<compile_context>
chip_gen: v5e
topology: v5e:2x2
jax: 0.10.0
libtpu: 0.0.40
codegen_flags: <defaults>
</compile_context>

<pallas_src>
import functools
import math

import jax
import jax.numpy as jnp
from jax.experimental import pallas as pl
from jax.experimental.pallas import tpu as pltpu


_VMEM_LIMIT = 48 * 1024 * 1024  # raise v5e's 16 MiB default, stay under v7x physical


# ----------------------------------------------------------------------------
# Pallas kernels
# ----------------------------------------------------------------------------
def _make_matmul_kernel(act):
    def kernel(a_ref, b_ref, bias_ref, o_ref):
        y = jnp.dot(
            a_ref[...].astype(jnp.bfloat16),
            b_ref[...],
            preferred_element_type=jnp.float32,
        ) + bias_ref[...]
        if act == "relu":
            y = jnp.maximum(y, 0.0)
        elif act == "sigmoid":
            y = jax.nn.sigmoid(y)
        o_ref[...] = y

    return kernel


def pallas_matmul_bias(a, bm, bias, act=None):
    """a: (M, K), bm: (K, N), bias: (N,) -> (M, N) f32 with fused bias (+act)."""
    M, K = a.shape
    _, N = bm.shape
    TM = min(256, M)
    grid_m = pl.cdiv(M, TM)
    bias2 = bias.reshape(1, N).astype(jnp.float32)
    return pl.pallas_call(
        _make_matmul_kernel(act),
        out_shape=jax.ShapeDtypeStruct((M, N), jnp.float32),
        grid=(grid_m,),
        in_specs=[
            pl.BlockSpec((TM, K), lambda i: (i, 0)),
            pl.BlockSpec((K, N), lambda i: (0, 0)),
            pl.BlockSpec((1, N), lambda i: (0, 0)),
        ],
        out_specs=pl.BlockSpec((TM, N), lambda i: (i, 0)),
        compiler_params=pltpu.CompilerParams(
            dimension_semantics=("parallel",),
            vmem_limit_bytes=_VMEM_LIMIT,
        ),
    )(a, bm.astype(jnp.bfloat16), bias2)


def _make_dw_kernel(K, H, WC, C, WpC):
    def dw_kernel(x_ref, w_ref, b_ref, o_ref):
        # x_ref: (Hp, Wp*C) lane-dense padded image; w_ref: (K*K, W*C); b_ref: (1, W*C)
        x = x_ref[...]
        acc = jnp.zeros((H, WC), jnp.float32)
        for kw in range(K):
            # shift by kw*C lanes (no wrap enters the kept [:WC] region)
            xw = pltpu.roll(x, shift=WpC - kw * C, axis=1) if kw else x
            for kh in range(K):
                idx = kh * K + kw
                acc = acc + xw[kh:kh + H, :WC] * w_ref[idx:idx + 1, :]
        o_ref[...] = acc + b_ref[...]

    return dw_kernel


def depthwise_conv2d(x, w, b, k):
    """Depthwise kxk conv, stride 1, reflect padding k//2.

    x: (B, H, W, C); w: (C, 1, k, k) (PyTorch layout); b: (C,)
    Lane-dense (H, W*C) packing; W-taps via pltpu.roll on the XLU.
    """
    B, H, W, C = x.shape
    p = k // 2
    xp = jnp.pad(x, ((0, 0), (p, p), (p, p), (0, 0)), mode="reflect")
    Hp, Wp = H + 2 * p, W + 2 * p
    WpC, WC = Wp * C, W * C
    xp = xp.reshape(B, Hp, WpC)                                # metadata-only reshape
    wt = jnp.transpose(w[:, 0], (1, 2, 0)).reshape(k * k, C)   # (k*k, C)
    wk = jnp.tile(wt, (1, W))                                  # (k*k, W*C) lane layout
    bias = jnp.tile(b, W).reshape(1, WC)
    kern = _make_dw_kernel(k, H, WC, C, WpC)
    # TODO(synk): at large resolutions (v7x 64 MiB VMEM) tile over H with a 2p-row halo;
    # whole-image-per-batch blocks are fine at these test shapes.
    out = pl.pallas_call(
        kern,
        out_shape=jax.ShapeDtypeStruct((B, H, WC), jnp.float32),
        grid=(B,),
        in_specs=[
            pl.BlockSpec((None, Hp, WpC), lambda bi: (bi, 0, 0)),
            pl.BlockSpec((k * k, WC), lambda bi: (0, 0)),
            pl.BlockSpec((1, WC), lambda bi: (0, 0)),
        ],
        out_specs=pl.BlockSpec((None, H, WC), lambda bi: (bi, 0, 0)),
        compiler_params=pltpu.CompilerParams(
            dimension_semantics=("parallel",),
            vmem_limit_bytes=_VMEM_LIMIT,
        ),
    )(xp, wk, bias)
    return out.reshape(B, H, W, C)


def _gate_proj_kernel(x1_ref, x2_ref, g_ref, w_ref, b_ref, o_ref):
    # g_ref already holds sigmoid(gate conv) — fused in the gate conv epilogue.
    g = g_ref[...]
    gated = x1_ref[...] * g[:, 0:1] + x2_ref[...] * g[:, 1:2]
    o_ref[...] = jnp.dot(
        gated.astype(jnp.bfloat16), w_ref[...], preferred_element_type=jnp.float32
    ) + b_ref[...]


def gate_proj_combine(x1, x2, g, w, b):
    """out = proj_1x1(x1 * g[...,0] + x2 * g[...,1]) fused in one Pallas kernel."""
    B, H, W, C = x1.shape
    M = B * H * W
    Cout = w.shape[0]
    wm = jnp.transpose(w[:, :, 0, 0]).astype(jnp.bfloat16)   # (Cin, Cout)
    bias = b.reshape(1, Cout).astype(jnp.float32)
    TM = min(256, M)
    out = pl.pallas_call(
        _gate_proj_kernel,
        out_shape=jax.ShapeDtypeStruct((M, Cout), jnp.float32),
        grid=(pl.cdiv(M, TM),),
        in_specs=[
            pl.BlockSpec((TM, C), lambda i: (i, 0)),
            pl.BlockSpec((TM, C), lambda i: (i, 0)),
            pl.BlockSpec((TM, 3), lambda i: (i, 0)),
            pl.BlockSpec((C, Cout), lambda i: (0, 0)),
            pl.BlockSpec((1, Cout), lambda i: (0, 0)),
        ],
        out_specs=pl.BlockSpec((TM, Cout), lambda i: (i, 0)),
        compiler_params=pltpu.CompilerParams(
            dimension_semantics=("parallel",),
            vmem_limit_bytes=_VMEM_LIMIT,
        ),
    )(x1.reshape(M, C), x2.reshape(M, C), g.reshape(M, 3), wm, bias)
    return out.reshape(B, H, W, Cout)


# ----------------------------------------------------------------------------
# Conv wrapper (im2col glue + Pallas matmul)
# ----------------------------------------------------------------------------
def conv2d(x, w, b=None, stride=1, padding=0, dilation=1, pad_mode="zeros", act=None):
    """General conv. x: (B,H,W,Cin); w: (Cout,Cin,KH,KW); b: (Cout,) or None."""
    B, H, W, Cin = x.shape
    Cout, _, KH, KW = w.shape
    if padding > 0:
        mode = "reflect" if pad_mode == "reflect" else "constant"
        x = jnp.pad(x, ((0, 0), (padding, padding), (padding, padding), (0, 0)), mode=mode)
    Hp, Wp = x.shape[1], x.shape[2]
    OH = (Hp - dilation * (KH - 1) - 1) // stride + 1
    OW = (Wp - dilation * (KW - 1) - 1) // stride + 1
    if KH == 1 and KW == 1 and stride == 1:
        # pure reshape, no im2col copy; cast to bf16 happens inside the kernel
        a = x.reshape(B * OH * OW, Cin)
    else:
        patches = []
        for kh in range(KH):
            for kw in range(KW):
                hs, ws = kh * dilation, kw * dilation
                sl = x[:, hs:hs + stride * (OH - 1) + 1:stride,
                          ws:ws + stride * (OW - 1) + 1:stride, :]
                patches.append(sl.astype(jnp.bfloat16))       # materialize im2col in bf16
        a = jnp.stack(patches, axis=3).reshape(B * OH * OW, KH * KW * Cin)
    bm = jnp.transpose(w, (2, 3, 1, 0)).reshape(KH * KW * Cin, Cout)
    bias = b if b is not None else jnp.zeros((Cout,), jnp.float32)
    out = pallas_matmul_bias(a, bm, bias, act=act)
    return out.reshape(B, OH, OW, Cout)


def pixel_shuffle(x, r):
    if r == 1:
        return x
    B, H, W, Cr2 = x.shape
    C = Cr2 // (r * r)
    x = x.reshape(B, H, W, C, r, r)
    x = jnp.transpose(x, (0, 1, 4, 2, 5, 3))
    return x.reshape(B, H * r, W * r, C)


def instance_norm(x, gamma, beta, eps=1e-5):
    mean = jnp.mean(x, axis=(1, 2), keepdims=True)
    var = jnp.mean((x - mean) ** 2, axis=(1, 2), keepdims=True)
    return (x - mean) / jnp.sqrt(var + eps) * gamma + beta


def batch_norm(x, eps=1e-5):
    # TODO(synk): matches training-mode BatchNorm2d(affine=False) of a freshly
    # constructed module (batch statistics, no running stats / affine).
    mean = jnp.mean(x, axis=(0, 1, 2), keepdims=True)
    var = jnp.mean((x - mean) ** 2, axis=(0, 1, 2), keepdims=True)
    return (x - mean) / jnp.sqrt(var + eps)


def mlp_1x1(x2d, w, b=None):
    """Tiny 1x1 conv on (B, C) pooled features -> plain XLA matmul (not worth a Pallas launch)."""
    y = jnp.dot(x2d, jnp.transpose(w[:, :, 0, 0]))
    if b is not None:
        y = y + b
    return y


# ----------------------------------------------------------------------------
# Parameter init (deterministic, synthetic)
# ----------------------------------------------------------------------------
class KeyGen:
    def __init__(self, key):
        self.key = key

    def __call__(self):
        self.key, k = jax.random.split(self.key)
        return k


def init_phdnet_params(key, kernel_size=3, base_dim=8, depths=(1, 1, 1)):
    assert len(depths) % 2 == 1
    stage_num = len(depths)
    half = stage_num // 2
    net_depth = sum(depths)
    embed_dims = [2 ** i * base_dim for i in range(half)]
    embed_dims = embed_dims + [2 ** half * base_dim] + embed_dims[::-1]
    kg = KeyGen(key)
    gain = (8 * net_depth) ** (-0.25)

    def conv_p(cout, cin, kh, kw, bias=True, use_gain=False):
        fan_in, fan_out = cin * kh * kw, cout * kh * kw
        std = math.sqrt(2.0 / float(fan_in + fan_out)) * (gain if use_gain else 1.0)
        w = jax.random.normal(kg(), (cout, cin, kh, kw), jnp.float32) * std
        return {"w": w, "b": jnp.zeros((cout,), jnp.float32) if bias else None}

    def convlayer_p(dim):
        return {
            "wv1_c1": conv_p(dim, dim, 1, 1, use_gain=True),
            "wv1_in_g": jnp.ones((dim,), jnp.float32),
            "wv1_in_b": jnp.zeros((dim,), jnp.float32),
            "wv1_dw": conv_p(dim, 1, kernel_size, kernel_size, use_gain=True),
            "wv2_c1": conv_p(dim, dim, 3, 3, use_gain=True),
            "wv2_in_g": jnp.ones((dim,), jnp.float32),
            "wv2_in_b": jnp.zeros((dim,), jnp.float32),
            "wv2_dw": conv_p(dim, 1, kernel_size, kernel_size, use_gain=True),
            "gate": conv_p(3, dim * 2, 3, 3, use_gain=True),
            "proj": conv_p(dim, dim, 1, 1, use_gain=True),
        }

    Cm = embed_dims[half]
    params = {
        "inconv": conv_p(embed_dims[0], 3, 3, 3),
        "layers": [
            [convlayer_p(embed_dims[i]) for _ in range(depths[i])]
            for i in range(stage_num)
        ],
        "downs": [conv_p(embed_dims[i + 1], embed_dims[i], 2, 2) for i in range(half)],
        "ups": [conv_p(embed_dims[i] * 4, embed_dims[i + 1], 1, 1) for i in range(half)],
        "skips": [conv_p(embed_dims[i], embed_dims[i], 1, 1) for i in range(half)],
        "fusions": [
            {
                "mlp1": conv_p(max(embed_dims[i] // 8, 4), embed_dims[i], 1, 1, bias=False),
                "mlp2": conv_p(embed_dims[i] * 2, max(embed_dims[i] // 8, 4), 1, 1, bias=False),
            }
            for i in range(half)
        ],
        "ka1": conv_p(Cm // 8, Cm, 1, 1),
        "ka2": conv_p(Cm, Cm // 8, 1, 1),
        "td1": conv_p(Cm, Cm, 3, 3),
        "td2": conv_p(Cm // 8, Cm, 3, 3),
        "td3": conv_p(Cm, Cm // 8, 3, 3),
        "outconv": conv_p(3, embed_dims[-1], 3, 3),
    }
    cfg = {
        "kernel_size": kernel_size,
        "stage_num": stage_num,
        "half_num": half,
        "embed_dims": embed_dims,
    }
    return params, cfg


# ----------------------------------------------------------------------------
# Model forward
# ----------------------------------------------------------------------------
def conv_layer_forward(p, x, k):
    # Wv1: 1x1 conv -> InstanceNorm -> ReLU -> depthwise kxk (reflect)
    y = conv2d(x, p["wv1_c1"]["w"], p["wv1_c1"]["b"])
    y = jnp.maximum(instance_norm(y, p["wv1_in_g"], p["wv1_in_b"]), 0.0)
    x1 = depthwise_conv2d(y, p["wv1_dw"]["w"], p["wv1_dw"]["b"], k)
    # Wv2: 3x3 dilated(2) conv -> InstanceNorm -> ReLU -> depthwise kxk (reflect)
    y = conv2d(x, p["wv2_c1"]["w"], p["wv2_c1"]["b"], padding=2, dilation=2)
    y = jnp.maximum(instance_norm(y, p["wv2_in_g"], p["wv2_in_b"]), 0.0)
    x2 = depthwise_conv2d(y, p["wv2_dw"]["w"], p["wv2_dw"]["b"], k)
    # gate conv (sigmoid fused in epilogue) -> fused gating + proj 1x1 kernel
    g = conv2d(jnp.concatenate([x1, x2], axis=-1), p["gate"]["w"], p["gate"]["b"],
               padding=1, act="sigmoid")
    return gate_proj_combine(x1, x2, g, p["proj"]["w"], p["proj"]["b"])


def basic_layer_forward(blocks, x, k):
    for blk in blocks:
        identity = x
        x = batch_norm(x)
        x = conv_layer_forward(blk, x, k)
        x = identity + x
    return x


def sk_fusion_forward(p, feats):
    B, H, W, C = feats[0].shape
    stacked = jnp.stack(feats, axis=1)                 # (B, 2, H, W, C)
    feats_sum = jnp.sum(stacked, axis=1)
    pooled = jnp.mean(feats_sum, axis=(1, 2))          # (B, C) — tiny, stays in XLA
    a = jnp.maximum(mlp_1x1(pooled, p["mlp1"]["w"]), 0.0)
    a = mlp_1x1(a, p["mlp2"]["w"])                     # (B, 2C)
    attn = jax.nn.softmax(a.reshape(B, 2, C), axis=1).reshape(B, 2, 1, 1, C)
    return jnp.sum(stacked * attn, axis=1)


def phdnet_forward(params, x, cfg):
    k = cfg["kernel_size"]
    half = cfg["half_num"]
    stage = cfg["stage_num"]

    feat = conv2d(x, params["inconv"]["w"], params["inconv"]["b"],
                  padding=1, pad_mode="reflect")
    skips = []
    for i in range(half):
        feat = basic_layer_forward(params["layers"][i], feat, k)
        skips.append(conv2d(feat, params["skips"][i]["w"], params["skips"][i]["b"]))
        feat = conv2d(feat, params["downs"][i]["w"], params["downs"][i]["b"], stride=2)

    feat = basic_layer_forward(params["layers"][half], feat, k)

    # ka branch (global avg pool -> tiny 1x1 MLP -> sigmoid) — plain XLA matmuls
    B, _, _, Cm = feat.shape
    pooled = jnp.mean(feat, axis=(1, 2))                               # (B, Cm)
    h = jnp.maximum(mlp_1x1(pooled, params["ka1"]["w"], params["ka1"]["b"]), 0.0)
    a = jax.nn.sigmoid(mlp_1x1(h, params["ka2"]["w"], params["ka2"]["b"]))
    a = a.reshape(B, 1, 1, Cm)
    # td branch (ReLU / sigmoid fused into the conv matmul epilogues)
    t = conv2d(feat, params["td1"]["w"], params["td1"]["b"], padding=1)
    t = conv2d(t, params["td2"]["w"], params["td2"]["b"], padding=1, act="relu")
    t = conv2d(t, params["td3"]["w"], params["td3"]["b"], padding=1, act="sigmoid")

    airminushazy = a - feat
    feat = (1.0 / t - 1.0) * airminushazy

    for i in range(half - 1, -1, -1):
        feat = conv2d(feat, params["ups"][i]["w"], params["ups"][i]["b"])
        feat = pixel_shuffle(feat, 2)
        feat = sk_fusion_forward(params["fusions"][i], [feat, skips[i]])
        feat = basic_layer_forward(params["layers"][stage - i - 1], feat, k)

    residual = conv2d(feat, params["outconv"]["w"], params["outconv"]["b"],
                      padding=1, pad_mode="reflect")
    clean_image = x - residual
    return clean_image


# ----------------------------------------------------------------------------
if __name__ == "__main__":
    key = jax.random.PRNGKey(0)
    pkey, xkey = jax.random.split(key)

    # Small PhDnet: depths=(1,1,1) -> stage_num=3, half_num=1, embed_dims=[8,16,8]
    params, cfg = init_phdnet_params(pkey, kernel_size=3, base_dim=8, depths=(1, 1, 1))

    # layout: NHWC input (equivalent PyTorch NCHW input would be (2, 3, 16, 16))
    x = jax.random.normal(xkey, (2, 16, 16, 3), jnp.float32)

    fwd = jax.jit(functools.partial(phdnet_forward, cfg=cfg))
    out = jax.block_until_ready(fwd(params, x))

    assert out.shape == x.shape, out.shape
    assert bool(jnp.all(jnp.isfinite(out)))
    print("KERNEL_OK")
</pallas_src>

<mosaic_0001>
module attributes {stable_mosaic.version = 11 : i64} {
  func.func @kernel(%arg0: i32, %arg1: memref<256x27xbf16, #tpu.memory_space<vmem>>, %arg2: memref<27x8xbf16, #tpu.memory_space<vmem>>, %arg3: memref<1x8xf32, #tpu.memory_space<vmem>>, %arg4: memref<256x8xf32, #tpu.memory_space<vmem>>) attributes {dimension_semantics = [#tpu.dimension_semantics<parallel>], iteration_bounds = array<i64: 2>, scalar_prefetch = 0 : i64, scratch_operands = 0 : i64, tpu.core_type = #tpu.core_type<tc>, window_params = [{transform_indices = @transform_0, window_bounds = array<i64: 256, 27>}, {pipeline_mode = #tpu.pipeline_mode<synchronous>, transform_indices = @transform_1, window_bounds = array<i64: 27, 8>}, {pipeline_mode = #tpu.pipeline_mode<synchronous>, transform_indices = @transform_2, window_bounds = array<i64: 1, 8>}, {transform_indices = @transform_3, window_bounds = array<i64: 256, 8>}]} {
    %c0 = arith.constant 0 : index
    %c0_0 = arith.constant 0 : index
    %0 = vector.load %arg1[%c0, %c0_0] : memref<256x27xbf16, #tpu.memory_space<vmem>>, vector<256x27xbf16>
    %c0_1 = arith.constant 0 : index
    %c0_2 = arith.constant 0 : index
    %1 = vector.load %arg2[%c0_1, %c0_2] : memref<27x8xbf16, #tpu.memory_space<vmem>>, vector<27x8xbf16>
    %cst = arith.constant dense<0.000000e+00> : vector<256x8xf32>
    %2 = tpu.matmul %0, %1, %cst {dimension_numbers = #tpu.dot_dimension_numbers<[1], [0], [0], [1], [0, 0, 1, 1], [], []>} : vector<256x27xbf16>, vector<27x8xbf16>, vector<256x8xf32> -> vector<256x8xf32>
    %c0_3 = arith.constant 0 : index
    %c0_4 = arith.constant 0 : index
    %3 = vector.load %arg3[%c0_3, %c0_4] : memref<1x8xf32, #tpu.memory_space<vmem>>, vector<1x8xf32>
    %4 = vector.broadcast %3 : vector<1x8xf32> to vector<256x8xf32>
    %5 = arith.addf %2, %4 : vector<256x8xf32>
    %c0_5 = arith.constant 0 : index
    %c0_6 = arith.constant 0 : index
    %6 = vector.load %arg4[%c0_5, %c0_6] : memref<256x8xf32, #tpu.memory_space<vmem>>, vector<256x8xf32>
    tpu.vector_store %arg4[%c0_5, %c0_6], %5 {strides = array<i32>} : memref<256x8xf32, #tpu.memory_space<vmem>>, vector<256x8xf32>,
    return
  }
  func.func @transform_0(%arg0: i32) -> (i32, i32) {
    %c0_i32 = arith.constant 0 : i32
    %c0_i32_0 = arith.constant 0 : i32
    return %arg0, %c0_i32 : i32, i32
  }
  func.func @transform_1(%arg0: i32) -> (i32, i32) {
    %c0_i32 = arith.constant 0 : i32
    %c0_i32_0 = arith.constant 0 : i32
    %c0_i32_1 = arith.constant 0 : i32
    return %c0_i32, %c0_i32_0 : i32, i32
  }
  func.func @transform_2(%arg0: i32) -> (i32, i32) {
    %c0_i32 = arith.constant 0 : i32
    %c0_i32_0 = arith.constant 0 : i32
    %c0_i32_1 = arith.constant 0 : i32
    return %c0_i32, %c0_i32_0 : i32, i32
  }
  func.func @transform_3(%arg0: i32) -> (i32, i32) {
    %c0_i32 = arith.constant 0 : i32
    %c0_i32_0 = arith.constant 0 : i32
    return %arg0, %c0_i32 : i32, i32
  }
}

module attributes {stable_mosaic.version = 11 : i64} {
  func.func @kernel(%arg0: i32, %arg1: memref<256x72xbf16, #tpu.memory_space<vmem>>, %arg2: memref<72x8xbf16, #tpu.memory_space<vmem>>, %arg3: memref<1x8xf32, #tpu.memory_space<vmem>>, %arg4: memref<256x8xf32, #tpu.memory_space<vmem>>) attributes {dimension_semantics = [#tpu.dimension_semantics<parallel>], iteration_bounds = array<i64: 2>, scalar_prefetch = 0 : i64, scratch_operands = 0 : i64, tpu.core_type = #tpu.core_type<tc>, window_params = [{transform_indices = @transform_0, window_bounds = array<i64: 256, 72>}, {pipeline_mode = #tpu.pipeline_mode<synchronous>, transform_indices = @transform_1, window_bounds = array<i64: 72, 8>}, {pipeline_mode = #tpu.pipeline_mode<synchronous>, transform_indices = @transform_2, window_bounds = array<i64: 1, 8>}, {transform_indices = @transform_3, window_bounds = array<i64: 256, 8>}]} {
    %c0 = arith.constant 0 : index
    %c0_0 = arith.constant 0 : index
    %0 = vector.load %arg1[%c0, %c0_0] : memref<256x72xbf16, #tpu.memory_space<vmem>>, vector<256x72xbf16>
    %c0_1 = arith.constant 0 : index
    %c0_2 = arith.constant 0 : index
    %1 = vector.load %arg2[%c0_1, %c0_2] : memref<72x8xbf16, #tpu.memory_space<vmem>>, vector<72x8xbf16>
    %cst = arith.constant dense<0.000000e+00> : vector<256x8xf32>
    %2 = tpu.matmul %0, %1, %cst {dimension_numbers = #tpu.dot_dimension_numbers<[1], [0], [0], [1], [0, 0, 1, 1], [], []>} : vector<256x72xbf16>, vector<72x8xbf16>, vector<256x8xf32> -> vector<256x8xf32>
    %c0_3 = arith.constant 0 : index
    %c0_4 = arith.constant 0 : index
    %3 = vector.load %arg3[%c0_3, %c0_4] : memref<1x8xf32, #tpu.memory_space<vmem>>, vector<1x8xf32>
    %4 = vector.broadcast %3 : vector<1x8xf32> to vector<256x8xf32>
    %5 = arith.addf %2, %4 : vector<256x8xf32>
    %c0_5 = arith.constant 0 : index
    %c0_6 = arith.constant 0 : index
    %6 = vector.load %arg4[%c0_5, %c0_6] : memref<256x8xf32, #tpu.memory_space<vmem>>, vector<256x8xf32>
    tpu.vector_store %arg4[%c0_5, %c0_6], %5 {strides = array<i32>} : memref<256x8xf32, #tpu.memory_space<vmem>>, vector<256x8xf32>,
    return
  }
  func.func @transform_0(%arg0: i32) -> (i32, i32) {
    %c0_i32 = arith.constant 0 : i32
    %c0_i32_0 = arith.constant 0 : i32
    return %arg0, %c0_i32 : i32, i32
  }
  func.func @transform_1(%arg0: i32) -> (i32, i32) {
    %c0_i32 = arith.constant 0 : i32
    %c0_i32_0 = arith.constant 0 : i32
    %c0_i32_1 = arith.constant 0 : i32
    return %c0_i32, %c0_i32_0 : i32, i32
  }
  func.func @transform_2(%arg0: i32) -> (i32, i32) {
    %c0_i32 = arith.constant 0 : i32
    %c0_i32_0 = arith.constant 0 : i32
    %c0_i32_1 = arith.constant 0 : i32
    return %c0_i32, %c0_i32_0 : i32, i32
  }
  func.func @transform_3(%arg0: i32) -> (i32, i32) {
    %c0_i32 = arith.constant 0 : i32
    %c0_i32_0 = arith.constant 0 : i32
    return %arg0, %c0_i32 : i32, i32
  }
}

module attributes {stable_mosaic.version = 11 : i64} {
  func.func @dw_kernel(%arg0: i32, %arg1: memref<1x18x144xf32, #tpu.memory_space<vmem>>, %arg2: memref<9x128xf32, #tpu.memory_space<vmem>>, %arg3: memref<1x128xf32, #tpu.memory_space<vmem>>, %arg4: memref<1x16x128xf32, #tpu.memory_space<vmem>>) attributes {dimension_semantics = [#tpu.dimension_semantics<parallel>], iteration_bounds = array<i64: 2>, scalar_prefetch = 0 : i64, scratch_operands = 0 : i64, tpu.core_type = #tpu.core_type<tc>, window_params = [{transform_indices = @transform_0, window_bounds = array<i64: 1, 18, 144>}, {pipeline_mode = #tpu.pipeline_mode<synchronous>, transform_indices = @transform_1, window_bounds = array<i64: 9, 128>}, {pipeline_mode = #tpu.pipeline_mode<synchronous>, transform_indices = @transform_2, window_bounds = array<i64: 1, 128>}, {transform_indices = @transform_3, window_bounds = array<i64: 1, 16, 128>}]} {
    %c0 = arith.constant 0 : index
    %c0_0 = arith.constant 0 : index
    %c0_1 = arith.constant 0 : index
    %0 = vector.load %arg1[%c0, %c0_0, %c0_1] : memref<1x18x144xf32, #tpu.memory_space<vmem>>, vector<1x18x144xf32>
    %1 = vector.shape_cast %0 : vector<1x18x144xf32> to vector<18x144xf32>
    %cst = arith.constant 0.000000e+00 : f32
    %2 = vector.broadcast %cst : f32 to vector<16x128xf32>
    %3 = vector.extract_strided_slice %1 {offsets = [0, 0], sizes = [16, 128], strides = [1, 1]} : vector<18x144xf32> to vector<16x128xf32>
    %c0_2 = arith.constant 0 : index
    %c0_3 = arith.constant 0 : index
    %4 = vector.load %arg2[%c0_2, %c0_3] : memref<9x128xf32, #tpu.memory_space<vmem>>, vector<1x128xf32>
    %5 = vector.broadcast %4 : vector<1x128xf32> to vector<16x128xf32>
    %6 = arith.mulf %3, %5 : vector<16x128xf32>
    %7 = arith.addf %2, %6 : vector<16x128xf32>
    %8 = vector.extract_strided_slice %1 {offsets = [1, 0], sizes = [16, 128], strides = [1, 1]} : vector<18x144xf32> to vector<16x128xf32>
    %c3 = arith.constant 3 : index
    %c0_4 = arith.constant 0 : index
    %9 = vector.load %arg2[%c3, %c0_4] : memref<9x128xf32, #tpu.memory_space<vmem>>, vector<1x128xf32>
    %10 = vector.broadcast %9 : vector<1x128xf32> to vector<16x128xf32>
    %11 = arith.mulf %8, %10 : vector<16x128xf32>
    %12 = arith.addf %7, %11 : vector<16x128xf32>
    %13 = vector.extract_strided_slice %1 {offsets = [2, 0], sizes = [16, 128], strides = [1, 1]} : vector<18x144xf32> to vector<16x128xf32>
    %c6 = arith.constant 6 : index
    %c0_5 = arith.constant 0 : index
    %14 = vector.load %arg2[%c6, %c0_5] : memref<9x128xf32, #tpu.memory_space<vmem>>, vector<1x128xf32>
    %15 = vector.broadcast %14 : vector<1x128xf32> to vector<16x128xf32>
    %16 = arith.mulf %13, %15 : vector<16x128xf32>
    %17 = arith.addf %12, %16 : vector<16x128xf32>
    %c136_i32 = arith.constant 136 : i32
    %18 = tpu.dynamic_rotate %1 by %c136_i32 dim 1 : vector<18x144xf32>, i32 -> vector<18x144xf32>
    %19 = vector.extract_strided_slice %18 {offsets = [0, 0], sizes = [16, 128], strides = [1, 1]} : vector<18x144xf32> to vector<16x128xf32>
    %c1 = arith.constant 1 : index
    %c0_6 = arith.constant 0 : index
    %20 = vector.load %arg2[%c1, %c0_6] : memref<9x128xf32, #tpu.memory_space<vmem>>, vector<1x128xf32>
    %21 = vector.broadcast %20 : vector<1x128xf32> to vector<16x128xf32>
    %22 = arith.mulf %19, %21 : vector<16x128xf32>
    %23 = arith.addf %17, %22 : vector<16x128xf32>
    %24 = vector.extract_strided_slice %18 {offsets = [1, 0], sizes = [16, 128], strides = [1, 1]} : vector<18x144xf32> to vector<16x128xf32>
    %c4 = arith.constant 4 : index
    %c0_7 = arith.constant 0 : index
    %25 = vector.load %arg2[%c4, %c0_7] : memref<9x128xf32, #tpu.memory_space<vmem>>, vector<1x128xf32>
    %26 = vector.broadcast %25 : vector<1x128xf32> to vector<16x128xf32>
    %27 = arith.mulf %24, %26 : vector<16x128xf32>
    %28 = arith.addf %23, %27 : vector<16x128xf32>
    %29 = vector.extract_strided_slice %18 {offsets = [2, 0], sizes = [16, 128], strides = [1, 1]} : vector<18x144xf32> to vector<16x128xf32>
    %c7 = arith.constant 7 : index
    %c0_8 = arith.constant 0 : index
    %30 = vector.load %arg2[%c7, %c0_8] : memref<9x128xf32, #tpu.memory_space<vmem>>, vector<1x128xf32>
    %31 = vector.broadcast %30 : vector<1x128xf32> to vector<16x128xf32>
    %32 = arith.mulf %29, %31 : vector<16x128xf32>
    %33 = arith.addf %28, %32 : vector<16x128xf32>
    %c128_i32 = arith.constant 128 : i32
    %34 = tpu.dynamic_rotate %1 by %c128_i32 dim 1 : vector<18x144xf32>, i32 -> vector<18x144xf32>
    %35 = vector.extract_strided_slice %34 {offsets = [0, 0], sizes = [16, 128], strides = [1, 1]} : vector<18x144xf32> to vector<16x128xf32>
    %c2 = arith.constant 2 : index
    %c0_9 = arith.constant 0 : index
    %36 = vector.load %arg2[%c2, %c0_9] : memref<9x128xf32, #tpu.memory_space<vmem>>, vector<1x128xf32>
    %37 = vector.broadcast %36 : vector<1x128xf32> to vector<16x128xf32>
    %38 = arith.mulf %35, %37 : vector<16x128xf32>
    %39 = arith.addf %33, %38 : vector<16x128xf32>
    %40 = vector.extract_strided_slice %34 {offsets = [1, 0], sizes = [16, 128], strides = [1, 1]} : vector<18x144xf32> to vector<16x128xf32>
    %c5 = arith.constant 5 : index
    %c0_10 = arith.constant 0 : index
    %41 = vector.load %arg2[%c5, %c0_10] : memref<9x128xf32, #tpu.memory_space<vmem>>, vector<1x128xf32>
    %42 = vector.broadcast %41 : vector<1x128xf32> to vector<16x128xf32>
    %43 = arith.mulf %40, %42 : vector<16x128xf32>
    %44 = arith.addf %39, %43 : vector<16x128xf32>
    %45 = vector.extract_strided_slice %34 {offsets = [2, 0], sizes = [16, 128], strides = [1, 1]} : vector<18x144xf32> to vector<16x128xf32>
    %c8 = arith.constant 8 : index
    %c0_11 = arith.constant 0 : index
    %46 = vector.load %arg2[%c8, %c0_11] : memref<9x128xf32, #tpu.memory_space<vmem>>, vector<1x128xf32>
    %47 = vector.broadcast %46 : vector<1x128xf32> to vector<16x128xf32>
    %48 = arith.mulf %45, %47 : vector<16x128xf32>
    %49 = arith.addf %44, %48 : vector<16x128xf32>
    %c0_12 = arith.constant 0 : index
    %c0_13 = arith.constant 0 : index
    %50 = vector.load %arg3[%c0_12, %c0_13] : memref<1x128xf32, #tpu.memory_space<vmem>>, vector<1x128xf32>
    %51 = vector.broadcast %50 : vector<1x128xf32> to vector<16x128xf32>
    %52 = arith.addf %49, %51 : vector<16x128xf32>
    %c0_14 = arith.constant 0 : index
    %c0_15 = arith.constant 0 : index
    %c0_16 = arith.constant 0 : index
    %53 = vector.load %arg4[%c0_14, %c0_15, %c0_16] : memref<1x16x128xf32, #tpu.memory_space<vmem>>, vector<1x16x128xf32>
    %54 = vector.shape_cast %53 : vector<1x16x128xf32> to vector<16x128xf32>
    %55 = vector.shape_cast %52 : vector<16x128xf32> to vector<1x16x128xf32>
    tpu.vector_store %arg4[%c0_14, %c0_15, %c0_16], %55 {strides = array<i32>} : memref<1x16x128xf32, #tpu.memory_space<vmem>>, vector<1x16x128xf32>,
    return
  }
  func.func @transform_0(%arg0: i32) -> (i32, i32, i32) {
    %c0_i32 = arith.constant 0 : i32
    %c0_i32_0 = arith.constant 0 : i32
    %c0_i32_1 = arith.constant 0 : i32
    return %arg0, %c0_i32, %c0_i32_0 : i32, i32, i32
  }
  func.func @transform_1(%arg0: i32) -> (i32, i32) {
    %c0_i32 = arith.constant 0 : i32
    %c0_i32_0 = arith.constant 0 : i32
    %c0_i32_1 = arith.constant 0 : i32
    return %c0_i32, %c0_i32_0 : i32, i32
  }
  func.func @transform_2(%arg0: i32) -> (i32, i32) {
    %c0_i32 = arith.constant 0 : i32
    %c0_i32_0 = arith.constant 0 : i32
    %c0_i32_1 = arith.constant 0 : i32
    return %c0_i32, %c0_i32_0 : i32, i32
  }
  func.func @transform_3(%arg0: i32) -> (i32, i32, i32) {
    %c0_i32 = arith.constant 0 : i32
    %c0_i32_0 = arith.constant 0 : i32
    %c0_i32_1 = arith.constant 0 : i32
    return %arg0, %c0_i32, %c0_i32_0 : i32, i32, i32
  }
}

module attributes {stable_mosaic.version = 11 : i64} {
  func.func @kernel(%arg0: i32, %arg1: memref<256x8xf32, #tpu.memory_space<vmem>>, %arg2: memref<8x8xbf16, #tpu.memory_space<vmem>>, %arg3: memref<1x8xf32, #tpu.memory_space<vmem>>, %arg4: memref<256x8xf32, #tpu.memory_space<vmem>>) attributes {dimension_semantics = [#tpu.dimension_semantics<parallel>], iteration_bounds = array<i64: 2>, scalar_prefetch = 0 : i64, scratch_operands = 0 : i64, tpu.core_type = #tpu.core_type<tc>, window_params = [{transform_indices = @transform_0, window_bounds = array<i64: 256, 8>}, {pipeline_mode = #tpu.pipeline_mode<synchronous>, transform_indices = @transform_1, window_bounds = array<i64: 8, 8>}, {pipeline_mode = #tpu.pipeline_mode<synchronous>, transform_indices = @transform_2, window_bounds = array<i64: 1, 8>}, {transform_indices = @transform_3, window_bounds = array<i64: 256, 8>}]} {
    %c0 = arith.constant 0 : index
    %c0_0 = arith.constant 0 : index
    %0 = vector.load %arg1[%c0, %c0_0] : memref<256x8xf32, #tpu.memory_space<vmem>>, vector<256x8xf32>
    %1 = arith.truncf %0 : vector<256x8xf32> to vector<256x8xbf16>
    %c0_1 = arith.constant 0 : index
    %c0_2 = arith.constant 0 : index
    %2 = vector.load %arg2[%c0_1, %c0_2] : memref<8x8xbf16, #tpu.memory_space<vmem>>, vector<8x8xbf16>
    %cst = arith.constant dense<0.000000e+00> : vector<256x8xf32>
    %3 = tpu.matmul %1, %2, %cst {dimension_numbers = #tpu.dot_dimension_numbers<[1], [0], [0], [1], [0, 0, 1, 1], [], []>} : vector<256x8xbf16>, vector<8x8xbf16>, vector<256x8xf32> -> vector<256x8xf32>
    %c0_3 = arith.constant 0 : index
    %c0_4 = arith.constant 0 : index
    %4 = vector.load %arg3[%c0_3, %c0_4] : memref<1x8xf32, #tpu.memory_space<vmem>>, vector<1x8xf32>
    %5 = vector.broadcast %4 : vector<1x8xf32> to vector<256x8xf32>
    %6 = arith.addf %3, %5 : vector<256x8xf32>
    %c0_5 = arith.constant 0 : index
    %c0_6 = arith.constant 0 : index
    %7 = vector.load %arg4[%c0_5, %c0_6] : memref<256x8xf32, #tpu.memory_space<vmem>>, vector<256x8xf32>
    tpu.vector_store %arg4[%c0_5, %c0_6], %6 {strides = array<i32>} : memref<256x8xf32, #tpu.memory_space<vmem>>, vector<256x8xf32>,
    return
  }
  func.func @transform_0(%arg0: i32) -> (i32, i32) {
    %c0_i32 = arith.constant 0 : i32
    %c0_i32_0 = arith.constant 0 : i32
    return %arg0, %c0_i32 : i32, i32
  }
  func.func @transform_1(%arg0: i32) -> (i32, i32) {
    %c0_i32 = arith.constant 0 : i32
    %c0_i32_0 = arith.constant 0 : i32
    %c0_i32_1 = arith.constant 0 : i32
    return %c0_i32, %c0_i32_0 : i32, i32
  }
  func.func @transform_2(%arg0: i32) -> (i32, i32) {
    %c0_i32 = arith.constant 0 : i32
    %c0_i32_0 = arith.constant 0 : i32
    %c0_i32_1 = arith.constant 0 : i32
    return %c0_i32, %c0_i32_0 : i32, i32
  }
  func.func @transform_3(%arg0: i32) -> (i32, i32) {
    %c0_i32 = arith.constant 0 : i32
    %c0_i32_0 = arith.constant 0 : i32
    return %arg0, %c0_i32 : i32, i32
  }
}

module attributes {stable_mosaic.version = 11 : i64} {
  func.func @kernel(%arg0: i32, %arg1: memref<256x144xbf16, #tpu.memory_space<vmem>>, %arg2: memref<144x3xbf16, #tpu.memory_space<vmem>>, %arg3: memref<1x3xf32, #tpu.memory_space<vmem>>, %arg4: memref<256x3xf32, #tpu.memory_space<vmem>>) attributes {dimension_semantics = [#tpu.dimension_semantics<parallel>], iteration_bounds = array<i64: 2>, scalar_prefetch = 0 : i64, scratch_operands = 0 : i64, tpu.core_type = #tpu.core_type<tc>, window_params = [{transform_indices = @transform_0, window_bounds = array<i64: 256, 144>}, {pipeline_mode = #tpu.pipeline_mode<synchronous>, transform_indices = @transform_1, window_bounds = array<i64: 144, 3>}, {pipeline_mode = #tpu.pipeline_mode<synchronous>, transform_indices = @transform_2, window_bounds = array<i64: 1, 3>}, {transform_indices = @transform_3, window_bounds = array<i64: 256, 3>}]} {
    %c0 = arith.constant 0 : index
    %c0_0 = arith.constant 0 : index
    %0 = vector.load %arg1[%c0, %c0_0] : memref<256x144xbf16, #tpu.memory_space<vmem>>, vector<256x144xbf16>
    %c0_1 = arith.constant 0 : index
    %c0_2 = arith.constant 0 : index
    %1 = vector.load %arg2[%c0_1, %c0_2] : memref<144x3xbf16, #tpu.memory_space<vmem>>, vector<144x3xbf16>
    %cst = arith.constant dense<0.000000e+00> : vector<256x3xf32>
    %2 = tpu.matmul %0, %1, %cst {dimension_numbers = #tpu.dot_dimension_numbers<[1], [0], [0], [1], [0, 0, 1, 1], [], []>} : vector<256x144xbf16>, vector<144x3xbf16>, vector<256x3xf32> -> vector<256x3xf32>
    %c0_3 = arith.constant 0 : index
    %c0_4 = arith.constant 0 : index
    %3 = vector.load %arg3[%c0_3, %c0_4] : memref<1x3xf32, #tpu.memory_space<vmem>>, vector<1x3xf32>
    %4 = vector.broadcast %3 : vector<1x3xf32> to vector<256x3xf32>
    %5 = arith.addf %2, %4 : vector<256x3xf32>
    %6 = arith.negf %5 : vector<256x3xf32>
    %7 = math.exp %6 : vector<256x3xf32>
    %cst_5 = arith.constant 1.000000e+00 : f32
    %8 = vector.broadcast %cst_5 : f32 to vector<256x3xf32>
    %9 = arith.addf %8, %7 : vector<256x3xf32>
    %10 = arith.divf %8, %9 : vector<256x3xf32>
    %c0_6 = arith.constant 0 : index
    %c0_7 = arith.constant 0 : index
    %11 = vector.load %arg4[%c0_6, %c0_7] : memref<256x3xf32, #tpu.memory_space<vmem>>, vector<256x3xf32>
    tpu.vector_store %arg4[%c0_6, %c0_7], %10 {strides = array<i32>} : memref<256x3xf32, #tpu.memory_space<vmem>>, vector<256x3xf32>,
    return
  }
  func.func @transform_0(%arg0: i32) -> (i32, i32) {
    %c0_i32 = arith.constant 0 : i32
    %c0_i32_0 = arith.constant 0 : i32
    return %arg0, %c0_i32 : i32, i32
  }
  func.func @transform_1(%arg0: i32) -> (i32, i32) {
    %c0_i32 = arith.constant 0 : i32
    %c0_i32_0 = arith.constant 0 : i32
    %c0_i32_1 = arith.constant 0 : i32
    return %c0_i32, %c0_i32_0 : i32, i32
  }
  func.func @transform_2(%arg0: i32) -> (i32, i32) {
    %c0_i32 = arith.constant 0 : i32
    %c0_i32_0 = arith.constant 0 : i32
    %c0_i32_1 = arith.constant 0 : i32
    return %c0_i32, %c0_i32_0 : i32, i32
  }
  func.func @transform_3(%arg0: i32) -> (i32, i32) {
    %c0_i32 = arith.constant 0 : i32
    %c0_i32_0 = arith.constant 0 : i32
    return %arg0, %c0_i32 : i32, i32
  }
}

module attributes {stable_mosaic.version = 11 : i64} {
  func.func @_gate_proj_kernel(%arg0: i32, %arg1: memref<256x8xf32, #tpu.memory_space<vmem>>, %arg2: memref<256x8xf32, #tpu.memory_space<vmem>>, %arg3: memref<256x3xf32, #tpu.memory_space<vmem>>, %arg4: memref<8x8xbf16, #tpu.memory_space<vmem>>, %arg5: memref<1x8xf32, #tpu.memory_space<vmem>>, %arg6: memref<256x8xf32, #tpu.memory_space<vmem>>) attributes {dimension_semantics = [#tpu.dimension_semantics<parallel>], iteration_bounds = array<i64: 2>, scalar_prefetch = 0 : i64, scratch_operands = 0 : i64, tpu.core_type = #tpu.core_type<tc>, window_params = [{transform_indices = @transform_0, window_bounds = array<i64: 256, 8>}, {transform_indices = @transform_1, window_bounds = array<i64: 256, 8>}, {transform_indices = @transform_2, window_bounds = array<i64: 256, 3>}, {pipeline_mode = #tpu.pipeline_mode<synchronous>, transform_indices = @transform_3, window_bounds = array<i64: 8, 8>}, {pipeline_mode = #tpu.pipeline_mode<synchronous>, transform_indices = @transform_4, window_bounds = array<i64: 1, 8>}, {transform_indices = @transform_5, window_bounds = array<i64: 256, 8>}]} {
    %c0 = arith.constant 0 : index
    %c0_0 = arith.constant 0 : index
    %0 = vector.load %arg3[%c0, %c0_0] : memref<256x3xf32, #tpu.memory_space<vmem>>, vector<256x3xf32>
    %c0_1 = arith.constant 0 : index
    %c0_2 = arith.constant 0 : index
    %1 = vector.load %arg1[%c0_1, %c0_2] : memref<256x8xf32, #tpu.memory_space<vmem>>, vector<256x8xf32>
    %2 = vector.extract_strided_slice %0 {offsets = [0, 0], sizes = [256, 1], strides = [1, 1]} : vector<256x3xf32> to vector<256x1xf32>
    %3 = vector.broadcast %2 : vector<256x1xf32> to vector<256x8xf32>
    %4 = arith.mulf %1, %3 : vector<256x8xf32>
    %c0_3 = arith.constant 0 : index
    %c0_4 = arith.constant 0 : index
    %5 = vector.load %arg2[%c0_3, %c0_4] : memref<256x8xf32, #tpu.memory_space<vmem>>, vector<256x8xf32>
    %6 = vector.extract_strided_slice %0 {offsets = [0, 1], sizes = [256, 1], strides = [1, 1]} : vector<256x3xf32> to vector<256x1xf32>
    %7 = vector.broadcast %6 : vector<256x1xf32> to vector<256x8xf32>
    %8 = arith.mulf %5, %7 : vector<256x8xf32>
    %9 = arith.addf %4, %8 : vector<256x8xf32>
    %10 = arith.truncf %9 : vector<256x8xf32> to vector<256x8xbf16>
    %c0_5 = arith.constant 0 : index
    %c0_6 = arith.constant 0 : index
    %11 = vector.load %arg4[%c0_5, %c0_6] : memref<8x8xbf16, #tpu.memory_space<vmem>>, vector<8x8xbf16>
    %cst = arith.constant dense<0.000000e+00> : vector<256x8xf32>
    %12 = tpu.matmul %10, %11, %cst {dimension_numbers = #tpu.dot_dimension_numbers<[1], [0], [0], [1], [0, 0, 1, 1], [], []>} : vector<256x8xbf16>, vector<8x8xbf16>, vector<256x8xf32> -> vector<256x8xf32>
    %c0_7 = arith.constant 0 : index
    %c0_8 = arith.constant 0 : index
    %13 = vector.load %arg5[%c0_7, %c0_8] : memref<1x8xf32, #tpu.memory_space<vmem>>, vector<1x8xf32>
    %14 = vector.broadcast %13 : vector<1x8xf32> to vector<256x8xf32>
    %15 = arith.addf %12, %14 : vector<256x8xf32>
    %c0_9 = arith.constant 0 : index
    %c0_10 = arith.constant 0 : index
    %16 = vector.load %arg6[%c0_9, %c0_10] : memref<256x8xf32, #tpu.memory_space<vmem>>, vector<256x8xf32>
    tpu.vector_store %arg6[%c0_9, %c0_10], %15 {strides = array<i32>} : memref<256x8xf32, #tpu.memory_space<vmem>>, vector<256x8xf32>,
    return
  }
  func.func @transform_0(%arg0: i32) -> (i32, i32) {
    %c0_i32 = arith.constant 0 : i32
    %c0_i32_0 = arith.constant 0 : i32
    return %arg0, %c0_i32 : i32, i32
  }
  func.func @transform_1(%arg0: i32) -> (i32, i32) {
    %c0_i32 = arith.constant 0 : i32
    %c0_i32_0 = arith.constant 0 : i32
    return %arg0, %c0_i32 : i32, i32
  }
  func.func @transform_2(%arg0: i32) -> (i32, i32) {
    %c0_i32 = arith.constant 0 : i32
    %c0_i32_0 = arith.constant 0 : i32
    return %arg0, %c0_i32 : i32, i32
  }
  func.func @transform_3(%arg0: i32) -> (i32, i32) {
    %c0_i32 = arith.constant 0 : i32
    %c0_i32_0 = arith.constant 0 : i32
    %c0_i32_1 = arith.constant 0 : i32
    return %c0_i32, %c0_i32_0 : i32, i32
  }
  func.func @transform_4(%arg0: i32) -> (i32, i32) {
    %c0_i32 = arith.constant 0 : i32
    %c0_i32_0 = arith.constant 0 : i32
    %c0_i32_1 = arith.constant 0 : i32
    return %c0_i32, %c0_i32_0 : i32, i32
  }
  func.func @transform_5(%arg0: i32) -> (i32, i32) {
    %c0_i32 = arith.constant 0 : i32
    %c0_i32_0 = arith.constant 0 : i32
    return %arg0, %c0_i32 : i32, i32
  }
}

module attributes {stable_mosaic.version = 11 : i64} {
  func.func @kernel(%arg0: i32, %arg1: memref<128x32xbf16, #tpu.memory_space<vmem>>, %arg2: memref<32x16xbf16, #tpu.memory_space<vmem>>, %arg3: memref<1x16xf32, #tpu.memory_space<vmem>>, %arg4: memref<128x16xf32, #tpu.memory_space<vmem>>) attributes {dimension_semantics = [#tpu.dimension_semantics<parallel>], iteration_bounds = array<i64: 1>, scalar_prefetch = 0 : i64, scratch_operands = 0 : i64, tpu.core_type = #tpu.core_type<tc>, window_params = [{transform_indices = @transform_0, window_bounds = array<i64: 128, 32>}, {pipeline_mode = #tpu.pipeline_mode<synchronous>, transform_indices = @transform_1, window_bounds = array<i64: 32, 16>}, {pipeline_mode = #tpu.pipeline_mode<synchronous>, transform_indices = @transform_2, window_bounds = array<i64: 1, 16>}, {transform_indices = @transform_3, window_bounds = array<i64: 128, 16>}]} {
    %c0 = arith.constant 0 : index
    %c0_0 = arith.constant 0 : index
    %0 = vector.load %arg1[%c0, %c0_0] : memref<128x32xbf16, #tpu.memory_space<vmem>>, vector<128x32xbf16>
    %c0_1 = arith.constant 0 : index
    %c0_2 = arith.constant 0 : index
    %1 = vector.load %arg2[%c0_1, %c0_2] : memref<32x16xbf16, #tpu.memory_space<vmem>>, vector<32x16xbf16>
    %cst = arith.constant dense<0.000000e+00> : vector<128x16xf32>
    %2 = tpu.matmul %0, %1, %cst {dimension_numbers = #tpu.dot_dimension_numbers<[1], [0], [0], [1], [0, 0, 1, 1], [], []>} : vector<128x32xbf16>, vector<32x16xbf16>, vector<128x16xf32> -> vector<128x16xf32>
    %c0_3 = arith.constant 0 : index
    %c0_4 = arith.constant 0 : index
    %3 = vector.load %arg3[%c0_3, %c0_4] : memref<1x16xf32, #tpu.memory_space<vmem>>, vector<1x16xf32>
    %4 = vector.broadcast %3 : vector<1x16xf32> to vector<128x16xf32>
    %5 = arith.addf %2, %4 : vector<128x16xf32>
    %c0_5 = arith.constant 0 : index
    %c0_6 = arith.constant 0 : index
    %6 = vector.load %arg4[%c0_5, %c0_6] : memref<128x16xf32, #tpu.memory_space<vmem>>, vector<128x16xf32>
    tpu.vector_store %arg4[%c0_5, %c0_6], %5 {strides = array<i32>} : memref<128x16xf32, #tpu.memory_space<vmem>>, vector<128x16xf32>,
    return
  }
  func.func @transform_0(%arg0: i32) -> (i32, i32) {
    %c0_i32 = arith.constant 0 : i32
    %c0_i32_0 = arith.constant 0 : i32
    return %arg0, %c0_i32 : i32, i32
  }
  func.func @transform_1(%arg0: i32) -> (i32, i32) {
    %c0_i32 = arith.constant 0 : i32
    %c0_i32_0 = arith.constant 0 : i32
    %c0_i32_1 = arith.constant 0 : i32
    return %c0_i32, %c0_i32_0 : i32, i32
  }
  func.func @transform_2(%arg0: i32) -> (i32, i32) {
    %c0_i32 = arith.constant 0 : i32
    %c0_i32_0 = arith.constant 0 : i32
    %c0_i32_1 = arith.constant 0 : i32
    return %c0_i32, %c0_i32_0 : i32, i32
  }
  func.func @transform_3(%arg0: i32) -> (i32, i32) {
    %c0_i32 = arith.constant 0 : i32
    %c0_i32_0 = arith.constant 0 : i32
    return %arg0, %c0_i32 : i32, i32
  }
}

module attributes {stable_mosaic.version = 11 : i64} {
  func.func @kernel(%arg0: i32, %arg1: memref<128x144xbf16, #tpu.memory_space<vmem>>, %arg2: memref<144x16xbf16, #tpu.memory_space<vmem>>, %arg3: memref<1x16xf32, #tpu.memory_space<vmem>>, %arg4: memref<128x16xf32, #tpu.memory_space<vmem>>) attributes {dimension_semantics = [#tpu.dimension_semantics<parallel>], iteration_bounds = array<i64: 1>, scalar_prefetch = 0 : i64, scratch_operands = 0 : i64, tpu.core_type = #tpu.core_type<tc>, window_params = [{transform_indices = @transform_0, window_bounds = array<i64: 128, 144>}, {pipeline_mode = #tpu.pipeline_mode<synchronous>, transform_indices = @transform_1, window_bounds = array<i64: 144, 16>}, {pipeline_mode = #tpu.pipeline_mode<synchronous>, transform_indices = @transform_2, window_bounds = array<i64: 1, 16>}, {transform_indices = @transform_3, window_bounds = array<i64: 128, 16>}]} {
    %c0 = arith.constant 0 : index
    %c0_0 = arith.constant 0 : index
    %0 = vector.load %arg1[%c0, %c0_0] : memref<128x144xbf16, #tpu.memory_space<vmem>>, vector<128x144xbf16>
    %c0_1 = arith.constant 0 : index
    %c0_2 = arith.constant 0 : index
    %1 = vector.load %arg2[%c0_1, %c0_2] : memref<144x16xbf16, #tpu.memory_space<vmem>>, vector<144x16xbf16>
    %cst = arith.constant dense<0.000000e+00> : vector<128x16xf32>
    %2 = tpu.matmul %0, %1, %cst {dimension_numbers = #tpu.dot_dimension_numbers<[1], [0], [0], [1], [0, 0, 1, 1], [], []>} : vector<128x144xbf16>, vector<144x16xbf16>, vector<128x16xf32> -> vector<128x16xf32>
    %c0_3 = arith.constant 0 : index
    %c0_4 = arith.constant 0 : index
    %3 = vector.load %arg3[%c0_3, %c0_4] : memref<1x16xf32, #tpu.memory_space<vmem>>, vector<1x16xf32>
    %4 = vector.broadcast %3 : vector<1x16xf32> to vector<128x16xf32>
    %5 = arith.addf %2, %4 : vector<128x16xf32>
    %c0_5 = arith.constant 0 : index
    %c0_6 = arith.constant 0 : index
    %6 = vector.load %arg4[%c0_5, %c0_6] : memref<128x16xf32, #tpu.memory_space<vmem>>, vector<128x16xf32>
    tpu.vector_store %arg4[%c0_5, %c0_6], %5 {strides = array<i32>} : memref<128x16xf32, #tpu.memory_space<vmem>>, vector<128x16xf32>,
    return
  }
  func.func @transform_0(%arg0: i32) -> (i32, i32) {
    %c0_i32 = arith.constant 0 : i32
    %c0_i32_0 = arith.constant 0 : i32
    return %arg0, %c0_i32 : i32, i32
  }
  func.func @transform_1(%arg0: i32) -> (i32, i32) {
    %c0_i32 = arith.constant 0 : i32
    %c0_i32_0 = arith.constant 0 : i32
    %c0_i32_1 = arith.constant 0 : i32
    return %c0_i32, %c0_i32_0 : i32, i32
  }
  func.func @transform_2(%arg0: i32) -> (i32, i32) {
    %c0_i32 = arith.constant 0 : i32
    %c0_i32_0 = arith.constant 0 : i32
    %c0_i32_1 = arith.constant 0 : i32
    return %c0_i32, %c0_i32_0 : i32, i32
  }
  func.func @transform_3(%arg0: i32) -> (i32, i32) {
    %c0_i32 = arith.constant 0 : i32
    %c0_i32_0 = arith.constant 0 : i32
    return %arg0, %c0_i32 : i32, i32
  }
}

module attributes {stable_mosaic.version = 11 : i64} {
  func.func @dw_kernel(%arg0: i32, %arg1: memref<1x10x160xf32, #tpu.memory_space<vmem>>, %arg2: memref<9x128xf32, #tpu.memory_space<vmem>>, %arg3: memref<1x128xf32, #tpu.memory_space<vmem>>, %arg4: memref<1x8x128xf32, #tpu.memory_space<vmem>>) attributes {dimension_semantics = [#tpu.dimension_semantics<parallel>], iteration_bounds = array<i64: 2>, scalar_prefetch = 0 : i64, scratch_operands = 0 : i64, tpu.core_type = #tpu.core_type<tc>, window_params = [{transform_indices = @transform_0, window_bounds = array<i64: 1, 10, 160>}, {pipeline_mode = #tpu.pipeline_mode<synchronous>, transform_indices = @transform_1, window_bounds = array<i64: 9, 128>}, {pipeline_mode = #tpu.pipeline_mode<synchronous>, transform_indices = @transform_2, window_bounds = array<i64: 1, 128>}, {transform_indices = @transform_3, window_bounds = array<i64: 1, 8, 128>}]} {
    %c0 = arith.constant 0 : index
    %c0_0 = arith.constant 0 : index
    %c0_1 = arith.constant 0 : index
    %0 = vector.load %arg1[%c0, %c0_0, %c0_1] : memref<1x10x160xf32, #tpu.memory_space<vmem>>, vector<1x10x160xf32>
    %1 = vector.shape_cast %0 : vector<1x10x160xf32> to vector<10x160xf32>
    %cst = arith.constant 0.000000e+00 : f32
    %2 = vector.broadcast %cst : f32 to vector<8x128xf32>
    %3 = vector.extract_strided_slice %1 {offsets = [0, 0], sizes = [8, 128], strides = [1, 1]} : vector<10x160xf32> to vector<8x128xf32>
    %c0_2 = arith.constant 0 : index
    %c0_3 = arith.constant 0 : index
    %4 = vector.load %arg2[%c0_2, %c0_3] : memref<9x128xf32, #tpu.memory_space<vmem>>, vector<1x128xf32>
    %5 = vector.broadcast %4 : vector<1x128xf32> to vector<8x128xf32>
    %6 = arith.mulf %3, %5 : vector<8x128xf32>
    %7 = arith.addf %2, %6 : vector<8x128xf32>
    %8 = vector.extract_strided_slice %1 {offsets = [1, 0], sizes = [8, 128], strides = [1, 1]} : vector<10x160xf32> to vector<8x128xf32>
    %c3 = arith.constant 3 : index
    %c0_4 = arith.constant 0 : index
    %9 = vector.load %arg2[%c3, %c0_4] : memref<9x128xf32, #tpu.memory_space<vmem>>, vector<1x128xf32>
    %10 = vector.broadcast %9 : vector<1x128xf32> to vector<8x128xf32>
    %11 = arith.mulf %8, %10 : vector<8x128xf32>
    %12 = arith.addf %7, %11 : vector<8x128xf32>
    %13 = vector.extract_strided_slice %1 {offsets = [2, 0], sizes = [8, 128], strides = [1, 1]} : vector<10x160xf32> to vector<8x128xf32>
    %c6 = arith.constant 6 : index
    %c0_5 = arith.constant 0 : index
    %14 = vector.load %arg2[%c6, %c0_5] : memref<9x128xf32, #tpu.memory_space<vmem>>, vector<1x128xf32>
    %15 = vector.broadcast %14 : vector<1x128xf32> to vector<8x128xf32>
    %16 = arith.mulf %13, %15 : vector<8x128xf32>
    %17 = arith.addf %12, %16 : vector<8x128xf32>
    %c144_i32 = arith.constant 144 : i32
    %18 = tpu.dynamic_rotate %1 by %c144_i32 dim 1 : vector<10x160xf32>, i32 -> vector<10x160xf32>
    %19 = vector.extract_strided_slice %18 {offsets = [0, 0], sizes = [8, 128], strides = [1, 1]} : vector<10x160xf32> to vector<8x128xf32>
    %c1 = arith.constant 1 : index
    %c0_6 = arith.constant 0 : index
    %20 = vector.load %arg2[%c1, %c0_6] : memref<9x128xf32, #tpu.memory_space<vmem>>, vector<1x128xf32>
    %21 = vector.broadcast %20 : vector<1x128xf32> to vector<8x128xf32>
    %22 = arith.mulf %19, %21 : vector<8x128xf32>
    %23 = arith.addf %17, %22 : vector<8x128xf32>
    %24 = vector.extract_strided_slice %18 {offsets = [1, 0], sizes = [8, 128], strides = [1, 1]} : vector<10x160xf32> to vector<8x128xf32>
    %c4 = arith.constant 4 : index
    %c0_7 = arith.constant 0 : index
    %25 = vector.load %arg2[%c4, %c0_7] : memref<9x128xf32, #tpu.memory_space<vmem>>, vector<1x128xf32>
    %26 = vector.broadcast %25 : vector<1x128xf32> to vector<8x128xf32>
    %27 = arith.mulf %24, %26 : vector<8x128xf32>
    %28 = arith.addf %23, %27 : vector<8x128xf32>
    %29 = vector.extract_strided_slice %18 {offsets = [2, 0], sizes = [8, 128], strides = [1, 1]} : vector<10x160xf32> to vector<8x128xf32>
    %c7 = arith.constant 7 : index
    %c0_8 = arith.constant 0 : index
    %30 = vector.load %arg2[%c7, %c0_8] : memref<9x128xf32, #tpu.memory_space<vmem>>, vector<1x128xf32>
    %31 = vector.broadcast %30 : vector<1x128xf32> to vector<8x128xf32>
    %32 = arith.mulf %29, %31 : vector<8x128xf32>
    %33 = arith.addf %28, %32 : vector<8x128xf32>
    %c128_i32 = arith.constant 128 : i32
    %34 = tpu.dynamic_rotate %1 by %c128_i32 dim 1 : vector<10x160xf32>, i32 -> vector<10x160xf32>
    %35 = vector.extract_strided_slice %34 {offsets = [0, 0], sizes = [8, 128], strides = [1, 1]} : vector<10x160xf32> to vector<8x128xf32>
    %c2 = arith.constant 2 : index
    %c0_9 = arith.constant 0 : index
    %36 = vector.load %arg2[%c2, %c0_9] : memref<9x128xf32, #tpu.memory_space<vmem>>, vector<1x128xf32>
    %37 = vector.broadcast %36 : vector<1x128xf32> to vector<8x128xf32>
    %38 = arith.mulf %35, %37 : vector<8x128xf32>
    %39 = arith.addf %33, %38 : vector<8x128xf32>
    %40 = vector.extract_strided_slice %34 {offsets = [1, 0], sizes = [8, 128], strides = [1, 1]} : vector<10x160xf32> to vector<8x128xf32>
    %c5 = arith.constant 5 : index
    %c0_10 = arith.constant 0 : index
    %41 = vector.load %arg2[%c5, %c0_10] : memref<9x128xf32, #tpu.memory_space<vmem>>, vector<1x128xf32>
    %42 = vector.broadcast %41 : vector<1x128xf32> to vector<8x128xf32>
    %43 = arith.mulf %40, %42 : vector<8x128xf32>
    %44 = arith.addf %39, %43 : vector<8x128xf32>
    %45 = vector.extract_strided_slice %34 {offsets = [2, 0], sizes = [8, 128], strides = [1, 1]} : vector<10x160xf32> to vector<8x128xf32>
    %c8 = arith.constant 8 : index
    %c0_11 = arith.constant 0 : index
    %46 = vector.load %arg2[%c8, %c0_11] : memref<9x128xf32, #tpu.memory_space<vmem>>, vector<1x128xf32>
    %47 = vector.broadcast %46 : vector<1x128xf32> to vector<8x128xf32>
    %48 = arith.mulf %45, %47 : vector<8x128xf32>
    %49 = arith.addf %44, %48 : vector<8x128xf32>
    %c0_12 = arith.constant 0 : index
    %c0_13 = arith.constant 0 : index
    %50 = vector.load %arg3[%c0_12, %c0_13] : memref<1x128xf32, #tpu.memory_space<vmem>>, vector<1x128xf32>
    %51 = vector.broadcast %50 : vector<1x128xf32> to vector<8x128xf32>
    %52 = arith.addf %49, %51 : vector<8x128xf32>
    %c0_14 = arith.constant 0 : index
    %c0_15 = arith.constant 0 : index
    %c0_16 = arith.constant 0 : index
    %53 = vector.load %arg4[%c0_14, %c0_15, %c0_16] : memref<1x8x128xf32, #tpu.memory_space<vmem>>, vector<1x8x128xf32>
    %54 = vector.shape_cast %53 : vector<1x8x128xf32> to vector<8x128xf32>
    %55 = vector.shape_cast %52 : vector<8x128xf32> to vector<1x8x128xf32>
    tpu.vector_store %arg4[%c0_14, %c0_15, %c0_16], %55 {strides = array<i32>} : memref<1x8x128xf32, #tpu.memory_space<vmem>>, vector<1x8x128xf32>,
    return
  }
  func.func @transform_0(%arg0: i32) -> (i32, i32, i32) {
    %c0_i32 = arith.constant 0 : i32
    %c0_i32_0 = arith.constant 0 : i32
    %c0_i32_1 = arith.constant 0 : i32
    return %arg0, %c0_i32, %c0_i32_0 : i32, i32, i32
  }
  func.func @transform_1(%arg0: i32) -> (i32, i32) {
    %c0_i32 = arith.constant 0 : i32
    %c0_i32_0 = arith.constant 0 : i32
    %c0_i32_1 = arith.constant 0 : i32
    return %c0_i32, %c0_i32_0 : i32, i32
  }
  func.func @transform_2(%arg0: i32) -> (i32, i32) {
    %c0_i32 = arith.constant 0 : i32
    %c0_i32_0 = arith.constant 0 : i32
    %c0_i32_1 = arith.constant 0 : i32
    return %c0_i32, %c0_i32_0 : i32, i32
  }
  func.func @transform_3(%arg0: i32) -> (i32, i32, i32) {
    %c0_i32 = arith.constant 0 : i32
    %c0_i32_0 = arith.constant 0 : i32
    %c0_i32_1 = arith.constant 0 : i32
    return %arg0, %c0_i32, %c0_i32_0 : i32, i32, i32
  }
}

module attributes {stable_mosaic.version = 11 : i64} {
  func.func @kernel(%arg0: i32, %arg1: memref<128x16xf32, #tpu.memory_space<vmem>>, %arg2: memref<16x16xbf16, #tpu.memory_space<vmem>>, %arg3: memref<1x16xf32, #tpu.memory_space<vmem>>, %arg4: memref<128x16xf32, #tpu.memory_space<vmem>>) attributes {dimension_semantics = [#tpu.dimension_semantics<parallel>], iteration_bounds = array<i64: 1>, scalar_prefetch = 0 : i64, scratch_operands = 0 : i64, tpu.core_type = #tpu.core_type<tc>, window_params = [{transform_indices = @transform_0, window_bounds = array<i64: 128, 16>}, {pipeline_mode = #tpu.pipeline_mode<synchronous>, transform_indices = @transform_1, window_bounds = array<i64: 16, 16>}, {pipeline_mode = #tpu.pipeline_mode<synchronous>, transform_indices = @transform_2, window_bounds = array<i64: 1, 16>}, {transform_indices = @transform_3, window_bounds = array<i64: 128, 16>}]} {
    %c0 = arith.constant 0 : index
    %c0_0 = arith.constant 0 : index
    %0 = vector.load %arg1[%c0, %c0_0] : memref<128x16xf32, #tpu.memory_space<vmem>>, vector<128x16xf32>
    %1 = arith.truncf %0 : vector<128x16xf32> to vector<128x16xbf16>
    %c0_1 = arith.constant 0 : index
    %c0_2 = arith.constant 0 : index
    %2 = vector.load %arg2[%c0_1, %c0_2] : memref<16x16xbf16, #tpu.memory_space<vmem>>, vector<16x16xbf16>
    %cst = arith.constant dense<0.000000e+00> : vector<128x16xf32>
    %3 = tpu.matmul %1, %2, %cst {dimension_numbers = #tpu.dot_dimension_numbers<[1], [0], [0], [1], [0, 0, 1, 1], [], []>} : vector<128x16xbf16>, vector<16x16xbf16>, vector<128x16xf32> -> vector<128x16xf32>
    %c0_3 = arith.constant 0 : index
    %c0_4 = arith.constant 0 : index
    %4 = vector.load %arg3[%c0_3, %c0_4] : memref<1x16xf32, #tpu.memory_space<vmem>>, vector<1x16xf32>
    %5 = vector.broadcast %4 : vector<1x16xf32> to vector<128x16xf32>
    %6 = arith.addf %3, %5 : vector<128x16xf32>
    %c0_5 = arith.constant 0 : index
    %c0_6 = arith.constant 0 : index
    %7 = vector.load %arg4[%c0_5, %c0_6] : memref<128x16xf32, #tpu.memory_space<vmem>>, vector<128x16xf32>
    tpu.vector_store %arg4[%c0_5, %c0_6], %6 {strides = array<i32>} : memref<128x16xf32, #tpu.memory_space<vmem>>, vector<128x16xf32>,
    return
  }
  func.func @transform_0(%arg0: i32) -> (i32, i32) {
    %c0_i32 = arith.constant 0 : i32
    %c0_i32_0 = arith.constant 0 : i32
    return %arg0, %c0_i32 : i32, i32
  }
  func.func @transform_1(%arg0: i32) -> (i32, i32) {
    %c0_i32 = arith.constant 0 : i32
    %c0_i32_0 = arith.constant 0 : i32
    %c0_i32_1 = arith.constant 0 : i32
    return %c0_i32, %c0_i32_0 : i32, i32
  }
  func.func @transform_2(%arg0: i32) -> (i32, i32) {
    %c0_i32 = arith.constant 0 : i32
    %c0_i32_0 = arith.constant 0 : i32
    %c0_i32_1 = arith.constant 0 : i32
    return %c0_i32, %c0_i32_0 : i32, i32
  }
  func.func @transform_3(%arg0: i32) -> (i32, i32) {
    %c0_i32 = arith.constant 0 : i32
    %c0_i32_0 = arith.constant 0 : i32
    return %arg0, %c0_i32 : i32, i32
  }
}

module attributes {stable_mosaic.version = 11 : i64} {
  func.func @kernel(%arg0: i32, %arg1: memref<128x288xbf16, #tpu.memory_space<vmem>>, %arg2: memref<288x3xbf16, #tpu.memory_space<vmem>>, %arg3: memref<1x3xf32, #tpu.memory_space<vmem>>, %arg4: memref<128x3xf32, #tpu.memory_space<vmem>>) attributes {dimension_semantics = [#tpu.dimension_semantics<parallel>], iteration_bounds = array<i64: 1>, scalar_prefetch = 0 : i64, scratch_operands = 0 : i64, tpu.core_type = #tpu.core_type<tc>, window_params = [{transform_indices = @transform_0, window_bounds = array<i64: 128, 288>}, {pipeline_mode = #tpu.pipeline_mode<synchronous>, transform_indices = @transform_1, window_bounds = array<i64: 288, 3>}, {pipeline_mode = #tpu.pipeline_mode<synchronous>, transform_indices = @transform_2, window_bounds = array<i64: 1, 3>}, {transform_indices = @transform_3, window_bounds = array<i64: 128, 3>}]} {
    %c0 = arith.constant 0 : index
    %c0_0 = arith.constant 0 : index
    %0 = vector.load %arg1[%c0, %c0_0] : memref<128x288xbf16, #tpu.memory_space<vmem>>, vector<128x288xbf16>
    %c0_1 = arith.constant 0 : index
    %c0_2 = arith.constant 0 : index
    %1 = vector.load %arg2[%c0_1, %c0_2] : memref<288x3xbf16, #tpu.memory_space<vmem>>, vector<288x3xbf16>
    %cst = arith.constant dense<0.000000e+00> : vector<128x3xf32>
    %2 = tpu.matmul %0, %1, %cst {dimension_numbers = #tpu.dot_dimension_numbers<[1], [0], [0], [1], [0, 0, 1, 1], [], []>} : vector<128x288xbf16>, vector<288x3xbf16>, vector<128x3xf32> -> vector<128x3xf32>
    %c0_3 = arith.constant 0 : index
    %c0_4 = arith.constant 0 : index
    %3 = vector.load %arg3[%c0_3, %c0_4] : memref<1x3xf32, #tpu.memory_space<vmem>>, vector<1x3xf32>
    %4 = vector.broadcast %3 : vector<1x3xf32> to vector<128x3xf32>
    %5 = arith.addf %2, %4 : vector<128x3xf32>
    %6 = arith.negf %5 : vector<128x3xf32>
    %7 = math.exp %6 : vector<128x3xf32>
    %cst_5 = arith.constant 1.000000e+00 : f32
    %8 = vector.broadcast %cst_5 : f32 to vector<128x3xf32>
    %9 = arith.addf %8, %7 : vector<128x3xf32>
    %10 = arith.divf %8, %9 : vector<128x3xf32>
    %c0_6 = arith.constant 0 : index
    %c0_7 = arith.constant 0 : index
    %11 = vector.load %arg4[%c0_6, %c0_7] : memref<128x3xf32, #tpu.memory_space<vmem>>, vector<128x3xf32>
    tpu.vector_store %arg4[%c0_6, %c0_7], %10 {strides = array<i32>} : memref<128x3xf32, #tpu.memory_space<vmem>>, vector<128x3xf32>,
    return
  }
  func.func @transform_0(%arg0: i32) -> (i32, i32) {
    %c0_i32 = arith.constant 0 : i32
    %c0_i32_0 = arith.constant 0 : i32
    return %arg0, %c0_i32 : i32, i32
  }
  func.func @transform_1(%arg0: i32) -> (i32, i32) {
    %c0_i32 = arith.constant 0 : i32
    %c0_i32_0 = arith.constant 0 : i32
    %c0_i32_1 = arith.constant 0 : i32
    return %c0_i32, %c0_i32_0 : i32, i32
  }
  func.func @transform_2(%arg0: i32) -> (i32, i32) {
    %c0_i32 = arith.constant 0 : i32
    %c0_i32_0 = arith.constant 0 : i32
    %c0_i32_1 = arith.constant 0 : i32
    return %c0_i32, %c0_i32_0 : i32, i32
  }
  func.func @transform_3(%arg0: i32) -> (i32, i32) {
    %c0_i32 = arith.constant 0 : i32
    %c0_i32_0 = arith.constant 0 : i32
    return %arg0, %c0_i32 : i32, i32
  }
}

module attributes {stable_mosaic.version = 11 : i64} {
  func.func @_gate_proj_kernel(%arg0: i32, %arg1: memref<128x16xf32, #tpu.memory_space<vmem>>, %arg2: memref<128x16xf32, #tpu.memory_space<vmem>>, %arg3: memref<128x3xf32, #tpu.memory_space<vmem>>, %arg4: memref<16x16xbf16, #tpu.memory_space<vmem>>, %arg5: memref<1x16xf32, #tpu.memory_space<vmem>>, %arg6: memref<128x16xf32, #tpu.memory_space<vmem>>) attributes {dimension_semantics = [#tpu.dimension_semantics<parallel>], iteration_bounds = array<i64: 1>, scalar_prefetch = 0 : i64, scratch_operands = 0 : i64, tpu.core_type = #tpu.core_type<tc>, window_params = [{transform_indices = @transform_0, window_bounds = array<i64: 128, 16>}, {transform_indices = @transform_1, window_bounds = array<i64: 128, 16>}, {transform_indices = @transform_2, window_bounds = array<i64: 128, 3>}, {pipeline_mode = #tpu.pipeline_mode<synchronous>, transform_indices = @transform_3, window_bounds = array<i64: 16, 16>}, {pipeline_mode = #tpu.pipeline_mode<synchronous>, transform_indices = @transform_4, window_bounds = array<i64: 1, 16>}, {transform_indices = @transform_5, window_bounds = array<i64: 128, 16>}]} {
    %c0 = arith.constant 0 : index
    %c0_0 = arith.constant 0 : index
    %0 = vector.load %arg3[%c0, %c0_0] : memref<128x3xf32, #tpu.memory_space<vmem>>, vector<128x3xf32>
    %c0_1 = arith.constant 0 : index
    %c0_2 = arith.constant 0 : index
    %1 = vector.load %arg1[%c0_1, %c0_2] : memref<128x16xf32, #tpu.memory_space<vmem>>, vector<128x16xf32>
    %2 = vector.extract_strided_slice %0 {offsets = [0, 0], sizes = [128, 1], strides = [1, 1]} : vector<128x3xf32> to vector<128x1xf32>
    %3 = vector.broadcast %2 : vector<128x1xf32> to vector<128x16xf32>
    %4 = arith.mulf %1, %3 : vector<128x16xf32>
    %c0_3 = arith.constant 0 : index
    %c0_4 = arith.constant 0 : index
    %5 = vector.load %arg2[%c0_3, %c0_4] : memref<128x16xf32, #tpu.memory_space<vmem>>, vector<128x16xf32>
    %6 = vector.extract_strided_slice %0 {offsets = [0, 1], sizes = [128, 1], strides = [1, 1]} : vector<128x3xf32> to vector<128x1xf32>
    %7 = vector.broadcast %6 : vector<128x1xf32> to vector<128x16xf32>
    %8 = arith.mulf %5, %7 : vector<128x16xf32>
    %9 = arith.addf %4, %8 : vector<128x16xf32>
    %10 = arith.truncf %9 : vector<128x16xf32> to vector<128x16xbf16>
    %c0_5 = arith.constant 0 : index
    %c0_6 = arith.constant 0 : index
    %11 = vector.load %arg4[%c0_5, %c0_6] : memref<16x16xbf16, #tpu.memory_space<vmem>>, vector<16x16xbf16>
    %cst = arith.constant dense<0.000000e+00> : vector<128x16xf32>
    %12 = tpu.matmul %10, %11, %cst {dimension_numbers = #tpu.dot_dimension_numbers<[1], [0], [0], [1], [0, 0, 1, 1], [], []>} : vector<128x16xbf16>, vector<16x16xbf16>, vector<128x16xf32> -> vector<128x16xf32>
    %c0_7 = arith.constant 0 : index
    %c0_8 = arith.constant 0 : index
    %13 = vector.load %arg5[%c0_7, %c0_8] : memref<1x16xf32, #tpu.memory_space<vmem>>, vector<1x16xf32>
    %14 = vector.broadcast %13 : vector<1x16xf32> to vector<128x16xf32>
    %15 = arith.addf %12, %14 : vector<128x16xf32>
    %c0_9 = arith.constant 0 : index
    %c0_10 = arith.constant 0 : index
    %16 = vector.load %arg6[%c0_9, %c0_10] : memref<128x16xf32, #tpu.memory_space<vmem>>, vector<128x16xf32>
    tpu.vector_store %arg6[%c0_9, %c0_10], %15 {strides = array<i32>} : memref<128x16xf32, #tpu.memory_space<vmem>>, vector<128x16xf32>,
    return
  }
  func.func @transform_0(%arg0: i32) -> (i32, i32) {
    %c0_i32 = arith.constant 0 : i32
    %c0_i32_0 = arith.constant 0 : i32
    return %arg0, %c0_i32 : i32, i32
  }
  func.func @transform_1(%arg0: i32) -> (i32, i32) {
    %c0_i32 = arith.constant 0 : i32
    %c0_i32_0 = arith.constant 0 : i32
    return %arg0, %c0_i32 : i32, i32
  }
  func.func @transform_2(%arg0: i32) -> (i32, i32) {
    %c0_i32 = arith.constant 0 : i32
    %c0_i32_0 = arith.constant 0 : i32
    return %arg0, %c0_i32 : i32, i32
  }
  func.func @transform_3(%arg0: i32) -> (i32, i32) {
    %c0_i32 = arith.constant 0 : i32
    %c0_i32_0 = arith.constant 0 : i32
    %c0_i32_1 = arith.constant 0 : i32
    return %c0_i32, %c0_i32_0 : i32, i32
  }
  func.func @transform_4(%arg0: i32) -> (i32, i32) {
    %c0_i32 = arith.constant 0 : i32
    %c0_i32_0 = arith.constant 0 : i32
    %c0_i32_1 = arith.constant 0 : i32
    return %c0_i32, %c0_i32_0 : i32, i32
  }
  func.func @transform_5(%arg0: i32) -> (i32, i32) {
    %c0_i32 = arith.constant 0 : i32
    %c0_i32_0 = arith.constant 0 : i32
    return %arg0, %c0_i32 : i32, i32
  }
}

module attributes {stable_mosaic.version = 11 : i64} {
  func.func @kernel(%arg0: i32, %arg1: memref<128x144xbf16, #tpu.memory_space<vmem>>, %arg2: memref<144x2xbf16, #tpu.memory_space<vmem>>, %arg3: memref<1x2xf32, #tpu.memory_space<vmem>>, %arg4: memref<128x2xf32, #tpu.memory_space<vmem>>) attributes {dimension_semantics = [#tpu.dimension_semantics<parallel>], iteration_bounds = array<i64: 1>, scalar_prefetch = 0 : i64, scratch_operands = 0 : i64, tpu.core_type = #tpu.core_type<tc>, window_params = [{transform_indices = @transform_0, window_bounds = array<i64: 128, 144>}, {pipeline_mode = #tpu.pipeline_mode<synchronous>, transform_indices = @transform_1, window_bounds = array<i64: 144, 2>}, {pipeline_mode = #tpu.pipeline_mode<synchronous>, transform_indices = @transform_2, window_bounds = array<i64: 1, 2>}, {transform_indices = @transform_3, window_bounds = array<i64: 128, 2>}]} {
    %c0 = arith.constant 0 : index
    %c0_0 = arith.constant 0 : index
    %0 = vector.load %arg1[%c0, %c0_0] : memref<128x144xbf16, #tpu.memory_space<vmem>>, vector<128x144xbf16>
    %c0_1 = arith.constant 0 : index
    %c0_2 = arith.constant 0 : index
    %1 = vector.load %arg2[%c0_1, %c0_2] : memref<144x2xbf16, #tpu.memory_space<vmem>>, vector<144x2xbf16>
    %cst = arith.constant dense<0.000000e+00> : vector<128x2xf32>
    %2 = tpu.matmul %0, %1, %cst {dimension_numbers = #tpu.dot_dimension_numbers<[1], [0], [0], [1], [0, 0, 1, 1], [], []>} : vector<128x144xbf16>, vector<144x2xbf16>, vector<128x2xf32> -> vector<128x2xf32>
    %c0_3 = arith.constant 0 : index
    %c0_4 = arith.constant 0 : index
    %3 = vector.load %arg3[%c0_3, %c0_4] : memref<1x2xf32, #tpu.memory_space<vmem>>, vector<1x2xf32>
    %4 = vector.broadcast %3 : vector<1x2xf32> to vector<128x2xf32>
    %5 = arith.addf %2, %4 : vector<128x2xf32>
    %cst_5 = arith.constant 0.000000e+00 : f32
    %6 = vector.broadcast %cst_5 : f32 to vector<128x2xf32>
    %7 = arith.maximumf %5, %6 : vector<128x2xf32>
    %c0_6 = arith.constant 0 : index
    %c0_7 = arith.constant 0 : index
    %8 = vector.load %arg4[%c0_6, %c0_7] : memref<128x2xf32, #tpu.memory_space<vmem>>, vector<128x2xf32>
    tpu.vector_store %arg4[%c0_6, %c0_7], %7 {strides = array<i32>} : memref<128x2xf32, #tpu.memory_space<vmem>>, vector<128x2xf32>,
    return
  }
  func.func @transform_0(%arg0: i32) -> (i32, i32) {
    %c0_i32 = arith.constant 0 : i32
    %c0_i32_0 = arith.constant 0 : i32
    return %arg0, %c0_i32 : i32, i32
  }
  func.func @transform_1(%arg0: i32) -> (i32, i32) {
    %c0_i32 = arith.constant 0 : i32
    %c0_i32_0 = arith.constant 0 : i32
    %c0_i32_1 = arith.constant 0 : i32
    return %c0_i32, %c0_i32_0 : i32, i32
  }
  func.func @transform_2(%arg0: i32) -> (i32, i32) {
    %c0_i32 = arith.constant 0 : i32
    %c0_i32_0 = arith.constant 0 : i32
    %c0_i32_1 = arith.constant 0 : i32
    return %c0_i32, %c0_i32_0 : i32, i32
  }
  func.func @transform_3(%arg0: i32) -> (i32, i32) {
    %c0_i32 = arith.constant 0 : i32
    %c0_i32_0 = arith.constant 0 : i32
    return %arg0, %c0_i32 : i32, i32
  }
}

module attributes {stable_mosaic.version = 11 : i64} {
  func.func @kernel(%arg0: i32, %arg1: memref<128x18xbf16, #tpu.memory_space<vmem>>, %arg2: memref<18x16xbf16, #tpu.memory_space<vmem>>, %arg3: memref<1x16xf32, #tpu.memory_space<vmem>>, %arg4: memref<128x16xf32, #tpu.memory_space<vmem>>) attributes {dimension_semantics = [#tpu.dimension_semantics<parallel>], iteration_bounds = array<i64: 1>, scalar_prefetch = 0 : i64, scratch_operands = 0 : i64, tpu.core_type = #tpu.core_type<tc>, window_params = [{transform_indices = @transform_0, window_bounds = array<i64: 128, 18>}, {pipeline_mode = #tpu.pipeline_mode<synchronous>, transform_indices = @transform_1, window_bounds = array<i64: 18, 16>}, {pipeline_mode = #tpu.pipeline_mode<synchronous>, transform_indices = @transform_2, window_bounds = array<i64: 1, 16>}, {transform_indices = @transform_3, window_bounds = array<i64: 128, 16>}]} {
    %c0 = arith.constant 0 : index
    %c0_0 = arith.constant 0 : index
    %0 = vector.load %arg1[%c0, %c0_0] : memref<128x18xbf16, #tpu.memory_space<vmem>>, vector<128x18xbf16>
    %c0_1 = arith.constant 0 : index
    %c0_2 = arith.constant 0 : index
    %1 = vector.load %arg2[%c0_1, %c0_2] : memref<18x16xbf16, #tpu.memory_space<vmem>>, vector<18x16xbf16>
    %cst = arith.constant dense<0.000000e+00> : vector<128x16xf32>
    %2 = tpu.matmul %0, %1, %cst {dimension_numbers = #tpu.dot_dimension_numbers<[1], [0], [0], [1], [0, 0, 1, 1], [], []>} : vector<128x18xbf16>, vector<18x16xbf16>, vector<128x16xf32> -> vector<128x16xf32>
    %c0_3 = arith.constant 0 : index
    %c0_4 = arith.constant 0 : index
    %3 = vector.load %arg3[%c0_3, %c0_4] : memref<1x16xf32, #tpu.memory_space<vmem>>, vector<1x16xf32>
    %4 = vector.broadcast %3 : vector<1x16xf32> to vector<128x16xf32>
    %5 = arith.addf %2, %4 : vector<128x16xf32>
    %6 = arith.negf %5 : vector<128x16xf32>
    %7 = math.exp %6 : vector<128x16xf32>
    %cst_5 = arith.constant 1.000000e+00 : f32
    %8 = vector.broadcast %cst_5 : f32 to vector<128x16xf32>
    %9 = arith.addf %8, %7 : vector<128x16xf32>
    %10 = arith.divf %8, %9 : vector<128x16xf32>
    %c0_6 = arith.constant 0 : index
    %c0_7 = arith.constant 0 : index
    %11 = vector.load %arg4[%c0_6, %c0_7] : memref<128x16xf32, #tpu.memory_space<vmem>>, vector<128x16xf32>
    tpu.vector_store %arg4[%c0_6, %c0_7], %10 {strides = array<i32>} : memref<128x16xf32, #tpu.memory_space<vmem>>, vector<128x16xf32>,
    return
  }
  func.func @transform_0(%arg0: i32) -> (i32, i32) {
    %c0_i32 = arith.constant 0 : i32
    %c0_i32_0 = arith.constant 0 : i32
    return %arg0, %c0_i32 : i32, i32
  }
  func.func @transform_1(%arg0: i32) -> (i32, i32) {
    %c0_i32 = arith.constant 0 : i32
    %c0_i32_0 = arith.constant 0 : i32
    %c0_i32_1 = arith.constant 0 : i32
    return %c0_i32, %c0_i32_0 : i32, i32
  }
  func.func @transform_2(%arg0: i32) -> (i32, i32) {
    %c0_i32 = arith.constant 0 : i32
    %c0_i32_0 = arith.constant 0 : i32
    %c0_i32_1 = arith.constant 0 : i32
    return %c0_i32, %c0_i32_0 : i32, i32
  }
  func.func @transform_3(%arg0: i32) -> (i32, i32) {
    %c0_i32 = arith.constant 0 : i32
    %c0_i32_0 = arith.constant 0 : i32
    return %arg0, %c0_i32 : i32, i32
  }
}

module attributes {stable_mosaic.version = 11 : i64} {
  func.func @kernel(%arg0: i32, %arg1: memref<128x16xf32, #tpu.memory_space<vmem>>, %arg2: memref<16x32xbf16, #tpu.memory_space<vmem>>, %arg3: memref<1x32xf32, #tpu.memory_space<vmem>>, %arg4: memref<128x32xf32, #tpu.memory_space<vmem>>) attributes {dimension_semantics = [#tpu.dimension_semantics<parallel>], iteration_bounds = array<i64: 1>, scalar_prefetch = 0 : i64, scratch_operands = 0 : i64, tpu.core_type = #tpu.core_type<tc>, window_params = [{transform_indices = @transform_0, window_bounds = array<i64: 128, 16>}, {pipeline_mode = #tpu.pipeline_mode<synchronous>, transform_indices = @transform_1, window_bounds = array<i64: 16, 32>}, {pipeline_mode = #tpu.pipeline_mode<synchronous>, transform_indices = @transform_2, window_bounds = array<i64: 1, 32>}, {transform_indices = @transform_3, window_bounds = array<i64: 128, 32>}]} {
    %c0 = arith.constant 0 : index
    %c0_0 = arith.constant 0 : index
    %0 = vector.load %arg1[%c0, %c0_0] : memref<128x16xf32, #tpu.memory_space<vmem>>, vector<128x16xf32>
    %1 = arith.truncf %0 : vector<128x16xf32> to vector<128x16xbf16>
    %c0_1 = arith.constant 0 : index
    %c0_2 = arith.constant 0 : index
    %2 = vector.load %arg2[%c0_1, %c0_2] : memref<16x32xbf16, #tpu.memory_space<vmem>>, vector<16x32xbf16>
    %cst = arith.constant dense<0.000000e+00> : vector<128x32xf32>
    %3 = tpu.matmul %1, %2, %cst {dimension_numbers = #tpu.dot_dimension_numbers<[1], [0], [0], [1], [0, 0, 1, 1], [], []>} : vector<128x16xbf16>, vector<16x32xbf16>, vector<128x32xf32> -> vector<128x32xf32>
    %c0_3 = arith.constant 0 : index
    %c0_4 = arith.constant 0 : index
    %4 = vector.load %arg3[%c0_3, %c0_4] : memref<1x32xf32, #tpu.memory_space<vmem>>, vector<1x32xf32>
    %5 = vector.broadcast %4 : vector<1x32xf32> to vector<128x32xf32>
    %6 = arith.addf %3, %5 : vector<128x32xf32>
    %c0_5 = arith.constant 0 : index
    %c0_6 = arith.constant 0 : index
    %7 = vector.load %arg4[%c0_5, %c0_6] : memref<128x32xf32, #tpu.memory_space<vmem>>, vector<128x32xf32>
    tpu.vector_store %arg4[%c0_5, %c0_6], %6 {strides = array<i32>} : memref<128x32xf32, #tpu.memory_space<vmem>>, vector<128x32xf32>,
    return
  }
  func.func @transform_0(%arg0: i32) -> (i32, i32) {
    %c0_i32 = arith.constant 0 : i32
    %c0_i32_0 = arith.constant 0 : i32
    return %arg0, %c0_i32 : i32, i32
  }
  func.func @transform_1(%arg0: i32) -> (i32, i32) {
    %c0_i32 = arith.constant 0 : i32
    %c0_i32_0 = arith.constant 0 : i32
    %c0_i32_1 = arith.constant 0 : i32
    return %c0_i32, %c0_i32_0 : i32, i32
  }
  func.func @transform_2(%arg0: i32) -> (i32, i32) {
    %c0_i32 = arith.constant 0 : i32
    %c0_i32_0 = arith.constant 0 : i32
    %c0_i32_1 = arith.constant 0 : i32
    return %c0_i32, %c0_i32_0 : i32, i32
  }
  func.func @transform_3(%arg0: i32) -> (i32, i32) {
    %c0_i32 = arith.constant 0 : i32
    %c0_i32_0 = arith.constant 0 : i32
    return %arg0, %c0_i32 : i32, i32
  }
}

module attributes {stable_mosaic.version = 11 : i64} {
  func.func @kernel(%arg0: i32, %arg1: memref<256x72xbf16, #tpu.memory_space<vmem>>, %arg2: memref<72x3xbf16, #tpu.memory_space<vmem>>, %arg3: memref<1x3xf32, #tpu.memory_space<vmem>>, %arg4: memref<256x3xf32, #tpu.memory_space<vmem>>) attributes {dimension_semantics = [#tpu.dimension_semantics<parallel>], iteration_bounds = array<i64: 2>, scalar_prefetch = 0 : i64, scratch_operands = 0 : i64, tpu.core_type = #tpu.core_type<tc>, window_params = [{transform_indices = @transform_0, window_bounds = array<i64: 256, 72>}, {pipeline_mode = #tpu.pipeline_mode<synchronous>, transform_indices = @transform_1, window_bounds = array<i64: 72, 3>}, {pipeline_mode = #tpu.pipeline_mode<synchronous>, transform_indices = @transform_2, window_bounds = array<i64: 1, 3>}, {transform_indices = @transform_3, window_bounds = array<i64: 256, 3>}]} {
    %c0 = arith.constant 0 : index
    %c0_0 = arith.constant 0 : index
    %0 = vector.load %arg1[%c0, %c0_0] : memref<256x72xbf16, #tpu.memory_space<vmem>>, vector<256x72xbf16>
    %c0_1 = arith.constant 0 : index
    %c0_2 = arith.constant 0 : index
    %1 = vector.load %arg2[%c0_1, %c0_2] : memref<72x3xbf16, #tpu.memory_space<vmem>>, vector<72x3xbf16>
    %cst = arith.constant dense<0.000000e+00> : vector<256x3xf32>
    %2 = tpu.matmul %0, %1, %cst {dimension_numbers = #tpu.dot_dimension_numbers<[1], [0], [0], [1], [0, 0, 1, 1], [], []>} : vector<256x72xbf16>, vector<72x3xbf16>, vector<256x3xf32> -> vector<256x3xf32>
    %c0_3 = arith.constant 0 : index
    %c0_4 = arith.constant 0 : index
    %3 = vector.load %arg3[%c0_3, %c0_4] : memref<1x3xf32, #tpu.memory_space<vmem>>, vector<1x3xf32>
    %4 = vector.broadcast %3 : vector<1x3xf32> to vector<256x3xf32>
    %5 = arith.addf %2, %4 : vector<256x3xf32>
    %c0_5 = arith.constant 0 : index
    %c0_6 = arith.constant 0 : index
    %6 = vector.load %arg4[%c0_5, %c0_6] : memref<256x3xf32, #tpu.memory_space<vmem>>, vector<256x3xf32>
    tpu.vector_store %arg4[%c0_5, %c0_6], %5 {strides = array<i32>} : memref<256x3xf32, #tpu.memory_space<vmem>>, vector<256x3xf32>,
    return
  }
  func.func @transform_0(%arg0: i32) -> (i32, i32) {
    %c0_i32 = arith.constant 0 : i32
    %c0_i32_0 = arith.constant 0 : i32
    return %arg0, %c0_i32 : i32, i32
  }
  func.func @transform_1(%arg0: i32) -> (i32, i32) {
    %c0_i32 = arith.constant 0 : i32
    %c0_i32_0 = arith.constant 0 : i32
    %c0_i32_1 = arith.constant 0 : i32
    return %c0_i32, %c0_i32_0 : i32, i32
  }
  func.func @transform_2(%arg0: i32) -> (i32, i32) {
    %c0_i32 = arith.constant 0 : i32
    %c0_i32_0 = arith.constant 0 : i32
    %c0_i32_1 = arith.constant 0 : i32
    return %c0_i32, %c0_i32_0 : i32, i32
  }
  func.func @transform_3(%arg0: i32) -> (i32, i32) {
    %c0_i32 = arith.constant 0 : i32
    %c0_i32_0 = arith.constant 0 : i32
    return %arg0, %c0_i32 : i32, i32
  }
}

</mosaic_0001>

<bundles_post_ra>
// kernel: phdnet_forward.26
= control target key start
LH: loop header
LB: loop body
LE: loop exit
PB: predicated region body
PF: predicated region fallthrough
CT: control target
= control target key end

     0   :  { %s702_s12 = smov 0   ;;  %s869_s0 = inlined_call_operand.vmem [shape: bf16[512,27], index: 0, kind: input, shape index: {}]   ;;  %s870_s1 = inlined_call_operand.vmem [shape: bf16[27,8], index: 1, kind: input, shape index: {}]   ;;  %s871_s2 = inlined_call_operand.vmem [shape: f32[1,8], index: 2, kind: input, shape index: {}]   ;;  %s872_s3 = inlined_call_operand.vmem [shape: f32[512,8], index: 3, kind: output, shape index: {}]  }
   0x1 LB: > { %s540_s13 = sadd.s32 4294967295, %s679_s12   ;;  %p544_p0 = scmp.ge.s32.totalorder %s679_s12, 1  ;;  %s679_s12 = sphi %s702_s12, %s13_s12  }
   0x2   : > { %p138_p1 = scmp.lt.s32.totalorder %s679_s12, 3 }
   0x4   : > { %p139_p2 = pnand %p544_p0, %p138_p1 }
   0x5   : > { %s545_s18 = sshll.u32 (!%p139_p2), %s540_s13, 5 }
   0x6   : > { %142 = sbr.rel (%p139_p2) target bundleno = 217 (0xd9), region = 32  ;;  %p163_p3 = scmp.lt.s32.totalorder (!%p139_p2), %s545_s18, 63 }
   0xb   : > { %v619_v0 = vld [vmem:[%s870_s1 + $0x8] sm:$0xf]  ;;  %v656_v1 = vld [vmem:[%s870_s1 + $0x8] sm:$0x30]  ;;  %vm355_vm0 = vcmask 1044480   ;;  %vm356_vm1 = vcmask 1045504  }
   0xc   : > { %v620_v2 = vor.u32 %v656_v1, %v619_v0  ;;  %v681_v3 = vmov 65535   ;;  %s874_s18 = smov (!%p163_p3, %s545_s18), 63  ;;  %v655_v7 = vld [vmem:[%s870_s1] sm:$0xff]  ;;  %vm306_vm2 = vcmask 220160   ;;  %vm451_vm3 = vcmask 64512  }
   0xd   : > { %v357_v4 = vsel %vm355_vm0, 4294967295, %v681_v3  ;;  %s546_s21 = sshll.u32 %s874_s18, 2  ;;  %s548_s25 = sshll.u32 %s874_s18, 3  ;;  %v763_v24 = vld [vmem:[%s871_s2] ss:$0 sm:$0xff] }
   0xe   : > { %v358_v5 = vsel %vm356_vm1, %v357_v4, 0  ;;  %s725_s24 = scalar_lea.vmem %s869_s0, %s546_s21  ;;  %s768_s30 = scalar_lea.vmem %s872_s3, %s548_s25 }
   0xf   : > { %v360_v6 = vand.u32 %v620_v2, %v358_v5  ;;  %v639_v8 = vld [vmem:[%s725_s24] sm:$0xff]  ;;  %v640_v12 = vld [vmem:[%s725_s24 + $0x8] sm:$0xff]  ;;  %v641_v16 = vld [vmem:[%s725_s24 + $0x10] sm:$0xff] }
  0x10   : > { %v643_v9 = vld [vmem:[%s725_s24 + $0x20] sm:$0xff]  ;;  %v644_v13 = vld [vmem:[%s725_s24 + $0x28] sm:$0xff]  ;;  %v645_v17 = vld [vmem:[%s725_s24 + $0x30] sm:$0xff] }
  0x11   : > { %368 = vmatpush.bf16.msra.mxu0 %v360_v6  ;;  %657 = vmatpush.bf16.msra.mxu1 %v360_v6  ;;  %v647_v10 = vld [vmem:[%s725_s24 + $0x40] sm:$0xff]  ;;  %v648_v14 = vld [vmem:[%s725_s24 + $0x48] sm:$0xff]  ;;  %v649_v18 = vld [vmem:[%s725_s24 + $0x50] sm:$0xff] }
  0x12   : > { %658 = vmatpush.bf16.msra.mxu2 %v360_v6  ;;  %659 = vmatpush.bf16.msra.mxu3 %v360_v6  ;;  %v651_v11 = vld [vmem:[%s725_s24 + $0x60] sm:$0xff]  ;;  %v652_v15 = vld [vmem:[%s725_s24 + $0x68] sm:$0xff]  ;;  %v653_v19 = vld [vmem:[%s725_s24 + $0x70] sm:$0xff] }
  0x13   : > { %v642_v20 = vld [vmem:[%s725_s24 + $0x18] sm:$0xff] }
  0x14   : > { %v646_v21 = vld [vmem:[%s725_s24 + $0x38] sm:$0xff] }
  0x15   : > { %369 = vmatpush.bf16.msra.mxu0 %v655_v7  ;;  %660 = vmatpush.bf16.msra.mxu1 %v655_v7  ;;  %v650_v22 = vld [vmem:[%s725_s24 + $0x58] sm:$0xff] }
  0x16   : > { %661 = vmatpush.bf16.msra.mxu2 %v655_v7  ;;  %662 = vmatpush.bf16.msra.mxu3 %v655_v7  ;;  %v654_v23 = vld [vmem:[%s725_s24 + $0x78] sm:$0xff] }
  0x18   : > { %621 = vmatmul.msk.bf16.vlgmr.msra.gmra.mxu0 %vm306_vm2, %v639_v8  ;;  %625 = vmatmul.msk.bf16.vlgmr.msra.gmra.mxu1 %vm306_vm2, %v643_v9 }
  0x19   : > { %629 = vmatmul.msk.bf16.vlgmr.msra.gmra.mxu2 %vm306_vm2, %v647_v10  ;;  %633 = vmatmul.msk.bf16.vlgmr.msra.gmra.mxu3 %vm306_vm2, %v651_v11 }
  0x28   : > { %622 = vmatmul.msk.bf16.gmra.mxu0 %vm306_vm2, %v640_v12  ;;  %626 = vmatmul.msk.bf16.gmra.mxu1 %vm306_vm2, %v644_v13 }
  0x29   : > { %630 = vmatmul.msk.bf16.gmra.mxu2 %vm306_vm2, %v648_v14  ;;  %634 = vmatmul.msk.bf16.gmra.mxu3 %vm306_vm2, %v652_v15 }
  0x38   : > { %623 = vmatmul.msk.bf16.gmra.mxu0 %vm306_vm2, %v641_v16  ;;  %627 = vmatmul.msk.bf16.gmra.mxu1 %vm306_vm2, %v645_v17 }
  0x39   : > { %631 = vmatmul.msk.bf16.gmra.mxu2 %vm306_vm2, %v649_v18  ;;  %635 = vmatmul.msk.bf16.gmra.mxu3 %vm306_vm2, %v653_v19 }
  0x48   : > { %624 = vmatmul.msk.bf16.gmra.mxu0 %vm306_vm2, %v642_v20  ;;  %628 = vmatmul.msk.bf16.gmra.mxu1 %vm306_vm2, %v646_v21 }
  0x49   : > { %632 = vmatmul.msk.bf16.gmra.mxu2 %vm306_vm2, %v650_v22  ;;  %636 = vmatmul.msk.bf16.gmra.mxu3 %vm306_vm2, %v654_v23 }
  0x95   : > { %v371_v25 = vpop.f32.mrf.mxu0  ;;  %v391_v26 = vpop.f32.mrf.mxu1 }
  0x96   : > { %v372_v27 = vadd.f32 %v763_v24, %v371_v25  ;;  %v392_v28 = vadd.f32 %v763_v24, %v391_v26 }
  0x98   : > { %452 = vst.msk [vmem:[%s768_s30] sm:$0xff] %vm451_vm3, %v372_v27 }
  0x99   : > { %460 = vst.msk [vmem:[%s768_s30 + $0x40] sm:$0xff] %vm451_vm3, %v392_v28 }
  0x9c   : > { %v411_v29 = vpop.f32.mrf.mxu2  ;;  %v431_v30 = vpop.f32.mrf.mxu3 }
  0x9d   : > { %v412_v31 = vadd.f32 %v763_v24, %v411_v29  ;;  %v432_v32 = vadd.f32 %v763_v24, %v431_v30  ;;  %v373_v33 = vpop.f32.mrf.mxu0  ;;  %v393_v34 = vpop.f32.mrf.mxu1 }
  0x9e   : > { %v374_v35 = vadd.f32 %v763_v24, %v373_v33  ;;  %v394_v36 = vadd.f32 %v763_v24, %v393_v34 }
  0x9f   : > { %468 = vst.msk [vmem:[%s768_s30 + $0x80] sm:$0xff] %vm451_vm3, %v412_v31 }
  0xa0   : > { %476 = vst.msk [vmem:[%s768_s30 + $0xc0] sm:$0xff] %vm451_vm3, %v432_v32 }
  0xa1   : > { %453 = vst.msk [vmem:[%s768_s30 + $0x8] sm:$0xff] %vm451_vm3, %v374_v35 }
  0xa2   : > { %461 = vst.msk [vmem:[%s768_s30 + $0x48] sm:$0xff] %vm451_vm3, %v394_v36 }
  0xa4   : > { %v413_v37 = vpop.f32.mrf.mxu2  ;;  %v433_v38 = vpop.f32.mrf.mxu3 }
  0xa5   : > { %v414_v39 = vadd.f32 %v763_v24, %v413_v37  ;;  %v434_v40 = vadd.f32 %v763_v24, %v433_v38  ;;  %v376_v41 = vpop.f32.mrf.mxu0  ;;  %v396_v42 = vpop.f32.mrf.mxu1 }
  0xa6   : > { %v377_v43 = vadd.f32 %v763_v24, %v376_v41  ;;  %v397_v44 = vadd.f32 %v763_v24, %v396_v42 }
  0xa7   : > { %469 = vst.msk [vmem:[%s768_s30 + $0x88] sm:$0xff] %vm451_vm3, %v414_v39 }
  0xa8   : > { %477 = vst.msk [vmem:[%s768_s30 + $0xc8] sm:$0xff] %vm451_vm3, %v434_v40 }
  0xa9   : > { %454 = vst.msk [vmem:[%s768_s30 + $0x10] sm:$0xff] %vm451_vm3, %v377_v43 }
  0xaa   : > { %462 = vst.msk [vmem:[%s768_s30 + $0x50] sm:$0xff] %vm451_vm3, %v397_v44 }
  0xac   : > { %v416_v45 = vpop.f32.mrf.mxu2  ;;  %v436_v46 = vpop.f32.mrf.mxu3 }
  0xad   : > { %v417_v47 = vadd.f32 %v763_v24, %v416_v45  ;;  %v437_v48 = vadd.f32 %v763_v24, %v436_v46  ;;  %v378_v49 = vpop.f32.mrf.mxu0  ;;  %v398_v50 = vpop.f32.mrf.mxu1 }
  0xae   : > { %v379_v51 = vadd.f32 %v763_v24, %v378_v49  ;;  %v399_v52 = vadd.f32 %v763_v24, %v398_v50 }
  0xaf   : > { %470 = vst.msk [vmem:[%s768_s30 + $0x90] sm:$0xff] %vm451_vm3, %v417_v47 }
  0xb0   : > { %478 = vst.msk [vmem:[%s768_s30 + $0xd0] sm:$0xff] %vm451_vm3, %v437_v48 }
  0xb1   : > { %455 = vst.msk [vmem:[%s768_s30 + $0x18] sm:$0xff] %vm451_vm3, %v379_v51 }
  0xb2   : > { %463 = vst.msk [vmem:[%s768_s30 + $0x58] sm:$0xff] %vm451_vm3, %v399_v52 }
  0xb4   : > { %v418_v53 = vpop.f32.mrf.mxu2  ;;  %v438_v54 = vpop.f32.mrf.mxu3 }
  0xb5   : > { %v419_v55 = vadd.f32 %v763_v24, %v418_v53  ;;  %v439_v56 = vadd.f32 %v763_v24, %v438_v54  ;;  %v381_v57 = vpop.f32.mrf.mxu0  ;;  %v401_v58 = vpop.f32.mrf.mxu1 }
  0xb6   : > { %v382_v59 = vadd.f32 %v763_v24, %v381_v57  ;;  %v402_v60 = vadd.f32 %v763_v24, %v401_v58 }
  0xb7   : > { %471 = vst.msk [vmem:[%s768_s30 + $0x98] sm:$0xff] %vm451_vm3, %v419_v55 }
  0xb8   : > { %479 = vst.msk [vmem:[%s768_s30 + $0xd8] sm:$0xff] %vm451_vm3, %v439_v56 }
  0xb9   : > { %456 = vst.msk [vmem:[%s768_s30 + $0x20] sm:$0xff] %vm451_vm3, %v382_v59 }
  0xba   : > { %464 = vst.msk [vmem:[%s768_s30 + $0x60] sm:$0xff] %vm451_vm3, %v402_v60 }
  0xbc   : > { %v421_v61 = vpop.f32.mrf.mxu2  ;;  %v441_v62 = vpop.f32.mrf.mxu3 }
  0xbd   : > { %v422_v63 = vadd.f32 %v763_v24, %v421_v61  ;;  %v442_v0 = vadd.f32 %v763_v24, %v441_v62  ;;  %v383_v1 = vpop.f32.mrf.mxu0  ;;  %v403_v2 = vpop.f32.mrf.mxu1 }
  0xbe   : > { %v384_v3 = vadd.f32 %v763_v24, %v383_v1  ;;  %v404_v4 = vadd.f32 %v763_v24, %v403_v2 }
  0xbf   : > { %472 = vst.msk [vmem:[%s768_s30 + $0xa0] sm:$0xff] %vm451_vm3, %v422_v63 }
  0xc0   : > { %480 = vst.msk [vmem:[%s768_s30 + $0xe0] sm:$0xff] %vm451_vm3, %v442_v0 }
  0xc1   : > { %457 = vst.msk [vmem:[%s768_s30 + $0x28] sm:$0xff] %vm451_vm3, %v384_v3 }
  0xc2   : > { %465 = vst.msk [vmem:[%s768_s30 + $0x68] sm:$0xff] %vm451_vm3, %v404_v4 }
  0xc4   : > { %v423_v5 = vpop.f32.mrf.mxu2  ;;  %v443_v6 = vpop.f32.mrf.mxu3 }
  0xc5   : > { %v424_v7 = vadd.f32 %v763_v24, %v423_v5  ;;  %v444_v8 = vadd.f32 %v763_v24, %v443_v6  ;;  %v386_v9 = vpop.f32.mrf.mxu0  ;;  %v406_v10 = vpop.f32.mrf.mxu1 }
  0xc6   : > { %v387_v11 = vadd.f32 %v763_v24, %v386_v9  ;;  %v407_v12 = vadd.f32 %v763_v24, %v406_v10 }
  0xc7   : > { %473 = vst.msk [vmem:[%s768_s30 + $0xa8] sm:$0xff] %vm451_vm3, %v424_v7 }
  0xc8   : > { %481 = vst.msk [vmem:[%s768_s30 + $0xe8] sm:$0xff] %vm451_vm3, %v444_v8 }
  0xc9   : > { %458 = vst.msk [vmem:[%s768_s30 + $0x30] sm:$0xff] %vm451_vm3, %v387_v11 }
  0xca   : > { %466 = vst.msk [vmem:[%s768_s30 + $0x70] sm:$0xff] %vm451_vm3, %v407_v12 }
  0xcc   : > { %v426_v13 = vpop.f32.mrf.mxu2  ;;  %v446_v14 = vpop.f32.mrf.mxu3 }
  0xcd   : > { %v427_v15 = vadd.f32 %v763_v24, %v426_v13  ;;  %v447_v16 = vadd.f32 %v763_v24, %v446_v14  ;;  %v388_v17 = vpop.f32.mrf.mxu0  ;;  %v408_v18 = vpop.f32.mrf.mxu1 }
  0xce   : > { %v389_v19 = vadd.f32 %v763_v24, %v388_v17  ;;  %v409_v20 = vadd.f32 %v763_v24, %v408_v18 }
  0xcf   : > { %474 = vst.msk [vmem:[%s768_s30 + $0xb0] sm:$0xff] %vm451_vm3, %v427_v15 }
  0xd0   : > { %482 = vst.msk [vmem:[%s768_s30 + $0xf0] sm:$0xff] %vm451_vm3, %v447_v16 }
  0xd1   : > { %459 = vst.msk [vmem:[%s768_s30 + $0x38] sm:$0xff] %vm451_vm3, %v389_v19 }
  0xd2   : > { %467 = vst.msk [vmem:[%s768_s30 + $0x78] sm:$0xff] %vm451_vm3, %v409_v20 }
  0xd4   : > { %v428_v21 = vpop.f32.mrf.mxu2  ;;  %v448_v22 = vpop.f32.mrf.mxu3 }
  0xd5   : > { %v429_v23 = vadd.f32 %v763_v24, %v428_v21  ;;  %v449_v25 = vadd.f32 %v763_v24, %v448_v22 }
  0xd7   : > { %475 = vst.msk [vmem:[%s768_s30 + $0xb8] sm:$0xff] %vm451_vm3, %v429_v23 }
  0xd8   : > { %483 = vst.msk [vmem:[%s768_s30 + $0xf8] sm:$0xff] %vm451_vm3, %v449_v25 }
  0xd9 PF: > { %s13_s12 = sadd.s32 1, %s679_s12  }
  0xda   : > { %p10_p4 = scmp.ge.s32.totalorder %s13_s12, 4  }
  0xdc   :  { %12 = sbr.rel (!%p10_p4) target bundleno = 1 (0x1), region = 62 }

// kernel: phdnet_forward.29
= control target key start
LH: loop header
LB: loop body
LE: loop exit
PB: predicated region body
PF: predicated region fallthrough
CT: control target
= control target key end

     0   :  { %s737_s12 = smov 0   ;;  %s910_s0 = inlined_call_operand.vmem [shape: bf16[512,72], index: 0, kind: input, shape index: {}]   ;;  %s911_s1 = inlined_call_operand.vmem [shape: bf16[72,8], index: 1, kind: input, shape index: {}]   ;;  %s912_s2 = inlined_call_operand.vmem [shape: f32[1,8], index: 2, kind: input, shape index: {}]   ;;  %s913_s3 = inlined_call_operand.vmem [shape: f32[512,8], index: 3, kind: output, shape index: {}]  }
   0x1 LB: > { %s558_s13 = sadd.s32 4294967295, %s715_s12   ;;  %p562_p0 = scmp.ge.s32.totalorder %s715_s12, 1  ;;  %s715_s12 = sphi %s737_s12, %s13_s12  }
   0x2   : > { %p138_p1 = scmp.lt.s32.totalorder %s715_s12, 3 }
   0x4   : > { %p139_p2 = pnand %p562_p0, %p138_p1 }
   0x5   : > { %s563_s16 = sshll.u32 (!%p139_p2), %s558_s13, 5 }
   0x6   : > { %142 = sbr.rel (%p139_p2) target bundleno = 229 (0xe5), region = 32  ;;  %p163_p3 = scmp.lt.s32.totalorder (!%p139_p2), %s563_s16, 63 }
   0xb   : > { %v215_v0 = vld [vmem:[%s911_s1 + $0x20] sm:$0xf]  ;;  %vm376_vm0 = vcmask 1043456   ;;  %v684_v4 = vld [vmem:[%s911_s1 + $0x18] sm:$0xff]  ;;  %v683_v5 = vld [vmem:[%s911_s1 + $0x10] sm:$0xff]  ;;  %s915_s16 = smov (!%p163_p3, %s563_s16), 63 }
   0xc   : > { %v317_v1 = vunpack.c.l.b16 %v215_v0  ;;  %v682_v6 = vld [vmem:[%s911_s1 + $0x8] sm:$0xff]  ;;  %s564_s23 = sshll.u32 %s915_s16, 2  ;;  %v681_v7 = vld [vmem:[%s911_s1] sm:$0xff]  ;;  %vm327_vm1 = vcmask 588800   ;;  %s566_s29 = sshll.u32 %s915_s16, 3  ;;  %vm469_vm2 = vcmask 64512  }
   0xd   : > { %s766_s28 = scalar_lea.vmem %s910_s0, %s564_s23  ;;  %v804_v24 = vld [vmem:[%s912_s2] ss:$0 sm:$0xff]  ;;  %s809_s7 = scalar_lea.vmem %s913_s3, %s566_s29 }
   0xe   : > { %v322_v2 = vpack.c.b16 %v317_v1, %v317_v1  ;;  %v665_v8 = vld [vmem:[%s766_s28] sm:$0xff]  ;;  %v666_v12 = vld [vmem:[%s766_s28 + $0x8] sm:$0xff]  ;;  %v667_v16 = vld [vmem:[%s766_s28 + $0x10] sm:$0xff] }
   0xf   : > { %v669_v9 = vld [vmem:[%s766_s28 + $0x20] sm:$0xff]  ;;  %v670_v13 = vld [vmem:[%s766_s28 + $0x28] sm:$0xff]  ;;  %v671_v17 = vld [vmem:[%s766_s28 + $0x30] sm:$0xff] }
  0x10   : > { %v378_v3 = vsel %vm376_vm0, %v322_v2, 0  ;;  %v673_v10 = vld [vmem:[%s766_s28 + $0x40] sm:$0xff]  ;;  %v674_v14 = vld [vmem:[%s766_s28 + $0x48] sm:$0xff]  ;;  %v675_v18 = vld [vmem:[%s766_s28 + $0x50] sm:$0xff] }
  0x11   : > { %383 = vmatpush.bf16.msra.mxu0 %v378_v3  ;;  %685 = vmatpush.bf16.msra.mxu1 %v378_v3  ;;  %v677_v11 = vld [vmem:[%s766_s28 + $0x60] sm:$0xff]  ;;  %v678_v15 = vld [vmem:[%s766_s28 + $0x68] sm:$0xff]  ;;  %v679_v19 = vld [vmem:[%s766_s28 + $0x70] sm:$0xff] }
  0x12   : > { %686 = vmatpush.bf16.msra.mxu2 %v378_v3  ;;  %687 = vmatpush.bf16.msra.mxu3 %v378_v3  ;;  %v668_v20 = vld [vmem:[%s766_s28 + $0x18] sm:$0xff] }
  0x13   : > { %v672_v21 = vld [vmem:[%s766_s28 + $0x38] sm:$0xff] }
  0x14   : > { %v676_v22 = vld [vmem:[%s766_s28 + $0x58] sm:$0xff] }
  0x15   : > { %384 = vmatpush.bf16.msra.mxu0 %v684_v4  ;;  %688 = vmatpush.bf16.msra.mxu1 %v684_v4  ;;  %v680_v23 = vld [vmem:[%s766_s28 + $0x78] sm:$0xff] }
  0x16   : > { %689 = vmatpush.bf16.msra.mxu2 %v684_v4  ;;  %690 = vmatpush.bf16.msra.mxu3 %v684_v4 }
  0x19   : > { %385 = vmatpush.bf16.msra.mxu0 %v683_v5  ;;  %691 = vmatpush.bf16.msra.mxu1 %v683_v5 }
  0x1a   : > { %692 = vmatpush.bf16.msra.mxu2 %v683_v5  ;;  %693 = vmatpush.bf16.msra.mxu3 %v683_v5 }
  0x1d   : > { %386 = vmatpush.bf16.msra.mxu0 %v682_v6  ;;  %694 = vmatpush.bf16.msra.mxu1 %v682_v6 }
  0x1e   : > { %695 = vmatpush.bf16.msra.mxu2 %v682_v6  ;;  %696 = vmatpush.bf16.msra.mxu3 %v682_v6 }
  0x21   : > { %387 = vmatpush.bf16.msra.mxu0 %v681_v7  ;;  %697 = vmatpush.bf16.msra.mxu1 %v681_v7 }
  0x22   : > { %698 = vmatpush.bf16.msra.mxu2 %v681_v7  ;;  %699 = vmatpush.bf16.msra.mxu3 %v681_v7 }
  0x24   : > { %647 = vmatmul.msk.bf16.vlgmr.msra.gmra.mxu0 %vm327_vm1, %v665_v8  ;;  %651 = vmatmul.msk.bf16.vlgmr.msra.gmra.mxu1 %vm327_vm1, %v669_v9 }
  0x25   : > { %655 = vmatmul.msk.bf16.vlgmr.msra.gmra.mxu2 %vm327_vm1, %v673_v10  ;;  %659 = vmatmul.msk.bf16.vlgmr.msra.gmra.mxu3 %vm327_vm1, %v677_v11 }
  0x34   : > { %648 = vmatmul.msk.bf16.gmra.mxu0 %vm327_vm1, %v666_v12  ;;  %652 = vmatmul.msk.bf16.gmra.mxu1 %vm327_vm1, %v670_v13 }
  0x35   : > { %656 = vmatmul.msk.bf16.gmra.mxu2 %vm327_vm1, %v674_v14  ;;  %660 = vmatmul.msk.bf16.gmra.mxu3 %vm327_vm1, %v678_v15 }
  0x44   : > { %649 = vmatmul.msk.bf16.gmra.mxu0 %vm327_vm1, %v667_v16  ;;  %653 = vmatmul.msk.bf16.gmra.mxu1 %vm327_vm1, %v671_v17 }
  0x45   : > { %657 = vmatmul.msk.bf16.gmra.mxu2 %vm327_vm1, %v675_v18  ;;  %661 = vmatmul.msk.bf16.gmra.mxu3 %vm327_vm1, %v679_v19 }
  0x54   : > { %650 = vmatmul.msk.bf16.gmra.mxu0 %vm327_vm1, %v668_v20  ;;  %654 = vmatmul.msk.bf16.gmra.mxu1 %vm327_vm1, %v672_v21 }
  0x55   : > { %658 = vmatmul.msk.bf16.gmra.mxu2 %vm327_vm1, %v676_v22  ;;  %662 = vmatmul.msk.bf16.gmra.mxu3 %vm327_vm1, %v680_v23 }
  0xa1   : > { %v389_v25 = vpop.f32.mrf.mxu0  ;;  %v409_v26 = vpop.f32.mrf.mxu1 }
  0xa2   : > { %v390_v27 = vadd.f32 %v804_v24, %v389_v25  ;;  %v410_v28 = vadd.f32 %v804_v24, %v409_v26 }
  0xa4   : > { %470 = vst.msk [vmem:[%s809_s7] sm:$0xff] %vm469_vm2, %v390_v27 }
  0xa5   : > { %478 = vst.msk [vmem:[%s809_s7 + $0x40] sm:$0xff] %vm469_vm2, %v410_v28 }
  0xa8   : > { %v429_v29 = vpop.f32.mrf.mxu2  ;;  %v449_v30 = vpop.f32.mrf.mxu3 }
  0xa9   : > { %v430_v31 = vadd.f32 %v804_v24, %v429_v29  ;;  %v450_v32 = vadd.f32 %v804_v24, %v449_v30  ;;  %v391_v33 = vpop.f32.mrf.mxu0  ;;  %v411_v34 = vpop.f32.mrf.mxu1 }
  0xaa   : > { %v392_v35 = vadd.f32 %v804_v24, %v391_v33  ;;  %v412_v36 = vadd.f32 %v804_v24, %v411_v34 }
  0xab   : > { %486 = vst.msk [vmem:[%s809_s7 + $0x80] sm:$0xff] %vm469_vm2, %v430_v31 }
  0xac   : > { %494 = vst.msk [vmem:[%s809_s7 + $0xc0] sm:$0xff] %vm469_vm2, %v450_v32 }
  0xad   : > { %471 = vst.msk [vmem:[%s809_s7 + $0x8] sm:$0xff] %vm469_vm2, %v392_v35 }
  0xae   : > { %479 = vst.msk [vmem:[%s809_s7 + $0x48] sm:$0xff] %vm469_vm2, %v412_v36 }
  0xb0   : > { %v431_v37 = vpop.f32.mrf.mxu2  ;;  %v451_v38 = vpop.f32.mrf.mxu3 }
  0xb1   : > { %v432_v39 = vadd.f32 %v804_v24, %v431_v37  ;;  %v452_v40 = vadd.f32 %v804_v24, %v451_v38  ;;  %v394_v41 = vpop.f32.mrf.mxu0  ;;  %v414_v42 = vpop.f32.mrf.mxu1 }
  0xb2   : > { %v395_v43 = vadd.f32 %v804_v24, %v394_v41  ;;  %v415_v44 = vadd.f32 %v804_v24, %v414_v42 }
  0xb3   : > { %487 = vst.msk [vmem:[%s809_s7 + $0x88] sm:$0xff] %vm469_vm2, %v432_v39 }
  0xb4   : > { %495 = vst.msk [vmem:[%s809_s7 + $0xc8] sm:$0xff] %vm469_vm2, %v452_v40 }
  0xb5   : > { %472 = vst.msk [vmem:[%s809_s7 + $0x10] sm:$0xff] %vm469_vm2, %v395_v43 }
  0xb6   : > { %480 = vst.msk [vmem:[%s809_s7 + $0x50] sm:$0xff] %vm469_vm2, %v415_v44 }
  0xb8   : > { %v434_v45 = vpop.f32.mrf.mxu2  ;;  %v454_v46 = vpop.f32.mrf.mxu3 }
  0xb9   : > { %v435_v47 = vadd.f32 %v804_v24, %v434_v45  ;;  %v455_v48 = vadd.f32 %v804_v24, %v454_v46  ;;  %v396_v49 = vpop.f32.mrf.mxu0  ;;  %v416_v50 = vpop.f32.mrf.mxu1 }
  0xba   : > { %v397_v51 = vadd.f32 %v804_v24, %v396_v49  ;;  %v417_v52 = vadd.f32 %v804_v24, %v416_v50 }
  0xbb   : > { %488 = vst.msk [vmem:[%s809_s7 + $0x90] sm:$0xff] %vm469_vm2, %v435_v47 }
  0xbc   : > { %496 = vst.msk [vmem:[%s809_s7 + $0xd0] sm:$0xff] %vm469_vm2, %v455_v48 }
  0xbd   : > { %473 = vst.msk [vmem:[%s809_s7 + $0x18] sm:$0xff] %vm469_vm2, %v397_v51 }
  0xbe   : > { %481 = vst.msk [vmem:[%s809_s7 + $0x58] sm:$0xff] %vm469_vm2, %v417_v52 }
  0xc0   : > { %v436_v53 = vpop.f32.mrf.mxu2  ;;  %v456_v54 = vpop.f32.mrf.mxu3 }
  0xc1   : > { %v437_v55 = vadd.f32 %v804_v24, %v436_v53  ;;  %v457_v56 = vadd.f32 %v804_v24, %v456_v54  ;;  %v399_v57 = vpop.f32.mrf.mxu0  ;;  %v419_v58 = vpop.f32.mrf.mxu1 }
  0xc2   : > { %v400_v59 = vadd.f32 %v804_v24, %v399_v57  ;;  %v420_v60 = vadd.f32 %v804_v24, %v419_v58 }
  0xc3   : > { %489 = vst.msk [vmem:[%s809_s7 + $0x98] sm:$0xff] %vm469_vm2, %v437_v55 }
  0xc4   : > { %497 = vst.msk [vmem:[%s809_s7 + $0xd8] sm:$0xff] %vm469_vm2, %v457_v56 }
  0xc5   : > { %474 = vst.msk [vmem:[%s809_s7 + $0x20] sm:$0xff] %vm469_vm2, %v400_v59 }
  0xc6   : > { %482 = vst.msk [vmem:[%s809_s7 + $0x60] sm:$0xff] %vm469_vm2, %v420_v60 }
  0xc8   : > { %v439_v61 = vpop.f32.mrf.mxu2  ;;  %v459_v62 = vpop.f32.mrf.mxu3 }
  0xc9   : > { %v440_v63 = vadd.f32 %v804_v24, %v439_v61  ;;  %v460_v0 = vadd.f32 %v804_v24, %v459_v62  ;;  %v401_v1 = vpop.f32.mrf.mxu0  ;;  %v421_v2 = vpop.f32.mrf.mxu1 }
  0xca   : > { %v402_v3 = vadd.f32 %v804_v24, %v401_v1  ;;  %v422_v4 = vadd.f32 %v804_v24, %v421_v2 }
  0xcb   : > { %490 = vst.msk [vmem:[%s809_s7 + $0xa0] sm:$0xff] %vm469_vm2, %v440_v63 }
  0xcc   : > { %498 = vst.msk [vmem:[%s809_s7 + $0xe0] sm:$0xff] %vm469_vm2, %v460_v0 }
  0xcd   : > { %475 = vst.msk [vmem:[%s809_s7 + $0x28] sm:$0xff] %vm469_vm2, %v402_v3 }
  0xce   : > { %483 = vst.msk [vmem:[%s809_s7 + $0x68] sm:$0xff] %vm469_vm2, %v422_v4 }
  0xd0   : > { %v441_v5 = vpop.f32.mrf.mxu2  ;;  %v461_v6 = vpop.f32.mrf.mxu3 }
  0xd1   : > { %v442_v7 = vadd.f32 %v804_v24, %v441_v5  ;;  %v462_v8 = vadd.f32 %v804_v24, %v461_v6  ;;  %v404_v9 = vpop.f32.mrf.mxu0  ;;  %v424_v10 = vpop.f32.mrf.mxu1 }
  0xd2   : > { %v405_v11 = vadd.f32 %v804_v24, %v404_v9  ;;  %v425_v12 = vadd.f32 %v804_v24, %v424_v10 }
  0xd3   : > { %491 = vst.msk [vmem:[%s809_s7 + $0xa8] sm:$0xff] %vm469_vm2, %v442_v7 }
  0xd4   : > { %499 = vst.msk [vmem:[%s809_s7 + $0xe8] sm:$0xff] %vm469_vm2, %v462_v8 }
  0xd5   : > { %476 = vst.msk [vmem:[%s809_s7 + $0x30] sm:$0xff] %vm469_vm2, %v405_v11 }
  0xd6   : > { %484 = vst.msk [vmem:[%s809_s7 + $0x70] sm:$0xff] %vm469_vm2, %v425_v12 }
  0xd8   : > { %v444_v13 = vpop.f32.mrf.mxu2  ;;  %v464_v14 = vpop.f32.mrf.mxu3 }
  0xd9   : > { %v445_v15 = vadd.f32 %v804_v24, %v444_v13  ;;  %v465_v16 = vadd.f32 %v804_v24, %v464_v14  ;;  %v406_v17 = vpop.f32.mrf.mxu0  ;;  %v426_v18 = vpop.f32.mrf.mxu1 }
  0xda   : > { %v407_v19 = vadd.f32 %v804_v24, %v406_v17  ;;  %v427_v20 = vadd.f32 %v804_v24, %v426_v18 }
  0xdb   : > { %492 = vst.msk [vmem:[%s809_s7 + $0xb0] sm:$0xff] %vm469_vm2, %v445_v15 }
  0xdc   : > { %500 = vst.msk [vmem:[%s809_s7 + $0xf0] sm:$0xff] %vm469_vm2, %v465_v16 }
  0xdd   : > { %477 = vst.msk [vmem:[%s809_s7 + $0x38] sm:$0xff] %vm469_vm2, %v407_v19 }
  0xde   : > { %485 = vst.msk [vmem:[%s809_s7 + $0x78] sm:$0xff] %vm469_vm2, %v427_v20 }
  0xe0   : > { %v446_v21 = vpop.f32.mrf.mxu2  ;;  %v466_v22 = vpop.f32.mrf.mxu3 }
  0xe1   : > { %v447_v23 = vadd.f32 %v804_v24, %v446_v21  ;;  %v467_v25 = vadd.f32 %v804_v24, %v466_v22 }
  0xe3   : > { %493 = vst.msk [vmem:[%s809_s7 + $0xb8] sm:$0xff] %vm469_vm2, %v447_v23 }
  0xe4   : > { %501 = vst.msk [vmem:[%s809_s7 + $0xf8] sm:$0xff] %vm469_vm2, %v467_v25 }
  0xe5 PF: > { %s13_s12 = sadd.s32 1, %s715_s12  }
  0xe6   : > { %p10_p4 = scmp.ge.s32.totalorder %s13_s12, 4  }
  0xe8   :  { %12 = sbr.rel (!%p10_p4) target bundleno = 1 (0x1), region = 62 }

// kernel: tile.66
= control target key start
LH: loop header
LB: loop body
LE: loop exit
PB: predicated region body
PF: predicated region fallthrough
CT: control target
= control target key end

     0   :  { %vm6_vm0 = vcmask 1043458   ;;  %vm10_vm1 = vcmask 1045508   ;;  %vm14_vm2 = vcmask 1047558   ;;  %s24_s6 = smov 3  ;;  %s27_s7 = smov 12  ;;  %vm16_vm3 = vcmask 64512   ;;  %s974_s0 = inlined_call_operand.vmem [shape: f32[9,16,8], index: 0, kind: input, shape index: {}]   ;;  %s975_s1 = inlined_call_operand.vmem [shape: f32[9,128], index: 1, kind: output, shape index: {}]  }
   0x1   :  { %v460_v0 = vld [vmem:[%s974_s0 + $0xf] ss:$16 sm:%s24_s6]   ;;  %s32_s12 = smov 48  ;;  %s37_s13 = smov 192  ;;  %v470_v26 = vld [vmem:[%s974_s0 + $0x8e] sm:$0x1]  }
   0x2   :  { %v461_v1 = vld [vmem:[%s974_s0 + $0xf] ss:$16 sm:%s27_s7]   ;;  %s53_s18 = smov 3  ;;  %s56_s21 = smov 12  ;;  %v476_v32 = vld [vmem:[%s974_s0 + $0x8d] sm:$0x1]  }
   0x3   :  { %v30_v2 = vsel %vm6_vm0, %v461_v1, %v460_v0  ;;  %v462_v3 = vld [vmem:[%s974_s0 + $0xf] ss:$16 sm:%s32_s12]   ;;  %v466_v6 = vld [vmem:[%s974_s0 + $0xe] ss:$16 sm:%s53_s18]   ;;  %s61_s22 = smov 48  ;;  %s66_s27 = smov 192 }
   0x4   :  { %v463_v4 = vld [vmem:[%s974_s0 + $0xf] ss:$16 sm:%s37_s13]   ;;  %v35_v5 = vsel %vm10_vm1, %v462_v3, %v30_v2  ;;  %v467_v8 = vld [vmem:[%s974_s0 + $0xe] ss:$16 sm:%s56_s21]   ;;  %s565_s28 = smov 120   ;;  %s111_s2 = smov 3 }
   0x5   :  { %v40_v7 = vsel %vm14_vm2, %v463_v4, %v35_v5  ;;  %v468_v9 = vld [vmem:[%s974_s0 + $0xe] ss:$16 sm:%s61_s22]   ;;  %v59_v10 = vsel %vm6_vm0, %v467_v8, %v466_v6  ;;  %s114_s3 = smov 12  ;;  %v478_v14 = vld [vmem:[%s974_s0 + $0xc] ss:$16 sm:%s111_s2]   ;;  %s119_s6 = smov 48 }
   0x6   :  { %41 = vrot.lane.b32.xlu0 %v40_v7, %s565_s28  ;;  %v469_v11 = vld [vmem:[%s974_s0 + $0xe] ss:$16 sm:%s66_s27]   ;;  %v64_v12 = vsel %vm10_vm1, %v468_v9, %v59_v10  ;;  %s566_s7 = smov 112   ;;  %v464_v15 = vld [vmem:[%s974_s0 + $0x8f] sm:$0x1]   ;;  %s82_s12 = smov 3 }
   0x7   :  { %v69_v13 = vsel %vm14_vm2, %v469_v11, %v64_v12  ;;  %v479_v16 = vld [vmem:[%s974_s0 + $0xc] ss:$16 sm:%s114_s3]   ;;  %s85_s13 = smov 12  ;;  %v472_v17 = vld [vmem:[%s974_s0 + $0xd] ss:$16 sm:%s82_s12]   ;;  %s90_s18 = smov 48 }
   0x8   :  { %70 = vrot.lane.b32.xlu1 %v69_v13, %s566_s7  ;;  %v473_v18 = vld [vmem:[%s974_s0 + $0xd] ss:$16 sm:%s85_s13]   ;;  %s95_s19 = smov 192  ;;  %v117_v23 = vsel %vm6_vm0, %v479_v16, %v478_v14  ;;  %s124_s26 = smov 192  ;;  %v482_v37 = vld [vmem:[%s974_s0 + $0x8c] sm:$0x1]  }
   0x9   :  { %v88_v19 = vsel %vm6_vm0, %v473_v18, %v472_v17  ;;  %v474_v20 = vld [vmem:[%s974_s0 + $0xd] ss:$16 sm:%s90_s18]   ;;  %v480_v24 = vld [vmem:[%s974_s0 + $0xc] ss:$16 sm:%s119_s6]   ;;  %s567_s29 = smov 104   ;;  %s169_s3 = smov 3 }
   0xa   :  { %v475_v21 = vld [vmem:[%s974_s0 + $0xd] ss:$16 sm:%s95_s19]   ;;  %v93_v22 = vsel %vm10_vm1, %v474_v20, %v88_v19  ;;  %v122_v27 = vsel %vm10_vm1, %v480_v24, %v117_v23  ;;  %v481_v28 = vld [vmem:[%s974_s0 + $0xc] ss:$16 sm:%s124_s26]   ;;  %s140_s4 = smov 3  ;;  %s143_s5 = smov 12 }
   0xb   :  { %v98_v25 = vsel %vm14_vm2, %v475_v21, %v93_v22  ;;  %s172_s6 = smov 12  ;;  %v484_v29 = vld [vmem:[%s974_s0 + $0xb] ss:$16 sm:%s140_s4]   ;;  %s148_s11 = smov 48  ;;  %v127_v31 = vsel %vm14_vm2, %v481_v28, %v122_v27  ;;  %v490_v33 = vld [vmem:[%s974_s0 + $0xa] ss:$16 sm:%s169_s3]  }
   0xc   :  { %99 = vrot.lane.b32.xlu2 %v98_v25, %s567_s29  ;;  %v485_v30 = vld [vmem:[%s974_s0 + $0xb] ss:$16 sm:%s143_s5]   ;;  %s177_s18 = smov 48  ;;  %s153_s21 = smov 192  ;;  %v494_v56 = vld [vmem:[%s974_s0 + $0x8a] sm:$0x1]  }
   0xd   :  { %v491_v34 = vld [vmem:[%s974_s0 + $0xa] ss:$16 sm:%s172_s6]   ;;  %v146_v35 = vsel %vm6_vm0, %v485_v30, %v484_v29  ;;  %v486_v36 = vld [vmem:[%s974_s0 + $0xb] ss:$16 sm:%s148_s11]   ;;  %s568_s22 = smov 96   ;;  %s198_s25 = smov 3 }
   0xe   :  { %47 = vrot.lane.b32.xlu0 %v464_v15, %s565_s28  ;;  %s201_s26 = smov 12  ;;  %v175_v38 = vsel %vm6_vm0, %v491_v34, %v490_v33  ;;  %v492_v39 = vld [vmem:[%s974_s0 + $0xa] ss:$16 sm:%s177_s18]   ;;  %v151_v40 = vsel %vm10_vm1, %v486_v36, %v146_v35  ;;  %v488_v44 = vld [vmem:[%s974_s0 + $0x8b] sm:$0x1]   ;;  %s211_s14 = smov 192 }
   0xf   :  { %v487_v41 = vld [vmem:[%s974_s0 + $0xb] ss:$16 sm:%s153_s21]   ;;  %v496_v42 = vld [vmem:[%s974_s0 + $0x9] ss:$16 sm:%s198_s25]   ;;  %v180_v45 = vsel %vm10_vm1, %v492_v39, %v175_v38  ;;  %s569_s15 = smov 88   ;;  %s227_s16 = smov 3 }
  0x10   :  { %76 = vrot.lane.b32.xlu1 %v470_v26, %s566_s7  ;;  %v497_v43 = vld [vmem:[%s974_s0 + $0x9] ss:$16 sm:%s201_s26]   ;;  %s206_s7 = smov 48  ;;  %v156_v47 = vsel %vm14_vm2, %v487_v41, %v151_v40  ;;  %s230_s17 = smov 12  ;;  %v506_v4 = vld [vmem:[%s974_s0 + $0x88] sm:$0x1]  }
  0x11   :  { %v204_v48 = vsel %vm6_vm0, %v497_v43, %v496_v42  ;;  %v498_v49 = vld [vmem:[%s974_s0 + $0x9] ss:$16 sm:%s206_s7]   ;;  %s570_s20 = smov 80   ;;  %s256_s21 = smov 3  ;;  %v502_v53 = vld [vmem:[%s974_s0 + $0x8] ss:$16 sm:%s227_s16]  }
  0x12   :  { %v209_v51 = vsel %vm10_vm1, %v498_v49, %v204_v48  ;;  %v499_v52 = vld [vmem:[%s974_s0 + $0x9] ss:$16 sm:%s211_s14]   ;;  %v503_v54 = vld [vmem:[%s974_s0 + $0x8] ss:$16 sm:%s230_s17]   ;;  %s235_s27 = smov 48  ;;  %s264_s5 = smov 48 }
  0x13   :  { %v214_v55 = vsel %vm14_vm2, %v499_v52, %v209_v51  ;;  %v508_v57 = vld [vmem:[%s974_s0 + $0x7] ss:$16 sm:%s256_s21]   ;;  %v233_v59 = vsel %vm6_vm0, %v503_v54, %v502_v53  ;;  %v504_v60 = vld [vmem:[%s974_s0 + $0x8] ss:$16 sm:%s235_s27]   ;;  %s240_s8 = smov 192  ;;  %s571_s9 = smov 72  }
  0x14   :  { %105 = vrot.lane.b32.xlu2 %v476_v32, %s567_s29  ;;  %s182_s29 = smov 192  ;;  %v500_v61 = vld [vmem:[%s974_s0 + $0x89] sm:$0x1]   ;;  %s285_s12 = smov 3  ;;  %v510_v63 = vld [vmem:[%s974_s0 + $0x7] ss:$16 sm:%s264_s5]   ;;  %v238_v0 = vsel %vm10_vm1, %v504_v60, %v233_v59 }
  0x15   :  { %v493_v46 = vld [vmem:[%s974_s0 + $0xa] ss:$16 sm:%s182_s29]   ;;  %s288_s13 = smov 12  ;;  %s269_s16 = smov 192  ;;  %v505_v1 = vld [vmem:[%s974_s0 + $0x8] ss:$16 sm:%s240_s8]  }
  0x16   :  { %128 = vrot.lane.b32.xlu0 %v127_v31, %s568_s22  ;;  %v185_v50 = vsel %vm14_vm2, %v493_v46, %v180_v45  ;;  %v514_v2 = vld [vmem:[%s974_s0 + $0x6] ss:$16 sm:%s285_s12]   ;;  %s293_s23 = smov 48  ;;  %v243_v7 = vsel %vm14_vm2, %v505_v1, %v238_v0  ;;  %s298_s30 = smov 192  ;;  %v512_v16 = vld [vmem:[%s974_s0 + $0x87] sm:$0x1]  }
  0x17   :  { %v515_v3 = vld [vmem:[%s974_s0 + $0x6] ss:$16 sm:%s288_s13]   ;;  %v511_v6 = vld [vmem:[%s974_s0 + $0x7] ss:$16 sm:%s269_s16]   ;;  %s572_s2 = smov 64   ;;  %s314_s3 = smov 3 }
  0x18   :  { %134 = vrot.lane.b32.xlu1 %v482_v37, %s568_s22  ;;  %s259_s22 = smov 12  ;;  %v291_v8 = vsel %vm6_vm0, %v515_v3, %v514_v2  ;;  %v516_v9 = vld [vmem:[%s974_s0 + $0x6] ss:$16 sm:%s293_s23]   ;;  %s317_s4 = smov 12  ;;  %v524_v28 = vld [vmem:[%s974_s0 + $0x85] sm:$0x1]  }
  0x19   :  { %v509_v58 = vld [vmem:[%s974_s0 + $0x7] ss:$16 sm:%s259_s22]   ;;  %v296_v11 = vsel %vm10_vm1, %v516_v9, %v291_v8  ;;  %v517_v12 = vld [vmem:[%s974_s0 + $0x6] ss:$16 sm:%s298_s30]   ;;  %s573_s7 = smov 56   ;;  %s343_s8 = smov 3 }
  0x1a   :  { %v262_v62 = vsel %vm6_vm0, %v509_v58, %v508_v57  ;;  %v520_v13 = vld [vmem:[%s974_s0 + $0x5] ss:$16 sm:%s314_s3]   ;;  %s322_s14 = smov 48  ;;  %v301_v15 = vsel %vm14_vm2, %v517_v12, %v296_v11  ;;  %v526_v17 = vld [vmem:[%s974_s0 + $0x4] ss:$16 sm:%s343_s8]   ;;  %s351_s21 = smov 48 }
  0x1b   :  { %v267_v5 = vsel %vm10_vm1, %v510_v63, %v262_v62  ;;  %v521_v14 = vld [vmem:[%s974_s0 + $0x5] ss:$16 sm:%s317_s4]   ;;  %s327_s24 = smov 192  ;;  %s574_s25 = smov 48   ;;  %v518_v21 = vld [vmem:[%s974_s0 + $0x86] sm:$0x1]  }
  0x1c   :  { %157 = vrot.lane.b32.xlu2 %v156_v47, %s569_s15  ;;  %v272_v10 = vsel %vm14_vm2, %v511_v6, %v267_v5  ;;  %v320_v19 = vsel %vm6_vm0, %v521_v14, %v520_v13  ;;  %v522_v20 = vld [vmem:[%s974_s0 + $0x5] ss:$16 sm:%s322_s14]   ;;  %s372_s28 = smov 3  ;;  %s375_s29 = smov 12  ;;  %v530_v40 = vld [vmem:[%s974_s0 + $0x84] sm:$0x1]  }
  0x1d   :  { %v528_v23 = vld [vmem:[%s974_s0 + $0x4] ss:$16 sm:%s351_s21]   ;;  %s356_s3 = smov 192  ;;  %v325_v24 = vsel %vm10_vm1, %v522_v20, %v320_v19  ;;  %v523_v25 = vld [vmem:[%s974_s0 + $0x5] ss:$16 sm:%s327_s24]   ;;  %s380_s10 = smov 48 }
  0x1e   :  { %163 = vrot.lane.b32.xlu0 %v488_v44, %s569_s15  ;;  %v532_v26 = vld [vmem:[%s974_s0 + $0x3] ss:$16 sm:%s372_s28]   ;;  %v330_v31 = vsel %vm14_vm2, %v523_v25, %v325_v24  ;;  %s385_s17 = smov 192  ;;  %s575_s18 = smov 40   ;;  %v458_v63 = vld [vmem:[%s974_s0 + $0x80] sm:$0x1]  }
  0x1f   :  { %v533_v27 = vld [vmem:[%s974_s0 + $0x3] ss:$16 sm:%s375_s29]   ;;  %v529_v30 = vld [vmem:[%s974_s0 + $0x4] ss:$16 sm:%s356_s3]   ;;  %s401_s19 = smov 3  ;;  %s576_s23 = smov 32  }
  0x20   :  { %186 = vrot.lane.b32.xlu1 %v185_v50, %s570_s20  ;;  %v378_v32 = vsel %vm6_vm0, %v533_v27, %v532_v26  ;;  %v534_v33 = vld [vmem:[%s974_s0 + $0x3] ss:$16 sm:%s380_s10]   ;;  %s430_s24 = smov 3  ;;  %s409_s30 = smov 48  ;;  %v542_v50 = vld [vmem:[%s974_s0 + $0x82] sm:$0x1]  }
  0x21   :  { %v383_v35 = vsel %vm10_vm1, %v534_v33, %v378_v32  ;;  %v535_v36 = vld [vmem:[%s974_s0 + $0x3] ss:$16 sm:%s385_s17]   ;;  %v538_v37 = vld [vmem:[%s974_s0 + $0x2] ss:$16 sm:%s401_s19]   ;;  %s438_s8 = smov 48  ;;  %s414_s11 = smov 192 }
  0x22   :  { %v388_v39 = vsel %vm14_vm2, %v535_v36, %v383_v35  ;;  %v544_v41 = vld [vmem:[%s974_s0 + $0x1] ss:$16 sm:%s430_s24]   ;;  %v540_v44 = vld [vmem:[%s974_s0 + $0x2] ss:$16 sm:%s409_s30]   ;;  %s577_s12 = smov 24   ;;  %s443_s17 = smov 192 }
  0x23   :  { %v536_v45 = vld [vmem:[%s974_s0 + $0x83] sm:$0x1]   ;;  %v546_v47 = vld [vmem:[%s974_s0 + $0x1] ss:$16 sm:%s438_s8]   ;;  %s578_s24 = smov 16   ;;  %s2_s28 = smov 3 }
  0x24   :  { %192 = vrot.lane.b32.xlu2 %v494_v56, %s570_s20  ;;  %s404_s20 = smov 12  ;;  %v541_v49 = vld [vmem:[%s974_s0 + $0x2] ss:$16 sm:%s414_s11]   ;;  %s4_s29 = smov 12  ;;  %459 = vst.msk [vmem:[%s975_s1 + $0x8] sm:$0x1] %vm16_vm3, %v458_v63  }
  0x25   :  { %v539_v38 = vld [vmem:[%s974_s0 + $0x2] ss:$16 sm:%s404_s20]   ;;  %v547_v52 = vld [vmem:[%s974_s0 + $0x1] ss:$16 sm:%s443_s17]   ;;  %s8_s30 = smov 48  ;;  %vm43_vm4 = vcmask 1048512  }
  0x26   :  { %215 = vrot.lane.b32.xlu0 %v214_v55, %s571_s9  ;;  %v407_v43 = vsel %vm6_vm0, %v539_v38, %v538_v37  ;;  %v548_v55 = vld [vmem:[%s974_s0 + $0x81] sm:$0x1]   ;;  %v3_v56 = vld [vmem:[%s974_s0] ss:$16 sm:%s2_s28]   ;;  %vm72_vm5 = vcmask 982912   ;;  %vm101_vm6 = vcmask 917312  }
  0x27   :  { %v412_v48 = vsel %vm10_vm1, %v540_v44, %v407_v43  ;;  %v5_v57 = vld [vmem:[%s974_s0] ss:$16 sm:%s4_s29]   ;;  %vm130_vm7 = vcmask 851712   ;;  %vm159_vm8 = vcmask 786112   ;;  %vm188_vm9 = vcmask 720512  }
  0x28   :  { %221 = vrot.lane.b32.xlu1 %v500_v61, %s571_s9  ;;  %s346_s9 = smov 12  ;;  %v417_v53 = vsel %vm14_vm2, %v541_v49, %v412_v48  ;;  %v9_v58 = vld [vmem:[%s974_s0] ss:$16 sm:%s8_s30]   ;;  %v7_v59 = vsel %vm6_vm0, %v5_v57, %v3_v56  ;;  %vm217_vm10 = vcmask 654912   ;;  %vm246_vm11 = vcmask 589312  }
  0x29   :  { %v527_v18 = vld [vmem:[%s974_s0 + $0x4] ss:$16 sm:%s346_s9]   ;;  %v11_v61 = vsel %vm10_vm1, %v9_v58, %v7_v59  ;;  %vm275_vm12 = vcmask 523712   ;;  %vm304_vm13 = vcmask 458112   ;;  %vm333_vm14 = vcmask 392512  }
  0x2a   :  { %v349_v22 = vsel %vm6_vm0, %v527_v18, %v526_v17  ;;  %vm362_vm15 = vcmask 326912  }
  0x2b   :  { %v354_v29 = vsel %vm10_vm1, %v528_v23, %v349_v22 }
  0x2c   :  { %244 = vrot.lane.b32.xlu2 %v243_v7, %s572_s2  ;;  %v359_v34 = vsel %vm14_vm2, %v529_v30, %v354_v29 }
  0x2e   :  { %250 = vrot.lane.b32.xlu0 %v506_v4, %s572_s2  ;;  %s12_s2 = smov 192 }
  0x2f   :  { %v13_v60 = vld [vmem:[%s974_s0] ss:$16 sm:%s12_s2]  }
  0x30   :  { %273 = vrot.lane.b32.xlu1 %v272_v10, %s573_s7  ;;  %v15_v62 = vsel %vm14_vm2, %v13_v60, %v11_v61 }
  0x31   :  { %17 = vst.msk [vmem:[%s975_s1] sm:$0xff] %vm16_vm3, %v15_v62  }
  0x34   :  { %279 = vrot.lane.b32.xlu2 %v512_v16, %s573_s7 }
  0x36   :  { %302 = vrot.lane.b32.xlu0 %v301_v15, %s574_s25 }
  0x38   :  { %308 = vrot.lane.b32.xlu1 %v518_v21, %s574_s25  ;;  %s433_s25 = smov 12 }
  0x39   :  { %v545_v42 = vld [vmem:[%s974_s0 + $0x1] ss:$16 sm:%s433_s25]   ;;  %s579_s25 = smov 8  }
  0x3a   :  { %v436_v46 = vsel %vm6_vm0, %v545_v42, %v544_v41  ;;  %vm391_vm0 = vcmask 261312  }
  0x3b   :  { %v441_v51 = vsel %vm10_vm1, %v546_v47, %v436_v46  ;;  %vm420_vm1 = vcmask 195712  }
  0x3c   :  { %331 = vrot.lane.b32.xlu2 %v330_v31, %s575_s18  ;;  %v446_v54 = vsel %vm14_vm2, %v547_v52, %v441_v51  ;;  %vm449_vm2 = vcmask 130112  }
  0x3e   :  { %337 = vrot.lane.b32.xlu0 %v524_v28, %s575_s18 }
  0x40   :  { %360 = vrot.lane.b32.xlu1 %v359_v34, %s576_s23 }
  0x44   :  { %366 = vrot.lane.b32.xlu2 %v530_v40, %s576_s23 }
  0x46   :  { %389 = vrot.lane.b32.xlu0 %v388_v39, %s577_s12 }
  0x48   :  { %395 = vrot.lane.b32.xlu1 %v536_v45, %s577_s12 }
  0x4c   :  { %418 = vrot.lane.b32.xlu2 %v417_v53, %s578_s24 }
  0x4e   :  { %424 = vrot.lane.b32.xlu0 %v542_v50, %s578_s24 }
  0x50   :  { %447 = vrot.lane.b32.xlu1 %v446_v54, %s579_s25 }
  0x54   :  { %453 = vrot.lane.b32.xlu2 %v548_v55, %s579_s25 }
  0x66   :  { %v100_v0 = vpop.permute.xlu2 %99  }
  0x6e   :  { %v106_v1 = vpop.permute.xlu2 %105  }
  0x76   :  { %v158_v3 = vpop.permute.xlu2 %157  }
  0x78   :  { %v42_v2 = vpop.permute.xlu0 %41  }
  0x79   :  { %44 = vst.msk [vmem:[%s975_s1] sm:$0xff] %vm43_vm4, %v42_v2  }
  0x7a   :  { %v71_v4 = vpop.permute.xlu1 %70  }
  0x7b   :  { %73 = vst.msk [vmem:[%s975_s1] sm:$0xff] %vm72_vm5, %v71_v4  }
  0x7c   :  { %102 = vst.msk [vmem:[%s975_s1] sm:$0xff] %vm101_vm6, %v100_v0  }
  0x7e   :  { %v193_v6 = vpop.permute.xlu2 %192  }
  0x80   :  { %v48_v5 = vpop.permute.xlu0 %47  }
  0x81   :  { %465 = vst.msk [vmem:[%s975_s1 + $0x8] sm:$0x1] %vm43_vm4, %v48_v5  }
  0x82   :  { %v77_v7 = vpop.permute.xlu1 %76  }
  0x83   :  { %471 = vst.msk [vmem:[%s975_s1 + $0x8] sm:$0x1] %vm72_vm5, %v77_v7  }
  0x84   :  { %477 = vst.msk [vmem:[%s975_s1 + $0x8] sm:$0x1] %vm101_vm6, %v106_v1  }
  0x86   :  { %v245_v9 = vpop.permute.xlu2 %244  }
  0x88   :  { %v129_v8 = vpop.permute.xlu0 %128  }
  0x89   :  { %131 = vst.msk [vmem:[%s975_s1] sm:$0xff] %vm130_vm7, %v129_v8  }
  0x8a   :  { %160 = vst.msk [vmem:[%s975_s1] sm:$0xff] %vm159_vm8, %v158_v3   ;;  %v135_v10 = vpop.permute.xlu1 %134  }
  0x8b   :  { %483 = vst.msk [vmem:[%s975_s1 + $0x8] sm:$0x1] %vm130_vm7, %v135_v10  }
  0x8e   :  { %v280_v12 = vpop.permute.xlu2 %279  }
  0x90   :  { %v164_v11 = vpop.permute.xlu0 %163  }
  0x91   :  { %489 = vst.msk [vmem:[%s975_s1 + $0x8] sm:$0x1] %vm159_vm8, %v164_v11  }
  0x92   :  { %495 = vst.msk [vmem:[%s975_s1 + $0x8] sm:$0x1] %vm188_vm9, %v193_v6   ;;  %v187_v13 = vpop.permute.xlu1 %186  }
  0x93   :  { %189 = vst.msk [vmem:[%s975_s1] sm:$0xff] %vm188_vm9, %v187_v13  }
  0x96   :  { %v332_v15 = vpop.permute.xlu2 %331  }
  0x98   :  { %v216_v14 = vpop.permute.xlu0 %215  }
  0x99   :  { %218 = vst.msk [vmem:[%s975_s1] sm:$0xff] %vm217_vm10, %v216_v14  }
  0x9a   :  { %247 = vst.msk [vmem:[%s975_s1] sm:$0xff] %vm246_vm11, %v245_v9   ;;  %v222_v16 = vpop.permute.xlu1 %221  }
  0x9b   :  { %501 = vst.msk [vmem:[%s975_s1 + $0x8] sm:$0x1] %vm217_vm10, %v222_v16  }
  0x9e   :  { %v367_v18 = vpop.permute.xlu2 %366  }
  0xa0   :  { %v251_v17 = vpop.permute.xlu0 %250  }
  0xa1   :  { %507 = vst.msk [vmem:[%s975_s1 + $0x8] sm:$0x1] %vm246_vm11, %v251_v17  }
  0xa2   :  { %513 = vst.msk [vmem:[%s975_s1 + $0x8] sm:$0x1] %vm275_vm12, %v280_v12   ;;  %v274_v19 = vpop.permute.xlu1 %273  }
  0xa3   :  { %276 = vst.msk [vmem:[%s975_s1] sm:$0xff] %vm275_vm12, %v274_v19  }
  0xa6   :  { %v419_v21 = vpop.permute.xlu2 %418  }
  0xa8   :  { %v303_v20 = vpop.permute.xlu0 %302  }
  0xa9   :  { %305 = vst.msk [vmem:[%s975_s1] sm:$0xff] %vm304_vm13, %v303_v20  }
  0xaa   :  { %334 = vst.msk [vmem:[%s975_s1] sm:$0xff] %vm333_vm14, %v332_v15   ;;  %v309_v22 = vpop.permute.xlu1 %308  }
  0xab   :  { %519 = vst.msk [vmem:[%s975_s1 + $0x8] sm:$0x1] %vm304_vm13, %v309_v22  }
  0xae   :  { %v454_v24 = vpop.permute.xlu2 %453  }
  0xb0   :  { %v338_v23 = vpop.permute.xlu0 %337  }
  0xb1   :  { %525 = vst.msk [vmem:[%s975_s1 + $0x8] sm:$0x1] %vm333_vm14, %v338_v23  }
  0xb2   :  { %531 = vst.msk [vmem:[%s975_s1 + $0x8] sm:$0x1] %vm362_vm15, %v367_v18   ;;  %v361_v25 = vpop.permute.xlu1 %360  }
  0xb3   :  { %363 = vst.msk [vmem:[%s975_s1] sm:$0xff] %vm362_vm15, %v361_v25  }
  0xb8   :  { %v390_v26 = vpop.permute.xlu0 %389  }
  0xb9   :  { %392 = vst.msk [vmem:[%s975_s1] sm:$0xff] %vm391_vm0, %v390_v26  }
  0xba   :  { %421 = vst.msk [vmem:[%s975_s1] sm:$0xff] %vm420_vm1, %v419_v21   ;;  %v396_v27 = vpop.permute.xlu1 %395  }
  0xbb   :  { %537 = vst.msk [vmem:[%s975_s1 + $0x8] sm:$0x1] %vm391_vm0, %v396_v27  }
  0xc0   :  { %v425_v28 = vpop.permute.xlu0 %424  }
  0xc1   :  { %543 = vst.msk [vmem:[%s975_s1 + $0x8] sm:$0x1] %vm420_vm1, %v425_v28  }
  0xc2   :  { %549 = vst.msk [vmem:[%s975_s1 + $0x8] sm:$0x1] %vm449_vm2, %v454_v24   ;;  %v448_v29 = vpop.permute.xlu1 %447  }
  0xc3   :  { %450 = vst.msk [vmem:[%s975_s1] sm:$0xff] %vm449_vm2, %v448_v29  }

// kernel: tile.70
= control target key start
LH: loop header
LB: loop body
LE: loop exit
PB: predicated region body
PF: predicated region fallthrough
CT: control target
= control target key end

     0   :  { %s28_s0 = inlined_call_operand.vmem [shape: f32[8], index: 0, kind: input, shape index: {}]   ;;  %s29_s1 = inlined_call_operand.vmem [shape: f32[16,8], index: 1, kind: output, shape index: {}]  }
   0x1   :  { %v4_v0 = vld [vmem:[%s28_s0] ss:$0 sm:$0xff] }
   0x2   :  { %5 = vst [vmem:[%s29_s1] sm:$0xff] %v4_v0 }
   0x3   :  { %8 = vst [vmem:[%s29_s1 + $0x8] sm:$0xff] %v4_v0 }

// kernel: tile.71
= control target key start
LH: loop header
LB: loop body
LE: loop exit
PB: predicated region body
PF: predicated region fallthrough
CT: control target
= control target key end

     0   :  { %s131_s10 = smov 120   ;;  %s132_s11 = smov 104   ;;  %vm3_vm0 = vcmask 64512   ;;  %vm9_vm1 = vcmask 1048512   ;;  %vm15_vm2 = vcmask 982912   ;;  %vm21_vm3 = vcmask 917312   ;;  %s207_s0 = inlined_call_operand.vmem [shape: f32[16,8], index: 0, kind: input, shape index: {}]   ;;  %s208_s1 = inlined_call_operand.vmem [shape: f32[1,128], index: 1, kind: output, shape index: {}]  }
   0x1   :  { %v101_v0 = vld [vmem:[%s207_s0 + $0xf] sm:$0x1]   ;;  %v103_v1 = vld [vmem:[%s207_s0 + $0xd] sm:$0x1]   ;;  %v105_v2 = vld [vmem:[%s207_s0 + $0xb] sm:$0x1]  }
   0x2   :  { %7 = vrot.lane.b32.xlu0 %v101_v0, %s131_s10  ;;  %19 = vrot.lane.b32.xlu1 %v103_v1, %s132_s11  ;;  %s133_s14 = smov 88   ;;  %v102_v3 = vld [vmem:[%s207_s0 + $0xe] sm:$0x1]   ;;  %v104_v4 = vld [vmem:[%s207_s0 + $0xc] sm:$0x1]   ;;  %s134_s19 = smov 112  }
   0x3   :  { %31 = vrot.lane.b32.xlu2 %v105_v2, %s133_s14  ;;  %s135_s20 = smov 96   ;;  %v106_v5 = vld [vmem:[%s207_s0 + $0xa] sm:$0x1]   ;;  %s136_s23 = smov 80   ;;  %v107_v6 = vld [vmem:[%s207_s0 + $0x9] sm:$0x1]  }
   0x4   :  { %v108_v7 = vld [vmem:[%s207_s0 + $0x8] sm:$0x1]   ;;  %s137_s28 = smov 72   ;;  %s138_s29 = smov 64   ;;  %v109_v8 = vld [vmem:[%s207_s0 + $0x7] sm:$0x1]  }
   0x5   :  { %s139_s3 = smov 56   ;;  %v110_v9 = vld [vmem:[%s207_s0 + $0x6] sm:$0x1]   ;;  %v111_v10 = vld [vmem:[%s207_s0 + $0x5] sm:$0x1]   ;;  %s140_s8 = smov 48  }
   0x6   :  { %s141_s9 = smov 40   ;;  %v112_v11 = vld [vmem:[%s207_s0 + $0x4] sm:$0x1]   ;;  %s142_s12 = smov 32   ;;  %v113_v12 = vld [vmem:[%s207_s0 + $0x3] sm:$0x1]  }
   0x7   :  { %v114_v13 = vld [vmem:[%s207_s0 + $0x2] sm:$0x1]   ;;  %s143_s17 = smov 24   ;;  %s144_s18 = smov 16   ;;  %v115_v14 = vld [vmem:[%s207_s0 + $0x1] sm:$0x1]  }
   0x8   :  { %s145_s21 = smov 8   ;;  %v2_v15 = vld [vmem:[%s207_s0] sm:$0x1]   ;;  %vm27_vm4 = vcmask 851712   ;;  %vm33_vm5 = vcmask 786112   ;;  %vm39_vm6 = vcmask 720512  }
   0x9   :  { %4 = vst.msk [vmem:[#allocation0] sm:$0x1] %vm3_vm0, %v2_v15   ;;  %vm45_vm7 = vcmask 654912   ;;  %vm51_vm8 = vcmask 589312   ;;  %vm57_vm9 = vcmask 523712   ;;  %vm63_vm10 = vcmask 458112  }
   0xa   :  { %13 = vrot.lane.b32.xlu0 %v102_v3, %s134_s19  ;;  %25 = vrot.lane.b32.xlu1 %v104_v4, %s135_s20  ;;  %vm69_vm11 = vcmask 392512   ;;  %vm75_vm12 = vcmask 326912   ;;  %vm81_vm13 = vcmask 261312   ;;  %vm87_vm14 = vcmask 195712  }
   0xb   :  { %37 = vrot.lane.b32.xlu2 %v106_v5, %s136_s23  ;;  %vm93_vm15 = vcmask 130112  }
  0x12   :  { %43 = vrot.lane.b32.xlu0 %v107_v6, %s137_s28  ;;  %49 = vrot.lane.b32.xlu1 %v108_v7, %s138_s29 }
  0x13   :  { %55 = vrot.lane.b32.xlu2 %v109_v8, %s139_s3 }
  0x1a   :  { %61 = vrot.lane.b32.xlu0 %v110_v9, %s140_s8  ;;  %67 = vrot.lane.b32.xlu1 %v111_v10, %s141_s9 }
  0x1b   :  { %73 = vrot.lane.b32.xlu2 %v112_v11, %s142_s12 }
  0x22   :  { %79 = vrot.lane.b32.xlu0 %v113_v12, %s143_s17  ;;  %85 = vrot.lane.b32.xlu1 %v114_v13, %s144_s18 }
  0x23   :  { %91 = vrot.lane.b32.xlu2 %v115_v14, %s145_s21 }
  0x5d   :  { %v32_v16 = vpop.permute.xlu2 %31  }
  0x65   :  { %v38_v17 = vpop.permute.xlu2 %37  }
  0x6d   :  { %v56_v18 = vpop.permute.xlu2 %55  }
  0x74   :  { %v8_v19 = vpop.permute.xlu0 %7   ;;  %v20_v20 = vpop.permute.xlu1 %19  }
  0x75   :  { %10 = vst.msk [vmem:[#allocation0] sm:$0x1] %vm9_vm1, %v8_v19   ;;  %v74_v21 = vpop.permute.xlu2 %73  }
  0x7c   :  { %v14_v22 = vpop.permute.xlu0 %13   ;;  %v26_v23 = vpop.permute.xlu1 %25  }
  0x7d   :  { %16 = vst.msk [vmem:[#allocation0] sm:$0x1] %vm15_vm2, %v14_v22   ;;  %v92_v24 = vpop.permute.xlu2 %91  }
  0x7e   :  { %22 = vst.msk [vmem:[#allocation0] sm:$0x1] %vm21_vm3, %v20_v20  }
  0x7f   :  { %28 = vst.msk [vmem:[#allocation0] sm:$0x1] %vm27_vm4, %v26_v23  }
  0x80   :  { %34 = vst.msk [vmem:[#allocation0] sm:$0x1] %vm33_vm5, %v32_v16  }
  0x81   :  { %40 = vst.msk [vmem:[#allocation0] sm:$0x1] %vm39_vm6, %v38_v17  }
  0x84   :  { %v44_v25 = vpop.permute.xlu0 %43   ;;  %v50_v26 = vpop.permute.xlu1 %49  }
  0x85   :  { %46 = vst.msk [vmem:[#allocation0] sm:$0x1] %vm45_vm7, %v44_v25  }
  0x86   :  { %52 = vst.msk [vmem:[#allocation0] sm:$0x1] %vm51_vm8, %v50_v26  }
  0x87   :  { %58 = vst.msk [vmem:[#allocation0] sm:$0x1] %vm57_vm9, %v56_v18  }
  0x8c   :  { %v62_v27 = vpop.permute.xlu0 %61   ;;  %v68_v28 = vpop.permute.xlu1 %67  }
  0x8d   :  { %64 = vst.msk [vmem:[#allocation0] sm:$0x1] %vm63_vm10, %v62_v27  }
  0x8e   :  { %70 = vst.msk [vmem:[#allocation0] sm:$0x1] %vm69_vm11, %v68_v28  }
  0x8f   :  { %76 = vst.msk [vmem:[#allocation0] sm:$0x1] %vm75_vm12, %v74_v21  }
  0x94   :  { %v80_v29 = vpop.permute.xlu0 %79   ;;  %v86_v30 = vpop.permute.xlu1 %85  }
  0x95   :  { %82 = vst.msk [vmem:[#allocation0] sm:$0x1] %vm81_vm13, %v80_v29  }
  0x96   :  { %88 = vst.msk [vmem:[#allocation0] sm:$0x1] %vm87_vm14, %v86_v30  }
  0x97   :  { %94 = vst.msk [vmem:[#allocation0] sm:$0x1] %vm93_vm15, %v92_v24  }
  0x9e   :  { %v97_v31 = vld [vmem:[#allocation0] sm:$0x1] }
  0x9f   :  { %100 = vst [vmem:[%s208_s1] sm:$0x1] %v97_v31 }

// kernel: phdnet_forward.27
= control target key start
LH: loop header
LB: loop body
LE: loop exit
PB: predicated region body
PF: predicated region fallthrough
CT: control target
= control target key end

     0   :  { %s525_s12 = smov 0   ;;  %s705_s0 = inlined_call_operand.vmem [shape: f32[512,8], index: 0, kind: input, shape index: {}]   ;;  %s706_s1 = inlined_call_operand.vmem [shape: bf16[8,8], index: 1, kind: input, shape index: {}]   ;;  %s707_s2 = inlined_call_operand.vmem [shape: f32[1,8], index: 2, kind: input, shape index: {}]   ;;  %s708_s3 = inlined_call_operand.vmem [shape: f32[512,8], index: 3, kind: output, shape index: {}]  }
   0x1 LB: > { %s458_s13 = sadd.s32 4294967295, %s503_s12   ;;  %p462_p0 = scmp.ge.s32.totalorder %s503_s12, 1  ;;  %s503_s12 = sphi %s525_s12, %s13_s12  }
   0x2   : > { %p138_p1 = scmp.lt.s32.totalorder %s503_s12, 3 }
   0x4   : > { %p139_p2 = pnand %p462_p0, %p138_p1 }
   0x5   : > { %s463_s16 = sshll.u32 (!%p139_p2), %s458_s13, 5 }
   0x6   : > { %142 = sbr.rel (%p139_p2) target bundleno = 211 (0xd3), region = 32  ;;  %p163_p3 = scmp.lt.s32.totalorder (!%p139_p2), %s463_s16, 63 }
   0xb   : > { %v223_v0 = vld [vmem:[%s706_s1] sm:$0xf]  ;;  %vm277_vm0 = vcmask 1043456   ;;  %s710_s16 = smov (!%p163_p3, %s463_s16), 63  ;;  %vm228_vm1 = vcmask 64512  }
   0xc   : > { %v279_v1 = vsel %vm277_vm0, %v223_v0, 0  ;;  %s464_s17 = sshll.u32 %s710_s16, 3  ;;  %v597_v50 = vld [vmem:[%s707_s2] ss:$0 sm:$0xff] }
   0xd   : > { %288 = vmatpush.bf16.msra.mxu0 %v279_v1  ;;  %485 = vmatpush.bf16.msra.mxu1 %v279_v1  ;;  %s544_s20 = scalar_lea.vmem %s705_s0, %s464_s17  ;;  %s604_s25 = scalar_lea.vmem %s708_s3, %s464_s17 }
   0xe   : > { %486 = vmatpush.bf16.msra.mxu2 %v279_v1  ;;  %487 = vmatpush.bf16.msra.mxu3 %v279_v1  ;;  %v175_v2 = vld [vmem:[%s544_s20] sm:$0xff]  ;;  %v176_v3 = vld [vmem:[%s544_s20 + $0x8] sm:$0xff]  ;;  %v177_v14 = vld [vmem:[%s544_s20 + $0x10] sm:$0xff] }
   0xf   : > { %v183_v4 = vld [vmem:[%s544_s20 + $0x40] sm:$0xff]  ;;  %v207_v5 = vpack.c.bf16 %v176_v3, %v175_v2  ;;  %v184_v6 = vld [vmem:[%s544_s20 + $0x48] sm:$0xff]  ;;  %v178_v15 = vld [vmem:[%s544_s20 + $0x18] sm:$0xff] }
  0x10   : > { %v191_v7 = vld [vmem:[%s544_s20 + $0x80] sm:$0xff]  ;;  %v192_v8 = vld [vmem:[%s544_s20 + $0x88] sm:$0xff]  ;;  %v211_v9 = vpack.c.bf16 %v184_v6, %v183_v4  ;;  %v185_v16 = vld [vmem:[%s544_s20 + $0x50] sm:$0xff]  ;;  %v208_v22 = vpack.c.bf16 %v178_v15, %v177_v14 }
  0x11   : > { %v215_v10 = vpack.c.bf16 %v192_v8, %v191_v7  ;;  %v199_v11 = vld [vmem:[%s544_s20 + $0xc0] sm:$0xff]  ;;  %v200_v12 = vld [vmem:[%s544_s20 + $0xc8] sm:$0xff]  ;;  %467 = vmatmul.msk.bf16.vlgmr.msra.gmra.mxu0 %vm228_vm1, %v207_v5  ;;  %v186_v17 = vld [vmem:[%s544_s20 + $0x58] sm:$0xff] }
  0x12   : > { %v219_v13 = vpack.c.bf16 %v200_v12, %v199_v11  ;;  %471 = vmatmul.msk.bf16.vlgmr.msra.gmra.mxu1 %vm228_vm1, %v211_v9  ;;  %v193_v18 = vld [vmem:[%s544_s20 + $0x90] sm:$0xff]  ;;  %v194_v19 = vld [vmem:[%s544_s20 + $0x98] sm:$0xff]  ;;  %v212_v23 = vpack.c.bf16 %v186_v17, %v185_v16  ;;  %v179_v26 = vld [vmem:[%s544_s20 + $0x20] sm:$0xff] }
  0x13   : > { %475 = vmatmul.msk.bf16.vlgmr.msra.gmra.mxu2 %vm228_vm1, %v215_v10  ;;  %v201_v20 = vld [vmem:[%s544_s20 + $0xd0] sm:$0xff]  ;;  %v202_v21 = vld [vmem:[%s544_s20 + $0xd8] sm:$0xff]  ;;  %v216_v24 = vpack.c.bf16 %v194_v19, %v193_v18  ;;  %v180_v27 = vld [vmem:[%s544_s20 + $0x28] sm:$0xff] }
  0x14   : > { %479 = vmatmul.msk.bf16.vlgmr.msra.gmra.mxu3 %vm228_vm1, %v219_v13  ;;  %v220_v25 = vpack.c.bf16 %v202_v21, %v201_v20  ;;  %v187_v28 = vld [vmem:[%s544_s20 + $0x60] sm:$0xff]  ;;  %v188_v29 = vld [vmem:[%s544_s20 + $0x68] sm:$0xff]  ;;  %v209_v34 = vpack.c.bf16 %v180_v27, %v179_v26  ;;  %v181_v38 = vld [vmem:[%s544_s20 + $0x30] sm:$0xff] }
  0x15   : > { %v195_v30 = vld [vmem:[%s544_s20 + $0xa0] sm:$0xff]  ;;  %v196_v31 = vld [vmem:[%s544_s20 + $0xa8] sm:$0xff]  ;;  %v213_v35 = vpack.c.bf16 %v188_v29, %v187_v28  ;;  %v182_v39 = vld [vmem:[%s544_s20 + $0x38] sm:$0xff] }
  0x16   : > { %v203_v32 = vld [vmem:[%s544_s20 + $0xe0] sm:$0xff]  ;;  %v204_v33 = vld [vmem:[%s544_s20 + $0xe8] sm:$0xff]  ;;  %v217_v36 = vpack.c.bf16 %v196_v31, %v195_v30  ;;  %v189_v40 = vld [vmem:[%s544_s20 + $0x70] sm:$0xff]  ;;  %v210_v46 = vpack.c.bf16 %v182_v39, %v181_v38 }
  0x17   : > { %v221_v37 = vpack.c.bf16 %v204_v33, %v203_v32  ;;  %v190_v41 = vld [vmem:[%s544_s20 + $0x78] sm:$0xff]  ;;  %v197_v42 = vld [vmem:[%s544_s20 + $0xb0] sm:$0xff] }
  0x18   : > { %v198_v43 = vld [vmem:[%s544_s20 + $0xb8] sm:$0xff]  ;;  %v205_v44 = vld [vmem:[%s544_s20 + $0xf0] sm:$0xff]  ;;  %v214_v47 = vpack.c.bf16 %v190_v41, %v189_v40 }
  0x19   : > { %v206_v45 = vld [vmem:[%s544_s20 + $0xf8] sm:$0xff]  ;;  %v218_v48 = vpack.c.bf16 %v198_v43, %v197_v42 }
  0x1a   : > { %v222_v49 = vpack.c.bf16 %v206_v45, %v205_v44 }
  0x21   : > { %468 = vmatmul.msk.bf16.gmra.mxu0 %vm228_vm1, %v208_v22 }
  0x22   : > { %472 = vmatmul.msk.bf16.gmra.mxu1 %vm228_vm1, %v212_v23 }
  0x23   : > { %476 = vmatmul.msk.bf16.gmra.mxu2 %vm228_vm1, %v216_v24 }
  0x24   : > { %480 = vmatmul.msk.bf16.gmra.mxu3 %vm228_vm1, %v220_v25 }
  0x31   : > { %469 = vmatmul.msk.bf16.gmra.mxu0 %vm228_vm1, %v209_v34 }
  0x32   : > { %473 = vmatmul.msk.bf16.gmra.mxu1 %vm228_vm1, %v213_v35 }
  0x33   : > { %477 = vmatmul.msk.bf16.gmra.mxu2 %vm228_vm1, %v217_v36 }
  0x34   : > { %481 = vmatmul.msk.bf16.gmra.mxu3 %vm228_vm1, %v221_v37 }
  0x41   : > { %470 = vmatmul.msk.bf16.gmra.mxu0 %vm228_vm1, %v210_v46 }
  0x42   : > { %474 = vmatmul.msk.bf16.gmra.mxu1 %vm228_vm1, %v214_v47 }
  0x43   : > { %478 = vmatmul.msk.bf16.gmra.mxu2 %vm228_vm1, %v218_v48 }
  0x44   : > { %482 = vmatmul.msk.bf16.gmra.mxu3 %vm228_vm1, %v222_v49 }
  0x8e   : > { %v290_v51 = vpop.f32.mrf.mxu0 }
  0x8f   : > { %v291_v52 = vadd.f32 %v597_v50, %v290_v51  ;;  %v310_v53 = vpop.f32.mrf.mxu1 }
  0x90   : > { %v311_v54 = vadd.f32 %v597_v50, %v310_v53 }
  0x91   : > { %370 = vst.msk [vmem:[%s604_s25] sm:$0xff] %vm228_vm1, %v291_v52 }
  0x92   : > { %378 = vst.msk [vmem:[%s604_s25 + $0x40] sm:$0xff] %vm228_vm1, %v311_v54 }
  0x96   : > { %v330_v55 = vpop.f32.mrf.mxu2  ;;  %v292_v58 = vpop.f32.mrf.mxu0 }
  0x97   : > { %v331_v56 = vadd.f32 %v597_v50, %v330_v55  ;;  %v350_v57 = vpop.f32.mrf.mxu3  ;;  %v293_v60 = vadd.f32 %v597_v50, %v292_v58  ;;  %v312_v61 = vpop.f32.mrf.mxu1 }
  0x98   : > { %v351_v59 = vadd.f32 %v597_v50, %v350_v57  ;;  %v313_v62 = vadd.f32 %v597_v50, %v312_v61 }
  0x99   : > { %386 = vst.msk [vmem:[%s604_s25 + $0x80] sm:$0xff] %vm228_vm1, %v331_v56 }
  0x9a   : > { %394 = vst.msk [vmem:[%s604_s25 + $0xc0] sm:$0xff] %vm228_vm1, %v351_v59 }
  0x9b   : > { %371 = vst.msk [vmem:[%s604_s25 + $0x8] sm:$0xff] %vm228_vm1, %v293_v60 }
  0x9c   : > { %379 = vst.msk [vmem:[%s604_s25 + $0x48] sm:$0xff] %vm228_vm1, %v313_v62 }
  0x9e   : > { %v332_v63 = vpop.f32.mrf.mxu2  ;;  %v295_v2 = vpop.f32.mrf.mxu0 }
  0x9f   : > { %v333_v0 = vadd.f32 %v597_v50, %v332_v63  ;;  %v352_v1 = vpop.f32.mrf.mxu3  ;;  %v296_v4 = vadd.f32 %v597_v50, %v295_v2  ;;  %v315_v5 = vpop.f32.mrf.mxu1 }
  0xa0   : > { %v353_v3 = vadd.f32 %v597_v50, %v352_v1  ;;  %v316_v6 = vadd.f32 %v597_v50, %v315_v5 }
  0xa1   : > { %387 = vst.msk [vmem:[%s604_s25 + $0x88] sm:$0xff] %vm228_vm1, %v333_v0 }
  0xa2   : > { %395 = vst.msk [vmem:[%s604_s25 + $0xc8] sm:$0xff] %vm228_vm1, %v353_v3 }
  0xa3   : > { %372 = vst.msk [vmem:[%s604_s25 + $0x10] sm:$0xff] %vm228_vm1, %v296_v4 }
  0xa4   : > { %380 = vst.msk [vmem:[%s604_s25 + $0x50] sm:$0xff] %vm228_vm1, %v316_v6 }
  0xa6   : > { %v335_v7 = vpop.f32.mrf.mxu2  ;;  %v297_v10 = vpop.f32.mrf.mxu0 }
  0xa7   : > { %v336_v8 = vadd.f32 %v597_v50, %v335_v7  ;;  %v355_v9 = vpop.f32.mrf.mxu3  ;;  %v298_v12 = vadd.f32 %v597_v50, %v297_v10  ;;  %v317_v13 = vpop.f32.mrf.mxu1 }
  0xa8   : > { %v356_v11 = vadd.f32 %v597_v50, %v355_v9  ;;  %v318_v14 = vadd.f32 %v597_v50, %v317_v13 }
  0xa9   : > { %388 = vst.msk [vmem:[%s604_s25 + $0x90] sm:$0xff] %vm228_vm1, %v336_v8 }
  0xaa   : > { %396 = vst.msk [vmem:[%s604_s25 + $0xd0] sm:$0xff] %vm228_vm1, %v356_v11 }
  0xab   : > { %373 = vst.msk [vmem:[%s604_s25 + $0x18] sm:$0xff] %vm228_vm1, %v298_v12 }
  0xac   : > { %381 = vst.msk [vmem:[%s604_s25 + $0x58] sm:$0xff] %vm228_vm1, %v318_v14 }
  0xae   : > { %v337_v15 = vpop.f32.mrf.mxu2  ;;  %v300_v18 = vpop.f32.mrf.mxu0 }
  0xaf   : > { %v338_v16 = vadd.f32 %v597_v50, %v337_v15  ;;  %v357_v17 = vpop.f32.mrf.mxu3  ;;  %v301_v20 = vadd.f32 %v597_v50, %v300_v18  ;;  %v320_v21 = vpop.f32.mrf.mxu1 }
  0xb0   : > { %v358_v19 = vadd.f32 %v597_v50, %v357_v17  ;;  %v321_v22 = vadd.f32 %v597_v50, %v320_v21 }
  0xb1   : > { %389 = vst.msk [vmem:[%s604_s25 + $0x98] sm:$0xff] %vm228_vm1, %v338_v16 }
  0xb2   : > { %397 = vst.msk [vmem:[%s604_s25 + $0xd8] sm:$0xff] %vm228_vm1, %v358_v19 }
  0xb3   : > { %374 = vst.msk [vmem:[%s604_s25 + $0x20] sm:$0xff] %vm228_vm1, %v301_v20 }
  0xb4   : > { %382 = vst.msk [vmem:[%s604_s25 + $0x60] sm:$0xff] %vm228_vm1, %v321_v22 }
  0xb6   : > { %v340_v23 = vpop.f32.mrf.mxu2  ;;  %v302_v26 = vpop.f32.mrf.mxu0 }
  0xb7   : > { %v341_v24 = vadd.f32 %v597_v50, %v340_v23  ;;  %v360_v25 = vpop.f32.mrf.mxu3  ;;  %v303_v28 = vadd.f32 %v597_v50, %v302_v26  ;;  %v322_v29 = vpop.f32.mrf.mxu1 }
  0xb8   : > { %v361_v27 = vadd.f32 %v597_v50, %v360_v25  ;;  %v323_v30 = vadd.f32 %v597_v50, %v322_v29 }
  0xb9   : > { %390 = vst.msk [vmem:[%s604_s25 + $0xa0] sm:$0xff] %vm228_vm1, %v341_v24 }
  0xba   : > { %398 = vst.msk [vmem:[%s604_s25 + $0xe0] sm:$0xff] %vm228_vm1, %v361_v27 }
  0xbb   : > { %375 = vst.msk [vmem:[%s604_s25 + $0x28] sm:$0xff] %vm228_vm1, %v303_v28 }
  0xbc   : > { %383 = vst.msk [vmem:[%s604_s25 + $0x68] sm:$0xff] %vm228_vm1, %v323_v30 }
  0xbe   : > { %v342_v31 = vpop.f32.mrf.mxu2  ;;  %v305_v34 = vpop.f32.mrf.mxu0 }
  0xbf   : > { %v343_v32 = vadd.f32 %v597_v50, %v342_v31  ;;  %v362_v33 = vpop.f32.mrf.mxu3  ;;  %v306_v36 = vadd.f32 %v597_v50, %v305_v34  ;;  %v325_v37 = vpop.f32.mrf.mxu1 }
  0xc0   : > { %v363_v35 = vadd.f32 %v597_v50, %v362_v33  ;;  %v326_v38 = vadd.f32 %v597_v50, %v325_v37 }
  0xc1   : > { %391 = vst.msk [vmem:[%s604_s25 + $0xa8] sm:$0xff] %vm228_vm1, %v343_v32 }
  0xc2   : > { %399 = vst.msk [vmem:[%s604_s25 + $0xe8] sm:$0xff] %vm228_vm1, %v363_v35 }
  0xc3   : > { %376 = vst.msk [vmem:[%s604_s25 + $0x30] sm:$0xff] %vm228_vm1, %v306_v36 }
  0xc4   : > { %384 = vst.msk [vmem:[%s604_s25 + $0x70] sm:$0xff] %vm228_vm1, %v326_v38 }
  0xc6   : > { %v345_v39 = vpop.f32.mrf.mxu2  ;;  %v307_v42 = vpop.f32.mrf.mxu0 }
  0xc7   : > { %v346_v40 = vadd.f32 %v597_v50, %v345_v39  ;;  %v365_v41 = vpop.f32.mrf.mxu3  ;;  %v308_v44 = vadd.f32 %v597_v50, %v307_v42  ;;  %v327_v45 = vpop.f32.mrf.mxu1 }
  0xc8   : > { %v366_v43 = vadd.f32 %v597_v50, %v365_v41  ;;  %v328_v46 = vadd.f32 %v597_v50, %v327_v45 }
  0xc9   : > { %392 = vst.msk [vmem:[%s604_s25 + $0xb0] sm:$0xff] %vm228_vm1, %v346_v40 }
  0xca   : > { %400 = vst.msk [vmem:[%s604_s25 + $0xf0] sm:$0xff] %vm228_vm1, %v366_v43 }
  0xcb   : > { %377 = vst.msk [vmem:[%s604_s25 + $0x38] sm:$0xff] %vm228_vm1, %v308_v44 }
  0xcc   : > { %385 = vst.msk [vmem:[%s604_s25 + $0x78] sm:$0xff] %vm228_vm1, %v328_v46 }
  0xce   : > { %v347_v47 = vpop.f32.mrf.mxu2 }
  0xcf   : > { %v348_v48 = vadd.f32 %v597_v50, %v347_v47  ;;  %v367_v49 = vpop.f32.mrf.mxu3 }
  0xd0   : > { %v368_v51 = vadd.f32 %v597_v50, %v367_v49 }
  0xd1   : > { %393 = vst.msk [vmem:[%s604_s25 + $0xb8] sm:$0xff] %vm228_vm1, %v348_v48 }
  0xd2   : > { %401 = vst.msk [vmem:[%s604_s25 + $0xf8] sm:$0xff] %vm228_vm1, %v368_v51 }
  0xd3 PF: > { %s13_s12 = sadd.s32 1, %s503_s12  }
  0xd4   : > { %p10_p4 = scmp.ge.s32.totalorder %s13_s12, 4  }
  0xd6   :  { %12 = sbr.rel (!%p10_p4) target bundleno = 1 (0x1), region = 62 }

// kernel: phdnet_forward.30
= control target key start
LH: loop header
LB: loop body
LE: loop exit
PB: predicated region body
PF: predicated region fallthrough
CT: control target
= control target key end

     0   :  { %s584_s12 = smov 0   ;;  %s771_s0 = inlined_call_operand.vmem [shape: f32[2,18,144], index: 0, kind: input, shape index: {}]   ;;  %s772_s1 = inlined_call_operand.vmem [shape: f32[9,128], index: 1, kind: input, shape index: {}]   ;;  %s773_s2 = inlined_call_operand.vmem [shape: f32[1,128], index: 2, kind: input, shape index: {}]   ;;  %s774_s3 = inlined_call_operand.vmem [shape: f32[2,16,128], index: 3, kind: output, shape index: {}]  }
   0x1 LB: > { %s518_s13 = sadd.s32 4294967295, %s558_s12   ;;  %p522_p0 = scmp.ge.s32.totalorder %s558_s12, 1  ;;  %s558_s12 = sphi %s584_s12, %s13_s12  }
   0x2   : > { %p137_p1 = scmp.lt.s32.totalorder %s558_s12, 3 }
   0x4   : > { %p138_p2 = pnand %p522_p0, %p137_p1 }
   0x5   : > { %p161_p3 = scmp.lt.s32.totalorder (!%p138_p2), %s518_s13, 1  ;;  %s560_s18 = smov (!%p138_p2), 8  }
   0x6   : > { %141 = sbr.rel (%p138_p2) target bundleno = 314 (0x13a), region = 32  ;;  %s561_s25 = smov (!%p138_p2), 16  }
   0x7   : > { %s562_s5 = smov (!%p138_p2), 120   ;;  %s563_s6 = smov (!%p138_p2), 112  }
   0xb   : > { %v542_v0 = vld [vmem:[%s772_s1 + $0x4] ss:$0 sm:$0xff]  ;;  %v543_v1 = vld [vmem:[%s772_s1 + $0x1] ss:$0 sm:$0xff]  ;;  %s776_s13 = smov (!%p161_p3, %s518_s13), 1  ;;  %vm191_vm0 = vcmask 1046528  }
   0xc   : > { %261 = vrot.lane.b32.xlu1 %v542_v0, %s560_s18  ;;  %232 = vrot.lane.b32.xlu2 %v543_v1, %s560_s18  ;;  %s529_s19 = smul.u32 48, %s776_s13  ;;  %v546_v4 = vld [vmem:[%s772_s1 + $0x7] ss:$0 sm:$0xff]  ;;  %v544_v6 = vld [vmem:[%s772_s1 + $0x2] ss:$0 sm:$0xff]  ;;  %vm209_vm1 = vcmask 1045504  }
   0xd   : > { %v547_v7 = vld [vmem:[%s772_s1 + $0x8] ss:$0 sm:$0xff]  ;;  %v545_v8 = vld [vmem:[%s772_s1 + $0x5] ss:$0 sm:$0xff]  ;;  %vm219_vm2 = vcmask 1047680   ;;  %vm251_vm3 = vcmask 982016  }
   0xe   : > { %s604_s22 = scalar_lea.vmem %s771_s0, %s529_s19  ;;  %vm364_vm4 = vcmask 916480   ;;  %s528_s15 = sshll.u32 %s776_s13, 4 }
   0xf   : > { %v607_v2 = vld [vmem:[%s604_s22] sm:$0xff]  ;;  %v618_v5 = vld [vmem:[%s604_s22 + $0x10] sm:$0xff]  ;;  %v172_v46 = vld [vmem:[%s604_s22 + $0x8] sm:$0xff]  ;;  %s170_s20 = scalar_lea.vmem %s774_s3, %s528_s15 }
  0x10   : > { %v610_v3 = vld [vmem:[%s604_s22 + $0x20] sm:$0x3]  ;;  %220 = vrot.lane.b32.xlu0 %v607_v2, %s561_s25  ;;  %v174_v47 = vld [vmem:[%s604_s22 + $0x18] sm:$0xff]  ;;  %v176_v58 = vld [vmem:[%s604_s22 + $0x28] sm:$0x3] }
  0x14   : > { %224 = vrot.lane.b32.xlu1 %v610_v3, %s561_s25  ;;  %303 = vrot.lane.b32.xlu2 %v546_v4, %s560_s18 }
  0x18   : > { %222 = vrot.lane.b32.xlu0 %v618_v5, %s561_s25 }
  0x1c   : > { %345 = vrot.lane.b32.xlu1 %v544_v6, %s561_s25  ;;  %416 = vrot.lane.b32.xlu2 %v547_v7, %s561_s25 }
  0x20   : > { %374 = vrot.lane.b32.xlu0 %v545_v8, %s561_s25 }
  0x66   : > { %v630_v9 = vpop.permute.xlu2 %232 }
  0x67   : > { %v237_v10 = vmul.f32 %v630_v9, %v618_v5  ;;  %v235_v11 = vmul.f32 %v630_v9, %v607_v2 }
  0x69   : > { %247 = vrot.lane.b32.xlu2 %v237_v10, %s562_s5  ;;  %243 = vrot.lane.b32.xlu0 %v235_v11, %s562_s5 }
  0x6e   : > { %v644_v15 = vpop.permute.xlu2 %303 }
  0x6f   : > { %v308_v18 = vmul.f32 %v644_v15, %v618_v5  ;;  %v310_v19 = vmul.f32 %v644_v15, %v610_v3  ;;  %v306_v30 = vmul.f32 %v644_v15, %v607_v2 }
  0x71   : > { %v319_v22 = vrot.slane %v308_v18, 2  ;;  %v324_v23 = vrot.slane %v310_v19, 2  ;;  %v318_v33 = vrot.slane %v306_v30, 2 }
  0x73   : > { %v325_v25 = vsel %vm209_vm1, %v319_v22, %v324_v23  ;;  %v320_v42 = vsel %vm209_vm1, %v318_v33, %v319_v22 }
  0x76   : > { %v662_v35 = vpop.permute.xlu2 %416 }
  0x77   : > { %v419_v38 = vmul.f32 %v662_v35, %v607_v2  ;;  %v670_v39 = vmul.f32 %v662_v35, %v618_v5 }
  0x79   : > { %v431_v48 = vrot.slane %v419_v38, 2  ;;  %v432_v49 = vrot.slane %v670_v39, 2 }
  0x7b   : > { %v433_v53 = vsel %vm209_vm1, %v431_v48, %v432_v49  ;;  %v550_v48 = vld [vmem:[%s772_s1 + $0x6] ss:$0 sm:$0xff] }
  0x7e   : > { %v638_v12 = vpop.permute.xlu1 %261 }
  0x7f   : > { %v264_v13 = vmul.f32 %v638_v12, %v607_v2  ;;  %v266_v14 = vmul.f32 %v638_v12, %v618_v5  ;;  %v268_v31 = vmul.f32 %v638_v12, %v610_v3 }
  0x81   : > { %v276_v16 = vrot.slane %v264_v13, 1  ;;  %v277_v17 = vrot.slane %v266_v14, 1  ;;  %v282_v34 = vrot.slane %v268_v31, 1 }
  0x82   : > { %v221_v21 = vpop.permute.xlu0 %220 }
  0x83   : > { %v278_v20 = vsel %vm191_vm0, %v276_v16, %v277_v17  ;;  %v283_v43 = vsel %vm191_vm0, %v277_v17, %v282_v34  ;;  %v226_v51 = vsel %vm219_vm2, %v221_v21, %v172_v46 }
  0x84   : > { %286 = vrot.lane.b32.xlu1 %v278_v20, %s562_s5  ;;  %v236_v54 = vmul.f32 %v630_v9, %v226_v51  ;;  %v265_v57 = vmul.f32 %v638_v12, %v226_v51  ;;  %v307_v18 = vmul.f32 %v644_v15, %v226_v51 }
  0x86   : > { %v225_v24 = vpop.permute.xlu1 %224  ;;  %v279_v60 = vrot.slane %v265_v57, 1  ;;  %v321_v21 = vrot.slane %v307_v18, 2  ;;  %v203_v57 = vmul.f32 %v550_v48, %v607_v2 }
  0x87   : > { %v228_v61 = vsel %vm219_vm2, %v225_v24, %v176_v58 }
  0x88   : > { %v311_v4 = vmul.f32 %v644_v15, %v228_v61  ;;  %v269_v6 = vmul.f32 %v638_v12, %v228_v61 }
  0x8a   : > { %v223_v26 = vpop.permute.xlu0 %222  ;;  %v326_v8 = vrot.slane %v311_v4, 2  ;;  %v284_v10 = vrot.slane %v269_v6, 1 }
  0x8b   : > { %v227_v52 = vsel %vm219_vm2, %v223_v26, %v174_v47  ;;  %v423_v26 = vmul.f32 %v662_v35, %v610_v3 }
  0x8c   : > { %332 = vrot.lane.b32.xlu1 %v325_v25, %s562_s5  ;;  %v267_v56 = vmul.f32 %v638_v12, %v227_v52  ;;  %v238_v62 = vmul.f32 %v630_v9, %v227_v52  ;;  %v309_v1 = vmul.f32 %v644_v15, %v227_v52  ;;  %v422_v24 = vmul.f32 %v662_v35, %v227_v52 }
  0x8d   : > { %v424_v15 = vmul.f32 %v662_v35, %v228_v61 }
  0x8e   : > { %v346_v27 = vpop.permute.xlu1 %345  ;;  %v280_v59 = vrot.slane %v267_v56, 1  ;;  %v322_v7 = vrot.slane %v309_v1, 2 }
  0x8f   : > { %v350_v28 = vmul.f32 %v346_v27, %v618_v5  ;;  %v348_v29 = vmul.f32 %v346_v27, %v607_v2  ;;  %v349_v0 = vmul.f32 %v346_v27, %v226_v51  ;;  %v351_v11 = vmul.f32 %v346_v27, %v227_v52 }
  0x90   : > { %v281_v63 = vsel %vm191_vm0, %v279_v60, %v280_v59  ;;  %v327_v9 = vsel %vm209_vm1, %v322_v7, %v326_v8  ;;  %v285_v16 = vsel %vm191_vm0, %v280_v59, %v284_v10  ;;  %v323_v23 = vsel %vm209_vm1, %v321_v21, %v322_v7 }
  0x91   : > { %360 = vrot.lane.b32.xlu2 %v350_v28, %s563_s6  ;;  %356 = vrot.lane.b32.xlu0 %v348_v29, %s563_s6  ;;  %v420_v27 = vmul.f32 %v662_v35, %v226_v51  ;;  %v435_v28 = vrot.slane %v422_v24, 2  ;;  %v437_v29 = vrot.slane %v423_v26, 2  ;;  %v439_v30 = vrot.slane %v424_v15, 2 }
  0x92   : > { %v375_v32 = vpop.permute.xlu0 %374  ;;  %v205_v59 = vmul.f32 %v550_v48, %v610_v3 }
  0x93   : > { %v377_v36 = vmul.f32 %v375_v32, %v607_v2  ;;  %v379_v37 = vmul.f32 %v375_v32, %v618_v5  ;;  %v381_v44 = vmul.f32 %v375_v32, %v610_v3  ;;  %v378_v13 = vmul.f32 %v375_v32, %v226_v51 }
  0x94   : > { %v380_v14 = vmul.f32 %v375_v32, %v227_v52  ;;  %v382_v17 = vmul.f32 %v375_v32, %v228_v61  ;;  %v434_v31 = vrot.slane %v420_v27, 2  ;;  %v440_v32 = vsel %vm209_vm1, %v435_v28, %v439_v30 }
  0x95   : > { %v389_v40 = vrot.slane %v377_v36, 1  ;;  %v390_v41 = vrot.slane %v379_v37, 1  ;;  %v395_v50 = vrot.slane %v381_v44, 1  ;;  %v392_v12 = vrot.slane %v378_v13, 1 }
  0x96   : > { %v393_v19 = vrot.slane %v380_v14, 1  ;;  %v397_v20 = vrot.slane %v382_v17, 1  ;;  %v436_v33 = vsel %vm209_vm1, %v434_v31, %v435_v28  ;;  %v438_v34 = vsel %vm209_vm1, %v432_v49, %v437_v29 }
  0x97   : > { %v391_v45 = vsel %vm191_vm0, %v389_v40, %v390_v41  ;;  %v396_v55 = vsel %vm191_vm0, %v390_v41, %v395_v50  ;;  %v213_v7 = vrot.slane %v205_v59, 2 }
  0x98   : > { %399 = vrot.lane.b32.xlu1 %v391_v45, %s563_s6  ;;  %v394_v22 = vsel %vm191_vm0, %v392_v12, %v393_v19  ;;  %v398_v25 = vsel %vm191_vm0, %v393_v19, %v397_v20  ;;  %v549_v45 = vld [vmem:[%s772_s1 + $0x3] ss:$0 sm:$0xff] }
  0x99   : > { %328 = vrot.lane.b32.xlu2 %v320_v42, %s562_s5  ;;  %290 = vrot.lane.b32.xlu0 %v283_v43, %s562_s5  ;;  %v186_v47 = vmul.f32 %v549_v45, %v618_v5  ;;  %v185_v50 = vmul.f32 %v549_v45, %v607_v2  ;;  %v187_v51 = vmul.f32 %v549_v45, %v610_v3 }
  0x9b   : > { %v192_v56 = vrot.slane %v185_v50, 1  ;;  %v195_v58 = vrot.slane %v187_v51, 1 }
  0xa0   : > { %245 = vrot.lane.b32.xlu1 %v236_v54, %s562_s5  ;;  %v193_v54 = vrot.slane %v186_v47, 1 }
  0xa1   : > { %441 = vrot.lane.b32.xlu2 %v433_v53, %s563_s6  ;;  %403 = vrot.lane.b32.xlu0 %v396_v55, %s563_s6  ;;  %v548_v53 = vld [vmem:[%s772_s1] ss:$0 sm:$0xff]  ;;  %v204_v55 = vmul.f32 %v550_v48, %v618_v5 }
  0xa2   : > { %v179_v60 = vmul.f32 %v548_v53, %v607_v2  ;;  %v180_v4 = vmul.f32 %v548_v53, %v618_v5  ;;  %v196_v6 = vsel %vm191_vm0, %v193_v54, %v195_v58 }
  0xa8   : > { %358 = vrot.lane.b32.xlu1 %v349_v0, %s563_s6  ;;  %v210_v0 = vrot.slane %v203_v57, 2 }
  0xa9   : > { %288 = vrot.lane.b32.xlu2 %v281_v63, %s562_s5  ;;  %249 = vrot.lane.b32.xlu0 %v238_v62, %s562_s5  ;;  %v211_v62 = vrot.slane %v204_v55, 2  ;;  %v194_v63 = vsel %vm191_vm0, %v192_v56, %v193_v54 }
  0xaa   : > { %v199_v8 = vadd.f32 %v194_v63, %v179_v60 }
  0xab   : > { %v214_v3 = vsel %vm209_vm1, %v211_v62, %v213_v7 }
  0xb0   : > { %292 = vrot.lane.b32.xlu1 %v285_v16, %s562_s5 }
  0xb1   : > { %334 = vrot.lane.b32.xlu2 %v327_v9, %s562_s5  ;;  %362 = vrot.lane.b32.xlu0 %v351_v11, %s563_s6  ;;  %v212_v11 = vsel %vm209_vm1, %v210_v0, %v211_v62  ;;  %v200_v9 = vadd.f32 %v196_v6, %v180_v4 }
  0xb2   : > { %v217_v2 = vadd.f32 %v212_v11, %v199_v8 }
  0xb3   : > { %v218_v16 = vadd.f32 %v214_v3, %v200_v9 }
  0xb8   : > { %405 = vrot.lane.b32.xlu1 %v398_v25, %s563_s6 }
  0xb9   : > { %401 = vrot.lane.b32.xlu2 %v394_v22, %s563_s6  ;;  %330 = vrot.lane.b32.xlu0 %v323_v23, %s562_s5 }
  0xc0   : > { %445 = vrot.lane.b32.xlu1 %v438_v34, %s563_s6 }
  0xc1   : > { %447 = vrot.lane.b32.xlu2 %v440_v32, %s563_s6  ;;  %443 = vrot.lane.b32.xlu0 %v436_v33, %s563_s6 }
  0xc3   : > { %v248_v36 = vpop.permute.xlu2 %247 }
  0xdb   : > { %v244_v35 = vpop.permute.xlu0 %243 }
  0xeb   : > { %v361_v37 = vpop.permute.xlu2 %360 }
  0xf3   : > { %v329_v39 = vpop.permute.xlu2 %328 }
  0xf6   : > { %v287_v38 = vpop.permute.xlu1 %286 }
  0xfb   : > { %v725_v43 = vpop.permute.xlu2 %441 }
  0xfe   : > { %v333_v40 = vpop.permute.xlu1 %332 }
 0x103   : > { %v357_v41 = vpop.permute.xlu0 %356  ;;  %v289_v52 = vpop.permute.xlu2 %288 }
 0x104   : > { %v294_v20 = vsel %vm251_vm3, %v287_v38, %v289_v52 }
 0x10a   : > { %v400_v44 = vpop.permute.xlu1 %399 }
 0x10b   : > { %v291_v42 = vpop.permute.xlu0 %290  ;;  %v335_v10 = vpop.permute.xlu2 %334 }
 0x10c   : > { %v337_v15 = vsel %vm251_vm3, %v333_v40, %v335_v10 }
 0x112   : > { %v246_v49 = vpop.permute.xlu1 %245 }
 0x113   : > { %v404_v46 = vpop.permute.xlu0 %403  ;;  %v252_v14 = vsel %vm251_vm3, %v244_v35, %v246_v49  ;;  %v402_v21 = vpop.permute.xlu2 %401 }
 0x114   : > { %v256_v5 = vadd.f32 %v252_v14, %v217_v2  ;;  %v407_v33 = vsel %vm364_vm4, %v400_v44, %v402_v21 }
 0x116   : > { %v298_v24 = vadd.f32 %v294_v20, %v256_v5 }
 0x11a   : > { %v359_v1 = vpop.permute.xlu1 %358 }
 0x11b   : > { %v250_v61 = vpop.permute.xlu0 %249  ;;  %v365_v28 = vsel %vm364_vm4, %v357_v41, %v359_v1 }
 0x11c   : > { %v253_v18 = vsel %vm251_vm3, %v248_v36, %v250_v61  ;;  %v551_v36 = vld [vmem:[%s773_s2] ss:$0 sm:$0xff] }
 0x11d   : > { %v257_v19 = vadd.f32 %v253_v18, %v218_v16 }
 0x122   : > { %v293_v17 = vpop.permute.xlu1 %292 }
 0x123   : > { %v363_v13 = vpop.permute.xlu0 %362  ;;  %v295_v12 = vsel %vm251_vm3, %v291_v42, %v293_v17 }
 0x124   : > { %v299_v22 = vadd.f32 %v295_v12, %v257_v19  ;;  %v366_v31 = vsel %vm364_vm4, %v361_v37, %v363_v13 }
 0x126   : > { %v341_v29 = vadd.f32 %v337_v15, %v299_v22 }
 0x128   : > { %v370_v34 = vadd.f32 %v366_v31, %v341_v29 }
 0x12a   : > { %v406_v25 = vpop.permute.xlu1 %405 }
 0x12b   : > { %v331_v23 = vpop.permute.xlu0 %330  ;;  %v408_v32 = vsel %vm364_vm4, %v404_v46, %v406_v25 }
 0x12c   : > { %v336_v26 = vsel %vm251_vm3, %v329_v39, %v331_v23  ;;  %v448_v39 = vpop.permute.xlu2 %447  ;;  %v412_v40 = vadd.f32 %v408_v32, %v370_v34 }
 0x12d   : > { %v340_v27 = vadd.f32 %v336_v26, %v298_v24 }
 0x12f   : > { %v369_v30 = vadd.f32 %v365_v28, %v340_v27 }
 0x131   : > { %v411_v35 = vadd.f32 %v407_v33, %v369_v30 }
 0x132   : > { %v446_v42 = vpop.permute.xlu1 %445 }
 0x133   : > { %v444_v38 = vpop.permute.xlu0 %443  ;;  %v450_v37 = vsel %vm364_vm4, %v446_v42, %v448_v39 }
 0x134   : > { %v449_v41 = vsel %vm364_vm4, %v725_v43, %v444_v38  ;;  %v454_v44 = vadd.f32 %v450_v37, %v412_v40 }
 0x135   : > { %v453_v45 = vadd.f32 %v449_v41, %v411_v35 }
 0x136   : > { %v460_v47 = vadd.f32 %v551_v36, %v454_v44 }
 0x137   : > { %v459_v46 = vadd.f32 %v551_v36, %v453_v45 }
 0x138   : > { %462 = vst [vmem:[%s170_s20 + $0x8] sm:$0xff] %v460_v47 }
 0x139   : > { %461 = vst [vmem:[%s170_s20] sm:$0xff] %v459_v46 }
 0x13a PF: > { %s13_s12 = sadd.s32 1, %s558_s12  }
 0x13b   : > { %p10_p4 = scmp.ge.s32.totalorder %s13_s12, 4  }
 0x13d   :  { %12 = sbr.rel (!%p10_p4) target bundleno = 1 (0x1), region = 62 }

// kernel: phdnet_forward.31
= control target key start
LH: loop header
LB: loop body
LE: loop exit
PB: predicated region body
PF: predicated region fallthrough
CT: control target
= control target key end

     0   :  { %s1795_s12 = smov 0   ;;  %s2418_s0 = inlined_call_operand.vmem [shape: bf16[512,144], index: 0, kind: input, shape index: {}]   ;;  %s2419_s1 = inlined_call_operand.vmem [shape: bf16[144,3], index: 1, kind: input, shape index: {}]   ;;  %s2420_s2 = inlined_call_operand.vmem [shape: f32[1,3], index: 2, kind: input, shape index: {}]   ;;  %s2421_s3 = inlined_call_operand.vmem [shape: f32[512,3], index: 3, kind: output, shape index: {}]  }
   0x1 LB: > { %s1354_s13 = sadd.s32 4294967295, %s1773_s12   ;;  %p1358_p0 = scmp.ge.s32.totalorder %s1773_s12, 1  ;;  %s1773_s12 = sphi %s1795_s12, %s13_s12  }
   0x2   : > { %p139_p1 = scmp.lt.s32.totalorder %s1773_s12, 3 }
   0x4   : > { %p140_p2 = pnand %p1358_p0, %p139_p1 }
   0x5   : > { %s1359_s18 = sshll.u32 (!%p140_p2), %s1354_s13, 5 }
   0x6   : > { %143 = sbr.rel (%p140_p2) target bundleno = 345 (0x159), region = 32  ;;  %p165_p3 = scmp.lt.s32.totalorder (!%p140_p2), %s1359_s18, 63 }
   0xb   : > { %v1618_v0 = vld [vmem:[%s2419_s1 + $0x38] sm:$0xff]  ;;  %v1619_v1 = vld [vmem:[%s2419_s1 + $0x40] sm:$0xff]  ;;  %v1617_v2 = vld [vmem:[%s2419_s1 + $0x30] sm:$0xff]  ;;  %s2453_s18 = smov (!%p165_p3, %s1359_s18), 63  ;;  %vm430_vm0 = vcmask 130048   ;;  %vm1265_vm4 = vcmask 23552  }
   0xc   : > { %479 = vmatpush.bf16.msra.mxu0 %v1618_v0  ;;  %1620 = vmatpush.bf16.msra.mxu2 %v1618_v0  ;;  %s1578_s21 = sshll.u32 %s2453_s18, 3  ;;  %v1616_v3 = vld [vmem:[%s2419_s1 + $0x28] sm:$0xff]  ;;  %v1615_v7 = vld [vmem:[%s2419_s1 + $0x20] sm:$0xff]  ;;  %v1614_v11 = vld [vmem:[%s2419_s1 + $0x18] sm:$0xff] }
   0xd   : > { %575 = vmatpush.bf16.msra.mxu1 %v1619_v1  ;;  %1628 = vmatpush.bf16.msra.mxu3 %v1619_v1  ;;  %s1820_s24 = scalar_lea.vmem %s2418_s0, %s1578_s21  ;;  %v1613_v12 = vld [vmem:[%s2419_s1 + $0x10] sm:$0xff]  ;;  %v1612_v16 = vld [vmem:[%s2419_s1 + $0x8] sm:$0xff]  ;;  %v1611_v19 = vld [vmem:[%s2419_s1] sm:$0xff]  ;;  %s1945_s15 = scalar_lea.vmem %s2421_s3, %s1578_s21 }
   0xe   : > { %v1579_v4 = vld [vmem:[%s1820_s24 + $0x4] sm:$0xf]  ;;  %v1368_v5 = vld [vmem:[%s1820_s24 + $0x8] sm:$0xf0]  ;;  %v1597_v8 = vld [vmem:[%s1820_s24 + $0x94] sm:$0xf] }
   0xf   : > { %v1371_v6 = vor.u32 %v1579_v4, %v1368_v5  ;;  %v1440_v9 = vld [vmem:[%s1820_s24 + $0x98] sm:$0xf0]  ;;  %v1581_v13 = vld [vmem:[%s1820_s24 + $0x14] sm:$0xf]  ;;  %v1599_v17 = vld [vmem:[%s1820_s24 + $0xa4] sm:$0xf] }
  0x10   : > { %480 = vmatpush.bf16.msra.mxu0 %v1617_v2  ;;  %1621 = vmatpush.bf16.msra.mxu2 %v1617_v2  ;;  %v1443_v10 = vor.u32 %v1597_v8, %v1440_v9  ;;  %v1376_v14 = vld [vmem:[%s1820_s24 + $0x18] sm:$0xf0]  ;;  %v1448_v18 = vld [vmem:[%s1820_s24 + $0xa8] sm:$0xf0]  ;;  %v1366_v20 = vld [vmem:[%s1820_s24] sm:$0xf] }
  0x11   : > { %1528 = vmatmul.msk.bf16.vlgmr.msra.gmra.mxu1 %vm430_vm0, %v1371_v6  ;;  %v1379_v15 = vor.u32 %v1581_v13, %v1376_v14  ;;  %v1580_v21 = vld [vmem:[%s1820_s24 + $0x4] sm:$0xf0]  ;;  %v1451_v22 = vor.u32 %v1599_v17, %v1448_v18  ;;  %v1430_v23 = vld [vmem:[%s1820_s24 + $0x80] sm:$0xf]  ;;  %v1583_v27 = vld [vmem:[%s1820_s24 + $0x24] sm:$0xf] }
  0x12   : > { %1537 = vmatmul.msk.bf16.vlgmr.msra.gmra.mxu3 %vm430_vm0, %v1443_v10  ;;  %v1596_v24 = vld [vmem:[%s1820_s24 + $0x84] sm:$0xf0]  ;;  %v1367_v25 = vor.u32 %v1580_v21, %v1366_v20  ;;  %v1384_v28 = vld [vmem:[%s1820_s24 + $0x28] sm:$0xf0]  ;;  %v1601_v30 = vld [vmem:[%s1820_s24 + $0xb4] sm:$0xf] }
  0x13   : > { %v1431_v26 = vor.u32 %v1596_v24, %v1430_v23  ;;  %v1387_v29 = vor.u32 %v1583_v27, %v1384_v28  ;;  %v1456_v31 = vld [vmem:[%s1820_s24 + $0xb8] sm:$0xf0]  ;;  %v1374_v32 = vld [vmem:[%s1820_s24 + $0x10] sm:$0xf]  ;;  %v1582_v33 = vld [vmem:[%s1820_s24 + $0x14] sm:$0xf0] }
  0x14   : > { %481 = vmatpush.bf16.msra.mxu0 %v1616_v3  ;;  %1622 = vmatpush.bf16.msra.mxu2 %v1616_v3  ;;  %v1459_v34 = vor.u32 %v1601_v30, %v1456_v31  ;;  %v1438_v35 = vld [vmem:[%s1820_s24 + $0x90] sm:$0xf]  ;;  %v1598_v36 = vld [vmem:[%s1820_s24 + $0x94] sm:$0xf0]  ;;  %v1375_v37 = vor.u32 %v1582_v33, %v1374_v32  ;;  %v1585_v39 = vld [vmem:[%s1820_s24 + $0x34] sm:$0xf] }
  0x15   : > { %v1439_v38 = vor.u32 %v1598_v36, %v1438_v35  ;;  %v1392_v40 = vld [vmem:[%s1820_s24 + $0x38] sm:$0xf0]  ;;  %v1603_v42 = vld [vmem:[%s1820_s24 + $0xc4] sm:$0xf]  ;;  %v1464_v43 = vld [vmem:[%s1820_s24 + $0xc8] sm:$0xf0] }
  0x16   : > { %v1395_v41 = vor.u32 %v1585_v39, %v1392_v40  ;;  %v1382_v44 = vld [vmem:[%s1820_s24 + $0x20] sm:$0xf]  ;;  %v1584_v45 = vld [vmem:[%s1820_s24 + $0x24] sm:$0xf0]  ;;  %v1467_v46 = vor.u32 %v1603_v42, %v1464_v43  ;;  %v1587_v51 = vld [vmem:[%s1820_s24 + $0x44] sm:$0xf] }
  0x17   : > { %v1446_v47 = vld [vmem:[%s1820_s24 + $0xa0] sm:$0xf]  ;;  %v1600_v48 = vld [vmem:[%s1820_s24 + $0xa4] sm:$0xf0]  ;;  %v1383_v49 = vor.u32 %v1584_v45, %v1382_v44  ;;  %v1400_v52 = vld [vmem:[%s1820_s24 + $0x48] sm:$0xf0] }
  0x18   : > { %482 = vmatpush.bf16.msra.mxu0 %v1615_v7  ;;  %1623 = vmatpush.bf16.msra.mxu2 %v1615_v7  ;;  %v1447_v50 = vor.u32 %v1600_v48, %v1446_v47  ;;  %v1403_v53 = vor.u32 %v1587_v51, %v1400_v52  ;;  %v1605_v54 = vld [vmem:[%s1820_s24 + $0xd4] sm:$0xf]  ;;  %v1472_v55 = vld [vmem:[%s1820_s24 + $0xd8] sm:$0xf0]  ;;  %v1390_v56 = vld [vmem:[%s1820_s24 + $0x30] sm:$0xf] }
  0x19   : > { %v1586_v57 = vld [vmem:[%s1820_s24 + $0x34] sm:$0xf0]  ;;  %v1475_v58 = vor.u32 %v1605_v54, %v1472_v55  ;;  %v1454_v59 = vld [vmem:[%s1820_s24 + $0xb0] sm:$0xf]  ;;  %v1589_v63 = vld [vmem:[%s1820_s24 + $0x54] sm:$0xf] }
  0x1a   : > { %v1602_v60 = vld [vmem:[%s1820_s24 + $0xb4] sm:$0xf0]  ;;  %v1391_v61 = vor.u32 %v1586_v57, %v1390_v56  ;;  %v1408_v0 = vld [vmem:[%s1820_s24 + $0x58] sm:$0xf0]  ;;  %v1607_v2 = vld [vmem:[%s1820_s24 + $0xe4] sm:$0xf] }
  0x1b   : > { %v1455_v62 = vor.u32 %v1602_v60, %v1454_v59  ;;  %v1411_v1 = vor.u32 %v1589_v63, %v1408_v0  ;;  %v1480_v3 = vld [vmem:[%s1820_s24 + $0xe8] sm:$0xf0]  ;;  %v1398_v4 = vld [vmem:[%s1820_s24 + $0x40] sm:$0xf]  ;;  %v1588_v5 = vld [vmem:[%s1820_s24 + $0x44] sm:$0xf0] }
  0x1c   : > { %483 = vmatpush.bf16.msra.mxu0 %v1614_v11  ;;  %1624 = vmatpush.bf16.msra.mxu2 %v1614_v11  ;;  %v1483_v6 = vor.u32 %v1607_v2, %v1480_v3  ;;  %v1462_v7 = vld [vmem:[%s1820_s24 + $0xc0] sm:$0xf]  ;;  %v1604_v8 = vld [vmem:[%s1820_s24 + $0xc4] sm:$0xf0]  ;;  %v1399_v9 = vor.u32 %v1588_v5, %v1398_v4  ;;  %v1591_v11 = vld [vmem:[%s1820_s24 + $0x64] sm:$0xf] }
  0x1d   : > { %v1463_v10 = vor.u32 %v1604_v8, %v1462_v7  ;;  %v1609_v14 = vld [vmem:[%s1820_s24 + $0xf4] sm:$0xf]  ;;  %v1590_v17 = vld [vmem:[%s1820_s24 + $0x54] sm:$0xf0]  ;;  %v1424_v24 = vld [vmem:[%s1820_s24 + $0x78] sm:$0xf0] }
  0x1e   : > { %v1606_v20 = vld [vmem:[%s1820_s24 + $0xd4] sm:$0xf0]  ;;  %v1593_v23 = vld [vmem:[%s1820_s24 + $0x74] sm:$0xf]  ;;  %v1592_v27 = vld [vmem:[%s1820_s24 + $0x64] sm:$0xf0] }
  0x1f   : > { %v1478_v28 = vld [vmem:[%s1820_s24 + $0xe0] sm:$0xf]  ;;  %v1595_v32 = vld [vmem:[%s1820_s24 + $0x84] sm:$0xf]  ;;  %v1432_v33 = vld [vmem:[%s1820_s24 + $0x88] sm:$0xf0] }
  0x20   : > { %484 = vmatpush.bf16.msra.mxu0 %v1613_v12  ;;  %1625 = vmatpush.bf16.msra.mxu2 %v1613_v12  ;;  %v1416_v12 = vld [vmem:[%s1820_s24 + $0x68] sm:$0xf0]  ;;  %v1422_v36 = vld [vmem:[%s1820_s24 + $0x70] sm:$0xf]  ;;  %v1610_v39 = vld [vmem:[%s1820_s24 + $0xf4] sm:$0xf0] }
  0x21   : > { %1529 = vmatmul.msk.bf16.gmra.mxu1 %vm430_vm0, %v1379_v15  ;;  %v1419_v13 = vor.u32 %v1591_v11, %v1416_v12  ;;  %v1488_v15 = vld [vmem:[%s1820_s24 + $0xf8] sm:$0xf0]  ;;  %v1923_v44 = vld [vmem:[%s2420_s2] ss:$0 sm:$0xff] }
  0x22   : > { %1538 = vmatmul.msk.bf16.gmra.mxu3 %vm430_vm0, %v1451_v22  ;;  %v1491_v18 = vor.u32 %v1609_v14, %v1488_v15 }
  0x24   : > { %485 = vmatpush.bf16.msra.mxu0 %v1612_v16  ;;  %1626 = vmatpush.bf16.msra.mxu2 %v1612_v16  ;;  %v1406_v16 = vld [vmem:[%s1820_s24 + $0x50] sm:$0xf] }
  0x25   : > { %v1407_v21 = vor.u32 %v1590_v17, %v1406_v16 }
  0x28   : > { %486 = vmatpush.bf16.msra.mxu0 %v1611_v19  ;;  %1627 = vmatpush.bf16.msra.mxu2 %v1611_v19  ;;  %v1470_v19 = vld [vmem:[%s1820_s24 + $0xd0] sm:$0xf] }
  0x29   : > { %v1471_v22 = vor.u32 %v1606_v20, %v1470_v19 }
  0x2b   : > { %487 = vmatmul.bf16.vlgmr.msra.gmra.mxu0 %v1367_v25  ;;  %527 = vmatmul.bf16.vlgmr.msra.gmra.mxu2 %v1431_v26  ;;  %v1427_v25 = vor.u32 %v1593_v23, %v1424_v24  ;;  %v1414_v26 = vld [vmem:[%s1820_s24 + $0x60] sm:$0xf] }
  0x2c   : > { %v1415_v30 = vor.u32 %v1592_v27, %v1414_v26 }
  0x31   : > { %1530 = vmatmul.msk.bf16.gmra.mxu1 %vm430_vm0, %v1387_v29  ;;  %v1608_v29 = vld [vmem:[%s1820_s24 + $0xe4] sm:$0xf0] }
  0x32   : > { %1539 = vmatmul.msk.bf16.gmra.mxu3 %vm430_vm0, %v1459_v34  ;;  %v1479_v31 = vor.u32 %v1608_v29, %v1478_v28  ;;  %v1435_v34 = vor.u32 %v1595_v32, %v1432_v33 }
  0x3b   : > { %492 = vmatmul.bf16.gmra.mxu0 %v1375_v37  ;;  %532 = vmatmul.bf16.gmra.mxu2 %v1439_v38  ;;  %v1594_v37 = vld [vmem:[%s1820_s24 + $0x74] sm:$0xf0]  ;;  %v1486_v38 = vld [vmem:[%s1820_s24 + $0xf0] sm:$0xf] }
  0x3c   : > { %v1423_v40 = vor.u32 %v1594_v37, %v1422_v36 }
  0x41   : > { %1531 = vmatmul.msk.bf16.gmra.mxu1 %vm430_vm0, %v1395_v41  ;;  %v1487_v41 = vor.u32 %v1610_v39, %v1486_v38 }
  0x42   : > { %1540 = vmatmul.msk.bf16.gmra.mxu3 %vm430_vm0, %v1467_v46 }
  0x4b   : > { %497 = vmatmul.bf16.gmra.mxu0 %v1383_v49  ;;  %537 = vmatmul.bf16.gmra.mxu2 %v1447_v50 }
  0x51   : > { %1532 = vmatmul.msk.bf16.gmra.mxu1 %vm430_vm0, %v1403_v53 }
  0x52   : > { %1541 = vmatmul.msk.bf16.gmra.mxu3 %vm430_vm0, %v1475_v58 }
  0x5b   : > { %502 = vmatmul.bf16.gmra.mxu0 %v1391_v61  ;;  %542 = vmatmul.bf16.gmra.mxu2 %v1455_v62 }
  0x61   : > { %1533 = vmatmul.msk.bf16.gmra.mxu1 %vm430_vm0, %v1411_v1 }
  0x62   : > { %1542 = vmatmul.msk.bf16.gmra.mxu3 %vm430_vm0, %v1483_v6 }
  0x6b   : > { %507 = vmatmul.bf16.gmra.mxu0 %v1399_v9  ;;  %547 = vmatmul.bf16.gmra.mxu2 %v1463_v10 }
  0x71   : > { %1534 = vmatmul.msk.bf16.gmra.mxu1 %vm430_vm0, %v1419_v13 }
  0x72   : > { %1543 = vmatmul.msk.bf16.gmra.mxu3 %vm430_vm0, %v1491_v18 }
  0x7b   : > { %512 = vmatmul.bf16.gmra.mxu0 %v1407_v21  ;;  %552 = vmatmul.bf16.gmra.mxu2 %v1471_v22 }
  0x81   : > { %1535 = vmatmul.msk.bf16.gmra.mxu1 %vm430_vm0, %v1427_v25 }
  0x8b   : > { %517 = vmatmul.bf16.gmra.mxu0 %v1415_v30  ;;  %557 = vmatmul.bf16.gmra.mxu2 %v1479_v31 }
  0x8e   : > { %v577_v35 = vpop.f32.mrf.mxu1 }
  0x91   : > { %1536 = vmatmul.msk.bf16.gmra.mxu1 %vm430_vm0, %v1435_v34 }
  0x95   : > { %v622_v55 = vpop.f32.mrf.mxu3 }
  0x96   : > { %v579_v42 = vpop.f32.mrf.mxu1 }
  0x9b   : > { %522 = vmatmul.bf16.gmra.mxu0 %v1423_v40  ;;  %562 = vmatmul.bf16.gmra.mxu2 %v1487_v41 }
  0x9d   : > { %v624_v2 = vpop.f32.mrf.mxu3 }
  0x9e   : > { %v582_v43 = vpop.f32.mrf.mxu1 }
  0xa5   : > { %v627_v27 = vpop.f32.mrf.mxu3 }
  0xa6   : > { %v584_v47 = vpop.f32.mrf.mxu1 }
  0xa8   : > { %v488_v45 = vpop.f32.mrf.mxu0 }
  0xa9   : > { %v489_v46 = vadd.f32 %v1923_v44, %v488_v45 }
  0xab   : > { %v578_v48 = vadd.f32 %v577_v35, %v489_v46 }
  0xad   : > { %v1544_v49 = vmul.f32 -1.442695, %v578_v48 }
  0xae   : > { %v1926_v50 = vpop.f32.mrf.mxu2  ;;  %v1929_v53 = vpop.f32.mrf.mxu1 }
  0xaf   : > { %1638 = vpow2.f32 %v1544_v49 }
  0xb0   : > { %v490_v51 = vpop.f32.mrf.mxu0 }
  0xb1   : > { %v491_v52 = vadd.f32 %v1923_v44, %v490_v51 }
  0xb3   : > { %v580_v54 = vadd.f32 %v579_v42, %v491_v52 }
  0xb5   : > { %v1639_v56 = vpop.eup %1638  ;;  %v1545_v57 = vmul.f32 -1.442695, %v580_v54 }
  0xb6   : > { %v753_v58 = vadd.f32 1.0, %v1639_v56  ;;  %v1931_v59 = vpop.f32.mrf.mxu2  ;;  %v1934_v62 = vpop.f32.mrf.mxu1 }
  0xb7   : > { %1640 = vpow2.f32 %v1545_v57  ;;  %v629_v57 = vpop.f32.mrf.mxu3 }
  0xb8   : > { %1642 = vrcp.f32 %v753_v58  ;;  %v493_v60 = vpop.f32.mrf.mxu0  ;;  %v794_v12 = vand.u32 2147483647, %v753_v58  ;;  %v796_v13 = vand.u32 2147483648, %v753_v58  ;;  %vm790_vm2 = vweird.f32 %v753_v58 }
  0xb9   : > { %v494_v61 = vadd.f32 %v1923_v44, %v493_v60 }
  0xba   : > { %v797_v22 = vor.u32 1.1754944e-38, %v796_v13  ;;  %vm795_vm5 = vcmp.eq.f32.partialorder %v794_v12, 8.507059e+37 }
  0xbb   : > { %v583_v63 = vadd.f32 %v582_v43, %v494_v61 }
  0xbd   : > { %v1641_v0 = vpop.eup %1640  ;;  %v1546_v1 = vmul.f32 -1.442695, %v583_v63 }
  0xbe   : > { %v1643_v3 = vpop.eup %1642  ;;  %v754_v4 = vadd.f32 1.0, %v1641_v0  ;;  %v533_v6 = vpop.f32.mrf.mxu2 }
  0xbf   : > { %v786_v5 = vmul.f32 %v1643_v3, %v753_v58  ;;  %1644 = vpow2.f32 %v1546_v1  ;;  %v534_v9 = vadd.f32 %v1923_v44, %v533_v6  ;;  %v1938_v11 = vpop.f32.mrf.mxu1  ;;  %vm791_vm1 = vweird.f32 %v1643_v3 }
  0xc0   : > { %1646 = vrcp.f32 %v754_v4  ;;  %v495_v7 = vpop.f32.mrf.mxu0  ;;  %vm792_vm3 = vmor %vm790_vm2, %vm791_vm1  ;;  %v811_v33 = vand.u32 2147483648, %v754_v4  ;;  %v809_v36 = vand.u32 2147483647, %v754_v4  ;;  %vm805_vm7 = vweird.f32 %v754_v4 }
  0xc1   : > { %v787_v8 = vsub.f32 1.0, %v786_v5  ;;  %v496_v10 = vadd.f32 %v1923_v44, %v495_v7  ;;  %v623_v15 = vadd.f32 %v622_v55, %v534_v9 }
  0xc2   : > { %v812_v43 = vor.u32 1.1754944e-38, %v811_v33  ;;  %vm810_vm9 = vcmp.eq.f32.partialorder %v809_v36, 8.507059e+37 }
  0xc3   : > { %v788_v14 = vmul.f32 %v1643_v3, %v787_v8  ;;  %v585_v16 = vadd.f32 %v584_v47, %v496_v10  ;;  %v1562_v19 = vmul.f32 -1.442695, %v623_v15 }
  0xc5   : > { %v1645_v17 = vpop.eup %1644  ;;  %v789_v18 = vadd.f32 %v1643_v3, %v788_v14  ;;  %v1547_v20 = vmul.f32 -1.442695, %v585_v16  ;;  %1648 = vpow2.f32 %v1562_v19 }
  0xc6   : > { %v1647_v21 = vpop.eup %1646  ;;  %v755_v23 = vadd.f32 1.0, %v1645_v17  ;;  %v535_v26 = vpop.f32.mrf.mxu2 }
  0xc7   : > { %v793_v24 = vsel %vm792_vm3, %v1643_v3, %v789_v18  ;;  %v801_v25 = vmul.f32 %v1647_v21, %v754_v4  ;;  %v536_v31 = vadd.f32 %v1923_v44, %v535_v26  ;;  %v1950_v32 = vpop.f32.mrf.mxu1  ;;  %vm806_vm6 = vweird.f32 %v1647_v21 }
  0xc8   : > { %v798_v28 = vsel %vm795_vm5, %v797_v22, %v793_v24  ;;  %1650 = vrcp.f32 %v755_v23  ;;  %v498_v29 = vpop.f32.mrf.mxu0  ;;  %vm807_vm8 = vmor %vm805_vm7, %vm806_vm6  ;;  %v824_v58 = vand.u32 2147483647, %v755_v23  ;;  %v826_v60 = vand.u32 2147483648, %v755_v23 }
  0xc9   : > { %1266 = vst.msk [vmem:[%s1945_s15] sm:$0xff] %vm1265_vm4, %v798_v28  ;;  %v802_v30 = vsub.f32 1.0, %v801_v25  ;;  %1652 = vpow2.f32 %v1547_v20  ;;  %v499_v34 = vadd.f32 %v1923_v44, %v498_v29  ;;  %v625_v37 = vadd.f32 %v624_v2, %v536_v31 }
  0xca   : > { %vm820_vm11 = vweird.f32 %v755_v23  ;;  %vm825_vm13 = vcmp.eq.f32.partialorder %v824_v58, 8.507059e+37  ;;  %v827_v6 = vor.u32 1.1754944e-38, %v826_v60 }
  0xcb   : > { %v803_v35 = vmul.f32 %v1647_v21, %v802_v30  ;;  %v588_v38 = vadd.f32 %v1929_v53, %v499_v34  ;;  %v1649_v39 = vpop.eup %1648  ;;  %v1563_v41 = vmul.f32 -1.442695, %v625_v37 }
  0xcc   : > { %v1954_v45 = vadd.f32 1.0, %v1649_v39 }
  0xcd   : > { %v804_v40 = vadd.f32 %v1647_v21, %v803_v35  ;;  %v1548_v46 = vmul.f32 -1.442695, %v588_v38  ;;  %1654 = vpow2.f32 %v1563_v41 }
  0xce   : > { %v1651_v42 = vpop.eup %1650  ;;  %v538_v51 = vpop.f32.mrf.mxu2  ;;  %1656 = vrcp.f32 %v1954_v45  ;;  %v1064_v13 = vand.u32 2147483647, %v1954_v45  ;;  %v1066_v16 = vand.u32 2147483648, %v1954_v45  ;;  %vm1060_vm14 = vweird.f32 %v1954_v45 }
  0xcf   : > { %v1653_v47 = vpop.eup %1652  ;;  %v808_v48 = vsel %vm807_vm8, %v1647_v21, %v804_v40  ;;  %v816_v49 = vmul.f32 %v1651_v42, %v755_v23  ;;  %1658 = vpow2.f32 %v1548_v46  ;;  %v1961_v56 = vpop.f32.mrf.mxu1  ;;  %v539_v61 = vadd.f32 %v1923_v44, %v538_v51 }
  0xd0   : > { %v813_v52 = vsel %vm810_vm9, %v812_v43, %v808_v48  ;;  %v500_v53 = vpop.f32.mrf.mxu0  ;;  %v1959_v55 = vadd.f32 1.0, %v1653_v47  ;;  %vm821_vm10 = vweird.f32 %v1651_v42  ;;  %vm1983_vm0 = vcmp.eq.f32.partialorder %v1064_v13, 8.507059e+37 }
  0xd1   : > { %1267 = vst.msk [vmem:[%s1945_s15 + $0x8] sm:$0xff] %vm1265_vm4, %v813_v52  ;;  %v817_v54 = vsub.f32 1.0, %v816_v49  ;;  %v501_v63 = vadd.f32 %v1923_v44, %v500_v53  ;;  %v628_v1 = vadd.f32 %v627_v27, %v539_v61  ;;  %vm822_vm12 = vmor %vm820_vm11, %vm821_vm10  ;;  %v632_v27 = vpop.f32.mrf.mxu3  ;;  %v1067_v28 = vor.u32 1.1754944e-38, %v1066_v16 }
  0xd2   : > { %1660 = vrcp.f32 %v1959_v55  ;;  %v839_v17 = vand.u32 2147483647, %v1959_v55  ;;  %v841_v21 = vand.u32 2147483648, %v1959_v55  ;;  %vm835_vm1 = vweird.f32 %v1959_v55 }
  0xd3   : > { %v818_v0 = vmul.f32 %v1651_v42, %v817_v54  ;;  %v590_v2 = vadd.f32 %v1934_v62, %v501_v63  ;;  %v1655_v3 = vpop.eup %1654  ;;  %v1564_v8 = vmul.f32 -1.442695, %v628_v1 }
  0xd4   : > { %v1657_v5 = vpop.eup %1656  ;;  %v1967_v7 = vadd.f32 1.0, %v1655_v3  ;;  %vm1990_vm2 = vcmp.eq.f32.partialorder %v839_v17, 8.507059e+37  ;;  %v842_v34 = vor.u32 1.1754944e-38, %v841_v21 }
  0xd5   : > { %v819_v4 = vadd.f32 %v1651_v42, %v818_v0  ;;  %v1659_v9 = vpop.eup %1658  ;;  %v1056_v12 = vmul.f32 %v1657_v5, %v1954_v45  ;;  %v1549_v14 = vmul.f32 -1.442695, %v590_v2  ;;  %vm1061_vm15 = vweird.f32 %v1657_v5 }
  0xd6   : > { %v540_v15 = vpop.f32.mrf.mxu2  ;;  %1662 = vrcp.f32 %v1967_v7  ;;  %v1977_v22 = vadd.f32 1.0, %v1659_v9  ;;  %vm1062_vm3 = vmor %vm1060_vm14, %vm1061_vm15  ;;  %v1079_v38 = vand.u32 2147483647, %v1967_v7  ;;  %v1081_v43 = vand.u32 2147483648, %v1967_v7 }
  0xd7   : > { %v823_v10 = vsel %vm822_vm12, %v1651_v42, %v819_v4  ;;  %v1057_v20 = vsub.f32 1.0, %v1056_v12  ;;  %1664 = vpow2.f32 %v1564_v8  ;;  %v1979_v23 = vpop.f32.mrf.mxu1  ;;  %v541_v30 = vadd.f32 %v1923_v44, %v540_v15 }
  0xd8   : > { %v828_v62 = vsel %vm825_vm13, %v827_v6, %v823_v10  ;;  %v503_v18 = vpop.f32.mrf.mxu0  ;;  %v1661_v19 = vpop.eup %1660  ;;  %1666 = vpow2.f32 %v1549_v14  ;;  %v854_v51 = vand.u32 2147483647, %v1977_v22  ;;  %vm1075_vm8 = vweird.f32 %v1967_v7 }
  0xd9   : > { %1268 = vst.msk [vmem:[%s1945_s15 + $0x10] sm:$0xff] %vm1265_vm4, %v828_v62  ;;  %v831_v24 = vmul.f32 %v1661_v19, %v1959_v55  ;;  %v1058_v25 = vmul.f32 %v1657_v5, %v1057_v20  ;;  %1668 = vrcp.f32 %v1977_v22  ;;  %v504_v35 = vadd.f32 %v1923_v44, %v503_v18  ;;  %v634_v8 = vpop.f32.mrf.mxu3 }
  0xda   : > { %vm836_vm5 = vweird.f32 %v1661_v19  ;;  %v630_v39 = vadd.f32 %v629_v57, %v541_v30  ;;  %v856_v57 = vand.u32 2147483648, %v1977_v22  ;;  %vm1080_vm9 = vcmp.eq.f32.partialorder %v1079_v38, 8.507059e+37 }
  0xdb   : > { %v832_v29 = vsub.f32 1.0, %v831_v24  ;;  %v1059_v31 = vadd.f32 %v1657_v5, %v1058_v25  ;;  %v593_v46 = vadd.f32 %v1938_v11, %v504_v35  ;;  %vm837_vm6 = vmor %vm835_vm1, %vm836_vm5  ;;  %v1082_v6 = vor.u32 1.1754944e-38, %v1081_v43 }
  0xdc   : > { %v1663_v36 = vpop.eup %1662  ;;  %v1565_v60 = vmul.f32 -1.442695, %v630_v39  ;;  %vm850_vm10 = vweird.f32 %v1977_v22  ;;  %vm2026_vm13 = vcmp.eq.f32.partialorder %v854_v51, 8.507059e+37 }
  0xdd   : > { %v833_v37 = vmul.f32 %v1661_v19, %v832_v29  ;;  %v1665_v40 = vpop.eup %1664  ;;  %v1063_v41 = vsel %vm1062_vm3, %v1657_v5, %v1059_v31  ;;  %v1071_v42 = vmul.f32 %v1663_v36, %v1967_v7  ;;  %vm1076_vm7 = vweird.f32 %v1663_v36 }
  0xde   : > { %v543_v47 = vpop.f32.mrf.mxu2  ;;  %v1667_v48 = vpop.eup %1666  ;;  %v1068_v45 = vsel %vm1983_vm0, %v1067_v28, %v1063_v41  ;;  %v2004_v52 = vadd.f32 1.0, %v1665_v40  ;;  %v1550_v3 = vmul.f32 -1.442695, %v593_v46  ;;  %vm1077_vm11 = vmor %vm1075_vm8, %vm1076_vm7  ;;  %v857_v7 = vor.u32 1.1754944e-38, %v856_v57 }
  0xdf   : > { %v834_v49 = vadd.f32 %v1661_v19, %v833_v37  ;;  %v1669_v54 = vpop.eup %1668  ;;  %1284 = vst.msk [vmem:[%s1945_s15 + $0x90] sm:$0xff] %vm1265_vm4, %v1068_v45  ;;  %v1072_v11 = vsub.f32 1.0, %v1071_v42  ;;  %v2012_v58 = vadd.f32 1.0, %v1667_v48  ;;  %v2014_v61 = vpop.f32.mrf.mxu1  ;;  %v544_v1 = vadd.f32 %v1923_v44, %v543_v47 }
  0xe0   : > { %v505_v53 = vpop.f32.mrf.mxu0  ;;  %v846_v0 = vmul.f32 %v1669_v54, %v1977_v22  ;;  %1670 = vrcp.f32 %v2004_v52  ;;  %vm851_vm12 = vweird.f32 %v1669_v54  ;;  %vm1090_vm15 = vweird.f32 %v2004_v52 }
  0xe1   : > { %v838_v63 = vsel %vm837_vm6, %v1661_v19, %v834_v49  ;;  %v1073_v55 = vmul.f32 %v1663_v36, %v1072_v11  ;;  %1672 = vrcp.f32 %v2012_v58  ;;  %v633_v10 = vadd.f32 %v632_v27, %v544_v1  ;;  %vm852_vm14 = vmor %vm850_vm10, %vm851_vm12  ;;  %v637_v45 = vpop.f32.mrf.mxu3 }
  0xe2   : > { %v843_v2 = vsel %vm1990_vm2, %v842_v34, %v838_v63  ;;  %v847_v4 = vsub.f32 1.0, %v846_v0  ;;  %1674 = vpow2.f32 %v1565_v60  ;;  %v506_v18 = vadd.f32 %v1923_v44, %v505_v53 }
  0xe3   : > { %1269 = vst.msk [vmem:[%s1945_s15 + $0x18] sm:$0xff] %vm1265_vm4, %v843_v2  ;;  %v1074_v5 = vadd.f32 %v1663_v36, %v1073_v55  ;;  %1676 = vpow2.f32 %v1550_v3  ;;  %v1566_v17 = vmul.f32 -1.442695, %v633_v10  ;;  %v1094_v27 = vand.u32 2147483647, %v2004_v52 }
  0xe4   : > { %v848_v9 = vmul.f32 %v1669_v54, %v847_v4  ;;  %v595_v28 = vadd.f32 %v1950_v32, %v506_v18  ;;  %v1096_v30 = vand.u32 2147483648, %v2004_v52  ;;  %v869_v35 = vand.u32 2147483647, %v2012_v58 }
  0xe5   : > { %v1078_v12 = vsel %vm1077_vm11, %v1663_v36, %v1074_v5  ;;  %1678 = vpow2.f32 %v1566_v17  ;;  %v871_v42 = vand.u32 2147483648, %v2012_v58  ;;  %vm865_vm3 = vweird.f32 %v2012_v58 }
  0xe6   : > { %v545_v14 = vpop.f32.mrf.mxu2  ;;  %v1671_v15 = vpop.eup %1670  ;;  %v1083_v62 = vsel %vm1080_vm9, %v1082_v6, %v1078_v12  ;;  %v849_v16 = vadd.f32 %v1669_v54, %v848_v9  ;;  %v1551_v36 = vmul.f32 -1.442695, %v595_v28  ;;  %vm1095_vm5 = vcmp.eq.f32.partialorder %v1094_v27, 8.507059e+37 }
  0xe7   : > { %1285 = vst.msk [vmem:[%s1945_s15 + $0x98] sm:$0xff] %vm1265_vm4, %v1083_v62  ;;  %v1086_v20 = vmul.f32 %v1671_v15, %v2004_v52  ;;  %v546_v21 = vadd.f32 %v1923_v44, %v545_v14  ;;  %v1673_v25 = vpop.eup %1672  ;;  %v2046_v33 = vpop.f32.mrf.mxu1  ;;  %vm1091_vm0 = vweird.f32 %v1671_v15  ;;  %v872_v63 = vor.u32 1.1754944e-38, %v871_v42 }
  0xe8   : > { %v508_v19 = vpop.f32.mrf.mxu0  ;;  %v853_v26 = vsel %vm852_vm14, %v1669_v54, %v849_v16  ;;  %v861_v31 = vmul.f32 %v1673_v25, %v2012_v58  ;;  %v1675_v34 = vpop.eup %1674  ;;  %vm866_vm1 = vweird.f32 %v1673_v25  ;;  %1680 = vpow2.f32 %v1551_v36  ;;  %vm1092_vm2 = vmor %vm1090_vm15, %vm1091_vm0 }
  0xe9   : > { %v509_v24 = vadd.f32 %v1923_v44, %v508_v19  ;;  %v858_v22 = vsel %vm2026_vm13, %v857_v7, %v853_v26  ;;  %v1087_v29 = vsub.f32 1.0, %v1086_v20  ;;  %v635_v37 = vadd.f32 %v634_v8, %v546_v21  ;;  %v1677_v38 = vpop.eup %1676  ;;  %vm867_vm6 = vmor %vm865_vm3, %vm866_vm1  ;;  %v639_v26 = vpop.f32.mrf.mxu3 }
  0xea   : > { %1270 = vst.msk [vmem:[%s1945_s15 + $0x20] sm:$0xff] %vm1265_vm4, %v858_v22  ;;  %v862_v39 = vsub.f32 1.0, %v861_v31  ;;  %v2051_v40 = vadd.f32 1.0, %v1675_v34  ;;  %v2055_v43 = vadd.f32 1.0, %v1677_v38  ;;  %vm870_vm7 = vcmp.eq.f32.partialorder %v869_v35, 8.507059e+37 }
  0xeb   : > { %v1088_v32 = vmul.f32 %v1671_v15, %v1087_v29  ;;  %v598_v41 = vadd.f32 %v1961_v56, %v509_v24  ;;  %v1567_v48 = vmul.f32 -1.442695, %v635_v37  ;;  %v1679_v51 = vpop.eup %1678  ;;  %v1097_v56 = vor.u32 1.1754944e-38, %v1096_v30 }
  0xec   : > { %v863_v47 = vmul.f32 %v1673_v25, %v862_v39  ;;  %1682 = vrcp.f32 %v2051_v40  ;;  %v2064_v0 = vadd.f32 1.0, %v1679_v51  ;;  %v1109_v58 = vand.u32 2147483647, %v2051_v40 }
  0xed   : > { %v1089_v46 = vadd.f32 %v1671_v15, %v1088_v32  ;;  %1684 = vrcp.f32 %v2055_v43  ;;  %v1552_v57 = vmul.f32 -1.442695, %v598_v41  ;;  %v1111_v55 = vand.u32 2147483648, %v2051_v40 }
  0xee   : > { %v548_v49 = vpop.f32.mrf.mxu2  ;;  %v864_v11 = vadd.f32 %v1673_v25, %v863_v47  ;;  %1686 = vpow2.f32 %v1567_v48  ;;  %v1681_v1 = vpop.eup %1680  ;;  %v884_v3 = vand.u32 2147483647, %v2055_v43  ;;  %v886_v5 = vand.u32 2147483648, %v2055_v43 }
  0xef   : > { %v1093_v54 = vsel %vm1092_vm2, %v1671_v15, %v1089_v46  ;;  %1688 = vrcp.f32 %v2064_v0  ;;  %v2075_v6 = vadd.f32 1.0, %v1681_v1  ;;  %v549_v8 = vadd.f32 %v1923_v44, %v548_v49  ;;  %v2078_v9 = vpop.f32.mrf.mxu1 }
  0xf0   : > { %v510_v53 = vpop.f32.mrf.mxu0  ;;  %v1098_v60 = vsel %vm1095_vm5, %v1097_v56, %v1093_v54  ;;  %v868_v52 = vsel %vm867_vm6, %v1673_v25, %v864_v11  ;;  %1690 = vpow2.f32 %v1552_v57  ;;  %vm1105_vm8 = vweird.f32 %v2051_v40 }
  0xf1   : > { %1286 = vst.msk [vmem:[%s1945_s15 + $0xa0] sm:$0xff] %vm1265_vm4, %v1098_v60  ;;  %v873_v2 = vsel %vm870_vm7, %v872_v63, %v868_v52  ;;  %vm880_vm9 = vweird.f32 %v2055_v43  ;;  %v1124_v7 = vand.u32 2147483647, %v2064_v0  ;;  %v1126_v14 = vand.u32 2147483648, %v2064_v0 }
  0xf2   : > { %v1683_v4 = vpop.eup %1682  ;;  %1271 = vst.msk [vmem:[%s1945_s15 + $0x28] sm:$0xff] %vm1265_vm4, %v873_v2  ;;  %1692 = vrcp.f32 %v2075_v6  ;;  %vm2087_vm10 = vcmp.eq.f32.partialorder %v1109_v58, 8.507059e+37  ;;  %v1112_v17 = vor.u32 1.1754944e-38, %v1111_v55  ;;  %vm2091_vm11 = vcmp.eq.f32.partialorder %v884_v3, 8.507059e+37 }
  0xf3   : > { %v1685_v10 = vpop.eup %1684  ;;  %v1101_v12 = vmul.f32 %v1683_v4, %v2051_v40  ;;  %v887_v24 = vor.u32 1.1754944e-38, %v886_v5  ;;  %vm1120_vm12 = vweird.f32 %v2064_v0  ;;  %v638_v25 = vadd.f32 %v637_v45, %v549_v8 }
  0xf4   : > { %v876_v13 = vmul.f32 %v1685_v10, %v2055_v43  ;;  %v1687_v20 = vpop.eup %1686  ;;  %vm1106_vm13 = vweird.f32 %v1683_v4  ;;  %v511_v29 = vadd.f32 %v1923_v44, %v510_v53  ;;  %vm881_vm14 = vweird.f32 %v1685_v10 }
  0xf5   : > { %v1102_v62 = vsub.f32 1.0, %v1101_v12  ;;  %v1689_v27 = vpop.eup %1688  ;;  %v2096_v22 = vadd.f32 1.0, %v1687_v20  ;;  %vm2100_vm15 = vcmp.eq.f32.partialorder %v1124_v7, 8.507059e+37  ;;  %v1127_v36 = vor.u32 1.1754944e-38, %v1126_v14  ;;  %vm1107_vm1 = vmor %vm1105_vm8, %vm1106_vm13  ;;  %v642_v12 = vpop.f32.mrf.mxu3 }
  0xf6   : > { %v550_v15 = vpop.f32.mrf.mxu2  ;;  %v877_v21 = vsub.f32 1.0, %v876_v13  ;;  %v1691_v30 = vpop.eup %1690  ;;  %v1116_v34 = vmul.f32 %v1689_v27, %v2064_v0  ;;  %vm895_vm0 = vweird.f32 %v2075_v6  ;;  %v899_v38 = vand.u32 2147483647, %v2075_v6  ;;  %vm882_vm2 = vmor %vm880_vm9, %vm881_vm14 }
  0xf7   : > { %v1103_v28 = vmul.f32 %v1683_v4, %v1102_v62  ;;  %v901_v32 = vand.u32 2147483648, %v2075_v6  ;;  %1694 = vrcp.f32 %v2096_v22  ;;  %v2111_v46 = vadd.f32 1.0, %v1691_v30  ;;  %v2121_v54 = vpop.f32.mrf.mxu1 }
  0xf8   : > { %v513_v19 = vpop.f32.mrf.mxu0  ;;  %v878_v31 = vmul.f32 %v1685_v10, %v877_v21  ;;  %v1693_v39 = vpop.eup %1692  ;;  %v1117_v42 = vsub.f32 1.0, %v1116_v34  ;;  %v1568_v47 = vmul.f32 -1.442695, %v638_v25  ;;  %v600_v49 = vadd.f32 %v1979_v23, %v511_v29 }
  0xf9   : > { %v1104_v37 = vadd.f32 %v1683_v4, %v1103_v28  ;;  %v891_v45 = vmul.f32 %v1693_v39, %v2075_v6  ;;  %v551_v51 = vadd.f32 %v1923_v44, %v550_v15  ;;  %vm1121_vm3 = vweird.f32 %v1689_v27 }
  0xfa   : > { %v879_v41 = vadd.f32 %v1685_v10, %v878_v31  ;;  %v1118_v53 = vmul.f32 %v1689_v27, %v1117_v42  ;;  %v1139_v60 = vand.u32 2147483647, %v2096_v22  ;;  %1696 = vrcp.f32 %v2111_v46  ;;  %vm1122_vm6 = vmor %vm1120_vm12, %vm1121_vm3 }
  0xfb   : > { %v1108_v48 = vsel %vm1107_vm1, %v1683_v4, %v1104_v37  ;;  %v892_v57 = vsub.f32 1.0, %v891_v45  ;;  %vm896_vm5 = vweird.f32 %v1693_v39  ;;  %v1141_v63 = vand.u32 2147483648, %v2096_v22 }
  0xfc   : > { %v1113_v40 = vsel %vm2087_vm10, %v1112_v17, %v1108_v48  ;;  %v883_v56 = vsel %vm882_vm2, %v1685_v10, %v879_v41  ;;  %v1119_v23 = vadd.f32 %v1689_v27, %v1118_v53  ;;  %1698 = vpow2.f32 %v1568_v47  ;;  %vm897_vm9 = vmor %vm895_vm0, %vm896_vm5 }
  0xfd   : > { %1287 = vst.msk [vmem:[%s1945_s15 + $0xa8] sm:$0xff] %vm1265_vm4, %v1113_v40  ;;  %v888_v43 = vsel %vm2091_vm11, %v887_v24, %v883_v56  ;;  %v1695_v58 = vpop.eup %1694  ;;  %v893_v1 = vmul.f32 %v1693_v39, %v892_v57  ;;  %v1553_v2 = vmul.f32 -1.442695, %v600_v49  ;;  %v640_v55 = vadd.f32 %v639_v26, %v551_v51 }
  0xfe   : > { %v553_v11 = vpop.f32.mrf.mxu2  ;;  %1272 = vst.msk [vmem:[%s1945_s15 + $0x30] sm:$0xff] %vm1265_vm4, %v888_v43  ;;  %v514_v3 = vadd.f32 %v1923_v44, %v513_v19  ;;  %v1123_v4 = vsel %vm1122_vm6, %v1689_v27, %v1119_v23  ;;  %vm2136_vm7 = vcmp.eq.f32.partialorder %v899_v38, 8.507059e+37  ;;  %v902_v8 = vor.u32 1.1754944e-38, %v901_v32 }
  0xff   : > { %v1131_v10 = vmul.f32 %v1695_v58, %v2096_v22  ;;  %v1128_v13 = vsel %vm2100_vm15, %v1127_v36, %v1123_v4  ;;  %v894_v7 = vadd.f32 %v1693_v39, %v893_v1  ;;  %vm1135_vm8 = vweird.f32 %v2096_v22  ;;  %v2165_v35 = vpop.f32.mrf.mxu1 }
 0x100   : > { %v515_v52 = vpop.f32.mrf.mxu0  ;;  %1700 = vpow2.f32 %v1553_v2  ;;  %1288 = vst.msk [vmem:[%s1945_s15 + $0xb0] sm:$0xff] %vm1265_vm4, %v1128_v13  ;;  %v1569_v14 = vmul.f32 -1.442695, %v640_v55  ;;  %v603_v15 = vadd.f32 %v2014_v61, %v514_v3  ;;  %v554_v62 = vadd.f32 %v1923_v44, %v553_v11  ;;  %v1697_v16 = vpop.eup %1696 }
 0x101   : > { %v1132_v0 = vsub.f32 1.0, %v1131_v10  ;;  %v898_v17 = vsel %vm897_vm9, %v1693_v39, %v894_v7  ;;  %vm2151_vm10 = vcmp.eq.f32.partialorder %v1139_v60, 8.507059e+37  ;;  %v1142_v19 = vor.u32 1.1754944e-38, %v1141_v63 }
 0x102   : > { %v516_v20 = vadd.f32 %v1923_v44, %v515_v52  ;;  %v1699_v21 = vpop.eup %1698  ;;  %v903_v6 = vsel %vm2136_vm7, %v902_v8, %v898_v17  ;;  %vm1136_vm11 = vweird.f32 %v1695_v58  ;;  %v906_v25 = vmul.f32 %v1697_v16, %v2111_v46 }
 0x103   : > { %v1133_v24 = vmul.f32 %v1695_v58, %v1132_v0  ;;  %1273 = vst.msk [vmem:[%s1945_s15 + $0x38] sm:$0xff] %vm1265_vm4, %v903_v6  ;;  %v2161_v26 = vadd.f32 1.0, %v1699_v21  ;;  %1702 = vpow2.f32 %v1569_v14  ;;  %v1554_v27 = vmul.f32 -1.442695, %v603_v15  ;;  %vm1137_vm12 = vmor %vm1135_vm8, %vm1136_vm11 }
 0x104   : > { %v643_v28 = vadd.f32 %v642_v12, %v554_v62  ;;  %v907_v30 = vsub.f32 1.0, %v906_v25  ;;  %v914_v31 = vand.u32 2147483647, %v2111_v46  ;;  %v916_v34 = vand.u32 2147483648, %v2111_v46 }
 0x105   : > { %v1134_v29 = vadd.f32 %v1695_v58, %v1133_v24  ;;  %vm911_vm13 = vweird.f32 %v1697_v16  ;;  %1704 = vrcp.f32 %v2161_v26  ;;  %v605_v37 = vadd.f32 %v2046_v33, %v516_v20  ;;  %v644_v33 = vpop.f32.mrf.mxu3 }
 0x106   : > { %v555_v61 = vpop.f32.mrf.mxu2  ;;  %v1701_v36 = vpop.eup %1700  ;;  %v908_v39 = vmul.f32 %v1697_v16, %v907_v30  ;;  %1706 = vpow2.f32 %v1554_v27  ;;  %v1570_v48 = vmul.f32 -1.442695, %v643_v28  ;;  %vm910_vm14 = vweird.f32 %v2111_v46 }
 0x107   : > { %v556_v38 = vadd.f32 %v1923_v44, %v555_v61  ;;  %v1138_v32 = vsel %vm1137_vm12, %v1695_v58, %v1134_v29  ;;  %v2172_v41 = vadd.f32 1.0, %v1701_v36  ;;  %vm915_vm15 = vcmp.eq.f32.partialorder %v914_v31, 8.507059e+37  ;;  %vm912_vm0 = vmor %vm910_vm14, %vm911_vm13  ;;  %v2207_v12 = vpop.f32.mrf.mxu1 }
 0x108   : > { %v518_v42 = vpop.f32.mrf.mxu0  ;;  %v1143_v47 = vsel %vm2151_vm10, %v1142_v19, %v1138_v32  ;;  %v909_v22 = vadd.f32 %v1697_v16, %v908_v39  ;;  %v917_v49 = vor.u32 1.1754944e-38, %v916_v34  ;;  %v1555_v51 = vmul.f32 -1.442695, %v605_v37 }
 0x109   : > { %1289 = vst.msk [vmem:[%s1945_s15 + $0xb8] sm:$0xff] %vm1265_vm4, %v1143_v47  ;;  %1708 = vrcp.f32 %v2172_v41  ;;  %v1703_v45 = vpop.eup %1702  ;;  %v645_v40 = vadd.f32 %v644_v33, %v556_v38  ;;  %v1154_v53 = vand.u32 2147483647, %v2161_v26  ;;  %v1156_v11 = vand.u32 2147483648, %v2161_v26 }
 0x10a   : > { %1710 = vpow2.f32 %v1570_v48  ;;  %v913_v56 = vsel %vm912_vm0, %v1697_v16, %v909_v22  ;;  %v2183_v43 = vadd.f32 1.0, %v1703_v45  ;;  %v929_v60 = vand.u32 2147483647, %v2172_v41 }
 0x10b   : > { %v1705_v46 = vpop.eup %1704  ;;  %v918_v57 = vsel %vm915_vm15, %v917_v49, %v913_v56  ;;  %1712 = vpow2.f32 %v1555_v51  ;;  %v1571_v23 = vmul.f32 -1.442695, %v645_v40  ;;  %v931_v58 = vand.u32 2147483648, %v2172_v41 }
 0x10c   : > { %v1707_v63 = vpop.eup %1706  ;;  %1274 = vst.msk [vmem:[%s1945_s15 + $0x40] sm:$0xff] %vm1265_vm4, %v918_v57  ;;  %v1146_v52 = vmul.f32 %v1705_v46, %v2161_v26  ;;  %1714 = vrcp.f32 %v2183_v43  ;;  %v2193_v1 = vadd.f32 %v1923_v44, %v1926_v50  ;;  %v2197_v2 = vadd.f32 %v1923_v44, %v1931_v59 }
 0x10d   : > { %v2199_v55 = vadd.f32 1.0, %v1707_v63  ;;  %v519_v3 = vadd.f32 %v1923_v44, %v518_v42  ;;  %vm1150_vm1 = vweird.f32 %v2161_v26  ;;  %vm2203_vm2 = vcmp.eq.f32.partialorder %v1154_v53, 8.507059e+37  ;;  %v647_v38 = vpop.f32.mrf.mxu3 }
 0x10e   : > { %v1147_v5 = vsub.f32 1.0, %v1146_v52  ;;  %v1157_v10 = vor.u32 1.1754944e-38, %v1156_v11  ;;  %vm925_vm3 = vweird.f32 %v2172_v41  ;;  %vm2211_vm5 = vcmp.eq.f32.partialorder %v929_v60, 8.507059e+37  ;;  %v558_v7 = vpop.f32.mrf.mxu2 }
 0x10f   : > { %v1709_v4 = vpop.eup %1708  ;;  %1716 = vpow2.f32 %v1571_v23  ;;  %vm1151_vm6 = vweird.f32 %v1705_v46  ;;  %v932_v14 = vor.u32 1.1754944e-38, %v931_v58  ;;  %vm1165_vm7 = vweird.f32 %v2183_v43  ;;  %v617_v49 = vpop.f32.mrf.mxu1 }
 0x110   : > { %v1711_v50 = vpop.eup %1710  ;;  %v921_v13 = vmul.f32 %v1709_v4, %v2172_v41  ;;  %v1148_v0 = vmul.f32 %v1705_v46, %v1147_v5  ;;  %1718 = vrcp.f32 %v2199_v55  ;;  %v520_v15 = vpop.f32.mrf.mxu0  ;;  %v1169_v17 = vand.u32 2147483647, %v2183_v43  ;;  %vm1152_vm8 = vmor %vm1150_vm1, %vm1151_vm6 }
 0x111   : > { %v1713_v62 = vpop.eup %1712  ;;  %v2218_v18 = vadd.f32 1.0, %v1711_v50  ;;  %v608_v19 = vadd.f32 %v2078_v9, %v519_v3  ;;  %v1171_v6 = vand.u32 2147483648, %v2183_v43  ;;  %v559_v25 = vadd.f32 %v1923_v44, %v558_v7 }
 0x112   : > { %v922_v16 = vsub.f32 1.0, %v921_v13  ;;  %v1715_v20 = vpop.eup %1714  ;;  %v1149_v21 = vadd.f32 %v1705_v46, %v1148_v0  ;;  %v2222_v24 = vadd.f32 1.0, %v1713_v62  ;;  %vm926_vm9 = vweird.f32 %v1709_v4 }
 0x113   : > { %v1161_v27 = vmul.f32 %v1715_v20, %v2183_v43  ;;  %v521_v28 = vadd.f32 %v1923_v44, %v520_v15  ;;  %v944_v29 = vand.u32 2147483647, %v2199_v55  ;;  %v946_v30 = vand.u32 2147483648, %v2199_v55  ;;  %vm927_vm10 = vmor %vm925_vm3, %vm926_vm9 }
 0x114   : > { %v923_v61 = vmul.f32 %v1709_v4, %v922_v16  ;;  %v1153_v9 = vsel %vm1152_vm8, %v1705_v46, %v1149_v21  ;;  %1720 = vrcp.f32 %v2218_v18  ;;  %v1556_v37 = vmul.f32 -1.442695, %v608_v19 }
 0x115   : > { %v1717_v31 = vpop.eup %1716  ;;  %v1158_v34 = vsel %vm2203_vm2, %v1157_v10, %v1153_v9  ;;  %v1162_v36 = vsub.f32 1.0, %v1161_v27  ;;  %vm2240_vm11 = vcmp.eq.f32.partialorder %v1169_v17, 8.507059e+37  ;;  %v1172_v39 = vor.u32 1.1754944e-38, %v1171_v6  ;;  %v2285_v17 = vld [vmem:[%s2420_s2] ss:$0 sm:$0xff] }
 0x116   : > { %v924_v26 = vadd.f32 %v1709_v4, %v923_v61  ;;  %v1719_v32 = vpop.eup %1718  ;;  %1290 = vst.msk [vmem:[%s1945_s15 + $0xc0] sm:$0xff] %vm1265_vm4, %v1158_v34  ;;  %1722 = vrcp.f32 %v2222_v24  ;;  %v648_v42 = vadd.f32 %v647_v38, %v559_v25  ;;  %vm1166_vm12 = vweird.f32 %v1715_v20  ;;  %v560_v50 = vpop.f32.mrf.mxu2 }
 0x117   : > { %v1163_v48 = vmul.f32 %v1715_v20, %v1162_v36  ;;  %v936_v22 = vmul.f32 %v1719_v32, %v2199_v55  ;;  %vm940_vm13 = vweird.f32 %v2199_v55  ;;  %vm2249_vm14 = vcmp.eq.f32.partialorder %v944_v29, 8.507059e+37  ;;  %vm1167_vm15 = vmor %vm1165_vm7, %vm1166_vm12 }
 0x118   : > { %v928_v47 = vsel %vm927_vm10, %v1709_v4, %v924_v26  ;;  %v947_v45 = vor.u32 1.1754944e-38, %v946_v30  ;;  %v2255_v56 = vadd.f32 1.0, %v1717_v31  ;;  %1724 = vpow2.f32 %v1556_v37  ;;  %v523_v31 = vpop.f32.mrf.mxu0 }
 0x119   : > { %v933_v33 = vsel %vm2211_vm5, %v932_v14, %v928_v47  ;;  %v1164_v51 = vadd.f32 %v1715_v20, %v1163_v48  ;;  %v937_v40 = vsub.f32 1.0, %v936_v22  ;;  %vm941_vm0 = vweird.f32 %v1719_v32  ;;  %v619_v48 = vpop.f32.mrf.mxu1 }
 0x11a   : > { %1275 = vst.msk [vmem:[%s1945_s15 + $0x48] sm:$0xff] %vm1265_vm4, %v933_v33  ;;  %v1721_v53 = vpop.eup %1720  ;;  %vm1180_vm1 = vweird.f32 %v2218_v18  ;;  %v1572_v11 = vmul.f32 -1.442695, %v648_v42  ;;  %v610_v46 = vadd.f32 %v2121_v54, %v521_v28  ;;  %v618_v63 = vadd.f32 %v617_v49, %v2193_v1  ;;  %vm942_vm2 = vmor %vm940_vm13, %vm941_vm0  ;;  %v649_v28 = vpop.f32.mrf.mxu3 }
 0x11b   : > { %v1168_v57 = vsel %vm1167_vm15, %v1715_v20, %v1164_v51  ;;  %v938_v60 = vmul.f32 %v1719_v32, %v937_v40  ;;  %v1176_v23 = vmul.f32 %v1721_v53, %v2218_v18  ;;  %v1184_v3 = vand.u32 2147483647, %v2218_v18 }
 0x11c   : > { %v1723_v52 = vpop.eup %1722  ;;  %v1173_v58 = vsel %vm2240_vm11, %v1172_v39, %v1168_v57  ;;  %v1186_v43 = vand.u32 2147483648, %v2218_v18  ;;  %1726 = vrcp.f32 %v2255_v56  ;;  %v959_v8 = vand.u32 2147483647, %v2222_v24 }
 0x11d   : > { %1291 = vst.msk [vmem:[%s1945_s15 + $0xc8] sm:$0xff] %vm1265_vm4, %v1173_v58  ;;  %v939_v4 = vadd.f32 %v1719_v32, %v938_v60  ;;  %v1177_v54 = vsub.f32 1.0, %v1176_v23  ;;  %v951_v5 = vmul.f32 %v1723_v52, %v2222_v24  ;;  %vm1181_vm3 = vweird.f32 %v1721_v53 }
 0x11e   : > { %v961_v1 = vand.u32 2147483648, %v2222_v24  ;;  %1728 = vpow2.f32 %v1572_v11  ;;  %v1557_v10 = vmul.f32 -1.442695, %v610_v46  ;;  %v1725_v13 = vpop.eup %1724  ;;  %v1560_v14 = vmul.f32 -1.442695, %v618_v63  ;;  %vm1182_vm6 = vmor %vm1180_vm1, %vm1181_vm3  ;;  %v563_v11 = vpop.f32.mrf.mxu2 }
 0x11f   : > { %v943_v59 = vsel %vm942_vm2, %v1719_v32, %v939_v4  ;;  %v1178_v7 = vmul.f32 %v1721_v53, %v1177_v54  ;;  %v952_v0 = vsub.f32 1.0, %v951_v5  ;;  %vm956_vm5 = vweird.f32 %v1723_v52 }
 0x120   : > { %v948_v15 = vsel %vm2249_vm14, %v947_v45, %v943_v59  ;;  %v2278_v62 = vadd.f32 1.0, %v1725_v13  ;;  %1730 = vpow2.f32 %v1557_v10  ;;  %v561_v19 = vadd.f32 %v2285_v17, %v560_v50  ;;  %v525_v13 = vpop.f32.mrf.mxu0 }
 0x121   : > { %1276 = vst.msk [vmem:[%s1945_s15 + $0x50] sm:$0xff] %vm1265_vm4, %v948_v15  ;;  %v1179_v55 = vadd.f32 %v1721_v53, %v1178_v7  ;;  %v953_v16 = vmul.f32 %v1723_v52, %v952_v0  ;;  %1732 = vpow2.f32 %v1560_v14  ;;  %vm1185_vm7 = vcmp.eq.f32.partialorder %v1184_v3, 8.507059e+37 }
 0x122   : > { %v1727_v20 = vpop.eup %1726  ;;  %v1187_v21 = vor.u32 1.1754944e-38, %v1186_v43  ;;  %v1199_v6 = vand.u32 2147483647, %v2255_v56  ;;  %1734 = vrcp.f32 %v2278_v62  ;;  %vm955_vm8 = vweird.f32 %v2222_v24  ;;  %v652_v54 = vpop.f32.mrf.mxu3 }
 0x123   : > { %v1183_v25 = vsel %vm1182_vm6, %v1721_v53, %v1179_v55  ;;  %v954_v61 = vadd.f32 %v1723_v52, %v953_v16  ;;  %v1191_v27 = vmul.f32 %v1727_v20, %v2255_v56  ;;  %vm957_vm9 = vmor %vm955_vm8, %vm956_vm5  ;;  %vm960_vm10 = vcmp.eq.f32.partialorder %v959_v8, 8.507059e+37 }
 0x124   : > { %v1729_v9 = vpop.eup %1728  ;;  %v1188_v29 = vsel %vm1185_vm7, %v1187_v21, %v1183_v25  ;;  %v962_v18 = vor.u32 1.1754944e-38, %v961_v1  ;;  %v650_v30 = vadd.f32 %v649_v28, %v561_v19  ;;  %v1201_v36 = vand.u32 2147483648, %v2255_v56 }
 0x125   : > { %1292 = vst.msk [vmem:[%s1945_s15 + $0xd0] sm:$0xff] %vm1265_vm4, %v1188_v29  ;;  %v958_v34 = vsel %vm957_vm9, %v1723_v52, %v954_v61  ;;  %v1192_v26 = vsub.f32 1.0, %v1191_v27  ;;  %v2299_v37 = vadd.f32 1.0, %v1729_v9  ;;  %vm1195_vm11 = vweird.f32 %v2255_v56 }
 0x126   : > { %v1731_v24 = vpop.eup %1730  ;;  %v963_v38 = vsel %vm960_vm10, %v962_v18, %v958_v34  ;;  %vm2302_vm12 = vcmp.eq.f32.partialorder %v1199_v6, 8.507059e+37  ;;  %v1573_v44 = vmul.f32 -1.442695, %v650_v30  ;;  %vm1196_vm13 = vweird.f32 %v1727_v20  ;;  %v565_v29 = vpop.f32.mrf.mxu2 }
 0x127   : > { %v1733_v39 = vpop.eup %1732  ;;  %1277 = vst.msk [vmem:[%s1945_s15 + $0x58] sm:$0xff] %vm1265_vm4, %v963_v38  ;;  %v1193_v42 = vmul.f32 %v1727_v20, %v1192_v26  ;;  %v974_v47 = vand.u32 2147483647, %v2278_v62  ;;  %1736 = vrcp.f32 %v2299_v37  ;;  %v976_v33 = vand.u32 2147483648, %v2278_v62  ;;  %vm1197_vm14 = vmor %vm1195_vm11, %vm1196_vm13 }
 0x128   : > { %v1735_v22 = vpop.eup %1734  ;;  %v2311_v41 = vadd.f32 1.0, %v1731_v24  ;;  %v2313_v45 = vadd.f32 1.0, %v1733_v39  ;;  %1738 = vpow2.f32 %v1573_v44  ;;  %v1202_v51 = vor.u32 1.1754944e-38, %v1201_v36 }
 0x129   : > { %v1194_v49 = vadd.f32 %v1727_v20, %v1193_v42  ;;  %v966_v40 = vmul.f32 %v1735_v22, %v2278_v62  ;;  %v524_v53 = vadd.f32 %v2285_v17, %v523_v31  ;;  %v1214_v46 = vand.u32 2147483647, %v2299_v37 }
 0x12a   : > { %v1216_v57 = vand.u32 2147483648, %v2299_v37  ;;  %1740 = vrcp.f32 %v2311_v41  ;;  %v620_v60 = vadd.f32 %v619_v48, %v2197_v2  ;;  %vm970_vm15 = vweird.f32 %v2278_v62  ;;  %v654_v48 = vpop.f32.mrf.mxu3 }
 0x12b   : > { %v1198_v23 = vsel %vm1197_vm14, %v1727_v20, %v1194_v49  ;;  %v967_v63 = vsub.f32 1.0, %v966_v40  ;;  %1742 = vrcp.f32 %v2313_v45  ;;  %vm2327_vm0 = vcmp.eq.f32.partialorder %v974_v47, 8.507059e+37 }
 0x12c   : > { %v1203_v52 = vsel %vm2302_vm12, %v1202_v51, %v1198_v23  ;;  %v977_v58 = vor.u32 1.1754944e-38, %v976_v33  ;;  %v564_v3 = vadd.f32 %v2285_v17, %v563_v11  ;;  %vm971_vm1 = vweird.f32 %v1735_v22 }
 0x12d   : > { %v1737_v43 = vpop.eup %1736  ;;  %1293 = vst.msk [vmem:[%s1945_s15 + $0xd8] sm:$0xff] %vm1265_vm4, %v1203_v52  ;;  %v968_v2 = vmul.f32 %v1735_v22, %v967_v63  ;;  %vm1210_vm2 = vweird.f32 %v2299_v37  ;;  %v613_v4 = vadd.f32 %v2165_v35, %v524_v53  ;;  %vm2337_vm3 = vcmp.eq.f32.partialorder %v1214_v46, 8.507059e+37  ;;  %vm972_vm6 = vmor %vm970_vm15, %vm971_vm1 }
 0x12e   : > { %v1739_v5 = vpop.eup %1738  ;;  %v1206_v8 = vmul.f32 %v1737_v43, %v2299_v37  ;;  %v1217_v10 = vor.u32 1.1754944e-38, %v1216_v57  ;;  %v1561_v50 = vmul.f32 -1.442695, %v620_v60  ;;  %vm985_vm5 = vweird.f32 %v2311_v41 }
 0x12f   : > { %v969_v59 = vadd.f32 %v1735_v22, %v968_v2  ;;  %v989_v7 = vand.u32 2147483647, %v2311_v41  ;;  %v991_v0 = vand.u32 2147483648, %v2311_v41  ;;  %v2344_v14 = vadd.f32 1.0, %v1739_v5 }
 0x130   : > { %v1741_v35 = vpop.eup %1740  ;;  %v1207_v15 = vsub.f32 1.0, %v1206_v8  ;;  %v1558_v55 = vmul.f32 -1.442695, %v613_v4  ;;  %1744 = vpow2.f32 %v1561_v50  ;;  %v653_v16 = vadd.f32 %v652_v54, %v564_v3 }
 0x131   : > { %v1743_v19 = vpop.eup %1742  ;;  %v973_v20 = vsel %vm972_vm6, %v1735_v22, %v969_v59  ;;  %v981_v21 = vmul.f32 %v1741_v35, %v2311_v41  ;;  %1746 = vrcp.f32 %v2344_v14  ;;  %v526_v6 = vadd.f32 %v2285_v17, %v525_v13 }
 0x132   : > { %v978_v25 = vsel %vm2327_vm0, %v977_v58, %v973_v20  ;;  %v1208_v61 = vmul.f32 %v1737_v43, %v1207_v15  ;;  %vm1211_vm7 = vweird.f32 %v1737_v43  ;;  %v1026_v62 = vmul.f32 %v1743_v19, %v2313_v45 }
 0x133   : > { %1278 = vst.msk [vmem:[%s1945_s15 + $0x60] sm:$0xff] %vm1265_vm4, %v978_v25  ;;  %v982_v27 = vsub.f32 1.0, %v981_v21  ;;  %vm1030_vm8 = vweird.f32 %v2313_v45  ;;  %v1034_v28 = vand.u32 2147483647, %v2313_v45  ;;  %v1036_v9 = vand.u32 2147483648, %v2313_v45  ;;  %vm1212_vm9 = vmor %vm1210_vm2, %vm1211_vm7 }
 0x134   : > { %v1209_v18 = vadd.f32 %v1737_v43, %v1208_v61  ;;  %v1027_v30 = vsub.f32 1.0, %v1026_v62  ;;  %1748 = vpow2.f32 %v1558_v55  ;;  %v1574_v31 = vmul.f32 -1.442695, %v653_v16 }
 0x135   : > { %v983_v34 = vmul.f32 %v1741_v35, %v982_v27  ;;  %vm986_vm10 = vweird.f32 %v1741_v35  ;;  %vm1031_vm11 = vweird.f32 %v1743_v19  ;;  %v615_v26 = vadd.f32 %v2207_v12, %v526_v6 }
 0x136   : > { %v1745_v36 = vpop.eup %1744  ;;  %v1213_v24 = vsel %vm1212_vm9, %v1737_v43, %v1209_v18  ;;  %v1028_v38 = vmul.f32 %v1743_v19, %v1027_v30  ;;  %1750 = vpow2.f32 %v1574_v31  ;;  %v566_v32 = vadd.f32 %v2285_v17, %v565_v29  ;;  %vm987_vm12 = vmor %vm985_vm5, %vm986_vm10 }
 0x137   : > { %v1747_v44 = vpop.eup %1746  ;;  %v1218_v39 = vsel %vm2337_vm3, %v1217_v10, %v1213_v24  ;;  %v984_v42 = vadd.f32 %v1741_v35, %v983_v34  ;;  %v2366_v47 = vadd.f32 1.0, %v1745_v36  ;;  %v1559_v37 = vmul.f32 -1.442695, %v615_v26  ;;  %vm1032_vm14 = vmor %vm1030_vm8, %vm1031_vm11 }
 0x138   : > { %1294 = vst.msk [vmem:[%s1945_s15 + $0xe0] sm:$0xff] %vm1265_vm4, %v1218_v39  ;;  %v992_v12 = vor.u32 1.1754944e-38, %v991_v0  ;;  %v1029_v22 = vadd.f32 %v1743_v19, %v1028_v38  ;;  %v1221_v17 = vmul.f32 %v1747_v44, %v2344_v14  ;;  %v655_v33 = vadd.f32 %v654_v48, %v566_v32 }
 0x139   : > { %v988_v49 = vsel %vm987_vm12, %v1741_v35, %v984_v42  ;;  %vm990_vm13 = vcmp.eq.f32.partialorder %v989_v7, 8.507059e+37  ;;  %v1037_v51 = vor.u32 1.1754944e-38, %v1036_v9  ;;  %1752 = vrcp.f32 %v2366_v47 }
 0x13a   : > { %v1749_v40 = vpop.eup %1748  ;;  %v993_v53 = vsel %vm990_vm13, %v992_v12, %v988_v49  ;;  %v1033_v41 = vsel %vm1032_vm14, %v1743_v19, %v1029_v22  ;;  %vm1035_vm15 = vcmp.eq.f32.partialorder %v1034_v28, 8.507059e+37  ;;  %v1222_v11 = vsub.f32 1.0, %v1221_v17 }
 0x13b   : > { %1279 = vst.msk [vmem:[%s1945_s15 + $0x68] sm:$0xff] %vm1265_vm4, %v993_v53  ;;  %v1038_v46 = vsel %vm1035_vm15, %v1037_v51, %v1033_v41  ;;  %v1231_v57 = vand.u32 2147483648, %v2344_v14  ;;  %v2381_v60 = vadd.f32 1.0, %v1749_v40  ;;  %1754 = vpow2.f32 %v1559_v37 }
 0x13c   : > { %v1751_v23 = vpop.eup %1750  ;;  %1282 = vst.msk [vmem:[%s1945_s15 + $0x80] sm:$0xff] %vm1265_vm4, %v1038_v46  ;;  %v1223_v45 = vmul.f32 %v1747_v44, %v1222_v11  ;;  %vm1226_vm0 = vweird.f32 %v1747_v44  ;;  %v1229_v63 = vand.u32 2147483647, %v2344_v14  ;;  %v1575_v52 = vmul.f32 -1.442695, %v655_v33 }
 0x13d   : > { %1756 = vrcp.f32 %v2381_v60  ;;  %vm1225_vm1 = vweird.f32 %v2344_v14  ;;  %v783_v58 = vadd.f32 1.0, %v1751_v23  ;;  %v1232_v43 = vor.u32 1.1754944e-38, %v1231_v57 }
 0x13e   : > { %v1224_v56 = vadd.f32 %v1747_v44, %v1223_v45  ;;  %1758 = vpow2.f32 %v1575_v52  ;;  %vm1227_vm2 = vmor %vm1225_vm1, %vm1226_vm0  ;;  %vm1230_vm3 = vcmp.eq.f32.partialorder %v1229_v63, 8.507059e+37  ;;  %v1049_v1 = vand.u32 2147483647, %v2366_v47 }
 0x13f   : > { %v1753_v3 = vpop.eup %1752  ;;  %1760 = vrcp.f32 %v783_v58  ;;  %v1051_v13 = vand.u32 2147483648, %v2366_v47  ;;  %vm1045_vm6 = vweird.f32 %v2366_v47  ;;  %v1004_v16 = vand.u32 2147483647, %v2381_v60 }
 0x140   : > { %v1228_v2 = vsel %vm1227_vm2, %v1747_v44, %v1224_v56  ;;  %v1041_v4 = vmul.f32 %v1753_v3, %v2366_v47  ;;  %vm1046_vm5 = vweird.f32 %v1753_v3  ;;  %vm1050_vm7 = vcmp.eq.f32.partialorder %v1049_v1, 8.507059e+37 }
 0x141   : > { %v1755_v54 = vpop.eup %1754  ;;  %v1233_v5 = vsel %vm1230_vm3, %v1232_v43, %v1228_v2  ;;  %v1006_v19 = vand.u32 2147483648, %v2381_v60  ;;  %vm1047_vm8 = vmor %vm1045_vm6, %vm1046_vm5  ;;  %v1052_v20 = vor.u32 1.1754944e-38, %v1051_v13  ;;  %vm1000_vm10 = vweird.f32 %v2381_v60 }
 0x142   : > { %1295 = vst.msk [vmem:[%s1945_s15 + $0xe8] sm:$0xff] %vm1265_vm4, %v1233_v5  ;;  %v1042_v8 = vsub.f32 1.0, %v1041_v4  ;;  %v768_v10 = vadd.f32 1.0, %v1755_v54  ;;  %v1244_v9 = vand.u32 2147483647, %v783_v58  ;;  %v1246_v29 = vand.u32 2147483648, %v783_v58 }
 0x143   : > { %v1757_v50 = vpop.eup %1756  ;;  %v1007_v18 = vor.u32 1.1754944e-38, %v1006_v19  ;;  %vm1005_vm13 = vcmp.eq.f32.partialorder %v1004_v16, 8.507059e+37  ;;  %vm1240_vm14 = vweird.f32 %v783_v58 }
 0x144   : > { %v1759_v59 = vpop.eup %1758  ;;  %v996_v7 = vmul.f32 %v1757_v50, %v2381_v60  ;;  %v1043_v0 = vmul.f32 %v1753_v3, %v1042_v8  ;;  %1762 = vrcp.f32 %v768_v10  ;;  %vm1001_vm9 = vweird.f32 %v1757_v50 }
 0x145   : > { %v2394_v14 = vadd.f32 1.0, %v1759_v59  ;;  %v1761_v35 = vpop.eup %1760  ;;  %vm1002_vm11 = vmor %vm1000_vm10, %vm1001_vm9  ;;  %vm1245_vm0 = vcmp.eq.f32.partialorder %v1244_v9, 8.507059e+37  ;;  %v1247_v32 = vor.u32 1.1754944e-38, %v1246_v29  ;;  %v1019_v44 = vand.u32 2147483647, %v768_v10 }
 0x146   : > { %v997_v15 = vsub.f32 1.0, %v996_v7  ;;  %v1044_v55 = vadd.f32 %v1753_v3, %v1043_v0  ;;  %v1236_v21 = vmul.f32 %v1761_v35, %v783_v58  ;;  %vm1241_vm12 = vweird.f32 %v1761_v35 }
 0x147   : > { %1764 = vrcp.f32 %v2394_v14  ;;  %vm1242_vm15 = vmor %vm1240_vm14, %vm1241_vm12  ;;  %v1021_v39 = vand.u32 2147483648, %v768_v10  ;;  %vm1015_vm2 = vweird.f32 %v768_v10  ;;  %vm1020_vm5 = vcmp.eq.f32.partialorder %v1019_v44, 8.507059e+37 }
 0x148   : > { %v998_v6 = vmul.f32 %v1757_v50, %v997_v15  ;;  %v1048_v25 = vsel %vm1047_vm8, %v1753_v3, %v1044_v55  ;;  %v1237_v62 = vsub.f32 1.0, %v1236_v21  ;;  %v1261_v33 = vand.u32 2147483648, %v2394_v14 }
 0x149   : > { %v1053_v61 = vsel %vm1050_vm7, %v1052_v20, %v1048_v25  ;;  %v1022_v17 = vor.u32 1.1754944e-38, %v1021_v39  ;;  %v1259_v40 = vand.u32 2147483647, %v2394_v14  ;;  %vm1255_vm7 = vweird.f32 %v2394_v14 }
 0x14a   : > { %v1763_v27 = vpop.eup %1762  ;;  %v999_v28 = vadd.f32 %v1757_v50, %v998_v6  ;;  %1283 = vst.msk [vmem:[%s1945_s15 + $0x88] sm:$0xff] %vm1265_vm4, %v1053_v61  ;;  %v1238_v30 = vmul.f32 %v1761_v35, %v1237_v62  ;;  %v1262_v11 = vor.u32 1.1754944e-38, %v1261_v33 }
 0x14b   : > { %v1011_v31 = vmul.f32 %v1763_v27, %v768_v10  ;;  %vm1016_vm1 = vweird.f32 %v1763_v27  ;;  %vm1260_vm9 = vcmp.eq.f32.partialorder %v1259_v40, 8.507059e+37 }
 0x14c   : > { %v1003_v34 = vsel %vm1002_vm11, %v1757_v50, %v999_v28  ;;  %v1239_v36 = vadd.f32 %v1761_v35, %v1238_v30  ;;  %vm1017_vm3 = vmor %vm1015_vm2, %vm1016_vm1 }
 0x14d   : > { %v1008_v26 = vsel %vm1005_vm13, %v1007_v18, %v1003_v34  ;;  %v1012_v24 = vsub.f32 1.0, %v1011_v31  ;;  %v1765_v38 = vpop.eup %1764 }
 0x14e   : > { %1280 = vst.msk [vmem:[%s1945_s15 + $0x70] sm:$0xff] %vm1265_vm4, %v1008_v26  ;;  %v1243_v42 = vsel %vm1242_vm15, %v1761_v35, %v1239_v36  ;;  %v1251_v37 = vmul.f32 %v1765_v38, %v2394_v14  ;;  %vm1256_vm6 = vweird.f32 %v1765_v38 }
 0x14f   : > { %v1013_v47 = vmul.f32 %v1763_v27, %v1012_v24  ;;  %v1248_v48 = vsel %vm1245_vm0, %v1247_v32, %v1243_v42  ;;  %vm1257_vm8 = vmor %vm1255_vm7, %vm1256_vm6 }
 0x150   : > { %1296 = vst.msk [vmem:[%s1945_s15 + $0xf0] sm:$0xff] %vm1265_vm4, %v1248_v48  ;;  %v1252_v22 = vsub.f32 1.0, %v1251_v37 }
 0x151   : > { %v1014_v12 = vadd.f32 %v1763_v27, %v1013_v47 }
 0x152   : > { %v1253_v51 = vmul.f32 %v1765_v38, %v1252_v22 }
 0x153   : > { %v1018_v49 = vsel %vm1017_vm3, %v1763_v27, %v1014_v12 }
 0x154   : > { %v1023_v53 = vsel %vm1020_vm5, %v1022_v17, %v1018_v49  ;;  %v1254_v41 = vadd.f32 %v1765_v38, %v1253_v51 }
 0x155   : > { %1281 = vst.msk [vmem:[%s1945_s15 + $0x78] sm:$0xff] %vm1265_vm4, %v1023_v53 }
 0x156   : > { %v1258_v46 = vsel %vm1257_vm8, %v1765_v38, %v1254_v41 }
 0x157   : > { %v1263_v57 = vsel %vm1260_vm9, %v1262_v11, %v1258_v46 }
 0x158   : > { %1297 = vst.msk [vmem:[%s1945_s15 + $0xf8] sm:$0xff] %vm1265_vm4, %v1263_v57 }
 0x159 PF: > { %s13_s12 = sadd.s32 1, %s1773_s12  }
 0x15a   : > { %p10_p4 = scmp.ge.s32.totalorder %s13_s12, 4  }
 0x15c   :  { %12 = sbr.rel (!%p10_p4) target bundleno = 1 (0x1), region = 62 }

// kernel: phdnet_forward.32
= control target key start
LH: loop header
LB: loop body
LE: loop exit
PB: predicated region body
PF: predicated region fallthrough
CT: control target
= control target key end

     0   :  { %s1127_s18 = smov 0   ;;  %s1525_s0 = inlined_call_operand.vmem [shape: f32[512,8], index: 0, kind: input, shape index: {}]   ;;  %s1526_s1 = inlined_call_operand.vmem [shape: f32[512,8], index: 1, kind: input, shape index: {}]   ;;  %s1527_s2 = inlined_call_operand.vmem [shape: f32[512,3], index: 2, kind: input, shape index: {}]   ;;  %s1528_s3 = inlined_call_operand.vmem [shape: bf16[8,8], index: 3, kind: input, shape index: {}]   ;;  %s1529_s4 = inlined_call_operand.vmem [shape: f32[1,8], index: 4, kind: input, shape index: {}]   ;;  %s1530_s5 = inlined_call_operand.vmem [shape: f32[512,8], index: 5, kind: output, shape index: {}]  }
   0x1 LB: > { %s1028_s19 = sadd.s32 4294967295, %s1093_s18   ;;  %p1032_p0 = scmp.ge.s32.totalorder %s1093_s18, 1  ;;  %s1093_s18 = sphi %s1127_s18, %s15_s18  }
   0x2   : > { %p210_p1 = scmp.lt.s32.totalorder %s1093_s18, 3 }
   0x4   : > { %p211_p2 = pnand %p1032_p0, %p210_p1 }
   0x5   : > { %s1033_s20 = sshll.u32 (!%p211_p2), %s1028_s19, 5 }
   0x6   : > { %214 = sbr.rel (%p211_p2) target bundleno = 459 (0x1cb), region = 40  ;;  %p249_p3 = scmp.lt.s32.totalorder (!%p211_p2), %s1033_s20, 63 }
   0xb   : > { %v1095_v0 = vmov 0   ;;  %s1532_s20 = smov (!%p249_p3, %s1033_s20), 63  ;;  %v1096_v27 = vmov 1   ;;  %v769_v55 = vld [vmem:[%s1528_s3] sm:$0xf]  ;;  %vm823_vm0 = vcmask 1043456  }
   0xc   : > { %1074 = vset.pattern.permute.xlu2 %v1095_v0  ;;  %1073 = vset.pattern.permute.xlu1 %v1095_v0  ;;  %s1138_s21 = sshll.u32 %s1532_s20, 3  ;;  %v825_v56 = vsel %vm823_vm0, %v769_v55, 0  ;;  %vm774_vm1 = vcmask 64512  }
   0xd   : > { %1072 = vset.pattern.permute.xlu0 %v1095_v0  ;;  %s1144_s24 = scalar_lea.vmem %s1527_s2, %s1138_s21  ;;  %1061 = vmatpush.bf16.msra.mxu3 %v825_v56  ;;  %s1296_s29 = scalar_lea.vmem %s1525_s0, %s1138_s21 }
   0xe   : > { %v1147_v1 = vld [vmem:[%s1144_s24 + $0x20] sm:$0xff]  ;;  %v1150_v2 = vld [vmem:[%s1144_s24 + $0x10] sm:$0xff]  ;;  %v1156_v4 = vld [vmem:[%s1144_s24 + $0x28] sm:$0xff]  ;;  %834 = vmatpush.bf16.msra.mxu0 %v825_v56  ;;  %1060 = vmatpush.bf16.msra.mxu2 %v825_v56  ;;  %s1302_s7 = scalar_lea.vmem %s1526_s1, %s1138_s21  ;;  %s1424_s12 = scalar_lea.vmem %s1530_s5, %s1138_s21 }
   0xf   : > { %v273_v3 = vld [vmem:[%s1144_s24] sm:$0xff]  ;;  %359 = vperm.xlu2 %1074, %v1147_v1   ;;  %349 = vperm.xlu1 %1073, %v1150_v2   ;;  %v1159_v5 = vld [vmem:[%s1144_s24 + $0x18] sm:$0xff]  ;;  %v274_v6 = vld [vmem:[%s1144_s24 + $0x8] sm:$0xff] }
  0x10   : > { %339 = vperm.xlu0 %1072, %v273_v3   ;;  %v281_v7 = vld [vmem:[%s1144_s24 + $0x40] sm:$0xff]  ;;  %v1166_v8 = vld [vmem:[%s1144_s24 + $0x38] sm:$0xff]  ;;  %v1169_v9 = vld [vmem:[%s1144_s24 + $0x30] sm:$0xff]  ;;  %1059 = vmatpush.bf16.msra.mxu1 %v825_v56 }
  0x11   : > { %v1174_v10 = vld [vmem:[%s1144_s24 + $0x58] sm:$0xff]  ;;  %v1177_v11 = vld [vmem:[%s1144_s24 + $0x50] sm:$0xff]  ;;  %v282_v12 = vld [vmem:[%s1144_s24 + $0x48] sm:$0xff] }
  0x12   : > { %v1183_v13 = vld [vmem:[%s1144_s24 + $0x70] sm:$0xff]  ;;  %v1186_v14 = vld [vmem:[%s1144_s24 + $0x68] sm:$0xff]  ;;  %v1189_v15 = vld [vmem:[%s1144_s24 + $0x60] sm:$0xff] }
  0x13   : > { %v290_v16 = vld [vmem:[%s1144_s24 + $0x88] sm:$0xff]  ;;  %v289_v17 = vld [vmem:[%s1144_s24 + $0x80] sm:$0xff]  ;;  %v1197_v18 = vld [vmem:[%s1144_s24 + $0x78] sm:$0xff] }
  0x14   : > { %v293_v19 = vld [vmem:[%s1144_s24 + $0xa0] sm:$0xff]  ;;  %v292_v20 = vld [vmem:[%s1144_s24 + $0x98] sm:$0xff]  ;;  %v291_v21 = vld [vmem:[%s1144_s24 + $0x90] sm:$0xff] }
  0x15   : > { %v1204_v22 = vld [vmem:[%s1144_s24 + $0xb8] sm:$0xff]  ;;  %v1207_v23 = vld [vmem:[%s1144_s24 + $0xb0] sm:$0xff]  ;;  %v294_v24 = vld [vmem:[%s1144_s24 + $0xa8] sm:$0xff] }
  0x16   : > { %v298_v25 = vld [vmem:[%s1144_s24 + $0xc8] sm:$0xff]  ;;  %v297_v26 = vld [vmem:[%s1144_s24 + $0xc0] sm:$0xff]  ;;  %v300_v28 = vld [vmem:[%s1144_s24 + $0xd8] sm:$0xff] }
  0x17   : > { %364 = vperm.xlu2 %1074, %v1156_v4   ;;  %354 = vperm.xlu1 %1073, %v1159_v5   ;;  %v299_v29 = vld [vmem:[%s1144_s24 + $0xd0] sm:$0xff]  ;;  %v302_v33 = vld [vmem:[%s1144_s24 + $0xe8] sm:$0xff]  ;;  %v304_v37 = vld [vmem:[%s1144_s24 + $0xf8] sm:$0xff] }
  0x18   : > { %344 = vperm.xlu0 %1072, %v274_v6   ;;  %v301_v40 = vld [vmem:[%s1144_s24 + $0xe0] sm:$0xff]  ;;  %v303_v53 = vld [vmem:[%s1144_s24 + $0xf0] sm:$0xff] }
  0x1f   : > { %379 = vperm.xlu2 %1074, %v281_v7   ;;  %374 = vperm.xlu1 %1073, %v1166_v8  }
  0x20   : > { %369 = vperm.xlu0 %1072, %v1169_v9  }
  0x27   : > { %394 = vperm.xlu2 %1074, %v1174_v10   ;;  %389 = vperm.xlu1 %1073, %v1177_v11  }
  0x28   : > { %384 = vperm.xlu0 %1072, %v282_v12  }
  0x2f   : > { %409 = vperm.xlu2 %1074, %v1183_v13   ;;  %404 = vperm.xlu1 %1073, %v1186_v14  }
  0x30   : > { %399 = vperm.xlu0 %1072, %v1189_v15  }
  0x37   : > { %424 = vperm.xlu2 %1074, %v290_v16   ;;  %419 = vperm.xlu1 %1073, %v289_v17  }
  0x38   : > { %414 = vperm.xlu0 %1072, %v1197_v18  }
  0x3f   : > { %439 = vperm.xlu2 %1074, %v293_v19   ;;  %434 = vperm.xlu1 %1073, %v292_v20  }
  0x40   : > { %429 = vperm.xlu0 %1072, %v291_v21  }
  0x47   : > { %454 = vperm.xlu2 %1074, %v1204_v22   ;;  %449 = vperm.xlu1 %1073, %v1207_v23  }
  0x48   : > { %444 = vperm.xlu0 %1072, %v294_v24  }
  0x4f   : > { %1075 = vset.pattern.permute.xlu2 %v1096_v27  ;;  %464 = vperm.xlu1 %1073, %v298_v25  }
  0x50   : > { %459 = vperm.xlu0 %1072, %v297_v26   ;;  %626 = vperm.xlu2 %1075, %v289_v17   ;;  %v305_v17 = vld [vmem:[%s1296_s29] sm:$0xff] }
  0x57   : > { %1076 = vset.pattern.permute.xlu1 %v1096_v27 }
  0x58   : > { %474 = vperm.xlu0 %1072, %v300_v28   ;;  %662 = vperm.xlu2 %1075, %v298_v25  }
  0x59   : > { %658 = vperm.xlu1 %1076, %v297_v26  }
  0x60   : > { %1078 = vset.pattern.permute.xlu0 %v1096_v27  ;;  %566 = vperm.xlu2 %1075, %v274_v6  }
  0x61   : > { %562 = vperm.xlu1 %1076, %v273_v3   ;;  %630 = vperm.xlu0 %1078, %v290_v16   ;;  %v530_v16 = vld [vmem:[%s1302_s7 + $0x8] sm:$0xff] }
  0x68   : > { %1077 = vset.pattern.permute.xlu2 %v1095_v0 }
  0x69   : > { %598 = vperm.xlu1 %1076, %v282_v12   ;;  %594 = vperm.xlu0 %1078, %v281_v7   ;;  %v1220_v30 = vpop.permute.xlu2 %359 }
  0x6a   : > { %469 = vperm.xlu2 %1077, %v299_v29  }
  0x71   : > { %634 = vperm.xlu1 %1076, %v291_v21   ;;  %570 = vperm.xlu0 %1078, %v1150_v2   ;;  %v1223_v31 = vpop.permute.xlu2 %364  ;;  %v330_v2 = vld [vmem:[%s1296_s29 + $0xc8] sm:$0xff]  ;;  %v529_v21 = vld [vmem:[%s1302_s7] sm:$0xff] }
  0x72   : > { %1079 = vset.pattern.permute.xlu2 %v1096_v27 }
  0x73   : > { %638 = vperm.xlu2 %1079, %v292_v20   ;;  %v322_v20 = vld [vmem:[%s1296_s29 + $0x88] sm:$0xff] }
  0x79   : > { %666 = vperm.xlu1 %1076, %v299_v29   ;;  %578 = vperm.xlu0 %1078, %v1147_v1   ;;  %v1227_v32 = vpop.permute.xlu2 %379  ;;  %v554_v1 = vld [vmem:[%s1302_s7 + $0xc8] sm:$0xff] }
  0x7b   : > { %670 = vperm.xlu2 %1079, %v300_v28  }
  0x81   : > { %574 = vperm.xlu1 %1076, %v1159_v5   ;;  %1082 = vset.pattern.permute.xlu0 %v1095_v0  ;;  %v1232_v34 = vpop.permute.xlu2 %394  ;;  %v1234_v35 = vpop.permute.xlu1 %349  ;;  %v553_v5 = vld [vmem:[%s1302_s7 + $0xc0] sm:$0xff] }
  0x82   : > { %484 = vperm.xlu0 %1082, %v302_v33   ;;  %v1236_v36 = vpop.permute.xlu0 %339 }
  0x83   : > { %602 = vperm.xlu2 %1079, %v1177_v11  }
  0x89   : > { %606 = vperm.xlu1 %1076, %v1174_v10   ;;  %v1241_v38 = vpop.permute.xlu2 %409  ;;  %v1243_v39 = vpop.permute.xlu1 %354 }
  0x8a   : > { %494 = vperm.xlu0 %1082, %v304_v37   ;;  %v1246_v41 = vpop.permute.xlu0 %344 }
  0x8b   : > { %1080 = vset.pattern.permute.xlu2 %v1095_v0 }
  0x8c   : > { %479 = vperm.xlu2 %1080, %v301_v40  }
  0x91   : > { %642 = vperm.xlu1 %1076, %v293_v19   ;;  %v1249_v42 = vpop.permute.xlu2 %424  ;;  %v1251_v43 = vpop.permute.xlu1 %374  ;;  %v306_v19 = vld [vmem:[%s1296_s29 + $0x8] sm:$0xff] }
  0x92   : > { %1085 = vset.pattern.permute.xlu0 %v1096_v27  ;;  %v1254_v44 = vpop.permute.xlu0 %369 }
  0x93   : > { %586 = vperm.xlu0 %1085, %v1169_v9  }
  0x94   : > { %1081 = vset.pattern.permute.xlu2 %v1096_v27 }
  0x95   : > { %646 = vperm.xlu2 %1081, %v294_v24  }
  0x99   : > { %674 = vperm.xlu1 %1076, %v301_v40   ;;  %v1258_v45 = vpop.permute.xlu2 %439  ;;  %v1260_v46 = vpop.permute.xlu1 %389 }
  0x9a   : > { %v1262_v47 = vpop.permute.xlu0 %384 }
  0x9d   : > { %678 = vperm.xlu2 %1081, %v302_v33   ;;  %v498_v33 = vmul.f32 %v1246_v41, %v306_v19 }
  0xa1   : > { %582 = vperm.xlu1 %1076, %v1156_v4   ;;  %v1265_v48 = vpop.permute.xlu1 %404  ;;  %v1267_v49 = vpop.permute.xlu2 %454  ;;  %v329_v4 = vld [vmem:[%s1296_s29 + $0xc0] sm:$0xff] }
  0xa2   : > { %v1269_v50 = vpop.permute.xlu0 %399 }
  0xa5   : > { %610 = vperm.xlu2 %1081, %v1189_v15   ;;  %v545_v15 = vld [vmem:[%s1302_s7 + $0x80] sm:$0xff] }
  0xa9   : > { %614 = vperm.xlu1 %1076, %v1186_v14   ;;  %v420_v51 = vpop.permute.xlu1 %419  ;;  %v321_v14 = vld [vmem:[%s1296_s29 + $0x80] sm:$0xff] }
  0xaa   : > { %v1273_v52 = vpop.permute.xlu0 %414  ;;  %v627_v54 = vpop.permute.xlu2 %626 }
  0xab   : > { %v705_v24 = vmul.f32 %v627_v54, %v545_v15  ;;  %v547_v15 = vld [vmem:[%s1302_s7 + $0x90] sm:$0xff] }
  0xad   : > { %1083 = vset.pattern.permute.xlu2 %v1095_v0 }
  0xae   : > { %489 = vperm.xlu2 %1083, %v303_v53  }
  0xb1   : > { %650 = vperm.xlu1 %1076, %v1207_v23   ;;  %v1281_v57 = vpop.permute.xlu1 %434  ;;  %v513_v23 = vmul.f32 %v420_v51, %v321_v14  ;;  %v323_v14 = vld [vmem:[%s1296_s29 + $0x90] sm:$0xff] }
  0xb2   : > { %v1283_v58 = vpop.permute.xlu0 %429  ;;  %v663_v59 = vpop.permute.xlu2 %662 }
  0xb3   : > { %v714_v6 = vmul.f32 %v663_v59, %v554_v1  ;;  %v737_v51 = vadd.f32 %v705_v24, %v513_v23  ;;  %v313_v59 = vld [vmem:[%s1296_s29 + $0x40] sm:$0xff]  ;;  %v331_v24 = vld [vmem:[%s1296_s29 + $0xd0] sm:$0xff] }
  0xb4   : > { %v537_v1 = vld [vmem:[%s1302_s7 + $0x40] sm:$0xff] }
  0xb6   : > { %1084 = vset.pattern.permute.xlu2 %v1096_v27  ;;  %v497_v27 = vmul.f32 %v1236_v36, %v305_v17  ;;  %v538_v36 = vld [vmem:[%s1302_s7 + $0x48] sm:$0xff]  ;;  %v515_v17 = vmul.f32 %v1283_v58, %v323_v14 }
  0xb7   : > { %654 = vperm.xlu2 %1084, %v1204_v22   ;;  %v546_v22 = vld [vmem:[%s1302_s7 + $0x88] sm:$0xff] }
  0xb9   : > { %682 = vperm.xlu1 %1076, %v303_v53   ;;  %v1287_v60 = vpop.permute.xlu1 %449 }
  0xba   : > { %v1289_v61 = vpop.permute.xlu0 %444  ;;  %v567_v62 = vpop.permute.xlu2 %566 }
  0xbb   : > { %v690_v25 = vmul.f32 %v567_v62, %v530_v16 }
  0xbd   : > { %v722_v55 = vadd.f32 %v690_v25, %v498_v33  ;;  %v332_v25 = vld [vmem:[%s1296_s29 + $0xd8] sm:$0xff] }
  0xbf   : > { %686 = vperm.xlu2 %1084, %v304_v37   ;;  %v514_v37 = vmul.f32 %v1249_v42, %v322_v20 }
  0xc1   : > { %590 = vperm.xlu1 %1076, %v1166_v8   ;;  %v465_v63 = vpop.permute.xlu1 %464 }
  0xc2   : > { %v460_v0 = vpop.permute.xlu0 %459  ;;  %v522_v7 = vmul.f32 %v465_v63, %v330_v2  ;;  %v505_v2 = vmul.f32 %v1227_v32, %v313_v59  ;;  %v532_v59 = vld [vmem:[%s1302_s7 + $0x18] sm:$0xff] }
  0xc3   : > { %v521_v10 = vmul.f32 %v460_v0, %v329_v4  ;;  %v314_v0 = vld [vmem:[%s1296_s29 + $0x48] sm:$0xff] }
  0xc4   : > { %v1307_v3 = vpop.permute.xlu2 %469  ;;  %v746_v12 = vadd.f32 %v714_v6, %v522_v7  ;;  %v506_v4 = vmul.f32 %v1262_v47, %v314_v0 }
  0xc7   : > { %618 = vperm.xlu2 %1084, %v1183_v13  }
  0xc9   : > { %622 = vperm.xlu1 %1076, %v1197_v18  }
  0xca   : > { %v1312_v8 = vpop.permute.xlu0 %474 }
  0xcb   : > { %v659_v9 = vpop.permute.xlu1 %658  ;;  %v524_v58 = vmul.f32 %v1312_v8, %v332_v25 }
  0xcc   : > { %v713_v11 = vmul.f32 %v659_v9, %v553_v5 }
  0xcd   : > { %v639_v26 = vpop.permute.xlu2 %638 }
  0xce   : > { %v745_v13 = vadd.f32 %v713_v11, %v521_v10  ;;  %v548_v11 = vld [vmem:[%s1302_s7 + $0x98] sm:$0xff] }
  0xcf   : > { %v708_v16 = vmul.f32 %v639_v26, %v548_v11  ;;  %v555_v26 = vld [vmem:[%s1302_s7 + $0xd0] sm:$0xff] }
  0xd0   : > { %v765_v18 = vpack.c.bf16 %v746_v12, %v745_v13  ;;  %v324_v13 = vld [vmem:[%s1296_s29 + $0x98] sm:$0xff] }
  0xd1   : > { %v516_v47 = vmul.f32 %v1281_v57, %v324_v13  ;;  %v523_v57 = vmul.f32 %v1307_v3, %v331_v24  ;;  %v550_v13 = vld [vmem:[%s1302_s7 + $0xa8] sm:$0xff] }
  0xd2   : > { %1053 = vmatmul.msk.bf16.vlgmr.msra.gmra.mxu3 %vm774_vm1, %v765_v18  ;;  %v558_v24 = vld [vmem:[%s1302_s7 + $0xe8] sm:$0xff] }
  0xd3   : > { %v563_v28 = vpop.permute.xlu1 %562  ;;  %v631_v29 = vpop.permute.xlu0 %630  ;;  %v740_v18 = vadd.f32 %v708_v16, %v516_v47  ;;  %v326_v16 = vld [vmem:[%s1296_s29 + $0xa8] sm:$0xff]  ;;  %v549_v47 = vld [vmem:[%s1302_s7 + $0xa0] sm:$0xff] }
  0xd4   : > { %v689_v40 = vmul.f32 %v563_v28, %v529_v21  ;;  %v706_v53 = vmul.f32 %v631_v29, %v546_v22  ;;  %v556_v21 = vld [vmem:[%s1302_s7 + $0xd8] sm:$0xff] }
  0xd5   : > { %v671_v7 = vpop.permute.xlu2 %670 }
  0xd6   : > { %v721_v54 = vadd.f32 %v689_v40, %v497_v27  ;;  %v738_v56 = vadd.f32 %v706_v53, %v514_v37  ;;  %v716_v27 = vmul.f32 %v671_v7, %v556_v21  ;;  %v531_v53 = vld [vmem:[%s1302_s7 + $0x10] sm:$0xff] }
  0xd8   : > { %v753_v62 = vpack.c.bf16 %v722_v55, %v721_v54  ;;  %v761_v63 = vpack.c.bf16 %v738_v56, %v737_v51  ;;  %v748_v33 = vadd.f32 %v716_v27, %v524_v58  ;;  %v307_v54 = vld [vmem:[%s1296_s29 + $0x10] sm:$0xff]  ;;  %v308_v56 = vld [vmem:[%s1296_s29 + $0x18] sm:$0xff] }
  0xd9   : > { %v499_v8 = vmul.f32 %v1234_v35, %v307_v54  ;;  %v309_v54 = vld [vmem:[%s1296_s29 + $0x20] sm:$0xff] }
  0xda   : > { %1041 = vmatmul.msk.bf16.vlgmr.msra.gmra.mxu0 %vm774_vm1, %v753_v62  ;;  %1049 = vmatmul.msk.bf16.vlgmr.msra.gmra.mxu2 %vm774_vm1, %v761_v63  ;;  %v500_v63 = vmul.f32 %v1243_v39, %v308_v56  ;;  %v310_v56 = vld [vmem:[%s1296_s29 + $0x28] sm:$0xff] }
  0xdb   : > { %v599_v41 = vpop.permute.xlu1 %598  ;;  %v595_v42 = vpop.permute.xlu0 %594 }
  0xdc   : > { %v698_v5 = vmul.f32 %v599_v41, %v538_v36  ;;  %v697_v6 = vmul.f32 %v595_v42, %v537_v1  ;;  %v539_v41 = vld [vmem:[%s1302_s7 + $0x50] sm:$0xff] }
  0xdd   : > { %v603_v22 = vpop.permute.xlu2 %602 }
  0xde   : > { %v730_v9 = vadd.f32 %v698_v5, %v506_v4  ;;  %v729_v10 = vadd.f32 %v697_v6, %v505_v2  ;;  %v316_v2 = vld [vmem:[%s1296_s29 + $0x58] sm:$0xff]  ;;  %v315_v4 = vld [vmem:[%s1296_s29 + $0x50] sm:$0xff]  ;;  %v699_v7 = vmul.f32 %v603_v22, %v539_v41  ;;  %v541_v41 = vld [vmem:[%s1302_s7 + $0x60] sm:$0xff] }
  0xdf   : > { %v540_v6 = vld [vmem:[%s1302_s7 + $0x58] sm:$0xff]  ;;  %v508_v35 = vmul.f32 %v1232_v34, %v316_v2  ;;  %v507_v39 = vmul.f32 %v1260_v46, %v315_v4  ;;  %v318_v2 = vld [vmem:[%s1296_s29 + $0x68] sm:$0xff]  ;;  %v317_v4 = vld [vmem:[%s1296_s29 + $0x60] sm:$0xff] }
  0xe0   : > { %v757_v12 = vpack.c.bf16 %v730_v9, %v729_v10 }
  0xe1   : > { %v731_v11 = vadd.f32 %v699_v7, %v507_v39 }
  0xe2   : > { %1045 = vmatmul.msk.bf16.vlgmr.msra.gmra.mxu1 %vm774_vm1, %v757_v12 }
  0xe3   : > { %v635_v32 = vpop.permute.xlu1 %634  ;;  %v571_v40 = vpop.permute.xlu0 %570 }
  0xe4   : > { %v707_v19 = vmul.f32 %v635_v32, %v547_v15  ;;  %v691_v62 = vmul.f32 %v571_v40, %v531_v53  ;;  %v325_v15 = vld [vmem:[%s1296_s29 + $0xa0] sm:$0xff] }
  0xe5   : > { %v517_v46 = vmul.f32 %v1258_v45, %v325_v15  ;;  %v533_v53 = vld [vmem:[%s1302_s7 + $0x20] sm:$0xff]  ;;  %v551_v15 = vld [vmem:[%s1302_s7 + $0xb0] sm:$0xff] }
  0xe6   : > { %v739_v20 = vadd.f32 %v707_v19, %v515_v17  ;;  %v480_v51 = vpop.permute.xlu2 %479  ;;  %v723_v36 = vadd.f32 %v691_v62, %v499_v8  ;;  %v501_v8 = vmul.f32 %v1220_v30, %v309_v54  ;;  %v510_v30 = vmul.f32 %v1265_v48, %v318_v2 }
  0xe8   : > { %v762_v23 = vpack.c.bf16 %v740_v18, %v739_v20  ;;  %v518_v18 = vmul.f32 %v1289_v61, %v326_v16 }
  0xea   : > { %1050 = vmatmul.msk.bf16.gmra.mxu2 %vm774_vm1, %v762_v23  ;;  %v334_v23 = vld [vmem:[%s1296_s29 + $0xe8] sm:$0xff] }
  0xeb   : > { %v667_v28 = vpop.permute.xlu1 %666  ;;  %v579_v32 = vpop.permute.xlu0 %578 }
  0xec   : > { %v715_v29 = vmul.f32 %v667_v28, %v555_v26  ;;  %v333_v26 = vld [vmem:[%s1296_s29 + $0xe0] sm:$0xff]  ;;  %v693_v62 = vmul.f32 %v579_v32, %v533_v53 }
  0xed   : > { %v557_v28 = vld [vmem:[%s1302_s7 + $0xe0] sm:$0xff] }
  0xee   : > { %v747_v37 = vadd.f32 %v715_v29, %v523_v57  ;;  %v525_v29 = vmul.f32 %v480_v51, %v333_v26  ;;  %v502_v51 = vmul.f32 %v1223_v31, %v310_v56  ;;  %v509_v31 = vmul.f32 %v1269_v50, %v317_v4 }
  0xef   : > { %v647_v5 = vpop.permute.xlu2 %646 }
  0xf0   : > { %v766_v55 = vpack.c.bf16 %v748_v33, %v747_v37  ;;  %v710_v17 = vmul.f32 %v647_v5, %v550_v13  ;;  %v542_v5 = vld [vmem:[%s1302_s7 + $0x68] sm:$0xff]  ;;  %v328_v13 = vld [vmem:[%s1296_s29 + $0xb8] sm:$0xff] }
  0xf1   : > { %v520_v48 = vmul.f32 %v1267_v49, %v328_v13 }
  0xf2   : > { %1054 = vmatmul.msk.bf16.gmra.mxu3 %vm774_vm1, %v766_v55  ;;  %v742_v21 = vadd.f32 %v710_v17, %v518_v18  ;;  %v560_v18 = vld [vmem:[%s1302_s7 + $0xf8] sm:$0xff] }
  0xf3   : > { %v575_v3 = vpop.permute.xlu1 %574 }
  0xf4   : > { %v692_v0 = vmul.f32 %v575_v3, %v532_v59  ;;  %v485_v27 = vpop.permute.xlu0 %484  ;;  %v534_v59 = vld [vmem:[%s1302_s7 + $0x28] sm:$0xff] }
  0xf5   : > { %v526_v57 = vmul.f32 %v485_v27, %v334_v23  ;;  %v559_v23 = vld [vmem:[%s1302_s7 + $0xf0] sm:$0xff] }
  0xf6   : > { %v724_v1 = vadd.f32 %v692_v0, %v500_v63 }
  0xf7   : > { %v679_v19 = vpop.permute.xlu2 %678 }
  0xf8   : > { %v754_v42 = vpack.c.bf16 %v724_v1, %v723_v36  ;;  %v718_v58 = vmul.f32 %v679_v19, %v558_v24  ;;  %v725_v36 = vadd.f32 %v693_v62, %v501_v8 }
  0xfa   : > { %1042 = vmatmul.msk.bf16.gmra.mxu0 %vm774_vm1, %v754_v42  ;;  %v750_v37 = vadd.f32 %v718_v58, %v526_v57  ;;  %v535_v58 = vld [vmem:[%s1302_s7 + $0x30] sm:$0xff] }
  0xfb   : > { %v607_v9 = vpop.permute.xlu1 %606 }
  0xfc   : > { %v700_v10 = vmul.f32 %v607_v9, %v540_v6  ;;  %v495_v17 = vpop.permute.xlu0 %494 }
  0xfe   : > { %v732_v12 = vadd.f32 %v700_v10, %v508_v35 }
  0xff   : > { %v611_v33 = vpop.permute.xlu2 %610 }
 0x100   : > { %v758_v14 = vpack.c.bf16 %v732_v12, %v731_v11  ;;  %v701_v6 = vmul.f32 %v611_v33, %v541_v41  ;;  %v552_v11 = vld [vmem:[%s1302_s7 + $0xb8] sm:$0xff] }
 0x101   : > { %v536_v33 = vld [vmem:[%s1302_s7 + $0x38] sm:$0xff] }
 0x102   : > { %1046 = vmatmul.msk.bf16.gmra.mxu1 %vm774_vm1, %v758_v14  ;;  %v733_v35 = vadd.f32 %v701_v6, %v509_v31  ;;  %v327_v14 = vld [vmem:[%s1296_s29 + $0xb0] sm:$0xff] }
 0x103   : > { %v643_v34 = vpop.permute.xlu1 %642  ;;  %v519_v50 = vmul.f32 %v1287_v60, %v327_v14 }
 0x104   : > { %v709_v20 = vmul.f32 %v643_v34, %v549_v47 }
 0x105   : > { %v587_v57 = vpop.permute.xlu0 %586 }
 0x106   : > { %v741_v22 = vadd.f32 %v709_v20, %v517_v46  ;;  %v336_v46 = vld [vmem:[%s1296_s29 + $0xf8] sm:$0xff] }
 0x107   : > { %v528_v24 = vmul.f32 %v495_v17, %v336_v46 }
 0x108   : > { %v763_v25 = vpack.c.bf16 %v742_v21, %v741_v22  ;;  %v490_v0 = vpop.permute.xlu2 %489  ;;  %v335_v21 = vld [vmem:[%s1296_s29 + $0xf0] sm:$0xff] }
 0x109   : > { %v527_v60 = vmul.f32 %v490_v0, %v335_v21  ;;  %v544_v0 = vld [vmem:[%s1302_s7 + $0x78] sm:$0xff] }
 0x10a   : > { %1051 = vmatmul.msk.bf16.gmra.mxu2 %vm774_vm1, %v763_v25 }
 0x10b   : > { %v675_v45 = vpop.permute.xlu1 %674 }
 0x10c   : > { %v717_v61 = vmul.f32 %v675_v45, %v557_v28 }
 0x10e   : > { %v749_v40 = vadd.f32 %v717_v61, %v525_v29  ;;  %v312_v29 = vld [vmem:[%s1296_s29 + $0x38] sm:$0xff]  ;;  %v311_v61 = vld [vmem:[%s1296_s29 + $0x30] sm:$0xff] }
 0x10f   : > { %v504_v53 = vmul.f32 %v1251_v43, %v312_v29 }
 0x110   : > { %v767_v55 = vpack.c.bf16 %v750_v37, %v749_v40  ;;  %v695_v37 = vmul.f32 %v587_v57, %v535_v58 }
 0x111   : > { %v655_v10 = vpop.permute.xlu2 %654 }
 0x112   : > { %1055 = vmatmul.msk.bf16.gmra.mxu3 %vm774_vm1, %v767_v55  ;;  %v712_v16 = vmul.f32 %v655_v10, %v552_v11  ;;  %v503_v55 = vmul.f32 %v1254_v44, %v311_v61 }
 0x113   : > { %v583_v3 = vpop.permute.xlu1 %582 }
 0x114   : > { %v694_v63 = vmul.f32 %v583_v3, %v534_v59  ;;  %v744_v19 = vadd.f32 %v712_v16, %v520_v48  ;;  %v727_v56 = vadd.f32 %v695_v37, %v503_v55  ;;  %v543_v3 = vld [vmem:[%s1302_s7 + $0x70] sm:$0xff] }
 0x116   : > { %v726_v1 = vadd.f32 %v694_v63, %v502_v51  ;;  %v319_v51 = vld [vmem:[%s1296_s29 + $0x70] sm:$0xff]  ;;  %v320_v63 = vld [vmem:[%s1296_s29 + $0x78] sm:$0xff] }
 0x117   : > { %v511_v41 = vmul.f32 %v1241_v38, %v319_v51  ;;  %v512_v43 = vmul.f32 %v1273_v52, %v320_v63 }
 0x118   : > { %v755_v42 = vpack.c.bf16 %v726_v1, %v725_v36 }
 0x119   : > { %v687_v22 = vpop.permute.xlu2 %686 }
 0x11a   : > { %1043 = vmatmul.msk.bf16.gmra.mxu0 %vm774_vm1, %v755_v42  ;;  %v720_v25 = vmul.f32 %v687_v22, %v560_v18 }
 0x11b   : > { %v615_v7 = vpop.permute.xlu1 %614 }
 0x11c   : > { %v702_v9 = vmul.f32 %v615_v7, %v542_v5  ;;  %v752_v27 = vadd.f32 %v720_v25, %v528_v24  ;;  %v1418_v5 = vld [vmem:[%s1529_s4] ss:$0 sm:$0xff] }
 0x11e   : > { %v734_v39 = vadd.f32 %v702_v9, %v510_v30 }
 0x120   : > { %v759_v12 = vpack.c.bf16 %v734_v39, %v733_v35 }
 0x121   : > { %v619_v62 = vpop.permute.xlu2 %618 }
 0x122   : > { %1047 = vmatmul.msk.bf16.gmra.mxu1 %vm774_vm1, %v759_v12  ;;  %v703_v36 = vmul.f32 %v619_v62, %v543_v3 }
 0x123   : > { %v651_v32 = vpop.permute.xlu1 %650 }
 0x124   : > { %v711_v47 = vmul.f32 %v651_v32, %v551_v15  ;;  %v735_v44 = vadd.f32 %v703_v36, %v511_v41 }
 0x126   : > { %v743_v34 = vadd.f32 %v711_v47, %v519_v50 }
 0x128   : > { %v764_v20 = vpack.c.bf16 %v744_v19, %v743_v34 }
 0x12a   : > { %1052 = vmatmul.msk.bf16.gmra.mxu2 %vm774_vm1, %v764_v20 }
 0x12b   : > { %v683_v49 = vpop.permute.xlu1 %682 }
 0x12c   : > { %v719_v26 = vmul.f32 %v683_v49, %v559_v23 }
 0x12e   : > { %v751_v28 = vadd.f32 %v719_v26, %v527_v60 }
 0x130   : > { %v768_v45 = vpack.c.bf16 %v752_v27, %v751_v28 }
 0x132   : > { %1056 = vmatmul.msk.bf16.gmra.mxu3 %vm774_vm1, %v768_v45 }
 0x133   : > { %v591_v40 = vpop.permute.xlu1 %590 }
 0x134   : > { %v696_v54 = vmul.f32 %v591_v40, %v536_v33 }
 0x136   : > { %v728_v59 = vadd.f32 %v696_v54, %v504_v53 }
 0x138   : > { %v756_v8 = vpack.c.bf16 %v728_v59, %v727_v56 }
 0x13a   : > { %1044 = vmatmul.msk.bf16.gmra.mxu0 %vm774_vm1, %v756_v8 }
 0x13b   : > { %v623_v1 = vpop.permute.xlu1 %622 }
 0x13c   : > { %v704_v42 = vmul.f32 %v623_v1, %v544_v0 }
 0x13e   : > { %v736_v2 = vadd.f32 %v704_v42, %v512_v43 }
 0x140   : > { %v760_v4 = vpack.c.bf16 %v736_v2, %v735_v44 }
 0x142   : > { %1048 = vmatmul.msk.bf16.gmra.mxu1 %vm774_vm1, %v760_v4 }
 0x155   : > { %v896_v38 = vpop.f32.mrf.mxu3 }
 0x156   : > { %v897_v52 = vadd.f32 %v1418_v5, %v896_v38 }
 0x157   : > { %v836_v6 = vpop.f32.mrf.mxu0 }
 0x158   : > { %940 = vst.msk [vmem:[%s1424_s12 + $0xc0] sm:$0xff] %vm774_vm1, %v897_v52  ;;  %v837_v7 = vadd.f32 %v1418_v5, %v836_v6 }
 0x15a   : > { %916 = vst.msk [vmem:[%s1424_s12] sm:$0xff] %vm774_vm1, %v837_v7 }
 0x15d   : > { %v876_v30 = vpop.f32.mrf.mxu2  ;;  %v898_v31 = vpop.f32.mrf.mxu3 }
 0x15e   : > { %v877_v9 = vadd.f32 %v1418_v5, %v876_v30  ;;  %v899_v35 = vadd.f32 %v1418_v5, %v898_v31 }
 0x15f   : > { %v838_v39 = vpop.f32.mrf.mxu0  ;;  %v856_v10 = vpop.f32.mrf.mxu1 }
 0x160   : > { %932 = vst.msk [vmem:[%s1424_s12 + $0x80] sm:$0xff] %vm774_vm1, %v877_v9  ;;  %v839_v11 = vadd.f32 %v1418_v5, %v838_v39  ;;  %v857_v12 = vadd.f32 %v1418_v5, %v856_v10 }
 0x161   : > { %941 = vst.msk [vmem:[%s1424_s12 + $0xc8] sm:$0xff] %vm774_vm1, %v899_v35 }
 0x162   : > { %917 = vst.msk [vmem:[%s1424_s12 + $0x8] sm:$0xff] %vm774_vm1, %v839_v11 }
 0x163   : > { %924 = vst.msk [vmem:[%s1424_s12 + $0x40] sm:$0xff] %vm774_vm1, %v857_v12 }
 0x165   : > { %v878_v13 = vpop.f32.mrf.mxu2 }
 0x166   : > { %v879_v14 = vadd.f32 %v1418_v5, %v878_v13 }
 0x167   : > { %v858_v15 = vpop.f32.mrf.mxu1 }
 0x168   : > { %933 = vst.msk [vmem:[%s1424_s12 + $0x88] sm:$0xff] %vm774_vm1, %v879_v14  ;;  %v859_v16 = vadd.f32 %v1418_v5, %v858_v15 }
 0x16a   : > { %925 = vst.msk [vmem:[%s1424_s12 + $0x48] sm:$0xff] %vm774_vm1, %v859_v16 }
 0x16d   : > { %v881_v32 = vpop.f32.mrf.mxu2 }
 0x16e   : > { %v882_v48 = vadd.f32 %v1418_v5, %v881_v32 }
 0x170   : > { %934 = vst.msk [vmem:[%s1424_s12 + $0x90] sm:$0xff] %vm774_vm1, %v882_v48 }
 0x175   : > { %v883_v50 = vpop.f32.mrf.mxu2  ;;  %v901_v47 = vpop.f32.mrf.mxu3 }
 0x176   : > { %v884_v17 = vadd.f32 %v1418_v5, %v883_v50  ;;  %v902_v19 = vadd.f32 %v1418_v5, %v901_v47 }
 0x177   : > { %v841_v34 = vpop.f32.mrf.mxu0 }
 0x178   : > { %935 = vst.msk [vmem:[%s1424_s12 + $0x98] sm:$0xff] %vm774_vm1, %v884_v17  ;;  %v842_v46 = vadd.f32 %v1418_v5, %v841_v34 }
 0x179   : > { %942 = vst.msk [vmem:[%s1424_s12 + $0xd0] sm:$0xff] %vm774_vm1, %v902_v19 }
 0x17a   : > { %918 = vst.msk [vmem:[%s1424_s12 + $0x10] sm:$0xff] %vm774_vm1, %v842_v46 }
 0x17d   : > { %v903_v18 = vpop.f32.mrf.mxu3 }
 0x17e   : > { %v904_v20 = vadd.f32 %v1418_v5, %v903_v18 }
 0x17f   : > { %v843_v21 = vpop.f32.mrf.mxu0  ;;  %v861_v22 = vpop.f32.mrf.mxu1 }
 0x180   : > { %943 = vst.msk [vmem:[%s1424_s12 + $0xd8] sm:$0xff] %vm774_vm1, %v904_v20  ;;  %v844_v23 = vadd.f32 %v1418_v5, %v843_v21  ;;  %v862_v24 = vadd.f32 %v1418_v5, %v861_v22 }
 0x182   : > { %919 = vst.msk [vmem:[%s1424_s12 + $0x18] sm:$0xff] %vm774_vm1, %v844_v23 }
 0x183   : > { %926 = vst.msk [vmem:[%s1424_s12 + $0x50] sm:$0xff] %vm774_vm1, %v862_v24 }
 0x187   : > { %v863_v25 = vpop.f32.mrf.mxu1 }
 0x188   : > { %v864_v49 = vadd.f32 %v1418_v5, %v863_v25 }
 0x18a   : > { %927 = vst.msk [vmem:[%s1424_s12 + $0x58] sm:$0xff] %vm774_vm1, %v864_v49 }
 0x18d   : > { %v886_v60 = vpop.f32.mrf.mxu2 }
 0x18e   : > { %v887_v26 = vadd.f32 %v1418_v5, %v886_v60 }
 0x190   : > { %936 = vst.msk [vmem:[%s1424_s12 + $0xa0] sm:$0xff] %vm774_vm1, %v887_v26 }
 0x195   : > { %v888_v27 = vpop.f32.mrf.mxu2  ;;  %v906_v28 = vpop.f32.mrf.mxu3 }
 0x196   : > { %v889_v57 = vadd.f32 %v1418_v5, %v888_v27  ;;  %v907_v58 = vadd.f32 %v1418_v5, %v906_v28 }
 0x197   : > { %v846_v45 = vpop.f32.mrf.mxu0 }
 0x198   : > { %937 = vst.msk [vmem:[%s1424_s12 + $0xa8] sm:$0xff] %vm774_vm1, %v889_v57  ;;  %v847_v29 = vadd.f32 %v1418_v5, %v846_v45 }
 0x199   : > { %944 = vst.msk [vmem:[%s1424_s12 + $0xe0] sm:$0xff] %vm774_vm1, %v907_v58 }
 0x19a   : > { %920 = vst.msk [vmem:[%s1424_s12 + $0x20] sm:$0xff] %vm774_vm1, %v847_v29 }
 0x19d   : > { %v908_v61 = vpop.f32.mrf.mxu3 }
 0x19e   : > { %v909_v33 = vadd.f32 %v1418_v5, %v908_v61 }
 0x19f   : > { %v848_v37 = vpop.f32.mrf.mxu0  ;;  %v866_v40 = vpop.f32.mrf.mxu1 }
 0x1a0   : > { %945 = vst.msk [vmem:[%s1424_s12 + $0xe8] sm:$0xff] %vm774_vm1, %v909_v33  ;;  %v849_v53 = vadd.f32 %v1418_v5, %v848_v37  ;;  %v867_v55 = vadd.f32 %v1418_v5, %v866_v40 }
 0x1a2   : > { %921 = vst.msk [vmem:[%s1424_s12 + $0x28] sm:$0xff] %vm774_vm1, %v849_v53 }
 0x1a3   : > { %928 = vst.msk [vmem:[%s1424_s12 + $0x60] sm:$0xff] %vm774_vm1, %v867_v55 }
 0x1a7   : > { %v868_v54 = vpop.f32.mrf.mxu1 }
 0x1a8   : > { %v869_v56 = vadd.f32 %v1418_v5, %v868_v54 }
 0x1aa   : > { %929 = vst.msk [vmem:[%s1424_s12 + $0x68] sm:$0xff] %vm774_vm1, %v869_v56 }
 0x1ad   : > { %v891_v59 = vpop.f32.mrf.mxu2 }
 0x1ae   : > { %v892_v62 = vadd.f32 %v1418_v5, %v891_v59 }
 0x1b0   : > { %938 = vst.msk [vmem:[%s1424_s12 + $0xb0] sm:$0xff] %vm774_vm1, %v892_v62 }
 0x1b5   : > { %v893_v3 = vpop.f32.mrf.mxu2  ;;  %v911_v8 = vpop.f32.mrf.mxu3 }
 0x1b6   : > { %v894_v51 = vadd.f32 %v1418_v5, %v893_v3  ;;  %v912_v63 = vadd.f32 %v1418_v5, %v911_v8 }
 0x1b7   : > { %v851_v0 = vpop.f32.mrf.mxu0 }
 0x1b8   : > { %939 = vst.msk [vmem:[%s1424_s12 + $0xb8] sm:$0xff] %vm774_vm1, %v894_v51  ;;  %v852_v36 = vadd.f32 %v1418_v5, %v851_v0 }
 0x1b9   : > { %946 = vst.msk [vmem:[%s1424_s12 + $0xf0] sm:$0xff] %vm774_vm1, %v912_v63 }
 0x1ba   : > { %922 = vst.msk [vmem:[%s1424_s12 + $0x30] sm:$0xff] %vm774_vm1, %v852_v36 }
 0x1bd   : > { %v913_v1 = vpop.f32.mrf.mxu3 }
 0x1be   : > { %v914_v41 = vadd.f32 %v1418_v5, %v913_v1 }
 0x1bf   : > { %v853_v43 = vpop.f32.mrf.mxu0  ;;  %v871_v42 = vpop.f32.mrf.mxu1 }
 0x1c0   : > { %947 = vst.msk [vmem:[%s1424_s12 + $0xf8] sm:$0xff] %vm774_vm1, %v914_v41  ;;  %v854_v44 = vadd.f32 %v1418_v5, %v853_v43  ;;  %v872_v2 = vadd.f32 %v1418_v5, %v871_v42 }
 0x1c2   : > { %923 = vst.msk [vmem:[%s1424_s12 + $0x38] sm:$0xff] %vm774_vm1, %v854_v44 }
 0x1c3   : > { %930 = vst.msk [vmem:[%s1424_s12 + $0x70] sm:$0xff] %vm774_vm1, %v872_v2 }
 0x1c7   : > { %v873_v4 = vpop.f32.mrf.mxu1 }
 0x1c8   : > { %v874_v38 = vadd.f32 %v1418_v5, %v873_v4 }
 0x1ca   : > { %931 = vst.msk [vmem:[%s1424_s12 + $0x78] sm:$0xff] %vm774_vm1, %v874_v38 }
 0x1cb PF: > { %s15_s18 = sadd.s32 1, %s1093_s18  }
 0x1cc   : > { %p12_p4 = scmp.ge.s32.totalorder %s15_s18, 4  }
 0x1ce   :  { %14 = sbr.rel (!%p12_p4) target bundleno = 1 (0x1), region = 76 }

// kernel: phdnet_forward.34
= control target key start
LH: loop header
LB: loop body
LE: loop exit
PB: predicated region body
PF: predicated region fallthrough
CT: control target
= control target key end

     0   :  { %vm91_vm0 = vcmask 261120   ;;  %vm165_vm1 = vcmask 130048   ;;  %s376_s1 = inlined_call_operand.vmem [shape: bf16[32,16], index: 1, kind: input, shape index: {}]   ;;  %s377_s0 = inlined_call_operand.vmem [shape: bf16[128,32], index: 0, kind: input, shape index: {}]   ;;  %s378_s2 = inlined_call_operand.vmem [shape: f32[1,16], index: 2, kind: input, shape index: {}]   ;;  %s379_s3 = inlined_call_operand.vmem [shape: f32[128,16], index: 3, kind: output, shape index: {}]  }
   0x1   :  { %v243_v0 = vld [vmem:[%s376_s1 + $0x8] sm:$0xff]  ;;  %v242_v1 = vld [vmem:[%s376_s1] sm:$0xff]  ;;  %v236_v3 = vld [vmem:[%s377_s0 + $0x10] sm:$0xff] }
   0x2   :  { %122 = vmatpush.bf16.msra.mxu0 %v243_v0  ;;  %244 = vmatpush.bf16.msra.mxu1 %v243_v0  ;;  %v234_v2 = vld [vmem:[%s377_s0] sm:$0xff]  ;;  %v240_v5 = vld [vmem:[%s377_s0 + $0x30] sm:$0xff]  ;;  %v235_v6 = vld [vmem:[%s377_s0 + $0x8] sm:$0xff] }
   0x3   :  { %245 = vmatpush.bf16.msra.mxu2 %v243_v0  ;;  %246 = vmatpush.bf16.msra.mxu3 %v243_v0  ;;  %v238_v4 = vld [vmem:[%s377_s0 + $0x20] sm:$0xff]  ;;  %v237_v7 = vld [vmem:[%s377_s0 + $0x18] sm:$0xff]  ;;  %v239_v8 = vld [vmem:[%s377_s0 + $0x28] sm:$0xff] }
   0x4   :  { %v241_v9 = vld [vmem:[%s377_s0 + $0x38] sm:$0xff]  ;;  %v250_v10 = vld [vmem:[%s378_s2] ss:$0 sm:$0xff] }
   0x6   :  { %123 = vmatpush.bf16.msra.mxu0 %v242_v1  ;;  %247 = vmatpush.bf16.msra.mxu1 %v242_v1 }
   0x7   :  { %248 = vmatpush.bf16.msra.mxu2 %v242_v1  ;;  %249 = vmatpush.bf16.msra.mxu3 %v242_v1 }
   0x9   :  { %226 = vmatmul.msk.bf16.vlgmr.msra.gmra.mxu0 %vm91_vm0, %v234_v2  ;;  %228 = vmatmul.msk.bf16.vlgmr.msra.gmra.mxu1 %vm91_vm0, %v236_v3 }
   0xa   :  { %230 = vmatmul.msk.bf16.vlgmr.msra.gmra.mxu2 %vm91_vm0, %v238_v4  ;;  %232 = vmatmul.msk.bf16.vlgmr.msra.gmra.mxu3 %vm91_vm0, %v240_v5 }
  0x19   :  { %227 = vmatmul.msk.bf16.gmra.mxu0 %vm91_vm0, %v235_v6  ;;  %229 = vmatmul.msk.bf16.gmra.mxu1 %vm91_vm0, %v237_v7 }
  0x1a   :  { %231 = vmatmul.msk.bf16.gmra.mxu2 %vm91_vm0, %v239_v8  ;;  %233 = vmatmul.msk.bf16.gmra.mxu3 %vm91_vm0, %v241_v9 }
  0x86   :  { %v125_v11 = vpop.f32.mrf.mxu0  ;;  %v135_v12 = vpop.f32.mrf.mxu1 }
  0x87   :  { %v126_v13 = vadd.f32 %v250_v10, %v125_v11  ;;  %v136_v14 = vadd.f32 %v250_v10, %v135_v12 }
  0x89   :  { %166 = vst.msk [vmem:[%s379_s3] sm:$0xff] %vm165_vm1, %v126_v13 }
  0x8a   :  { %170 = vst.msk [vmem:[%s379_s3 + $0x20] sm:$0xff] %vm165_vm1, %v136_v14 }
  0x8d   :  { %v145_v15 = vpop.f32.mrf.mxu2  ;;  %v155_v16 = vpop.f32.mrf.mxu3 }
  0x8e   :  { %v146_v17 = vadd.f32 %v250_v10, %v145_v15  ;;  %v156_v18 = vadd.f32 %v250_v10, %v155_v16  ;;  %v127_v19 = vpop.f32.mrf.mxu0  ;;  %v137_v20 = vpop.f32.mrf.mxu1 }
  0x8f   :  { %v128_v21 = vadd.f32 %v250_v10, %v127_v19  ;;  %v138_v22 = vadd.f32 %v250_v10, %v137_v20 }
  0x90   :  { %174 = vst.msk [vmem:[%s379_s3 + $0x40] sm:$0xff] %vm165_vm1, %v146_v17 }
  0x91   :  { %178 = vst.msk [vmem:[%s379_s3 + $0x60] sm:$0xff] %vm165_vm1, %v156_v18 }
  0x92   :  { %167 = vst.msk [vmem:[%s379_s3 + $0x8] sm:$0xff] %vm165_vm1, %v128_v21 }
  0x93   :  { %171 = vst.msk [vmem:[%s379_s3 + $0x28] sm:$0xff] %vm165_vm1, %v138_v22 }
  0x95   :  { %v147_v23 = vpop.f32.mrf.mxu2  ;;  %v157_v24 = vpop.f32.mrf.mxu3 }
  0x96   :  { %v148_v25 = vadd.f32 %v250_v10, %v147_v23  ;;  %v158_v26 = vadd.f32 %v250_v10, %v157_v24  ;;  %v130_v27 = vpop.f32.mrf.mxu0  ;;  %v140_v28 = vpop.f32.mrf.mxu1 }
  0x97   :  { %v131_v29 = vadd.f32 %v250_v10, %v130_v27  ;;  %v141_v30 = vadd.f32 %v250_v10, %v140_v28 }
  0x98   :  { %175 = vst.msk [vmem:[%s379_s3 + $0x48] sm:$0xff] %vm165_vm1, %v148_v25 }
  0x99   :  { %179 = vst.msk [vmem:[%s379_s3 + $0x68] sm:$0xff] %vm165_vm1, %v158_v26 }
  0x9a   :  { %168 = vst.msk [vmem:[%s379_s3 + $0x10] sm:$0xff] %vm165_vm1, %v131_v29 }
  0x9b   :  { %172 = vst.msk [vmem:[%s379_s3 + $0x30] sm:$0xff] %vm165_vm1, %v141_v30 }
  0x9d   :  { %v150_v31 = vpop.f32.mrf.mxu2  ;;  %v160_v32 = vpop.f32.mrf.mxu3 }
  0x9e   :  { %v151_v33 = vadd.f32 %v250_v10, %v150_v31  ;;  %v161_v34 = vadd.f32 %v250_v10, %v160_v32  ;;  %v132_v35 = vpop.f32.mrf.mxu0  ;;  %v142_v36 = vpop.f32.mrf.mxu1 }
  0x9f   :  { %v133_v37 = vadd.f32 %v250_v10, %v132_v35  ;;  %v143_v38 = vadd.f32 %v250_v10, %v142_v36 }
  0xa0   :  { %176 = vst.msk [vmem:[%s379_s3 + $0x50] sm:$0xff] %vm165_vm1, %v151_v33 }
  0xa1   :  { %180 = vst.msk [vmem:[%s379_s3 + $0x70] sm:$0xff] %vm165_vm1, %v161_v34 }
  0xa2   :  { %169 = vst.msk [vmem:[%s379_s3 + $0x18] sm:$0xff] %vm165_vm1, %v133_v37 }
  0xa3   :  { %173 = vst.msk [vmem:[%s379_s3 + $0x38] sm:$0xff] %vm165_vm1, %v143_v38 }
  0xa5   :  { %v152_v39 = vpop.f32.mrf.mxu2  ;;  %v162_v40 = vpop.f32.mrf.mxu3 }
  0xa6   :  { %v153_v41 = vadd.f32 %v250_v10, %v152_v39  ;;  %v163_v42 = vadd.f32 %v250_v10, %v162_v40 }
  0xa8   :  { %177 = vst.msk [vmem:[%s379_s3 + $0x58] sm:$0xff] %vm165_vm1, %v153_v41 }
  0xa9   :  { %181 = vst.msk [vmem:[%s379_s3 + $0x78] sm:$0xff] %vm165_vm1, %v163_v42 }

// kernel: phdnet_forward.37
= control target key start
LH: loop header
LB: loop body
LE: loop exit
PB: predicated region body
PF: predicated region fallthrough
CT: control target
= control target key end

     0   :  { %vm179_vm0 = vcmask 130048   ;;  %s701_s1 = inlined_call_operand.vmem [shape: bf16[144,16], index: 1, kind: input, shape index: {}]   ;;  %s702_s0 = inlined_call_operand.vmem [shape: bf16[128,144], index: 0, kind: input, shape index: {}]   ;;  %s703_s2 = inlined_call_operand.vmem [shape: f32[1,16], index: 2, kind: input, shape index: {}]   ;;  %s704_s3 = inlined_call_operand.vmem [shape: f32[128,16], index: 3, kind: output, shape index: {}]  }
   0x1   :  { %v453_v0 = vld [vmem:[%s701_s1 + $0x38] sm:$0xff]  ;;  %v454_v1 = vld [vmem:[%s701_s1 + $0x40] sm:$0xff]  ;;  %v326_v3 = vld [vmem:[%s702_s0 + $0x8] sm:$0xf0] }
   0x2   :  { %v430_v2 = vld [vmem:[%s702_s0 + $0x4] sm:$0xf]  ;;  %204 = vmatpush.bf16.msra.mxu0 %v453_v0  ;;  %455 = vmatpush.bf16.msra.mxu2 %v453_v0  ;;  %v452_v5 = vld [vmem:[%s701_s1 + $0x30] sm:$0xff]  ;;  %v451_v6 = vld [vmem:[%s701_s1 + $0x28] sm:$0xff] }
   0x3   :  { %v329_v4 = vor.u32 %v430_v2, %v326_v3  ;;  %260 = vmatpush.bf16.msra.mxu1 %v454_v1  ;;  %463 = vmatpush.bf16.msra.mxu3 %v454_v1  ;;  %v440_v7 = vld [vmem:[%s702_s0 + $0x54] sm:$0xf]  ;;  %v366_v8 = vld [vmem:[%s702_s0 + $0x58] sm:$0xf0]  ;;  %v450_v10 = vld [vmem:[%s701_s1 + $0x20] sm:$0xff] }
   0x4   :  { %v369_v9 = vor.u32 %v440_v7, %v366_v8  ;;  %v449_v11 = vld [vmem:[%s701_s1 + $0x18] sm:$0xff]  ;;  %v432_v12 = vld [vmem:[%s702_s0 + $0x14] sm:$0xf]  ;;  %v447_v16 = vld [vmem:[%s701_s1 + $0x8] sm:$0xff] }
   0x5   :  { %v334_v13 = vld [vmem:[%s702_s0 + $0x18] sm:$0xf0]  ;;  %v448_v15 = vld [vmem:[%s701_s1 + $0x10] sm:$0xff]  ;;  %v442_v17 = vld [vmem:[%s702_s0 + $0x64] sm:$0xf] }
   0x6   :  { %422 = vmatmul.msk.bf16.vlgmr.msra.gmra.mxu1 %vm179_vm0, %v329_v4  ;;  %205 = vmatpush.bf16.msra.mxu0 %v452_v5  ;;  %v337_v14 = vor.u32 %v432_v12, %v334_v13  ;;  %v374_v18 = vld [vmem:[%s702_s0 + $0x68] sm:$0xf0]  ;;  %v446_v20 = vld [vmem:[%s701_s1] sm:$0xff]  ;;  %v431_v22 = vld [vmem:[%s702_s0 + $0x4] sm:$0xf0] }
   0x7   :  { %456 = vmatpush.bf16.msra.mxu2 %v452_v5  ;;  %427 = vmatmul.msk.bf16.vlgmr.msra.gmra.mxu3 %vm179_vm0, %v369_v9  ;;  %v377_v19 = vor.u32 %v442_v17, %v374_v18  ;;  %v324_v21 = vld [vmem:[%s702_s0] sm:$0xf]  ;;  %v439_v24 = vld [vmem:[%s702_s0 + $0x44] sm:$0xf0]  ;;  %v434_v27 = vld [vmem:[%s702_s0 + $0x24] sm:$0xf] }
   0x8   :  { %v356_v23 = vld [vmem:[%s702_s0 + $0x40] sm:$0xf]  ;;  %v325_v25 = vor.u32 %v431_v22, %v324_v21  ;;  %v342_v28 = vld [vmem:[%s702_s0 + $0x28] sm:$0xf0]  ;;  %v444_v30 = vld [vmem:[%s702_s0 + $0x74] sm:$0xf] }
   0x9   :  { %v357_v26 = vor.u32 %v439_v24, %v356_v23  ;;  %v345_v29 = vor.u32 %v434_v27, %v342_v28  ;;  %v382_v31 = vld [vmem:[%s702_s0 + $0x78] sm:$0xf0]  ;;  %v332_v33 = vld [vmem:[%s702_s0 + $0x10] sm:$0xf]  ;;  %v433_v34 = vld [vmem:[%s702_s0 + $0x14] sm:$0xf0] }
   0xa   :  { %206 = vmatpush.bf16.msra.mxu0 %v451_v6  ;;  %v385_v32 = vor.u32 %v444_v30, %v382_v31  ;;  %v364_v35 = vld [vmem:[%s702_s0 + $0x50] sm:$0xf]  ;;  %v441_v36 = vld [vmem:[%s702_s0 + $0x54] sm:$0xf0]  ;;  %v333_v37 = vor.u32 %v433_v34, %v332_v33  ;;  %v436_v39 = vld [vmem:[%s702_s0 + $0x34] sm:$0xf] }
   0xb   :  { %457 = vmatpush.bf16.msra.mxu2 %v451_v6  ;;  %v365_v38 = vor.u32 %v441_v36, %v364_v35  ;;  %v350_v40 = vld [vmem:[%s702_s0 + $0x38] sm:$0xf0]  ;;  %v340_v42 = vld [vmem:[%s702_s0 + $0x20] sm:$0xf]  ;;  %v435_v43 = vld [vmem:[%s702_s0 + $0x24] sm:$0xf0] }
   0xc   :  { %v353_v41 = vor.u32 %v436_v39, %v350_v40  ;;  %v372_v44 = vld [vmem:[%s702_s0 + $0x60] sm:$0xf]  ;;  %v443_v45 = vld [vmem:[%s702_s0 + $0x64] sm:$0xf0]  ;;  %v341_v46 = vor.u32 %v435_v43, %v340_v42  ;;  %v438_v48 = vld [vmem:[%s702_s0 + $0x44] sm:$0xf] }
   0xd   :  { %v373_v47 = vor.u32 %v443_v45, %v372_v44  ;;  %v358_v49 = vld [vmem:[%s702_s0 + $0x48] sm:$0xf0]  ;;  %v348_v51 = vld [vmem:[%s702_s0 + $0x30] sm:$0xf]  ;;  %v437_v52 = vld [vmem:[%s702_s0 + $0x34] sm:$0xf0] }
   0xe   :  { %207 = vmatpush.bf16.msra.mxu0 %v450_v10  ;;  %v361_v50 = vor.u32 %v438_v48, %v358_v49  ;;  %v380_v53 = vld [vmem:[%s702_s0 + $0x70] sm:$0xf]  ;;  %v445_v54 = vld [vmem:[%s702_s0 + $0x74] sm:$0xf0]  ;;  %v349_v55 = vor.u32 %v437_v52, %v348_v51  ;;  %v619_v61 = vld [vmem:[%s703_s2] ss:$0 sm:$0xff] }
   0xf   :  { %458 = vmatpush.bf16.msra.mxu2 %v450_v10  ;;  %v381_v56 = vor.u32 %v445_v54, %v380_v53 }
  0x12   :  { %208 = vmatpush.bf16.msra.mxu0 %v449_v11 }
  0x13   :  { %459 = vmatpush.bf16.msra.mxu2 %v449_v11 }
  0x16   :  { %423 = vmatmul.msk.bf16.gmra.mxu1 %vm179_vm0, %v337_v14  ;;  %209 = vmatpush.bf16.msra.mxu0 %v448_v15 }
  0x17   :  { %460 = vmatpush.bf16.msra.mxu2 %v448_v15  ;;  %428 = vmatmul.msk.bf16.gmra.mxu3 %vm179_vm0, %v377_v19 }
  0x1a   :  { %210 = vmatpush.bf16.msra.mxu0 %v447_v16 }
  0x1b   :  { %461 = vmatpush.bf16.msra.mxu2 %v447_v16 }
  0x1e   :  { %211 = vmatpush.bf16.msra.mxu0 %v446_v20 }
  0x1f   :  { %462 = vmatpush.bf16.msra.mxu2 %v446_v20 }
  0x21   :  { %212 = vmatmul.bf16.vlgmr.msra.gmra.mxu0 %v325_v25 }
  0x22   :  { %232 = vmatmul.bf16.vlgmr.msra.gmra.mxu2 %v357_v26 }
  0x26   :  { %424 = vmatmul.msk.bf16.gmra.mxu1 %vm179_vm0, %v345_v29 }
  0x27   :  { %429 = vmatmul.msk.bf16.gmra.mxu3 %vm179_vm0, %v385_v32 }
  0x31   :  { %217 = vmatmul.bf16.gmra.mxu0 %v333_v37 }
  0x32   :  { %237 = vmatmul.bf16.gmra.mxu2 %v365_v38 }
  0x36   :  { %425 = vmatmul.msk.bf16.gmra.mxu1 %vm179_vm0, %v353_v41 }
  0x41   :  { %222 = vmatmul.bf16.gmra.mxu0 %v341_v46 }
  0x42   :  { %242 = vmatmul.bf16.gmra.mxu2 %v373_v47 }
  0x46   :  { %426 = vmatmul.msk.bf16.gmra.mxu1 %vm179_vm0, %v361_v50 }
  0x51   :  { %227 = vmatmul.bf16.gmra.mxu0 %v349_v55 }
  0x52   :  { %247 = vmatmul.bf16.gmra.mxu2 %v381_v56 }
  0x83   :  { %v262_v57 = vpop.f32.mrf.mxu1 }
  0x8a   :  { %v287_v8 = vpop.f32.mrf.mxu3 }
  0x8b   :  { %v264_v58 = vpop.f32.mrf.mxu1 }
  0x92   :  { %v289_v17 = vpop.f32.mrf.mxu3 }
  0x93   :  { %v267_v59 = vpop.f32.mrf.mxu1 }
  0x9a   :  { %v292_v27 = vpop.f32.mrf.mxu3 }
  0x9b   :  { %v269_v60 = vpop.f32.mrf.mxu1 }
  0x9e   :  { %v213_v62 = vpop.f32.mrf.mxu0 }
  0x9f   :  { %v214_v63 = vadd.f32 %v619_v61, %v213_v62 }
  0xa1   :  { %v263_v0 = vadd.f32 %v262_v57, %v214_v63 }
  0xa2   :  { %v294_v38 = vpop.f32.mrf.mxu3 }
  0xa3   :  { %302 = vst.msk [vmem:[%s704_s3] sm:$0xff] %vm179_vm0, %v263_v0  ;;  %v272_v1 = vpop.f32.mrf.mxu1 }
  0xa5   :  { %v233_v2 = vpop.f32.mrf.mxu2 }
  0xa6   :  { %v215_v3 = vpop.f32.mrf.mxu0  ;;  %v234_v28 = vadd.f32 %v619_v61, %v233_v2 }
  0xa7   :  { %v216_v4 = vadd.f32 %v619_v61, %v215_v3 }
  0xa9   :  { %v265_v5 = vadd.f32 %v264_v58, %v216_v4 }
  0xaa   :  { %v297_v47 = vpop.f32.mrf.mxu3 }
  0xab   :  { %303 = vst.msk [vmem:[%s704_s3 + $0x8] sm:$0xff] %vm179_vm0, %v265_v5  ;;  %v274_v6 = vpop.f32.mrf.mxu1 }
  0xad   :  { %v235_v7 = vpop.f32.mrf.mxu2 }
  0xae   :  { %v218_v9 = vpop.f32.mrf.mxu0  ;;  %v236_v37 = vadd.f32 %v619_v61, %v235_v7 }
  0xaf   :  { %v219_v10 = vadd.f32 %v619_v61, %v218_v9 }
  0xb1   :  { %v268_v11 = vadd.f32 %v267_v59, %v219_v10 }
  0xb2   :  { %v299_v56 = vpop.f32.mrf.mxu3 }
  0xb3   :  { %304 = vst.msk [vmem:[%s704_s3 + $0x10] sm:$0xff] %vm179_vm0, %v268_v11  ;;  %v277_v12 = vpop.f32.mrf.mxu1 }
  0xb5   :  { %v238_v13 = vpop.f32.mrf.mxu2 }
  0xb6   :  { %v239_v14 = vadd.f32 %v619_v61, %v238_v13  ;;  %v220_v15 = vpop.f32.mrf.mxu0 }
  0xb7   :  { %v221_v16 = vadd.f32 %v619_v61, %v220_v15 }
  0xb8   :  { %v288_v18 = vadd.f32 %v287_v8, %v239_v14 }
  0xb9   :  { %v270_v19 = vadd.f32 %v269_v60, %v221_v16 }
  0xba   :  { %312 = vst.msk [vmem:[%s704_s3 + $0x50] sm:$0xff] %vm179_vm0, %v288_v18 }
  0xbb   :  { %305 = vst.msk [vmem:[%s704_s3 + $0x18] sm:$0xff] %vm179_vm0, %v270_v19  ;;  %v279_v20 = vpop.f32.mrf.mxu1 }
  0xbd   :  { %v240_v21 = vpop.f32.mrf.mxu2 }
  0xbe   :  { %v241_v22 = vadd.f32 %v619_v61, %v240_v21  ;;  %v223_v23 = vpop.f32.mrf.mxu0 }
  0xbf   :  { %v224_v24 = vadd.f32 %v619_v61, %v223_v23 }
  0xc0   :  { %v290_v25 = vadd.f32 %v289_v17, %v241_v22 }
  0xc1   :  { %v273_v26 = vadd.f32 %v272_v1, %v224_v24 }
  0xc2   :  { %313 = vst.msk [vmem:[%s704_s3 + $0x58] sm:$0xff] %vm179_vm0, %v290_v25 }
  0xc3   :  { %306 = vst.msk [vmem:[%s704_s3 + $0x20] sm:$0xff] %vm179_vm0, %v273_v26  ;;  %v282_v29 = vpop.f32.mrf.mxu1 }
  0xc4   :  { %v283_v30 = vadd.f32 %v282_v29, %v234_v28 }
  0xc5   :  { %v243_v31 = vpop.f32.mrf.mxu2 }
  0xc6   :  { %310 = vst.msk [vmem:[%s704_s3 + $0x40] sm:$0xff] %vm179_vm0, %v283_v30  ;;  %v244_v32 = vadd.f32 %v619_v61, %v243_v31  ;;  %v225_v33 = vpop.f32.mrf.mxu0 }
  0xc7   :  { %v226_v34 = vadd.f32 %v619_v61, %v225_v33 }
  0xc8   :  { %v293_v35 = vadd.f32 %v292_v27, %v244_v32 }
  0xc9   :  { %v275_v36 = vadd.f32 %v274_v6, %v226_v34 }
  0xca   :  { %314 = vst.msk [vmem:[%s704_s3 + $0x60] sm:$0xff] %vm179_vm0, %v293_v35 }
  0xcb   :  { %307 = vst.msk [vmem:[%s704_s3 + $0x28] sm:$0xff] %vm179_vm0, %v275_v36  ;;  %v284_v39 = vpop.f32.mrf.mxu1 }
  0xcc   :  { %v285_v40 = vadd.f32 %v284_v39, %v236_v37 }
  0xcd   :  { %v245_v41 = vpop.f32.mrf.mxu2 }
  0xce   :  { %311 = vst.msk [vmem:[%s704_s3 + $0x48] sm:$0xff] %vm179_vm0, %v285_v40  ;;  %v246_v42 = vadd.f32 %v619_v61, %v245_v41  ;;  %v228_v43 = vpop.f32.mrf.mxu0 }
  0xcf   :  { %v229_v44 = vadd.f32 %v619_v61, %v228_v43 }
  0xd0   :  { %v295_v45 = vadd.f32 %v294_v38, %v246_v42 }
  0xd1   :  { %v278_v46 = vadd.f32 %v277_v12, %v229_v44 }
  0xd2   :  { %315 = vst.msk [vmem:[%s704_s3 + $0x68] sm:$0xff] %vm179_vm0, %v295_v45 }
  0xd3   :  { %308 = vst.msk [vmem:[%s704_s3 + $0x30] sm:$0xff] %vm179_vm0, %v278_v46 }
  0xd5   :  { %v248_v48 = vpop.f32.mrf.mxu2 }
  0xd6   :  { %v249_v49 = vadd.f32 %v619_v61, %v248_v48  ;;  %v230_v50 = vpop.f32.mrf.mxu0 }
  0xd7   :  { %v231_v51 = vadd.f32 %v619_v61, %v230_v50 }
  0xd8   :  { %v298_v52 = vadd.f32 %v297_v47, %v249_v49 }
  0xd9   :  { %v280_v53 = vadd.f32 %v279_v20, %v231_v51 }
  0xda   :  { %316 = vst.msk [vmem:[%s704_s3 + $0x70] sm:$0xff] %vm179_vm0, %v298_v52 }
  0xdb   :  { %309 = vst.msk [vmem:[%s704_s3 + $0x38] sm:$0xff] %vm179_vm0, %v280_v53 }
  0xdd   :  { %v250_v54 = vpop.f32.mrf.mxu2 }
  0xde   :  { %v251_v55 = vadd.f32 %v619_v61, %v250_v54 }
  0xe0   :  { %v300_v57 = vadd.f32 %v299_v56, %v251_v55 }
  0xe2   :  { %317 = vst.msk [vmem:[%s704_s3 + $0x78] sm:$0xff] %vm179_vm0, %v300_v57 }

// kernel: tile.84
= control target key start
LH: loop header
LB: loop body
LE: loop exit
PB: predicated region body
PF: predicated region fallthrough
CT: control target
= control target key end

     0   :  { %vm4_vm0 = vcmask 1047556   ;;  %s169_s14 = smov 96   ;;  %s170_s15 = smov 112   ;;  %vm6_vm1 = vcmask 130048   ;;  %vm21_vm2 = vcmask 1048448   ;;  %vm38_vm3 = vcmask 917248   ;;  %s314_s0 = inlined_call_operand.vmem [shape: f32[9,8,16], index: 0, kind: input, shape index: {}]   ;;  %s315_s1 = inlined_call_operand.vmem [shape: f32[9,128], index: 1, kind: output, shape index: {}]  }
   0x1   :  { %v138_v0 = vld [vmem:[%s314_s0 + $0x6] ss:$8 sm:$0xf]   ;;  %v134_v3 = vld [vmem:[%s314_s0 + $0x7] ss:$8 sm:$0xf]  }
   0x2   :  { %v139_v1 = vld [vmem:[%s314_s0 + $0x6] ss:$8 sm:$0xf0]   ;;  %v135_v4 = vld [vmem:[%s314_s0 + $0x7] ss:$8 sm:$0xf0]  }
   0x3   :  { %v35_v2 = vsel %vm4_vm0, %v139_v1, %v138_v0  ;;  %v18_v5 = vsel %vm4_vm0, %v135_v4, %v134_v3  ;;  %v142_v6 = vld [vmem:[%s314_s0 + $0x5] ss:$8 sm:$0xf]   ;;  %v140_v8 = vld [vmem:[%s314_s0 + $0x46] sm:$0x1]   ;;  %s171_s24 = smov 80  }
   0x4   :  { %36 = vrot.lane.b32.xlu1 %v35_v2, %s169_s14  ;;  %19 = vrot.lane.b32.xlu0 %v18_v5, %s170_s15  ;;  %v143_v7 = vld [vmem:[%s314_s0 + $0x5] ss:$8 sm:$0xf0]   ;;  %v136_v10 = vld [vmem:[%s314_s0 + $0x47] sm:$0x1]   ;;  %s172_s4 = smov 64  }
   0x5   :  { %v52_v9 = vsel %vm4_vm0, %v143_v7, %v142_v6  ;;  %v146_v11 = vld [vmem:[%s314_s0 + $0x4] ss:$8 sm:$0xf]   ;;  %v144_v13 = vld [vmem:[%s314_s0 + $0x45] sm:$0x1]   ;;  %s174_s16 = smov 32  }
   0x6   :  { %53 = vrot.lane.b32.xlu2 %v52_v9, %s171_s24  ;;  %v147_v12 = vld [vmem:[%s314_s0 + $0x4] ss:$8 sm:$0xf0]   ;;  %v150_v16 = vld [vmem:[%s314_s0 + $0x3] ss:$8 sm:$0xf]  }
   0x7   :  { %v148_v14 = vld [vmem:[%s314_s0 + $0x44] sm:$0x1]   ;;  %v69_v15 = vsel %vm4_vm0, %v147_v12, %v146_v11  ;;  %v151_v17 = vld [vmem:[%s314_s0 + $0x3] ss:$8 sm:$0xf0]   ;;  %s175_s25 = smov 16  }
   0x8   :  { %v154_v18 = vld [vmem:[%s314_s0 + $0x2] ss:$8 sm:$0xf]   ;;  %v86_v20 = vsel %vm4_vm0, %v151_v17, %v150_v16  ;;  %v152_v22 = vld [vmem:[%s314_s0 + $0x43] sm:$0x1]   ;;  %vm55_vm4 = vcmask 786048  }
   0x9   :  { %v155_v19 = vld [vmem:[%s314_s0 + $0x2] ss:$8 sm:$0xf0]   ;;  %v158_v23 = vld [vmem:[%s314_s0 + $0x1] ss:$8 sm:$0xf]  }
   0xa   :  { %v103_v21 = vsel %vm4_vm0, %v155_v19, %v154_v18  ;;  %v159_v24 = vld [vmem:[%s314_s0 + $0x1] ss:$8 sm:$0xf0]   ;;  %v156_v25 = vld [vmem:[%s314_s0 + $0x42] sm:$0x1]   ;;  %vm72_vm5 = vcmask 654848  }
   0xb   :  { %v160_v26 = vld [vmem:[%s314_s0 + $0x41] sm:$0x1]   ;;  %v120_v27 = vsel %vm4_vm0, %v159_v24, %v158_v23  ;;  %v2_v28 = vld [vmem:[%s314_s0] ss:$8 sm:$0xf]   ;;  %vm89_vm6 = vcmask 523648  }
   0xc   :  { %42 = vrot.lane.b32.xlu1 %v140_v8, %s169_s14  ;;  %25 = vrot.lane.b32.xlu0 %v136_v10, %s170_s15  ;;  %s173_s15 = smov 48   ;;  %v3_v29 = vld [vmem:[%s314_s0] ss:$8 sm:$0xf0]   ;;  %vm106_vm7 = vcmask 392448   ;;  %vm123_vm8 = vcmask 261248  }
   0xd   :  { %v5_v30 = vsel %vm4_vm0, %v3_v29, %v2_v28  ;;  %v132_v31 = vld [vmem:[%s314_s0 + $0x40] sm:$0x1]  }
   0xe   :  { %59 = vrot.lane.b32.xlu2 %v144_v13, %s171_s24  ;;  %7 = vst.msk [vmem:[%s315_s1] sm:$0xff] %vm6_vm1, %v5_v30  }
   0xf   :  { %133 = vst.msk [vmem:[%s315_s1 + $0x8] sm:$0x1] %vm6_vm1, %v132_v31  }
  0x14   :  { %76 = vrot.lane.b32.xlu1 %v148_v14, %s172_s4  ;;  %70 = vrot.lane.b32.xlu0 %v69_v15, %s172_s4 }
  0x16   :  { %87 = vrot.lane.b32.xlu2 %v86_v20, %s173_s15 }
  0x1c   :  { %104 = vrot.lane.b32.xlu1 %v103_v21, %s174_s16  ;;  %93 = vrot.lane.b32.xlu0 %v152_v22, %s173_s15 }
  0x1e   :  { %110 = vrot.lane.b32.xlu2 %v156_v25, %s174_s16 }
  0x24   :  { %127 = vrot.lane.b32.xlu1 %v160_v26, %s175_s25  ;;  %121 = vrot.lane.b32.xlu0 %v120_v27, %s175_s25 }
  0x60   :  { %v54_v32 = vpop.permute.xlu2 %53  }
  0x68   :  { %v60_v33 = vpop.permute.xlu2 %59  }
  0x70   :  { %v88_v34 = vpop.permute.xlu2 %87  }
  0x76   :  { %v37_v35 = vpop.permute.xlu1 %36   ;;  %v20_v36 = vpop.permute.xlu0 %19  }
  0x77   :  { %22 = vst.msk [vmem:[%s315_s1] sm:$0xff] %vm21_vm2, %v20_v36  }
  0x78   :  { %39 = vst.msk [vmem:[%s315_s1] sm:$0xff] %vm38_vm3, %v37_v35   ;;  %v111_v37 = vpop.permute.xlu2 %110  }
  0x79   :  { %56 = vst.msk [vmem:[%s315_s1] sm:$0xff] %vm55_vm4, %v54_v32  }
  0x7e   :  { %v43_v38 = vpop.permute.xlu1 %42   ;;  %v26_v39 = vpop.permute.xlu0 %25  }
  0x7f   :  { %137 = vst.msk [vmem:[%s315_s1 + $0x8] sm:$0x1] %vm21_vm2, %v26_v39  }
  0x80   :  { %141 = vst.msk [vmem:[%s315_s1 + $0x8] sm:$0x1] %vm38_vm3, %v43_v38  }
  0x81   :  { %145 = vst.msk [vmem:[%s315_s1 + $0x8] sm:$0x1] %vm55_vm4, %v60_v33  }
  0x86   :  { %v77_v40 = vpop.permute.xlu1 %76   ;;  %v71_v41 = vpop.permute.xlu0 %70  }
  0x87   :  { %149 = vst.msk [vmem:[%s315_s1 + $0x8] sm:$0x1] %vm72_vm5, %v77_v40  }
  0x88   :  { %73 = vst.msk [vmem:[%s315_s1] sm:$0xff] %vm72_vm5, %v71_v41  }
  0x89   :  { %90 = vst.msk [vmem:[%s315_s1] sm:$0xff] %vm89_vm6, %v88_v34  }
  0x8e   :  { %v105_v42 = vpop.permute.xlu1 %104   ;;  %v94_v43 = vpop.permute.xlu0 %93  }
  0x8f   :  { %107 = vst.msk [vmem:[%s315_s1] sm:$0xff] %vm106_vm7, %v105_v42  }
  0x90   :  { %153 = vst.msk [vmem:[%s315_s1 + $0x8] sm:$0x1] %vm89_vm6, %v94_v43  }
  0x91   :  { %157 = vst.msk [vmem:[%s315_s1 + $0x8] sm:$0x1] %vm106_vm7, %v111_v37  }
  0x96   :  { %v128_v44 = vpop.permute.xlu1 %127   ;;  %v122_v45 = vpop.permute.xlu0 %121  }
  0x97   :  { %161 = vst.msk [vmem:[%s315_s1 + $0x8] sm:$0x1] %vm123_vm8, %v128_v44  }
  0x98   :  { %124 = vst.msk [vmem:[%s315_s1] sm:$0xff] %vm123_vm8, %v122_v45  }

// kernel: tile.88
= control target key start
LH: loop header
LB: loop body
LE: loop exit
PB: predicated region body
PF: predicated region fallthrough
CT: control target
= control target key end

     0   :  { %s22_s0 = inlined_call_operand.vmem [shape: f32[16], index: 0, kind: input, shape index: {}]   ;;  %s23_s1 = inlined_call_operand.vmem [shape: f32[8,16], index: 1, kind: output, shape index: {}]  }
   0x1   :  { %v4_v0 = vld [vmem:[%s22_s0] ss:$0 sm:$0xff] }
   0x2   :  { %5 = vst [vmem:[%s23_s1] sm:$0xff] %v4_v0 }

// kernel: tile.89
= control target key start
LH: loop header
LB: loop body
LE: loop exit
PB: predicated region body
PF: predicated region fallthrough
CT: control target
= control target key end

     0   :  { %s67_s10 = smov 112   ;;  %s68_s11 = smov 80   ;;  %vm3_vm0 = vcmask 130048   ;;  %vm9_vm1 = vcmask 1048448   ;;  %vm15_vm2 = vcmask 917248   ;;  %vm21_vm3 = vcmask 786048   ;;  %s111_s0 = inlined_call_operand.vmem [shape: f32[8,16], index: 0, kind: input, shape index: {}]   ;;  %s112_s1 = inlined_call_operand.vmem [shape: f32[1,128], index: 1, kind: output, shape index: {}]  }
   0x1   :  { %v53_v0 = vld [vmem:[%s111_s0 + $0x7] sm:$0x1]   ;;  %v55_v1 = vld [vmem:[%s111_s0 + $0x5] sm:$0x1]   ;;  %v57_v2 = vld [vmem:[%s111_s0 + $0x3] sm:$0x1]  }
   0x2   :  { %7 = vrot.lane.b32.xlu0 %v53_v0, %s67_s10  ;;  %19 = vrot.lane.b32.xlu1 %v55_v1, %s68_s11  ;;  %s69_s14 = smov 48   ;;  %v54_v3 = vld [vmem:[%s111_s0 + $0x6] sm:$0x1]   ;;  %v56_v4 = vld [vmem:[%s111_s0 + $0x4] sm:$0x1]   ;;  %s70_s21 = smov 96  }
   0x3   :  { %31 = vrot.lane.b32.xlu2 %v57_v2, %s69_s14  ;;  %v58_v5 = vld [vmem:[%s111_s0 + $0x2] sm:$0x1]   ;;  %s71_s22 = smov 64   ;;  %s72_s23 = smov 32   ;;  %v59_v6 = vld [vmem:[%s111_s0 + $0x1] sm:$0x1]  }
   0x4   :  { %s73_s26 = smov 16   ;;  %v2_v7 = vld [vmem:[%s111_s0] sm:$0x1]   ;;  %vm27_vm4 = vcmask 654848   ;;  %vm33_vm5 = vcmask 523648   ;;  %vm39_vm6 = vcmask 392448  }
   0x5   :  { %4 = vst.msk [vmem:[#allocation0] sm:$0x1] %vm3_vm0, %v2_v7   ;;  %vm45_vm7 = vcmask 261248  }
   0xa   :  { %13 = vrot.lane.b32.xlu0 %v54_v3, %s70_s21  ;;  %25 = vrot.lane.b32.xlu1 %v56_v4, %s71_s22 }
   0xb   :  { %37 = vrot.lane.b32.xlu2 %v58_v5, %s72_s23 }
  0x12   :  { %43 = vrot.lane.b32.xlu0 %v59_v6, %s73_s26 }
  0x5d   :  { %v32_v8 = vpop.permute.xlu2 %31  }
  0x65   :  { %v38_v9 = vpop.permute.xlu2 %37  }
  0x74   :  { %v8_v10 = vpop.permute.xlu0 %7   ;;  %v20_v11 = vpop.permute.xlu1 %19  }
  0x75   :  { %10 = vst.msk [vmem:[#allocation0] sm:$0x1] %vm9_vm1, %v8_v10  }
  0x7c   :  { %v14_v12 = vpop.permute.xlu0 %13   ;;  %v26_v13 = vpop.permute.xlu1 %25  }
  0x7d   :  { %16 = vst.msk [vmem:[#allocation0] sm:$0x1] %vm15_vm2, %v14_v12  }
  0x7e   :  { %22 = vst.msk [vmem:[#allocation0] sm:$0x1] %vm21_vm3, %v20_v11  }
  0x7f   :  { %28 = vst.msk [vmem:[#allocation0] sm:$0x1] %vm27_vm4, %v26_v13  }
  0x80   :  { %34 = vst.msk [vmem:[#allocation0] sm:$0x1] %vm33_vm5, %v32_v8  }
  0x81   :  { %40 = vst.msk [vmem:[#allocation0] sm:$0x1] %vm39_vm6, %v38_v9  }
  0x84   :  { %v44_v14 = vpop.permute.xlu0 %43  }
  0x85   :  { %46 = vst.msk [vmem:[#allocation0] sm:$0x1] %vm45_vm7, %v44_v14  }
  0x8c   :  { %v49_v15 = vld [vmem:[#allocation0] sm:$0x1] }
  0x8d   :  { %52 = vst [vmem:[%s112_s1] sm:$0x1] %v49_v15 }

// kernel: phdnet_forward.38
= control target key start
LH: loop header
LB: loop body
LE: loop exit
PB: predicated region body
PF: predicated region fallthrough
CT: control target
= control target key end

     0   :  { %s476_s12 = smov 0   ;;  %s576_s0 = inlined_call_operand.vmem [shape: f32[2,10,160], index: 0, kind: input, shape index: {}]   ;;  %s577_s1 = inlined_call_operand.vmem [shape: f32[9,128], index: 1, kind: input, shape index: {}]   ;;  %s578_s2 = inlined_call_operand.vmem [shape: f32[1,128], index: 2, kind: input, shape index: {}]   ;;  %s579_s3 = inlined_call_operand.vmem [shape: f32[2,8,128], index: 3, kind: output, shape index: {}]  }
   0x1 LB: > { %s411_s13 = sadd.s32 4294967295, %s450_s12   ;;  %p415_p0 = scmp.ge.s32.totalorder %s450_s12, 1  ;;  %s450_s12 = sphi %s476_s12, %s13_s12  }
   0x2   : > { %p137_p1 = scmp.lt.s32.totalorder %s450_s12, 3 }
   0x4   : > { %p138_p2 = pnand %p415_p0, %p137_p1 }
   0x5   : > { %p160_p3 = scmp.lt.s32.totalorder (!%p138_p2), %s411_s13, 1  ;;  %s452_s16 = smov (!%p138_p2), 16  }
   0x6   : > { %141 = sbr.rel (%p138_p2) target bundleno = 277 (0x115), region = 32  ;;  %s453_s25 = smov (!%p138_p2), 32  }
   0x7   : > { %s454_s5 = smov (!%p138_p2), 112   ;;  %s455_s6 = smov (!%p138_p2), 96  }
   0xb   : > { %v434_v0 = vld [vmem:[%s577_s1 + $0x4] ss:$0 sm:$0xff]  ;;  %s581_s13 = smov (!%p160_p3, %s411_s13), 1  ;;  %v438_v1 = vld [vmem:[%s577_s1 + $0x7] ss:$0 sm:$0xff]  ;;  %vm195_vm0 = vcmask 1045504  }
   0xc   : > { %229 = vrot.lane.b32.xlu1 %v434_v0, %s452_s16  ;;  %s421_s17 = sshll.u32 %s581_s13, 5  ;;  %v435_v3 = vld [vmem:[%s577_s1 + $0x1] ss:$0 sm:$0xff]  ;;  %256 = vrot.lane.b32.xlu2 %v438_v1, %s452_s16  ;;  %v439_v4 = vld [vmem:[%s577_s1 + $0x5] ss:$0 sm:$0xff]  ;;  %vm183_vm1 = vcmask 1046528  }
   0xd   : > { %s496_s22 = scalar_lea.vmem %s576_s0, %s421_s17  ;;  %v436_v6 = vld [vmem:[%s577_s1 + $0x8] ss:$0 sm:$0xff]  ;;  %v437_v7 = vld [vmem:[%s577_s1 + $0x2] ss:$0 sm:$0xff]  ;;  %vm201_vm2 = vcmask 1047808   ;;  %vm222_vm3 = vcmask 916480  }
   0xe   : > { %v499_v2 = vld [vmem:[%s496_s22] sm:$0xff]  ;;  %v509_v5 = vld [vmem:[%s496_s22 + $0x10] sm:$0x3]  ;;  %v170_v22 = vld [vmem:[%s496_s22 + $0x8] sm:$0xff]  ;;  %vm294_vm4 = vcmask 785408   ;;  %s418_s15 = sshll.u32 %s581_s13, 3 }
   0xf   : > { %202 = vrot.lane.b32.xlu0 %v499_v2, %s453_s25  ;;  %v172_v31 = vld [vmem:[%s496_s22 + $0x18] sm:$0x3]  ;;  %v441_v0 = vld [vmem:[%s577_s1 + $0x3] ss:$0 sm:$0xff]  ;;  %s168_s20 = scalar_lea.vmem %s579_s3, %s418_s15 }
  0x14   : > { %211 = vrot.lane.b32.xlu1 %v435_v3, %s452_s16  ;;  %301 = vrot.lane.b32.xlu2 %v439_v4, %s453_s25  ;;  %v180_v3 = vmul.f32 %v441_v0, %v509_v5  ;;  %v442_v4 = vld [vmem:[%s577_s1 + $0x6] ss:$0 sm:$0xff] }
  0x17   : > { %204 = vrot.lane.b32.xlu0 %v509_v5, %s453_s25 }
  0x1c   : > { %328 = vrot.lane.b32.xlu1 %v436_v6, %s453_s25  ;;  %v179_v6 = vmul.f32 %v441_v0, %v499_v2 }
  0x1f   : > { %283 = vrot.lane.b32.xlu0 %v437_v7, %s453_s25 }
  0x66   : > { %v257_v8 = vpop.permute.xlu2 %256 }
  0x67   : > { %v259_v9 = vmul.f32 %v257_v8, %v499_v2  ;;  %v261_v10 = vmul.f32 %v257_v8, %v509_v5 }
  0x69   : > { %v267_v11 = vrot.slane %v259_v9, 2  ;;  %v268_v12 = vrot.slane %v261_v10, 2  ;;  %v185_v9 = vrot.slane %v180_v3, 1  ;;  %v192_v10 = vmul.f32 %v442_v4, %v509_v5 }
  0x6b   : > { %v269_v13 = vsel %vm195_vm0, %v267_v11, %v268_v12  ;;  %v184_v11 = vrot.slane %v179_v6, 1  ;;  %v191_v12 = vmul.f32 %v442_v4, %v499_v2 }
  0x6c   : > { %273 = vrot.lane.b32.xlu0 %v269_v13, %s454_s5 }
  0x6e   : > { %v302_v17 = vpop.permute.xlu2 %301 }
  0x6f   : > { %v304_v18 = vmul.f32 %v302_v17, %v499_v2  ;;  %v306_v19 = vmul.f32 %v302_v17, %v509_v5 }
  0x71   : > { %v312_v25 = vrot.slane %v304_v18, 1  ;;  %v313_v26 = vrot.slane %v306_v19, 1 }
  0x73   : > { %v314_v32 = vsel %vm183_vm1, %v312_v25, %v313_v26 }
  0x7e   : > { %v230_v14 = vpop.permute.xlu1 %229 }
  0x7f   : > { %v232_v15 = vmul.f32 %v230_v14, %v499_v2  ;;  %v234_v16 = vmul.f32 %v230_v14, %v509_v5 }
  0x81   : > { %v240_v20 = vrot.slane %v232_v15, 1  ;;  %v241_v21 = vrot.slane %v234_v16, 1  ;;  %v203_v23 = vpop.permute.xlu0 %202  ;;  %v197_v15 = vrot.slane %v192_v10, 2  ;;  %v186_v16 = vsel %vm183_vm1, %v184_v11, %v185_v9 }
  0x82   : > { %v206_v27 = vsel %vm201_vm2, %v203_v23, %v170_v22 }
  0x83   : > { %v242_v24 = vsel %vm183_vm1, %v240_v20, %v241_v21  ;;  %v260_v36 = vmul.f32 %v257_v8, %v206_v27  ;;  %v233_v49 = vmul.f32 %v230_v14, %v206_v27  ;;  %v305_v60 = vmul.f32 %v302_v17, %v206_v27 }
  0x84   : > { %246 = vrot.lane.b32.xlu1 %v242_v24, %s454_s5 }
  0x85   : > { %v270_v39 = vrot.slane %v260_v36, 2  ;;  %v243_v57 = vrot.slane %v233_v49, 1  ;;  %v315_v62 = vrot.slane %v305_v60, 1  ;;  %v443_v36 = vld [vmem:[%s578_s2] ss:$0 sm:$0xff] }
  0x86   : > { %v212_v28 = vpop.permute.xlu1 %211 }
  0x87   : > { %v214_v29 = vmul.f32 %v212_v28, %v499_v2  ;;  %v215_v30 = vmul.f32 %v212_v28, %v206_v27 }
  0x89   : > { %220 = vrot.lane.b32.xlu0 %v215_v30, %s454_s5  ;;  %218 = vrot.lane.b32.xlu2 %v214_v29, %s454_s5  ;;  %v205_v33 = vpop.permute.xlu0 %204 }
  0x8a   : > { %v207_v34 = vsel %vm201_vm2, %v205_v33, %v172_v31 }
  0x8b   : > { %v262_v35 = vmul.f32 %v257_v8, %v207_v34  ;;  %v235_v48 = vmul.f32 %v230_v14, %v207_v34  ;;  %v307_v58 = vmul.f32 %v302_v17, %v207_v34  ;;  %v440_v8 = vld [vmem:[%s577_s1] ss:$0 sm:$0xff]  ;;  %v196_v17 = vrot.slane %v191_v12, 2 }
  0x8c   : > { %318 = vrot.lane.b32.xlu1 %v314_v32, %s455_s6  ;;  %v175_v14 = vmul.f32 %v440_v8, %v499_v2 }
  0x8d   : > { %v271_v38 = vrot.slane %v262_v35, 2  ;;  %v244_v54 = vrot.slane %v235_v48, 1  ;;  %v316_v61 = vrot.slane %v307_v58, 1  ;;  %v198_v20 = vsel %vm195_vm0, %v196_v17, %v197_v15 }
  0x8e   : > { %v329_v37 = vpop.permute.xlu1 %328  ;;  %v188_v19 = vadd.f32 %v186_v16, %v175_v14 }
  0x8f   : > { %v331_v40 = vmul.f32 %v329_v37, %v499_v2  ;;  %v332_v41 = vmul.f32 %v329_v37, %v206_v27  ;;  %v333_v42 = vmul.f32 %v329_v37, %v509_v5  ;;  %v334_v43 = vmul.f32 %v329_v37, %v207_v34 }
  0x90   : > { %v272_v45 = vsel %vm195_vm0, %v270_v39, %v271_v38  ;;  %v245_v59 = vsel %vm183_vm1, %v243_v57, %v244_v54  ;;  %v317_v63 = vsel %vm183_vm1, %v315_v62, %v316_v61  ;;  %v200_v22 = vadd.f32 %v198_v20, %v188_v19 }
  0x91   : > { %v284_v44 = vpop.permute.xlu0 %283  ;;  %v342_v50 = vrot.slane %v332_v41, 2  ;;  %v343_v51 = vrot.slane %v334_v43, 2  ;;  %v339_v52 = vrot.slane %v331_v40, 2  ;;  %v340_v53 = vrot.slane %v333_v42, 2 }
  0x92   : > { %v286_v46 = vmul.f32 %v284_v44, %v499_v2  ;;  %v287_v47 = vmul.f32 %v284_v44, %v206_v27 }
  0x93   : > { %v344_v55 = vsel %vm195_vm0, %v342_v50, %v343_v51  ;;  %v341_v56 = vsel %vm195_vm0, %v339_v52, %v340_v53 }
  0x94   : > { %275 = vrot.lane.b32.xlu1 %v272_v45, %s454_s5  ;;  %292 = vrot.lane.b32.xlu0 %v287_v47, %s455_s6 }
  0x95   : > { %290 = vrot.lane.b32.xlu2 %v286_v46, %s455_s6 }
  0x9c   : > { %347 = vrot.lane.b32.xlu1 %v344_v55, %s455_s6  ;;  %345 = vrot.lane.b32.xlu0 %v341_v56, %s455_s6 }
  0x9d   : > { %248 = vrot.lane.b32.xlu2 %v245_v59, %s454_s5 }
  0xa5   : > { %320 = vrot.lane.b32.xlu2 %v317_v63, %s455_s6 }
  0xde   : > { %v274_v7 = vpop.permute.xlu0 %273 }
  0xe3   : > { %v219_v1 = vpop.permute.xlu2 %218 }
  0xef   : > { %v291_v18 = vpop.permute.xlu2 %290 }
  0xf6   : > { %v247_v13 = vpop.permute.xlu1 %246 }
  0xf7   : > { %v249_v24 = vpop.permute.xlu2 %248 }
  0xf8   : > { %v250_v26 = vsel %vm222_vm3, %v247_v13, %v249_v24 }
  0xfb   : > { %v221_v21 = vpop.permute.xlu0 %220 }
  0xfc   : > { %v223_v5 = vsel %vm222_vm3, %v219_v1, %v221_v21 }
  0xfd   : > { %v225_v25 = vadd.f32 %v223_v5, %v200_v22 }
  0xfe   : > { %v319_v23 = vpop.permute.xlu1 %318 }
  0xff   : > { %v252_v28 = vadd.f32 %v250_v26, %v225_v25  ;;  %v321_v32 = vpop.permute.xlu2 %320 }
 0x100   : > { %v322_v34 = vsel %vm294_vm4, %v319_v23, %v321_v32 }
 0x106   : > { %v276_v27 = vpop.permute.xlu1 %275  ;;  %v293_v30 = vpop.permute.xlu0 %292 }
 0x107   : > { %v277_v2 = vsel %vm222_vm3, %v274_v7, %v276_v27  ;;  %v295_v31 = vsel %vm294_vm4, %v291_v18, %v293_v30 }
 0x108   : > { %v279_v29 = vadd.f32 %v277_v2, %v252_v28 }
 0x10a   : > { %v297_v33 = vadd.f32 %v295_v31, %v279_v29 }
 0x10c   : > { %v324_v38 = vadd.f32 %v322_v34, %v297_v33 }
 0x10e   : > { %v348_v35 = vpop.permute.xlu1 %347  ;;  %v346_v37 = vpop.permute.xlu0 %345 }
 0x10f   : > { %v349_v39 = vsel %vm294_vm4, %v346_v37, %v348_v35 }
 0x110   : > { %v351_v40 = vadd.f32 %v349_v39, %v324_v38 }
 0x112   : > { %v356_v41 = vadd.f32 %v443_v36, %v351_v40 }
 0x114   : > { %357 = vst [vmem:[%s168_s20] sm:$0xff] %v356_v41 }
 0x115 PF: > { %s13_s12 = sadd.s32 1, %s450_s12  }
 0x116   : > { %p10_p4 = scmp.ge.s32.totalorder %s13_s12, 4  }
 0x118   :  { %12 = sbr.rel (!%p10_p4) target bundleno = 1 (0x1), region = 62 }

// kernel: phdnet_forward.35
= control target key start
LH: loop header
LB: loop body
LE: loop exit
PB: predicated region body
PF: predicated region fallthrough
CT: control target
= control target key end

     0   :  { %vm51_vm0 = vcmask 130048   ;;  %s308_s1 = inlined_call_operand.vmem [shape: bf16[16,16], index: 1, kind: input, shape index: {}]   ;;  %s309_s0 = inlined_call_operand.vmem [shape: f32[128,16], index: 0, kind: input, shape index: {}]   ;;  %s310_s2 = inlined_call_operand.vmem [shape: f32[1,16], index: 2, kind: input, shape index: {}]   ;;  %s311_s3 = inlined_call_operand.vmem [shape: f32[128,16], index: 3, kind: output, shape index: {}]  }
   0x1   :  { %v157_v0 = vld [vmem:[%s308_s1] sm:$0xff]  ;;  %v16_v2 = vld [vmem:[%s309_s0 + $0x8] sm:$0xff]  ;;  %v17_v13 = vld [vmem:[%s309_s0 + $0x10] sm:$0xff] }
   0x2   :  { %v15_v1 = vld [vmem:[%s309_s0] sm:$0xff]  ;;  %v20_v5 = vld [vmem:[%s309_s0 + $0x28] sm:$0xff]  ;;  %83 = vmatpush.bf16.msra.mxu0 %v157_v0  ;;  %158 = vmatpush.bf16.msra.mxu1 %v157_v0  ;;  %v18_v14 = vld [vmem:[%s309_s0 + $0x18] sm:$0xff] }
   0x3   :  { %v31_v3 = vpack.c.bf16 %v16_v2, %v15_v1  ;;  %v19_v4 = vld [vmem:[%s309_s0 + $0x20] sm:$0xff]  ;;  %v24_v8 = vld [vmem:[%s309_s0 + $0x48] sm:$0xff]  ;;  %159 = vmatpush.bf16.msra.mxu2 %v157_v0  ;;  %160 = vmatpush.bf16.msra.mxu3 %v157_v0  ;;  %v21_v15 = vld [vmem:[%s309_s0 + $0x30] sm:$0xff]  ;;  %v32_v21 = vpack.c.bf16 %v18_v14, %v17_v13 }
   0x4   :  { %v23_v6 = vld [vmem:[%s309_s0 + $0x40] sm:$0xff]  ;;  %v33_v7 = vpack.c.bf16 %v20_v5, %v19_v4  ;;  %v28_v10 = vld [vmem:[%s309_s0 + $0x68] sm:$0xff]  ;;  %v22_v16 = vld [vmem:[%s309_s0 + $0x38] sm:$0xff] }
   0x5   :  { %v27_v9 = vld [vmem:[%s309_s0 + $0x60] sm:$0xff]  ;;  %v35_v11 = vpack.c.bf16 %v24_v8, %v23_v6  ;;  %149 = vmatmul.msk.bf16.vlgmr.msra.gmra.mxu0 %vm51_vm0, %v31_v3  ;;  %v25_v17 = vld [vmem:[%s309_s0 + $0x50] sm:$0xff]  ;;  %v26_v18 = vld [vmem:[%s309_s0 + $0x58] sm:$0xff]  ;;  %v34_v22 = vpack.c.bf16 %v22_v16, %v21_v15 }
   0x6   :  { %v37_v12 = vpack.c.bf16 %v28_v10, %v27_v9  ;;  %151 = vmatmul.msk.bf16.vlgmr.msra.gmra.mxu1 %vm51_vm0, %v33_v7  ;;  %v29_v19 = vld [vmem:[%s309_s0 + $0x70] sm:$0xff]  ;;  %v30_v20 = vld [vmem:[%s309_s0 + $0x78] sm:$0xff]  ;;  %v36_v23 = vpack.c.bf16 %v26_v18, %v25_v17  ;;  %v161_v25 = vld [vmem:[%s310_s2] ss:$0 sm:$0xff] }
   0x7   :  { %153 = vmatmul.msk.bf16.vlgmr.msra.gmra.mxu2 %vm51_vm0, %v35_v11  ;;  %v38_v24 = vpack.c.bf16 %v30_v20, %v29_v19 }
   0x8   :  { %155 = vmatmul.msk.bf16.vlgmr.msra.gmra.mxu3 %vm51_vm0, %v37_v12 }
  0x15   :  { %150 = vmatmul.msk.bf16.gmra.mxu0 %vm51_vm0, %v32_v21 }
  0x16   :  { %152 = vmatmul.msk.bf16.gmra.mxu1 %vm51_vm0, %v34_v22 }
  0x17   :  { %154 = vmatmul.msk.bf16.gmra.mxu2 %vm51_vm0, %v36_v23 }
  0x18   :  { %156 = vmatmul.msk.bf16.gmra.mxu3 %vm51_vm0, %v38_v24 }
  0x82   :  { %v85_v26 = vpop.f32.mrf.mxu0 }
  0x83   :  { %v95_v27 = vpop.f32.mrf.mxu1  ;;  %v86_v28 = vadd.f32 %v161_v25, %v85_v26 }
  0x84   :  { %v96_v29 = vadd.f32 %v161_v25, %v95_v27 }
  0x85   :  { %125 = vst.msk [vmem:[%s311_s3] sm:$0xff] %vm51_vm0, %v86_v28 }
  0x86   :  { %129 = vst.msk [vmem:[%s311_s3 + $0x20] sm:$0xff] %vm51_vm0, %v96_v29 }
  0x8a   :  { %v105_v30 = vpop.f32.mrf.mxu2  ;;  %v87_v34 = vpop.f32.mrf.mxu0 }
  0x8b   :  { %v115_v31 = vpop.f32.mrf.mxu3  ;;  %v106_v32 = vadd.f32 %v161_v25, %v105_v30  ;;  %v97_v35 = vpop.f32.mrf.mxu1  ;;  %v88_v36 = vadd.f32 %v161_v25, %v87_v34 }
  0x8c   :  { %v116_v33 = vadd.f32 %v161_v25, %v115_v31  ;;  %v98_v37 = vadd.f32 %v161_v25, %v97_v35 }
  0x8d   :  { %133 = vst.msk [vmem:[%s311_s3 + $0x40] sm:$0xff] %vm51_vm0, %v106_v32 }
  0x8e   :  { %137 = vst.msk [vmem:[%s311_s3 + $0x60] sm:$0xff] %vm51_vm0, %v116_v33 }
  0x8f   :  { %126 = vst.msk [vmem:[%s311_s3 + $0x8] sm:$0xff] %vm51_vm0, %v88_v36 }
  0x90   :  { %130 = vst.msk [vmem:[%s311_s3 + $0x28] sm:$0xff] %vm51_vm0, %v98_v37 }
  0x92   :  { %v107_v38 = vpop.f32.mrf.mxu2  ;;  %v90_v42 = vpop.f32.mrf.mxu0 }
  0x93   :  { %v117_v39 = vpop.f32.mrf.mxu3  ;;  %v108_v40 = vadd.f32 %v161_v25, %v107_v38  ;;  %v100_v43 = vpop.f32.mrf.mxu1  ;;  %v91_v44 = vadd.f32 %v161_v25, %v90_v42 }
  0x94   :  { %v118_v41 = vadd.f32 %v161_v25, %v117_v39  ;;  %v101_v45 = vadd.f32 %v161_v25, %v100_v43 }
  0x95   :  { %134 = vst.msk [vmem:[%s311_s3 + $0x48] sm:$0xff] %vm51_vm0, %v108_v40 }
  0x96   :  { %138 = vst.msk [vmem:[%s311_s3 + $0x68] sm:$0xff] %vm51_vm0, %v118_v41 }
  0x97   :  { %127 = vst.msk [vmem:[%s311_s3 + $0x10] sm:$0xff] %vm51_vm0, %v91_v44 }
  0x98   :  { %131 = vst.msk [vmem:[%s311_s3 + $0x30] sm:$0xff] %vm51_vm0, %v101_v45 }
  0x9a   :  { %v110_v46 = vpop.f32.mrf.mxu2  ;;  %v92_v50 = vpop.f32.mrf.mxu0 }
  0x9b   :  { %v120_v47 = vpop.f32.mrf.mxu3  ;;  %v111_v48 = vadd.f32 %v161_v25, %v110_v46  ;;  %v102_v51 = vpop.f32.mrf.mxu1  ;;  %v93_v52 = vadd.f32 %v161_v25, %v92_v50 }
  0x9c   :  { %v121_v49 = vadd.f32 %v161_v25, %v120_v47  ;;  %v103_v53 = vadd.f32 %v161_v25, %v102_v51 }
  0x9d   :  { %135 = vst.msk [vmem:[%s311_s3 + $0x50] sm:$0xff] %vm51_vm0, %v111_v48 }
  0x9e   :  { %139 = vst.msk [vmem:[%s311_s3 + $0x70] sm:$0xff] %vm51_vm0, %v121_v49 }
  0x9f   :  { %128 = vst.msk [vmem:[%s311_s3 + $0x18] sm:$0xff] %vm51_vm0, %v93_v52 }
  0xa0   :  { %132 = vst.msk [vmem:[%s311_s3 + $0x38] sm:$0xff] %vm51_vm0, %v103_v53 }
  0xa2   :  { %v112_v54 = vpop.f32.mrf.mxu2 }
  0xa3   :  { %v122_v55 = vpop.f32.mrf.mxu3  ;;  %v113_v56 = vadd.f32 %v161_v25, %v112_v54 }
  0xa4   :  { %v123_v57 = vadd.f32 %v161_v25, %v122_v55 }
  0xa5   :  { %136 = vst.msk [vmem:[%s311_s3 + $0x58] sm:$0xff] %vm51_vm0, %v113_v56 }
  0xa6   :  { %140 = vst.msk [vmem:[%s311_s3 + $0x78] sm:$0xff] %vm51_vm0, %v123_v57 }

// kernel: phdnet_forward.39
= control target key start
LH: loop header
LB: loop body
LE: loop exit
PB: predicated region body
PF: predicated region fallthrough
CT: control target
= control target key end

     0   :  { %vm315_vm0 = vcmask 261120   ;;  %vm791_vm4 = vcmask 23552   ;;  %s1513_s1 = inlined_call_operand.vmem [shape: bf16[288,3], index: 1, kind: input, shape index: {}]   ;;  %s1514_s0 = inlined_call_operand.vmem [shape: bf16[128,288], index: 0, kind: input, shape index: {}]   ;;  %s1515_s2 = inlined_call_operand.vmem [shape: f32[1,3], index: 2, kind: input, shape index: {}]   ;;  %s1516_s3 = inlined_call_operand.vmem [shape: f32[128,3], index: 3, kind: output, shape index: {}]  }
   0x1   :  { %v1035_v0 = vld [vmem:[%s1513_s1 + $0x38] sm:$0xff]  ;;  %v1045_v1 = vld [vmem:[%s1513_s1 + $0x88] sm:$0xff]  ;;  %v1034_v3 = vld [vmem:[%s1513_s1 + $0x30] sm:$0xff] }
   0x2   :  { %v1043_v2 = vld [vmem:[%s1513_s1 + $0x78] sm:$0xff]  ;;  %340 = vmatpush.bf16.msra.mxu0 %v1035_v0  ;;  %1046 = vmatpush.bf16.msra.mxu3 %v1035_v0  ;;  %v1044_v4 = vld [vmem:[%s1513_s1 + $0x80] sm:$0xff]  ;;  %v1042_v5 = vld [vmem:[%s1513_s1 + $0x70] sm:$0xff] }
   0x3   :  { %444 = vmatpush.bf16.msra.mxu2 %v1045_v1  ;;  %389 = vmatpush.bf16.msra.mxu1 %v1043_v2  ;;  %v822_v6 = vld [vmem:[%s1514_s0 + $0x8] sm:$0xf]  ;;  %v1006_v7 = vld [vmem:[%s1514_s0 + $0x10] sm:$0xf0]  ;;  %v1032_v11 = vld [vmem:[%s1513_s1 + $0x20] sm:$0xff] }
   0x4   :  { %v823_v8 = vor.u32 %v1006_v7, %v822_v6  ;;  %v1033_v9 = vld [vmem:[%s1513_s1 + $0x28] sm:$0xff]  ;;  %v1040_v12 = vld [vmem:[%s1513_s1 + $0x60] sm:$0xff]  ;;  %v1031_v13 = vld [vmem:[%s1513_s1 + $0x18] sm:$0xff] }
   0x5   :  { %v1041_v10 = vld [vmem:[%s1513_s1 + $0x68] sm:$0xff]  ;;  %v1039_v14 = vld [vmem:[%s1513_s1 + $0x58] sm:$0xff]  ;;  %v1030_v15 = vld [vmem:[%s1513_s1 + $0x10] sm:$0xff] }
   0x6   :  { %341 = vmatpush.bf16.msra.mxu0 %v1034_v3  ;;  %1047 = vmatpush.bf16.msra.mxu3 %v1034_v3  ;;  %v1038_v16 = vld [vmem:[%s1513_s1 + $0x50] sm:$0xff]  ;;  %v834_v17 = vld [vmem:[%s1514_s0 + $0x20] sm:$0xf]  ;;  %v1009_v18 = vld [vmem:[%s1514_s0 + $0x28] sm:$0xf0] }
   0x7   :  { %445 = vmatpush.bf16.msra.mxu2 %v1044_v4  ;;  %390 = vmatpush.bf16.msra.mxu1 %v1042_v5  ;;  %v835_v19 = vor.u32 %v1009_v18, %v834_v17  ;;  %v1029_v20 = vld [vmem:[%s1513_s1 + $0x8] sm:$0xff]  ;;  %v1028_v22 = vld [vmem:[%s1513_s1] sm:$0xff]  ;;  %v886_v26 = vld [vmem:[%s1514_s0 + $0x90] sm:$0xf] }
   0x8   :  { %v1037_v21 = vld [vmem:[%s1513_s1 + $0x48] sm:$0xff]  ;;  %v1036_v23 = vld [vmem:[%s1513_s1 + $0x40] sm:$0xff]  ;;  %v1023_v27 = vld [vmem:[%s1514_s0 + $0x98] sm:$0xf0] }
   0x9   :  { %v814_v24 = vld [vmem:[%s1514_s0] sm:$0xf]  ;;  %v1005_v25 = vld [vmem:[%s1514_s0 + $0x8] sm:$0xf0]  ;;  %v1004_v28 = vld [vmem:[%s1514_s0 + $0x4] sm:$0xf]  ;;  %v887_v31 = vor.u32 %v1023_v27, %v886_v26 }
   0xa   :  { %980 = vmatmul.msk.bf16.vlgmr.msra.gmra.mxu2 %vm315_vm0, %v823_v8  ;;  %342 = vmatpush.bf16.msra.mxu0 %v1033_v9  ;;  %v816_v29 = vld [vmem:[%s1514_s0 + $0xc] sm:$0xf0]  ;;  %v815_v30 = vor.u32 %v1005_v25, %v814_v24  ;;  %v846_v33 = vld [vmem:[%s1514_s0 + $0x38] sm:$0xf]  ;;  %v1012_v34 = vld [vmem:[%s1514_s0 + $0x40] sm:$0xf0] }
   0xb   :  { %1048 = vmatpush.bf16.msra.mxu3 %v1033_v9  ;;  %391 = vmatpush.bf16.msra.mxu1 %v1041_v10  ;;  %v819_v32 = vor.u32 %v1004_v28, %v816_v29  ;;  %v847_v35 = vor.u32 %v1012_v34, %v846_v33  ;;  %v826_v36 = vld [vmem:[%s1514_s0 + $0x18] sm:$0xf]  ;;  %v1008_v37 = vld [vmem:[%s1514_s0 + $0x20] sm:$0xf0]  ;;  %v898_v38 = vld [vmem:[%s1514_s0 + $0xa8] sm:$0xf] }
   0xc   :  { %v1026_v39 = vld [vmem:[%s1514_s0 + $0xb0] sm:$0xf0]  ;;  %v1007_v40 = vld [vmem:[%s1514_s0 + $0x1c] sm:$0xf]  ;;  %v828_v41 = vld [vmem:[%s1514_s0 + $0x24] sm:$0xf0]  ;;  %v827_v42 = vor.u32 %v1008_v37, %v826_v36 }
   0xd   :  { %v899_v43 = vor.u32 %v1026_v39, %v898_v38  ;;  %v831_v44 = vor.u32 %v1007_v40, %v828_v41  ;;  %v858_v45 = vld [vmem:[%s1514_s0 + $0x50] sm:$0xf]  ;;  %v1015_v46 = vld [vmem:[%s1514_s0 + $0x58] sm:$0xf0]  ;;  %v1022_v50 = vld [vmem:[%s1514_s0 + $0x94] sm:$0xf] }
   0xe   :  { %343 = vmatpush.bf16.msra.mxu0 %v1032_v11  ;;  %v859_v47 = vor.u32 %v1015_v46, %v858_v45  ;;  %v838_v48 = vld [vmem:[%s1514_s0 + $0x30] sm:$0xf]  ;;  %v1011_v49 = vld [vmem:[%s1514_s0 + $0x38] sm:$0xf0]  ;;  %v888_v51 = vld [vmem:[%s1514_s0 + $0x9c] sm:$0xf0] }
   0xf   :  { %1049 = vmatpush.bf16.msra.mxu3 %v1032_v11  ;;  %392 = vmatpush.bf16.msra.mxu1 %v1040_v12  ;;  %v1010_v52 = vld [vmem:[%s1514_s0 + $0x34] sm:$0xf]  ;;  %v840_v53 = vld [vmem:[%s1514_s0 + $0x3c] sm:$0xf0]  ;;  %v839_v54 = vor.u32 %v1011_v49, %v838_v48  ;;  %v891_v55 = vor.u32 %v1022_v50, %v888_v51  ;;  %v870_v57 = vld [vmem:[%s1514_s0 + $0x68] sm:$0xf] }
  0x10   :  { %v843_v56 = vor.u32 %v1010_v52, %v840_v53  ;;  %v1018_v58 = vld [vmem:[%s1514_s0 + $0x70] sm:$0xf0]  ;;  %v850_v60 = vld [vmem:[%s1514_s0 + $0x48] sm:$0xf]  ;;  %v1025_v62 = vld [vmem:[%s1514_s0 + $0xac] sm:$0xf] }
  0x11   :  { %v871_v59 = vor.u32 %v1018_v58, %v870_v57  ;;  %v1014_v61 = vld [vmem:[%s1514_s0 + $0x50] sm:$0xf0]  ;;  %v900_v63 = vld [vmem:[%s1514_s0 + $0xb4] sm:$0xf0]  ;;  %v1013_v0 = vld [vmem:[%s1514_s0 + $0x4c] sm:$0xf] }
  0x12   :  { %344 = vmatpush.bf16.msra.mxu0 %v1031_v13  ;;  %v852_v1 = vld [vmem:[%s1514_s0 + $0x54] sm:$0xf0]  ;;  %v903_v3 = vor.u32 %v1025_v62, %v900_v63  ;;  %v1021_v6 = vld [vmem:[%s1514_s0 + $0x88] sm:$0xf0]  ;;  %v862_v8 = vld [vmem:[%s1514_s0 + $0x60] sm:$0xf] }
  0x13   :  { %1050 = vmatpush.bf16.msra.mxu3 %v1031_v13  ;;  %393 = vmatpush.bf16.msra.mxu1 %v1039_v14  ;;  %v855_v4 = vor.u32 %v1013_v0, %v852_v1  ;;  %v1017_v9 = vld [vmem:[%s1514_s0 + $0x68] sm:$0xf0]  ;;  %v864_v11 = vld [vmem:[%s1514_s0 + $0x6c] sm:$0xf0]  ;;  %v874_v17 = vld [vmem:[%s1514_s0 + $0x78] sm:$0xf] }
  0x14   :  { %v1020_v18 = vld [vmem:[%s1514_s0 + $0x80] sm:$0xf0]  ;;  %v1027_v24 = vld [vmem:[%s1514_s0 + $0xb8] sm:$0xf0]  ;;  %v1356_v28 = vld [vmem:[%s1515_s2] ss:$0 sm:$0xff] }
  0x16   :  { %345 = vmatpush.bf16.msra.mxu0 %v1030_v15 }
  0x17   :  { %1051 = vmatpush.bf16.msra.mxu3 %v1030_v15  ;;  %394 = vmatpush.bf16.msra.mxu1 %v1038_v16  ;;  %v1024_v15 = vld [vmem:[%s1514_s0 + $0xa0] sm:$0xf0] }
  0x1a   :  { %981 = vmatmul.msk.bf16.gmra.mxu2 %vm315_vm0, %v835_v19  ;;  %346 = vmatpush.bf16.msra.mxu0 %v1029_v20  ;;  %v1019_v19 = vld [vmem:[%s1514_s0 + $0x7c] sm:$0xf] }
  0x1b   :  { %1052 = vmatpush.bf16.msra.mxu3 %v1029_v20  ;;  %395 = vmatpush.bf16.msra.mxu1 %v1037_v21  ;;  %v876_v20 = vld [vmem:[%s1514_s0 + $0x84] sm:$0xf0] }
  0x1e   :  { %347 = vmatpush.bf16.msra.mxu0 %v1028_v22 }
  0x1f   :  { %1053 = vmatpush.bf16.msra.mxu3 %v1028_v22  ;;  %396 = vmatpush.bf16.msra.mxu1 %v1036_v23  ;;  %v879_v22 = vor.u32 %v1019_v19, %v876_v20 }
  0x21   :  { %348 = vmatmul.bf16.vlgmr.msra.gmra.mxu0 %v815_v30 }
  0x22   :  { %378 = vmatmul.bf16.vlgmr.msra.gmra.mxu3 %v887_v31  ;;  %397 = vmatmul.bf16.vlgmr.msra.gmra.mxu1 %v819_v32 }
  0x23   :  { %1054 = vmatpush.bf16.msrb.mxu3 %v1043_v2  ;;  %v851_v2 = vor.u32 %v1014_v61, %v850_v60 }
  0x27   :  { %1055 = vmatpush.bf16.msrb.mxu3 %v1042_v5  ;;  %v882_v5 = vld [vmem:[%s1514_s0 + $0x80] sm:$0xf] }
  0x28   :  { %v883_v7 = vor.u32 %v1021_v6, %v882_v5 }
  0x2a   :  { %982 = vmatmul.msk.bf16.gmra.mxu2 %vm315_vm0, %v847_v35 }
  0x2b   :  { %1056 = vmatpush.bf16.msrb.mxu3 %v1041_v10  ;;  %v1016_v10 = vld [vmem:[%s1514_s0 + $0x64] sm:$0xf] }
  0x2c   :  { %v867_v13 = vor.u32 %v1016_v10, %v864_v11 }
  0x2f   :  { %1057 = vmatpush.bf16.msrb.mxu3 %v1040_v12  ;;  %v863_v12 = vor.u32 %v1017_v9, %v862_v8 }
  0x31   :  { %353 = vmatmul.bf16.gmra.mxu0 %v827_v42 }
  0x32   :  { %383 = vmatmul.bf16.gmra.mxu3 %v899_v43  ;;  %402 = vmatmul.bf16.gmra.mxu1 %v831_v44 }
  0x33   :  { %1058 = vmatpush.bf16.msrb.mxu3 %v1039_v14  ;;  %v894_v14 = vld [vmem:[%s1514_s0 + $0x98] sm:$0xf] }
  0x37   :  { %1059 = vmatpush.bf16.msrb.mxu3 %v1038_v16  ;;  %v895_v16 = vor.u32 %v1024_v15, %v894_v14 }
  0x3a   :  { %983 = vmatmul.msk.bf16.gmra.mxu2 %vm315_vm0, %v859_v47 }
  0x3b   :  { %1060 = vmatpush.bf16.msrb.mxu3 %v1037_v21  ;;  %v875_v21 = vor.u32 %v1020_v18, %v874_v17 }
  0x3f   :  { %1061 = vmatpush.bf16.msrb.mxu3 %v1036_v23  ;;  %v906_v23 = vld [vmem:[%s1514_s0 + $0xb0] sm:$0xf] }
  0x40   :  { %v907_v25 = vor.u32 %v1027_v24, %v906_v23 }
  0x41   :  { %358 = vmatmul.bf16.gmra.mxu0 %v839_v54 }
  0x42   :  { %427 = vmatmul.bf16.vlgmr.msrb.gmra.mxu3 %v891_v55  ;;  %407 = vmatmul.bf16.gmra.mxu1 %v843_v56 }
  0x4a   :  { %984 = vmatmul.msk.bf16.gmra.mxu2 %vm315_vm0, %v871_v59 }
  0x51   :  { %363 = vmatmul.bf16.gmra.mxu0 %v851_v2 }
  0x52   :  { %432 = vmatmul.bf16.gmra.mxu3 %v903_v3  ;;  %412 = vmatmul.bf16.gmra.mxu1 %v855_v4 }
  0x5a   :  { %985 = vmatmul.msk.bf16.gmra.mxu2 %vm315_vm0, %v883_v7 }
  0x61   :  { %368 = vmatmul.bf16.gmra.mxu0 %v863_v12 }
  0x62   :  { %417 = vmatmul.bf16.gmra.mxu1 %v867_v13 }
  0x6a   :  { %986 = vmatmul.msk.bf16.gmra.mxu2 %vm315_vm0, %v895_v16 }
  0x71   :  { %373 = vmatmul.bf16.gmra.mxu0 %v875_v21 }
  0x72   :  { %422 = vmatmul.bf16.gmra.mxu1 %v879_v22 }
  0x7a   :  { %987 = vmatmul.msk.bf16.gmra.mxu2 %vm315_vm0, %v907_v25 }
  0x8d   :  { %v447_v26 = vpop.f32.mrf.mxu2 }
  0x95   :  { %v449_v27 = vpop.f32.mrf.mxu2 }
  0x9d   :  { %v452_v29 = vpop.f32.mrf.mxu2 }
  0x9e   :  { %v349_v30 = vpop.f32.mrf.mxu0 }
  0x9f   :  { %v350_v31 = vadd.f32 %v1356_v28, %v349_v30  ;;  %v398_v32 = vpop.f32.mrf.mxu1 }
  0xa1   :  { %v399_v33 = vadd.f32 %v398_v32, %v350_v31 }
  0xa3   :  { %v448_v34 = vadd.f32 %v447_v26, %v399_v33 }
  0xa5   :  { %v988_v35 = vmul.f32 -1.442695, %v448_v34  ;;  %v454_v36 = vpop.f32.mrf.mxu2  ;;  %v1364_v1 = vpop.f32.mrf.mxu3 }
  0xa6   :  { %v351_v37 = vpop.f32.mrf.mxu0 }
  0xa7   :  { %1063 = vpow2.f32 %v988_v35  ;;  %v352_v38 = vadd.f32 %v1356_v28, %v351_v37  ;;  %v400_v39 = vpop.f32.mrf.mxu1 }
  0xa9   :  { %v401_v40 = vadd.f32 %v400_v39, %v352_v38 }
  0xab   :  { %v450_v41 = vadd.f32 %v449_v27, %v401_v40 }
  0xad   :  { %v1064_v42 = vpop.eup %1063  ;;  %v989_v43 = vmul.f32 -1.442695, %v450_v41  ;;  %v457_v44 = vpop.f32.mrf.mxu2 }
  0xae   :  { %v535_v45 = vadd.f32 1.0, %v1064_v42  ;;  %v354_v46 = vpop.f32.mrf.mxu0  ;;  %v1373_v23 = vpop.f32.mrf.mxu3 }
  0xaf   :  { %1065 = vpow2.f32 %v989_v43  ;;  %v355_v47 = vadd.f32 %v1356_v28, %v354_v46  ;;  %v403_v48 = vpop.f32.mrf.mxu1 }
  0xb0   :  { %1067 = vrcp.f32 %v535_v45  ;;  %v562_v62 = vand.u32 2147483648, %v535_v45  ;;  %v560_v0 = vand.u32 2147483647, %v535_v45  ;;  %vm556_vm2 = vweird.f32 %v535_v45 }
  0xb1   :  { %v404_v49 = vadd.f32 %v403_v48, %v355_v47 }
  0xb2   :  { %v563_v8 = vor.u32 1.1754944e-38, %v562_v62  ;;  %vm561_vm5 = vcmp.eq.f32.partialorder %v560_v0, 8.507059e+37 }
  0xb3   :  { %v453_v50 = vadd.f32 %v452_v29, %v404_v49 }
  0xb5   :  { %v1066_v51 = vpop.eup %1065  ;;  %v990_v52 = vmul.f32 -1.442695, %v453_v50  ;;  %v1361_v53 = vpop.f32.mrf.mxu2 }
  0xb6   :  { %v1068_v54 = vpop.eup %1067  ;;  %v536_v55 = vadd.f32 1.0, %v1066_v51  ;;  %v356_v56 = vpop.f32.mrf.mxu0 }
  0xb7   :  { %v552_v57 = vmul.f32 %v1068_v54, %v535_v45  ;;  %1069 = vpow2.f32 %v990_v52  ;;  %v357_v58 = vadd.f32 %v1356_v28, %v356_v56  ;;  %v405_v59 = vpop.f32.mrf.mxu1  ;;  %vm557_vm1 = vweird.f32 %v1068_v54  ;;  %v1385_v50 = vpop.f32.mrf.mxu3 }
  0xb8   :  { %1071 = vrcp.f32 %v536_v55  ;;  %vm558_vm3 = vmor %vm556_vm2, %vm557_vm1  ;;  %v577_v17 = vand.u32 2147483648, %v536_v55  ;;  %v575_v19 = vand.u32 2147483647, %v536_v55  ;;  %vm571_vm7 = vweird.f32 %v536_v55 }
  0xb9   :  { %v553_v60 = vsub.f32 1.0, %v552_v57  ;;  %v406_v61 = vadd.f32 %v405_v59, %v357_v58 }
  0xba   :  { %v578_v27 = vor.u32 1.1754944e-38, %v577_v17  ;;  %vm576_vm9 = vcmp.eq.f32.partialorder %v575_v19, 8.507059e+37 }
  0xbb   :  { %v554_v63 = vmul.f32 %v1068_v54, %v553_v60  ;;  %v455_v2 = vadd.f32 %v454_v36, %v406_v61 }
  0xbd   :  { %v1070_v3 = vpop.eup %1069  ;;  %v555_v4 = vadd.f32 %v1068_v54, %v554_v63  ;;  %v991_v5 = vmul.f32 -1.442695, %v455_v2  ;;  %v1366_v6 = vpop.f32.mrf.mxu2 }
  0xbe   :  { %v1072_v7 = vpop.eup %1071  ;;  %v537_v9 = vadd.f32 1.0, %v1070_v3  ;;  %v359_v10 = vpop.f32.mrf.mxu0 }
  0xbf   :  { %v559_v11 = vsel %vm558_vm3, %v1068_v54, %v555_v4  ;;  %v567_v12 = vmul.f32 %v1072_v7, %v536_v55  ;;  %1073 = vpow2.f32 %v991_v5  ;;  %v408_v13 = vpop.f32.mrf.mxu1  ;;  %v360_v16 = vadd.f32 %v1356_v28, %v359_v10 }
  0xc0   :  { %v564_v14 = vsel %vm561_vm5, %v563_v8, %v559_v11  ;;  %1075 = vrcp.f32 %v537_v9  ;;  %vm572_vm6 = vweird.f32 %v1072_v7  ;;  %v592_v38 = vand.u32 2147483648, %v537_v9 }
  0xc1   :  { %792 = vst.msk [vmem:[%s1516_s3] sm:$0xff] %vm791_vm4, %v564_v14  ;;  %v568_v15 = vsub.f32 1.0, %v567_v12  ;;  %v409_v20 = vadd.f32 %v408_v13, %v360_v16  ;;  %vm573_vm8 = vmor %vm571_vm7, %vm572_vm6  ;;  %v590_v40 = vand.u32 2147483647, %v537_v9  ;;  %vm586_vm11 = vweird.f32 %v537_v9 }
  0xc2   :  { %v593_v46 = vor.u32 1.1754944e-38, %v592_v38 }
  0xc3   :  { %v569_v18 = vmul.f32 %v1072_v7, %v568_v15  ;;  %v458_v24 = vadd.f32 %v457_v44, %v409_v20  ;;  %vm591_vm13 = vcmp.eq.f32.partialorder %v590_v40, 8.507059e+37 }
  0xc5   :  { %v1074_v21 = vpop.eup %1073  ;;  %v570_v22 = vadd.f32 %v1072_v7, %v569_v18  ;;  %v1375_v25 = vpop.f32.mrf.mxu2  ;;  %v992_v33 = vmul.f32 -1.442695, %v458_v24 }
  0xc6   :  { %v1076_v26 = vpop.eup %1075  ;;  %v538_v29 = vadd.f32 1.0, %v1074_v21  ;;  %v361_v30 = vpop.f32.mrf.mxu0 }
  0xc7   :  { %v574_v31 = vsel %vm573_vm8, %v1072_v7, %v570_v22  ;;  %v582_v32 = vmul.f32 %v1076_v26, %v537_v9  ;;  %v410_v34 = vpop.f32.mrf.mxu1  ;;  %v362_v37 = vadd.f32 %v1356_v28, %v361_v30  ;;  %vm587_vm10 = vweird.f32 %v1076_v26 }
  0xc8   :  { %v579_v35 = vsel %vm576_vm9, %v578_v27, %v574_v31  ;;  %1077 = vrcp.f32 %v538_v29  ;;  %vm588_vm12 = vmor %vm586_vm11, %vm587_vm10  ;;  %v607_v58 = vand.u32 2147483648, %v538_v29  ;;  %v605_v60 = vand.u32 2147483647, %v538_v29 }
  0xc9   :  { %793 = vst.msk [vmem:[%s1516_s3 + $0x8] sm:$0xff] %vm791_vm4, %v579_v35  ;;  %v583_v36 = vsub.f32 1.0, %v582_v32  ;;  %1079 = vpow2.f32 %v992_v33  ;;  %v411_v41 = vadd.f32 %v410_v34, %v362_v37  ;;  %vm601_vm15 = vweird.f32 %v538_v29 }
  0xca   :  { %v608_v2 = vor.u32 1.1754944e-38, %v607_v58  ;;  %vm606_vm1 = vcmp.eq.f32.partialorder %v605_v60, 8.507059e+37 }
  0xcb   :  { %v584_v39 = vmul.f32 %v1076_v26, %v583_v36  ;;  %v460_v43 = vadd.f32 %v1361_v53, %v411_v41 }
  0xcd   :  { %v585_v42 = vadd.f32 %v1076_v26, %v584_v39  ;;  %v1383_v44 = vpop.f32.mrf.mxu2  ;;  %v993_v52 = vmul.f32 -1.442695, %v460_v43 }
  0xce   :  { %v1078_v45 = vpop.eup %1077  ;;  %v364_v47 = vpop.f32.mrf.mxu0 }
  0xcf   :  { %v1080_v48 = vpop.eup %1079  ;;  %v589_v49 = vsel %vm588_vm12, %v1076_v26, %v585_v42  ;;  %v597_v51 = vmul.f32 %v1078_v45, %v538_v29  ;;  %v413_v54 = vpop.f32.mrf.mxu1  ;;  %v365_v57 = vadd.f32 %v1356_v28, %v364_v47  ;;  %1081 = vpow2.f32 %v993_v52 }
  0xd0   :  { %v594_v55 = vsel %vm591_vm13, %v593_v46, %v589_v49  ;;  %v539_v56 = vadd.f32 1.0, %v1080_v48  ;;  %vm602_vm14 = vweird.f32 %v1078_v45 }
  0xd1   :  { %794 = vst.msk [vmem:[%s1516_s3 + $0x10] sm:$0xff] %vm791_vm4, %v594_v55  ;;  %v598_v53 = vsub.f32 1.0, %v597_v51  ;;  %v414_v61 = vadd.f32 %v413_v54, %v365_v57  ;;  %vm603_vm0 = vmor %vm601_vm15, %vm602_vm14 }
  0xd2   :  { %1083 = vrcp.f32 %v539_v56  ;;  %v622_v17 = vand.u32 2147483648, %v539_v56  ;;  %v620_v19 = vand.u32 2147483647, %v539_v56  ;;  %vm616_vm3 = vweird.f32 %v539_v56 }
  0xd3   :  { %v599_v59 = vmul.f32 %v1078_v45, %v598_v53  ;;  %v463_v63 = vadd.f32 %v1366_v6, %v414_v61  ;;  %v1400_v6 = vpop.f32.mrf.mxu3 }
  0xd4   :  { %v623_v31 = vor.u32 1.1754944e-38, %v622_v17  ;;  %vm621_vm6 = vcmp.eq.f32.partialorder %v620_v19, 8.507059e+37 }
  0xd5   :  { %v600_v62 = vadd.f32 %v1078_v45, %v599_v59  ;;  %v1393_v0 = vpop.f32.mrf.mxu2  ;;  %v1082_v4 = vpop.eup %1081  ;;  %v994_v7 = vmul.f32 -1.442695, %v463_v63 }
  0xd6   :  { %v366_v3 = vpop.f32.mrf.mxu0  ;;  %v540_v12 = vadd.f32 1.0, %v1082_v4 }
  0xd7   :  { %v604_v5 = vsel %vm603_vm0, %v1078_v45, %v600_v62  ;;  %v367_v8 = vadd.f32 %v1356_v28, %v366_v3  ;;  %v415_v9 = vpop.f32.mrf.mxu1  ;;  %1085 = vpow2.f32 %v994_v7 }
  0xd8   :  { %v1084_v10 = vpop.eup %1083  ;;  %v609_v11 = vsel %vm606_vm1, %v608_v2, %v604_v5  ;;  %1087 = vrcp.f32 %v540_v12  ;;  %v637_v39 = vand.u32 2147483648, %v540_v12  ;;  %v635_v42 = vand.u32 2147483647, %v540_v12 }
  0xd9   :  { %795 = vst.msk [vmem:[%s1516_s3 + $0x18] sm:$0xff] %vm791_vm4, %v609_v11  ;;  %v612_v13 = vmul.f32 %v1084_v10, %v539_v56  ;;  %v416_v14 = vadd.f32 %v415_v9, %v367_v8  ;;  %vm617_vm2 = vweird.f32 %v1084_v10  ;;  %vm631_vm8 = vweird.f32 %v540_v12 }
  0xda   :  { %vm618_vm5 = vmor %vm616_vm3, %vm617_vm2  ;;  %v638_v54 = vor.u32 1.1754944e-38, %v637_v39  ;;  %vm636_vm10 = vcmp.eq.f32.partialorder %v635_v42, 8.507059e+37  ;;  %v385_v39 = vadd.f32 %v1356_v28, %v1385_v50 }
  0xdb   :  { %v613_v15 = vsub.f32 1.0, %v612_v13  ;;  %v465_v16 = vadd.f32 %v1375_v25, %v416_v14  ;;  %v428_v36 = vpop.f32.mrf.mxu3 }
  0xdd   :  { %v614_v18 = vmul.f32 %v1084_v10, %v613_v15  ;;  %v995_v20 = vmul.f32 -1.442695, %v465_v16  ;;  %v1403_v21 = vpop.f32.mrf.mxu2  ;;  %v1086_v24 = vpop.eup %1085 }
  0xde   :  { %v369_v22 = vpop.f32.mrf.mxu0  ;;  %v1088_v30 = vpop.eup %1087  ;;  %v541_v32 = vadd.f32 1.0, %v1086_v24 }
  0xdf   :  { %v615_v26 = vadd.f32 %v1084_v10, %v614_v18  ;;  %1089 = vpow2.f32 %v995_v20  ;;  %v370_v27 = vadd.f32 %v1356_v28, %v369_v22  ;;  %v418_v29 = vpop.f32.mrf.mxu1  ;;  %v627_v33 = vmul.f32 %v1088_v30, %v540_v12 }
  0xe0   :  { %1091 = vrcp.f32 %v541_v32  ;;  %vm632_vm7 = vweird.f32 %v1088_v30  ;;  %v650_v61 = vand.u32 2147483647, %v541_v32  ;;  %vm646_vm12 = vweird.f32 %v541_v32 }
  0xe1   :  { %v619_v25 = vsel %vm618_vm5, %v1084_v10, %v615_v26  ;;  %v419_v34 = vadd.f32 %v418_v29, %v370_v27  ;;  %v628_v37 = vsub.f32 1.0, %v627_v33  ;;  %vm633_vm9 = vmor %vm631_vm8, %vm632_vm7 }
  0xe2   :  { %v624_v35 = vsel %vm621_vm6, %v623_v31, %v619_v25  ;;  %vm651_vm14 = vcmp.eq.f32.partialorder %v650_v61, 8.507059e+37  ;;  %v387_v61 = vadd.f32 %v1356_v28, %v1400_v6 }
  0xe3   :  { %796 = vst.msk [vmem:[%s1516_s3 + $0x20] sm:$0xff] %vm791_vm4, %v624_v35  ;;  %v468_v38 = vadd.f32 %v1383_v44, %v419_v34  ;;  %v629_v41 = vmul.f32 %v1088_v30, %v628_v37  ;;  %v380_v44 = vadd.f32 %v1356_v28, %v1364_v1  ;;  %v652_v1 = vand.u32 2147483648, %v541_v32  ;;  %v430_v63 = vpop.f32.mrf.mxu3 }
  0xe5   :  { %v1090_v40 = vpop.eup %1089  ;;  %v996_v43 = vmul.f32 -1.442695, %v468_v38  ;;  %v1411_v45 = vpop.f32.mrf.mxu2  ;;  %v630_v48 = vadd.f32 %v1088_v30, %v629_v41  ;;  %v429_v60 = vadd.f32 %v428_v36, %v380_v44  ;;  %v653_v12 = vor.u32 1.1754944e-38, %v652_v1 }
  0xe6   :  { %v1413_v46 = vadd.f32 1.0, %v1090_v40  ;;  %v371_v47 = vpop.f32.mrf.mxu0  ;;  %v1092_v52 = vpop.eup %1091 }
  0xe7   :  { %1093 = vpow2.f32 %v996_v43  ;;  %v372_v49 = vadd.f32 %v1356_v28, %v371_v47  ;;  %v420_v51 = vpop.f32.mrf.mxu1  ;;  %v634_v55 = vsel %vm633_vm9, %v1088_v30, %v630_v48  ;;  %v642_v56 = vmul.f32 %v1092_v52, %v541_v32 }
  0xe8   :  { %1095 = vrcp.f32 %v1413_v46  ;;  %v639_v53 = vsel %vm636_vm10, %v638_v54, %v634_v55  ;;  %vm647_vm11 = vweird.f32 %v1092_v52  ;;  %v665_v19 = vand.u32 2147483647, %v1413_v46 }
  0xe9   :  { %v421_v57 = vadd.f32 %v420_v51, %v372_v49  ;;  %797 = vst.msk [vmem:[%s1516_s3 + $0x28] sm:$0xff] %vm791_vm4, %v639_v53  ;;  %v643_v58 = vsub.f32 1.0, %v642_v56  ;;  %vm648_vm13 = vmor %vm646_vm12, %vm647_vm11  ;;  %v667_v20 = vand.u32 2147483648, %v1413_v46  ;;  %vm661_vm0 = vweird.f32 %v1413_v46 }
  0xea   :  { %vm666_vm2 = vcmp.eq.f32.partialorder %v665_v19, 8.507059e+37 }
  0xeb   :  { %v470_v59 = vadd.f32 %v1393_v0, %v421_v57  ;;  %v644_v2 = vmul.f32 %v1092_v52, %v643_v58  ;;  %v382_v0 = vadd.f32 %v1356_v28, %v1373_v23  ;;  %v668_v32 = vor.u32 1.1754944e-38, %v667_v20  ;;  %v433_v34 = vpop.f32.mrf.mxu3 }
  0xec   :  { %v434_v51 = vadd.f32 %v433_v34, %v385_v39 }
  0xed   :  { %v1094_v62 = vpop.eup %1093  ;;  %v997_v3 = vmul.f32 -1.442695, %v470_v59  ;;  %v477_v4 = vpop.f32.mrf.mxu2  ;;  %v645_v10 = vadd.f32 %v1092_v52, %v644_v2  ;;  %v431_v24 = vadd.f32 %v430_v63, %v382_v0 }
  0xee   :  { %v1096_v5 = vpop.eup %1095  ;;  %v1424_v7 = vadd.f32 1.0, %v1094_v62  ;;  %v478_v8 = vadd.f32 %v477_v4, %v429_v60  ;;  %v374_v9 = vpop.f32.mrf.mxu0 }
  0xef   :  { %v657_v11 = vmul.f32 %v1096_v5, %v1413_v46  ;;  %1097 = vpow2.f32 %v997_v3  ;;  %v423_v13 = vpop.f32.mrf.mxu1  ;;  %v649_v14 = vsel %vm648_vm13, %v1092_v52, %v645_v10  ;;  %v375_v17 = vadd.f32 %v1356_v28, %v374_v9 }
  0xf0   :  { %1099 = vrcp.f32 %v1424_v7  ;;  %v1000_v16 = vmul.f32 -1.442695, %v478_v8  ;;  %v654_v18 = vsel %vm651_vm14, %v653_v12, %v649_v14  ;;  %vm662_vm15 = vweird.f32 %v1096_v5 }
  0xf1   :  { %v658_v15 = vsub.f32 1.0, %v657_v11  ;;  %798 = vst.msk [vmem:[%s1516_s3 + $0x30] sm:$0xff] %vm791_vm4, %v654_v18  ;;  %v424_v22 = vadd.f32 %v423_v13, %v375_v17  ;;  %vm663_vm1 = vmor %vm661_vm0, %vm662_vm15  ;;  %v682_v43 = vand.u32 2147483648, %v1424_v7  ;;  %v680_v49 = vand.u32 2147483647, %v1424_v7 }
  0xf2   :  { %1101 = vpow2.f32 %v1000_v16  ;;  %vm676_vm5 = vweird.f32 %v1424_v7 }
  0xf3   :  { %v659_v23 = vmul.f32 %v1096_v5, %v658_v15  ;;  %v473_v29 = vadd.f32 %v1403_v21, %v424_v22  ;;  %v683_v56 = vor.u32 1.1754944e-38, %v682_v43  ;;  %vm681_vm7 = vcmp.eq.f32.partialorder %v680_v49, 8.507059e+37  ;;  %v435_v2 = vpop.f32.mrf.mxu3 }
  0xf4   :  { %v436_v10 = vadd.f32 %v435_v2, %v387_v61 }
  0xf5   :  { %v1098_v26 = vpop.eup %1097  ;;  %v660_v27 = vadd.f32 %v1096_v5, %v659_v23  ;;  %v479_v30 = vpop.f32.mrf.mxu2  ;;  %v998_v37 = vmul.f32 -1.442695, %v473_v29 }
  0xf6   :  { %v1100_v31 = vpop.eup %1099  ;;  %v1439_v25 = vadd.f32 1.0, %v1098_v26  ;;  %v480_v33 = vadd.f32 %v479_v30, %v431_v24  ;;  %v376_v38 = vpop.f32.mrf.mxu0 }
  0xf7   :  { %v664_v35 = vsel %vm663_vm1, %v1096_v5, %v660_v27  ;;  %v672_v36 = vmul.f32 %v1100_v31, %v1424_v7  ;;  %v377_v47 = vadd.f32 %v1356_v28, %v376_v38  ;;  %v425_v48 = vpop.f32.mrf.mxu1  ;;  %vm677_vm3 = vweird.f32 %v1100_v31 }
  0xf8   :  { %v669_v40 = vsel %vm666_vm2, %v668_v32, %v664_v35  ;;  %1103 = vrcp.f32 %v1439_v25  ;;  %v1102_v21 = vpop.eup %1101  ;;  %v1001_v42 = vmul.f32 -1.442695, %v480_v33  ;;  %vm678_vm6 = vmor %vm676_vm5, %vm677_vm3  ;;  %v697_v4 = vand.u32 2147483648, %v1439_v25 }
  0xf9   :  { %799 = vst.msk [vmem:[%s1516_s3 + $0x38] sm:$0xff] %vm791_vm4, %v669_v40  ;;  %v673_v41 = vsub.f32 1.0, %v672_v36  ;;  %1105 = vpow2.f32 %v998_v37  ;;  %v1450_v46 = vadd.f32 1.0, %v1102_v21  ;;  %v426_v44 = vadd.f32 %v425_v48, %v377_v47 }
  0xfa   :  { %1107 = vpow2.f32 %v1001_v42  ;;  %vm691_vm9 = vweird.f32 %v1439_v25  ;;  %v698_v0 = vor.u32 1.1754944e-38, %v697_v4 }
  0xfb   :  { %v674_v50 = vmul.f32 %v1100_v31, %v673_v41  ;;  %1109 = vrcp.f32 %v1450_v46  ;;  %v475_v60 = vadd.f32 %v1411_v45, %v426_v44  ;;  %v695_v45 = vand.u32 2147483647, %v1439_v25 }
  0xfc   :  { %v740_v14 = vand.u32 2147483647, %v1450_v46  ;;  %v742_v15 = vand.u32 2147483648, %v1450_v46  ;;  %vm736_vm13 = vweird.f32 %v1450_v46 }
  0xfd   :  { %v675_v52 = vadd.f32 %v1100_v31, %v674_v50  ;;  %v482_v54 = vpop.f32.mrf.mxu2  ;;  %v999_v5 = vmul.f32 -1.442695, %v475_v60  ;;  %vm696_vm11 = vcmp.eq.f32.partialorder %v695_v45, 8.507059e+37 }
  0xfe   :  { %v1104_v55 = vpop.eup %1103  ;;  %v483_v57 = vadd.f32 %v482_v54, %v434_v51  ;;  %vm741_vm15 = vcmp.eq.f32.partialorder %v740_v14, 8.507059e+37  ;;  %v743_v27 = vor.u32 1.1754944e-38, %v742_v15 }
  0xff   :  { %v1106_v53 = vpop.eup %1105  ;;  %v679_v58 = vsel %vm678_vm6, %v1100_v31, %v675_v52  ;;  %v687_v59 = vmul.f32 %v1104_v55, %v1439_v25  ;;  %vm692_vm8 = vweird.f32 %v1104_v55 }
 0x100   :  { %v684_v1 = vsel %vm681_vm7, %v683_v56, %v679_v58  ;;  %v1460_v62 = vadd.f32 1.0, %v1106_v53  ;;  %v1108_v63 = vpop.eup %1107  ;;  %v1002_v28 = vmul.f32 -1.442695, %v483_v57  ;;  %vm693_vm10 = vmor %vm691_vm9, %vm692_vm8 }
 0x101   :  { %800 = vst.msk [vmem:[%s1516_s3 + $0x40] sm:$0xff] %vm791_vm4, %v684_v1  ;;  %v688_v3 = vsub.f32 1.0, %v687_v59  ;;  %v1110_v7 = vpop.eup %1109  ;;  %v1470_v9 = vadd.f32 1.0, %v1108_v63 }
 0x102   :  { %1111 = vrcp.f32 %v1460_v62  ;;  %v732_v8 = vmul.f32 %v1110_v7, %v1450_v46  ;;  %vm737_vm12 = vweird.f32 %v1110_v7  ;;  %v712_v32 = vand.u32 2147483648, %v1460_v62 }
 0x103   :  { %v689_v6 = vmul.f32 %v1104_v55, %v688_v3  ;;  %1113 = vpow2.f32 %v999_v5  ;;  %vm738_vm14 = vmor %vm736_vm13, %vm737_vm12  ;;  %v710_v37 = vand.u32 2147483647, %v1460_v62  ;;  %vm706_vm1 = vweird.f32 %v1460_v62 }
 0x104   :  { %v733_v12 = vsub.f32 1.0, %v732_v8  ;;  %1115 = vrcp.f32 %v1470_v9  ;;  %v713_v21 = vor.u32 1.1754944e-38, %v712_v32  ;;  %v757_v41 = vand.u32 2147483648, %v1470_v9 }
 0x105   :  { %v690_v11 = vadd.f32 %v1104_v55, %v689_v6  ;;  %v484_v13 = vpop.f32.mrf.mxu2  ;;  %1117 = vpow2.f32 %v1002_v28  ;;  %v755_v46 = vand.u32 2147483647, %v1470_v9  ;;  %vm711_vm5 = vcmp.eq.f32.partialorder %v710_v37, 8.507059e+37 }
 0x106   :  { %v485_v16 = vadd.f32 %v484_v13, %v436_v10  ;;  %v734_v18 = vmul.f32 %v1110_v7, %v733_v12  ;;  %vm751_vm6 = vweird.f32 %v1470_v9  ;;  %v758_v52 = vor.u32 1.1754944e-38, %v757_v41 }
 0x107   :  { %v694_v17 = vsel %vm693_vm10, %v1104_v55, %v690_v11  ;;  %vm756_vm8 = vcmp.eq.f32.partialorder %v755_v46, 8.507059e+37 }
 0x108   :  { %v1112_v19 = vpop.eup %1111  ;;  %v699_v20 = vsel %vm696_vm11, %v698_v0, %v694_v17  ;;  %v1003_v23 = vmul.f32 -1.442695, %v485_v16  ;;  %v735_v22 = vadd.f32 %v1110_v7, %v734_v18 }
 0x109   :  { %801 = vst.msk [vmem:[%s1516_s3 + $0x48] sm:$0xff] %vm791_vm4, %v699_v20  ;;  %v702_v24 = vmul.f32 %v1112_v19, %v1460_v62  ;;  %v1114_v26 = vpop.eup %1113  ;;  %vm707_vm0 = vweird.f32 %v1112_v19 }
 0x10a   :  { %1119 = vpow2.f32 %v1003_v23  ;;  %v1116_v29 = vpop.eup %1115  ;;  %v739_v30 = vsel %vm738_vm14, %v1110_v7, %v735_v22  ;;  %v546_v25 = vadd.f32 1.0, %v1114_v26  ;;  %vm708_vm2 = vmor %vm706_vm1, %vm707_vm0 }
 0x10b   :  { %v703_v31 = vsub.f32 1.0, %v702_v24  ;;  %v1118_v33 = vpop.eup %1117  ;;  %v744_v34 = vsel %vm741_vm15, %v743_v27, %v739_v30  ;;  %v747_v35 = vmul.f32 %v1116_v29, %v1470_v9  ;;  %vm752_vm3 = vweird.f32 %v1116_v29 }
 0x10c   :  { %804 = vst.msk [vmem:[%s1516_s3 + $0x60] sm:$0xff] %vm791_vm4, %v744_v34  ;;  %1121 = vrcp.f32 %v546_v25  ;;  %v549_v39 = vadd.f32 1.0, %v1118_v33  ;;  %vm753_vm7 = vmor %vm751_vm6, %vm752_vm3  ;;  %v727_v53 = vand.u32 2147483648, %v546_v25  ;;  %v725_v60 = vand.u32 2147483647, %v546_v25 }
 0x10d   :  { %v704_v36 = vmul.f32 %v1112_v19, %v703_v31  ;;  %v748_v38 = vsub.f32 1.0, %v747_v35  ;;  %vm721_vm10 = vweird.f32 %v546_v25 }
 0x10e   :  { %1123 = vrcp.f32 %v549_v39  ;;  %v772_v63 = vand.u32 2147483648, %v549_v39  ;;  %v728_v3 = vor.u32 1.1754944e-38, %v727_v53  ;;  %v770_v5 = vand.u32 2147483647, %v549_v39 }
 0x10f   :  { %v705_v40 = vadd.f32 %v1112_v19, %v704_v36  ;;  %v749_v43 = vmul.f32 %v1116_v29, %v748_v38  ;;  %vm726_vm13 = vcmp.eq.f32.partialorder %v725_v60, 8.507059e+37  ;;  %vm766_vm14 = vweird.f32 %v549_v39 }
 0x110   :  { %v1120_v42 = vpop.eup %1119  ;;  %v773_v9 = vor.u32 1.1754944e-38, %v772_v63  ;;  %vm771_vm1 = vcmp.eq.f32.partialorder %v770_v5, 8.507059e+37 }
 0x111   :  { %v709_v47 = vsel %vm708_vm2, %v1112_v19, %v705_v40  ;;  %v550_v48 = vadd.f32 1.0, %v1120_v42  ;;  %v750_v49 = vadd.f32 %v1116_v29, %v749_v43 }
 0x112   :  { %v714_v50 = vsel %vm711_vm5, %v713_v21, %v709_v47  ;;  %v1122_v51 = vpop.eup %1121 }
 0x113   :  { %802 = vst.msk [vmem:[%s1516_s3 + $0x50] sm:$0xff] %vm791_vm4, %v714_v50  ;;  %1125 = vrcp.f32 %v550_v48  ;;  %v754_v44 = vsel %vm753_vm7, %v1116_v29, %v750_v49  ;;  %v717_v54 = vmul.f32 %v1122_v51, %v546_v25  ;;  %vm722_vm9 = vweird.f32 %v1122_v51 }
 0x114   :  { %v759_v55 = vsel %vm756_vm8, %v758_v52, %v754_v44  ;;  %v1124_v56 = vpop.eup %1123  ;;  %vm723_vm11 = vmor %vm721_vm10, %vm722_vm9  ;;  %v787_v8 = vand.u32 2147483648, %v550_v48  ;;  %v785_v11 = vand.u32 2147483647, %v550_v48  ;;  %vm781_vm2 = vweird.f32 %v550_v48 }
 0x115   :  { %805 = vst.msk [vmem:[%s1516_s3 + $0x68] sm:$0xff] %vm791_vm4, %v759_v55  ;;  %v718_v57 = vsub.f32 1.0, %v717_v54  ;;  %v762_v58 = vmul.f32 %v1124_v56, %v549_v39  ;;  %vm767_vm12 = vweird.f32 %v1124_v56 }
 0x116   :  { %vm768_vm15 = vmor %vm766_vm14, %vm767_vm12  ;;  %v788_v14 = vor.u32 1.1754944e-38, %v787_v8  ;;  %vm786_vm5 = vcmp.eq.f32.partialorder %v785_v11, 8.507059e+37 }
 0x117   :  { %v719_v59 = vmul.f32 %v1122_v51, %v718_v57  ;;  %v763_v1 = vsub.f32 1.0, %v762_v58 }
 0x119   :  { %v1126_v61 = vpop.eup %1125  ;;  %v720_v62 = vadd.f32 %v1122_v51, %v719_v59  ;;  %v764_v4 = vmul.f32 %v1124_v56, %v763_v1 }
 0x11a   :  { %v777_v2 = vmul.f32 %v1126_v61, %v550_v48  ;;  %vm782_vm0 = vweird.f32 %v1126_v61 }
 0x11b   :  { %v724_v7 = vsel %vm723_vm11, %v1122_v51, %v720_v62  ;;  %v765_v6 = vadd.f32 %v1124_v56, %v764_v4  ;;  %vm783_vm3 = vmor %vm781_vm2, %vm782_vm0 }
 0x11c   :  { %v778_v45 = vsub.f32 1.0, %v777_v2  ;;  %v729_v28 = vsel %vm726_vm13, %v728_v3, %v724_v7 }
 0x11d   :  { %803 = vst.msk [vmem:[%s1516_s3 + $0x58] sm:$0xff] %vm791_vm4, %v729_v28  ;;  %v769_v0 = vsel %vm768_vm15, %v1124_v56, %v765_v6 }
 0x11e   :  { %v779_v10 = vmul.f32 %v1126_v61, %v778_v45  ;;  %v774_v12 = vsel %vm771_vm1, %v773_v9, %v769_v0 }
 0x11f   :  { %806 = vst.msk [vmem:[%s1516_s3 + $0x70] sm:$0xff] %vm791_vm4, %v774_v12 }
 0x120   :  { %v780_v13 = vadd.f32 %v1126_v61, %v779_v10 }
 0x122   :  { %v784_v15 = vsel %vm783_vm3, %v1126_v61, %v780_v13 }
 0x123   :  { %v789_v16 = vsel %vm786_vm5, %v788_v14, %v784_v15 }
 0x124   :  { %807 = vst.msk [vmem:[%s1516_s3 + $0x78] sm:$0xff] %vm791_vm4, %v789_v16 }

// kernel: phdnet_forward.40
= control target key start
LH: loop header
LB: loop body
LE: loop exit
PB: predicated region body
PF: predicated region fallthrough
CT: control target
= control target key end

     0   :  { %v412_v0 = vmov 1   ;;  %v413_v3 = vmov 0   ;;  %vm281_vm0 = vcmask 130048   ;;  %s669_s2 = inlined_call_operand.vmem [shape: f32[128,3], index: 2, kind: input, shape index: {}]   ;;  %s670_s4 = inlined_call_operand.vmem [shape: f32[1,16], index: 4, kind: input, shape index: {}]   ;;  %s671_s3 = inlined_call_operand.vmem [shape: bf16[16,16], index: 3, kind: input, shape index: {}]   ;;  %s672_s1 = inlined_call_operand.vmem [shape: f32[128,16], index: 1, kind: input, shape index: {}]   ;;  %s673_s0 = inlined_call_operand.vmem [shape: f32[128,16], index: 0, kind: input, shape index: {}]   ;;  %s674_s5 = inlined_call_operand.vmem [shape: f32[128,16], index: 5, kind: output, shape index: {}]  }
   0x1   :  { %395 = vset.pattern.permute.xlu0 %v412_v0  ;;  %394 = vset.pattern.permute.xlu2 %v412_v0  ;;  %v33_v1 = vld [vmem:[%s669_s2 + $0x60] sm:$0xff]  ;;  %v35_v4 = vld [vmem:[%s669_s2 + $0x70] sm:$0xff]  ;;  %v34_v5 = vld [vmem:[%s669_s2 + $0x68] sm:$0xff] }
   0x2   :  { %v29_v2 = vld [vmem:[%s669_s2 + $0x40] sm:$0xff]  ;;  %393 = vset.pattern.permute.xlu1 %v413_v3  ;;  %214 = vperm.xlu0 %395, %v33_v1   ;;  %v30_v6 = vld [vmem:[%s669_s2 + $0x48] sm:$0xff]  ;;  %v31_v11 = vld [vmem:[%s669_s2 + $0x50] sm:$0xff] }
   0x3   :  { %115 = vperm.xlu1 %393, %v33_v1   ;;  %198 = vperm.xlu2 %394, %v29_v2   ;;  %v21_v7 = vld [vmem:[%s669_s2] sm:$0xff]  ;;  %v22_v9 = vld [vmem:[%s669_s2 + $0x8] sm:$0xff]  ;;  %v36_v12 = vld [vmem:[%s669_s2 + $0x78] sm:$0xff] }
   0x4   :  { %v25_v8 = vld [vmem:[%s669_s2 + $0x20] sm:$0xff]  ;;  %v26_v10 = vld [vmem:[%s669_s2 + $0x28] sm:$0xff]  ;;  %v32_v13 = vld [vmem:[%s669_s2 + $0x58] sm:$0xff] }
   0x5   :  { %v28_v14 = vld [vmem:[%s669_s2 + $0x38] sm:$0xff]  ;;  %v23_v15 = vld [vmem:[%s669_s2 + $0x10] sm:$0xff]  ;;  %v387_v19 = vld [vmem:[%s671_s3] sm:$0xff] }
   0x6   :  { %v27_v16 = vld [vmem:[%s669_s2 + $0x30] sm:$0xff]  ;;  %v24_v17 = vld [vmem:[%s669_s2 + $0x18] sm:$0xff]  ;;  %390 = vmatpush.bf16.msra.mxu3 %v387_v19  ;;  %389 = vmatpush.bf16.msra.mxu2 %v387_v19  ;;  %v161_v27 = vld [vmem:[%s672_s1 + $0x60] sm:$0xff] }
   0x7   :  { %313 = vmatpush.bf16.msra.mxu0 %v387_v19  ;;  %388 = vmatpush.bf16.msra.mxu1 %v387_v19  ;;  %v49_v28 = vld [vmem:[%s673_s0 + $0x60] sm:$0xff]  ;;  %v50_v29 = vld [vmem:[%s673_s0 + $0x68] sm:$0xff]  ;;  %v160_v19 = vld [vmem:[%s672_s1 + $0x58] sm:$0xff] }
   0x8   :  { %v162_v30 = vld [vmem:[%s672_s1 + $0x68] sm:$0xff]  ;;  %v45_v40 = vld [vmem:[%s673_s0 + $0x40] sm:$0xff] }
   0x9   :  { %v157_v42 = vld [vmem:[%s672_s1 + $0x40] sm:$0xff]  ;;  %v158_v43 = vld [vmem:[%s672_s1 + $0x48] sm:$0xff] }
   0xa   :  { %222 = vperm.xlu0 %395, %v35_v4   ;;  %v46_v44 = vld [vmem:[%s673_s0 + $0x48] sm:$0xff]  ;;  %v37_v57 = vld [vmem:[%s673_s0] sm:$0xff] }
   0xb   :  { %120 = vperm.xlu1 %393, %v34_v5   ;;  %202 = vperm.xlu2 %394, %v30_v6   ;;  %v150_v54 = vld [vmem:[%s672_s1 + $0x8] sm:$0xff]  ;;  %v149_v58 = vld [vmem:[%s672_s1] sm:$0xff] }
   0xc   :  { %v38_v56 = vld [vmem:[%s673_s0 + $0x8] sm:$0xff] }
  0x12   :  { %405 = vset.pattern.permute.xlu0 %v413_v3 }
  0x13   :  { %396 = vset.pattern.permute.xlu1 %v412_v0  ;;  %397 = vset.pattern.permute.xlu2 %v413_v3 }
  0x14   :  { %218 = vperm.xlu1 %396, %v34_v5   ;;  %95 = vperm.xlu0 %405, %v29_v2   ;;  %v154_v2 = vld [vmem:[%s672_s1 + $0x28] sm:$0xff]  ;;  %v41_v5 = vld [vmem:[%s673_s0 + $0x20] sm:$0xff] }
  0x15   :  { %55 = vperm.xlu2 %397, %v21_v7  }
  0x1c   :  { %398 = vset.pattern.permute.xlu1 %v413_v3  ;;  %100 = vperm.xlu0 %405, %v30_v6  }
  0x1d   :  { %75 = vperm.xlu2 %397, %v25_v8   ;;  %60 = vperm.xlu1 %398, %v22_v9  }
  0x24   :  { %80 = vperm.xlu0 %405, %v26_v10  }
  0x25   :  { %400 = vset.pattern.permute.xlu2 %v412_v0  ;;  %399 = vset.pattern.permute.xlu1 %v412_v0 }
  0x26   :  { %170 = vperm.xlu2 %400, %v22_v9   ;;  %166 = vperm.xlu1 %399, %v21_v7  }
  0x2c   :  { %105 = vperm.xlu0 %405, %v31_v11  }
  0x2e   :  { %186 = vperm.xlu2 %400, %v26_v10   ;;  %182 = vperm.xlu1 %399, %v25_v8   ;;  %v153_v8 = vld [vmem:[%s672_s1 + $0x20] sm:$0xff] }
  0x34   :  { %130 = vperm.xlu0 %405, %v36_v12  }
  0x36   :  { %402 = vset.pattern.permute.xlu2 %v413_v3  ;;  %401 = vset.pattern.permute.xlu1 %v413_v3 }
  0x37   :  { %125 = vperm.xlu2 %402, %v35_v4   ;;  %110 = vperm.xlu1 %401, %v32_v13  }
  0x3c   :  { %90 = vperm.xlu0 %405, %v28_v14  }
  0x3f   :  { %404 = vset.pattern.permute.xlu2 %v412_v0  ;;  %403 = vset.pattern.permute.xlu1 %v412_v0 }
  0x40   :  { %210 = vperm.xlu2 %404, %v32_v13   ;;  %206 = vperm.xlu1 %403, %v31_v11  }
  0x44   :  { %410 = vset.pattern.permute.xlu0 %v412_v0 }
  0x48   :  { %406 = vset.pattern.permute.xlu2 %v413_v3  ;;  %226 = vperm.xlu1 %403, %v36_v12  }
  0x49   :  { %65 = vperm.xlu2 %406, %v23_v15  }
  0x50   :  { %407 = vset.pattern.permute.xlu1 %v413_v3  ;;  %v42_v3 = vld [vmem:[%s673_s0 + $0x28] sm:$0xff] }
  0x51   :  { %85 = vperm.xlu2 %406, %v27_v16   ;;  %70 = vperm.xlu1 %407, %v24_v17  }
  0x59   :  { %409 = vset.pattern.permute.xlu2 %v412_v0  ;;  %408 = vset.pattern.permute.xlu1 %v412_v0 }
  0x5a   :  { %178 = vperm.xlu2 %409, %v24_v17   ;;  %174 = vperm.xlu1 %408, %v23_v15  }
  0x5d   :  { %v199_v18 = vpop.permute.xlu2 %198 }
  0x5e   :  { %v237_v47 = vmul.f32 %v199_v18, %v157_v42 }
  0x62   :  { %194 = vperm.xlu2 %409, %v28_v14   ;;  %190 = vperm.xlu1 %408, %v27_v16  }
  0x65   :  { %v203_v20 = vpop.permute.xlu2 %202 }
  0x66   :  { %v238_v48 = vmul.f32 %v203_v20, %v158_v43  ;;  %v48_v20 = vld [vmem:[%s673_s0 + $0x58] sm:$0xff] }
  0x6f   :  { %v56_v23 = vpop.permute.xlu2 %55 }
  0x70   :  { %v133_v62 = vmul.f32 %v56_v23, %v37_v57  ;;  %v159_v23 = vld [vmem:[%s672_s1 + $0x50] sm:$0xff] }
  0x74   :  { %v215_v21 = vpop.permute.xlu0 %214 }
  0x75   :  { %v116_v22 = vpop.permute.xlu1 %115  ;;  %v241_v31 = vmul.f32 %v215_v21, %v161_v27 }
  0x76   :  { %v145_v32 = vmul.f32 %v116_v22, %v49_v28  ;;  %v47_v22 = vld [vmem:[%s673_s0 + $0x50] sm:$0xff] }
  0x77   :  { %v76_v26 = vpop.permute.xlu2 %75 }
  0x78   :  { %v257_v37 = vadd.f32 %v241_v31, %v145_v32  ;;  %v137_v12 = vmul.f32 %v76_v26, %v41_v5 }
  0x7c   :  { %v495_v24 = vpop.permute.xlu0 %222 }
  0x7d   :  { %v121_v25 = vpop.permute.xlu1 %120 }
  0x7e   :  { %v146_v35 = vmul.f32 %v121_v25, %v50_v29 }
  0x80   :  { %v171_v39 = vpop.permute.xlu2 %170 }
  0x81   :  { %v230_v59 = vmul.f32 %v171_v39, %v150_v54 }
  0x86   :  { %v219_v33 = vpop.permute.xlu1 %218  ;;  %v96_v34 = vpop.permute.xlu0 %95 }
  0x87   :  { %v242_v36 = vmul.f32 %v219_v33, %v162_v30  ;;  %v141_v45 = vmul.f32 %v96_v34, %v45_v40  ;;  %v163_v33 = vld [vmem:[%s672_s1 + $0x70] sm:$0xff] }
  0x88   :  { %v187_v55 = vpop.permute.xlu2 %186  ;;  %v51_v34 = vld [vmem:[%s673_s0 + $0x70] sm:$0xff] }
  0x89   :  { %v258_v38 = vadd.f32 %v242_v36, %v146_v35  ;;  %v253_v51 = vadd.f32 %v237_v47, %v141_v45  ;;  %v234_v9 = vmul.f32 %v187_v55, %v154_v2  ;;  %v52_v36 = vld [vmem:[%s673_s0 + $0x78] sm:$0xff]  ;;  %v155_v2 = vld [vmem:[%s672_s1 + $0x30] sm:$0xff] }
  0x8b   :  { %v267_v41 = vpack.c.bf16 %v258_v38, %v257_v37  ;;  %v164_v37 = vld [vmem:[%s672_s1 + $0x78] sm:$0xff]  ;;  %v243_v38 = vmul.f32 %v495_v24, %v163_v33 }
  0x8c   :  { %v40_v24 = vld [vmem:[%s673_s0 + $0x18] sm:$0xff] }
  0x8d   :  { %385 = vmatmul.msk.bf16.vlgmr.msra.gmra.mxu3 %vm281_vm0, %v267_v41 }
  0x8e   :  { %v101_v46 = vpop.permute.xlu0 %100 }
  0x8f   :  { %v142_v49 = vmul.f32 %v101_v46, %v46_v44  ;;  %v61_v50 = vpop.permute.xlu1 %60 }
  0x90   :  { %v134_v60 = vmul.f32 %v61_v50, %v38_v56  ;;  %v152_v50 = vld [vmem:[%s672_s1 + $0x18] sm:$0xff] }
  0x91   :  { %v254_v52 = vadd.f32 %v238_v48, %v142_v49  ;;  %v126_v6 = vpop.permute.xlu2 %125 }
  0x92   :  { %v246_v0 = vadd.f32 %v230_v59, %v134_v60  ;;  %v147_v39 = vmul.f32 %v126_v6, %v51_v34 }
  0x93   :  { %v265_v53 = vpack.c.bf16 %v254_v52, %v253_v51  ;;  %v39_v51 = vld [vmem:[%s673_s0 + $0x10] sm:$0xff] }
  0x94   :  { %v259_v45 = vadd.f32 %v243_v38, %v147_v39  ;;  %v151_v52 = vld [vmem:[%s672_s1 + $0x10] sm:$0xff] }
  0x95   :  { %383 = vmatmul.msk.bf16.vlgmr.msra.gmra.mxu2 %vm281_vm0, %v265_v53 }
  0x96   :  { %v81_v7 = vpop.permute.xlu0 %80 }
  0x97   :  { %v138_v10 = vmul.f32 %v81_v7, %v42_v3 }
  0x98   :  { %v167_v61 = vpop.permute.xlu1 %166 }
  0x99   :  { %v229_v63 = vmul.f32 %v167_v61, %v149_v58  ;;  %v250_v14 = vadd.f32 %v234_v9, %v138_v10  ;;  %v156_v61 = vld [vmem:[%s672_s1 + $0x38] sm:$0xff] }
  0x9a   :  { %v211_v17 = vpop.permute.xlu2 %210 }
  0x9b   :  { %v245_v1 = vadd.f32 %v229_v63, %v133_v62  ;;  %v240_v25 = vmul.f32 %v211_v17, %v160_v19  ;;  %v43_v63 = vld [vmem:[%s673_s0 + $0x30] sm:$0xff] }
  0x9d   :  { %v261_v4 = vpack.c.bf16 %v246_v0, %v245_v1  ;;  %v44_v1 = vld [vmem:[%s673_s0 + $0x38] sm:$0xff] }
  0x9e   :  { %v106_v21 = vpop.permute.xlu0 %105 }
  0x9f   :  { %379 = vmatmul.msk.bf16.vlgmr.msra.gmra.mxu0 %vm281_vm0, %v261_v4  ;;  %v143_v29 = vmul.f32 %v106_v21, %v47_v22 }
  0xa0   :  { %v183_v11 = vpop.permute.xlu1 %182 }
  0xa1   :  { %v233_v13 = vmul.f32 %v183_v11, %v153_v8  ;;  %v411_v11 = vld [vmem:[%s670_s4] ss:$0 sm:$0xff] }
  0xa3   :  { %v249_v15 = vadd.f32 %v233_v13, %v137_v12  ;;  %v66_v27 = vpop.permute.xlu2 %65 }
  0xa4   :  { %v135_v56 = vmul.f32 %v66_v27, %v39_v51 }
  0xa5   :  { %v263_v16 = vpack.c.bf16 %v250_v14, %v249_v15 }
  0xa6   :  { %v131_v40 = vpop.permute.xlu0 %130 }
  0xa7   :  { %381 = vmatmul.msk.bf16.vlgmr.msra.gmra.mxu1 %vm281_vm0, %v263_v16  ;;  %v148_v42 = vmul.f32 %v131_v40, %v52_v36 }
  0xa9   :  { %v111_v18 = vpop.permute.xlu1 %110 }
  0xaa   :  { %v144_v26 = vmul.f32 %v111_v18, %v48_v20 }
  0xab   :  { %v86_v44 = vpop.permute.xlu2 %85 }
  0xac   :  { %v256_v31 = vadd.f32 %v240_v25, %v144_v26  ;;  %v139_v5 = vmul.f32 %v86_v44, %v43_v63 }
  0xae   :  { %v91_v0 = vpop.permute.xlu0 %90 }
  0xaf   :  { %v140_v6 = vmul.f32 %v91_v0, %v44_v1 }
  0xb2   :  { %v207_v28 = vpop.permute.xlu1 %206 }
  0xb3   :  { %v239_v30 = vmul.f32 %v207_v28, %v159_v23 }
  0xb4   :  { %v179_v49 = vpop.permute.xlu2 %178 }
  0xb5   :  { %v255_v32 = vadd.f32 %v239_v30, %v143_v29  ;;  %v232_v53 = vmul.f32 %v179_v49, %v152_v50 }
  0xb7   :  { %v266_v35 = vpack.c.bf16 %v256_v31, %v255_v32 }
  0xb9   :  { %384 = vmatmul.msk.bf16.gmra.mxu2 %vm281_vm0, %v266_v35 }
  0xba   :  { %v227_v41 = vpop.permute.xlu1 %226 }
  0xbb   :  { %v244_v43 = vmul.f32 %v227_v41, %v164_v37 }
  0xbc   :  { %v195_v60 = vpop.permute.xlu2 %194 }
  0xbd   :  { %v260_v46 = vadd.f32 %v244_v43, %v148_v42  ;;  %v236_v3 = vmul.f32 %v195_v60, %v156_v61 }
  0xbf   :  { %v268_v47 = vpack.c.bf16 %v260_v46, %v259_v45  ;;  %v252_v8 = vadd.f32 %v236_v3, %v140_v6 }
  0xc1   :  { %386 = vmatmul.msk.bf16.gmra.mxu3 %vm281_vm0, %v268_v47 }
  0xc3   :  { %v71_v48 = vpop.permute.xlu1 %70 }
  0xc4   :  { %v136_v54 = vmul.f32 %v71_v48, %v40_v24 }
  0xc6   :  { %v248_v58 = vadd.f32 %v232_v53, %v136_v54 }
  0xcc   :  { %v175_v55 = vpop.permute.xlu1 %174 }
  0xcd   :  { %v231_v57 = vmul.f32 %v175_v55, %v151_v52 }
  0xcf   :  { %v247_v59 = vadd.f32 %v231_v57, %v135_v56 }
  0xd1   :  { %v262_v62 = vpack.c.bf16 %v248_v58, %v247_v59 }
  0xd3   :  { %380 = vmatmul.msk.bf16.gmra.mxu0 %vm281_vm0, %v262_v62 }
  0xd4   :  { %v191_v4 = vpop.permute.xlu1 %190 }
  0xd5   :  { %v235_v7 = vmul.f32 %v191_v4, %v155_v2 }
  0xd7   :  { %v251_v9 = vadd.f32 %v235_v7, %v139_v5 }
  0xd9   :  { %v264_v10 = vpack.c.bf16 %v252_v8, %v251_v9 }
  0xdb   :  { %382 = vmatmul.msk.bf16.gmra.mxu1 %vm281_vm0, %v264_v10 }
 0x110   :  { %v345_v12 = vpop.f32.mrf.mxu3 }
 0x111   :  { %v346_v13 = vadd.f32 %v411_v11, %v345_v12 }
 0x113   :  { %367 = vst.msk [vmem:[%s674_s5 + $0x60] sm:$0xff] %vm281_vm0, %v346_v13 }
 0x118   :  { %v335_v14 = vpop.f32.mrf.mxu2  ;;  %v347_v15 = vpop.f32.mrf.mxu3 }
 0x119   :  { %v336_v16 = vadd.f32 %v411_v11, %v335_v14  ;;  %v348_v17 = vadd.f32 %v411_v11, %v347_v15 }
 0x11b   :  { %363 = vst.msk [vmem:[%s674_s5 + $0x40] sm:$0xff] %vm281_vm0, %v336_v16 }
 0x11c   :  { %368 = vst.msk [vmem:[%s674_s5 + $0x68] sm:$0xff] %vm281_vm0, %v348_v17  ;;  %v315_v18 = vpop.f32.mrf.mxu0 }
 0x11d   :  { %v316_v19 = vadd.f32 %v411_v11, %v315_v18 }
 0x11f   :  { %355 = vst.msk [vmem:[%s674_s5] sm:$0xff] %vm281_vm0, %v316_v19 }
 0x120   :  { %v337_v20 = vpop.f32.mrf.mxu2 }
 0x121   :  { %v338_v21 = vadd.f32 %v411_v11, %v337_v20 }
 0x123   :  { %364 = vst.msk [vmem:[%s674_s5 + $0x48] sm:$0xff] %vm281_vm0, %v338_v21 }
 0x124   :  { %v317_v22 = vpop.f32.mrf.mxu0  ;;  %v325_v23 = vpop.f32.mrf.mxu1 }
 0x125   :  { %v318_v25 = vadd.f32 %v411_v11, %v317_v22  ;;  %v326_v26 = vadd.f32 %v411_v11, %v325_v23 }
 0x127   :  { %356 = vst.msk [vmem:[%s674_s5 + $0x8] sm:$0xff] %vm281_vm0, %v318_v25 }
 0x128   :  { %359 = vst.msk [vmem:[%s674_s5 + $0x20] sm:$0xff] %vm281_vm0, %v326_v26 }
 0x12c   :  { %v327_v27 = vpop.f32.mrf.mxu1 }
 0x12d   :  { %v328_v28 = vadd.f32 %v411_v11, %v327_v27 }
 0x12f   :  { %360 = vst.msk [vmem:[%s674_s5 + $0x28] sm:$0xff] %vm281_vm0, %v328_v28 }
 0x13c   :  { %v340_v29 = vpop.f32.mrf.mxu2 }
 0x13d   :  { %v341_v30 = vadd.f32 %v411_v11, %v340_v29 }
 0x13f   :  { %365 = vst.msk [vmem:[%s674_s5 + $0x50] sm:$0xff] %vm281_vm0, %v341_v30 }
 0x144   :  { %v342_v31 = vpop.f32.mrf.mxu2  ;;  %v350_v32 = vpop.f32.mrf.mxu3 }
 0x145   :  { %v343_v33 = vadd.f32 %v411_v11, %v342_v31  ;;  %v351_v34 = vadd.f32 %v411_v11, %v350_v32 }
 0x147   :  { %366 = vst.msk [vmem:[%s674_s5 + $0x58] sm:$0xff] %vm281_vm0, %v343_v33 }
 0x148   :  { %369 = vst.msk [vmem:[%s674_s5 + $0x70] sm:$0xff] %vm281_vm0, %v351_v34 }
 0x14c   :  { %v352_v35 = vpop.f32.mrf.mxu3 }
 0x14d   :  { %v353_v36 = vadd.f32 %v411_v11, %v352_v35 }
 0x14f   :  { %370 = vst.msk [vmem:[%s674_s5 + $0x78] sm:$0xff] %vm281_vm0, %v353_v36 }
 0x150   :  { %v320_v37 = vpop.f32.mrf.mxu0 }
 0x151   :  { %v321_v38 = vadd.f32 %v411_v11, %v320_v37 }
 0x153   :  { %357 = vst.msk [vmem:[%s674_s5 + $0x10] sm:$0xff] %vm281_vm0, %v321_v38 }
 0x158   :  { %v322_v39 = vpop.f32.mrf.mxu0  ;;  %v330_v40 = vpop.f32.mrf.mxu1 }
 0x159   :  { %v323_v41 = vadd.f32 %v411_v11, %v322_v39  ;;  %v331_v42 = vadd.f32 %v411_v11, %v330_v40 }
 0x15b   :  { %358 = vst.msk [vmem:[%s674_s5 + $0x18] sm:$0xff] %vm281_vm0, %v323_v41 }
 0x15c   :  { %361 = vst.msk [vmem:[%s674_s5 + $0x30] sm:$0xff] %vm281_vm0, %v331_v42 }
 0x160   :  { %v332_v43 = vpop.f32.mrf.mxu1 }
 0x161   :  { %v333_v44 = vadd.f32 %v411_v11, %v332_v43 }
 0x163   :  { %362 = vst.msk [vmem:[%s674_s5 + $0x38] sm:$0xff] %vm281_vm0, %v333_v44 }

// kernel: phdnet_forward.42
= control target key start
LH: loop header
LB: loop body
LE: loop exit
PB: predicated region body
PF: predicated region fallthrough
CT: control target
= control target key end

     0   :  { %vm179_vm0 = vcmask 130048   ;;  %vm318_vm1 = vcmask 15360   ;;  %s718_s1 = inlined_call_operand.vmem [shape: bf16[144,2], index: 1, kind: input, shape index: {}]   ;;  %s719_s0 = inlined_call_operand.vmem [shape: bf16[128,144], index: 0, kind: input, shape index: {}]   ;;  %s720_s2 = inlined_call_operand.vmem [shape: f32[1,2], index: 2, kind: input, shape index: {}]   ;;  %s721_s3 = inlined_call_operand.vmem [shape: f32[128,2], index: 3, kind: output, shape index: {}]  }
   0x1   :  { %v470_v0 = vld [vmem:[%s718_s1 + $0x38] sm:$0xff]  ;;  %v471_v1 = vld [vmem:[%s718_s1 + $0x40] sm:$0xff]  ;;  %v343_v3 = vld [vmem:[%s719_s0 + $0x8] sm:$0xf0] }
   0x2   :  { %v447_v2 = vld [vmem:[%s719_s0 + $0x4] sm:$0xf]  ;;  %204 = vmatpush.bf16.msra.mxu0 %v470_v0  ;;  %472 = vmatpush.bf16.msra.mxu2 %v470_v0  ;;  %v469_v5 = vld [vmem:[%s718_s1 + $0x30] sm:$0xff]  ;;  %v468_v6 = vld [vmem:[%s718_s1 + $0x28] sm:$0xff] }
   0x3   :  { %v346_v4 = vor.u32 %v447_v2, %v343_v3  ;;  %260 = vmatpush.bf16.msra.mxu1 %v471_v1  ;;  %480 = vmatpush.bf16.msra.mxu3 %v471_v1  ;;  %v457_v7 = vld [vmem:[%s719_s0 + $0x54] sm:$0xf]  ;;  %v383_v8 = vld [vmem:[%s719_s0 + $0x58] sm:$0xf0]  ;;  %v467_v10 = vld [vmem:[%s718_s1 + $0x20] sm:$0xff] }
   0x4   :  { %v386_v9 = vor.u32 %v457_v7, %v383_v8  ;;  %v466_v11 = vld [vmem:[%s718_s1 + $0x18] sm:$0xff]  ;;  %v449_v12 = vld [vmem:[%s719_s0 + $0x14] sm:$0xf]  ;;  %v464_v16 = vld [vmem:[%s718_s1 + $0x8] sm:$0xff] }
   0x5   :  { %v351_v13 = vld [vmem:[%s719_s0 + $0x18] sm:$0xf0]  ;;  %v465_v15 = vld [vmem:[%s718_s1 + $0x10] sm:$0xff]  ;;  %v459_v17 = vld [vmem:[%s719_s0 + $0x64] sm:$0xf] }
   0x6   :  { %439 = vmatmul.msk.bf16.vlgmr.msra.gmra.mxu1 %vm179_vm0, %v346_v4  ;;  %205 = vmatpush.bf16.msra.mxu0 %v469_v5  ;;  %v354_v14 = vor.u32 %v449_v12, %v351_v13  ;;  %v391_v18 = vld [vmem:[%s719_s0 + $0x68] sm:$0xf0]  ;;  %v463_v20 = vld [vmem:[%s718_s1] sm:$0xff]  ;;  %v448_v22 = vld [vmem:[%s719_s0 + $0x4] sm:$0xf0] }
   0x7   :  { %473 = vmatpush.bf16.msra.mxu2 %v469_v5  ;;  %444 = vmatmul.msk.bf16.vlgmr.msra.gmra.mxu3 %vm179_vm0, %v386_v9  ;;  %v394_v19 = vor.u32 %v459_v17, %v391_v18  ;;  %v341_v21 = vld [vmem:[%s719_s0] sm:$0xf]  ;;  %v456_v24 = vld [vmem:[%s719_s0 + $0x44] sm:$0xf0]  ;;  %v451_v27 = vld [vmem:[%s719_s0 + $0x24] sm:$0xf] }
   0x8   :  { %v373_v23 = vld [vmem:[%s719_s0 + $0x40] sm:$0xf]  ;;  %v342_v25 = vor.u32 %v448_v22, %v341_v21  ;;  %v359_v28 = vld [vmem:[%s719_s0 + $0x28] sm:$0xf0]  ;;  %v461_v30 = vld [vmem:[%s719_s0 + $0x74] sm:$0xf] }
   0x9   :  { %v374_v26 = vor.u32 %v456_v24, %v373_v23  ;;  %v362_v29 = vor.u32 %v451_v27, %v359_v28  ;;  %v399_v31 = vld [vmem:[%s719_s0 + $0x78] sm:$0xf0]  ;;  %v349_v33 = vld [vmem:[%s719_s0 + $0x10] sm:$0xf]  ;;  %v450_v34 = vld [vmem:[%s719_s0 + $0x14] sm:$0xf0] }
   0xa   :  { %206 = vmatpush.bf16.msra.mxu0 %v468_v6  ;;  %v402_v32 = vor.u32 %v461_v30, %v399_v31  ;;  %v381_v35 = vld [vmem:[%s719_s0 + $0x50] sm:$0xf]  ;;  %v458_v36 = vld [vmem:[%s719_s0 + $0x54] sm:$0xf0]  ;;  %v350_v37 = vor.u32 %v450_v34, %v349_v33  ;;  %v453_v39 = vld [vmem:[%s719_s0 + $0x34] sm:$0xf] }
   0xb   :  { %474 = vmatpush.bf16.msra.mxu2 %v468_v6  ;;  %v382_v38 = vor.u32 %v458_v36, %v381_v35  ;;  %v367_v40 = vld [vmem:[%s719_s0 + $0x38] sm:$0xf0]  ;;  %v357_v42 = vld [vmem:[%s719_s0 + $0x20] sm:$0xf]  ;;  %v452_v43 = vld [vmem:[%s719_s0 + $0x24] sm:$0xf0] }
   0xc   :  { %v370_v41 = vor.u32 %v453_v39, %v367_v40  ;;  %v389_v44 = vld [vmem:[%s719_s0 + $0x60] sm:$0xf]  ;;  %v460_v45 = vld [vmem:[%s719_s0 + $0x64] sm:$0xf0]  ;;  %v358_v46 = vor.u32 %v452_v43, %v357_v42  ;;  %v455_v48 = vld [vmem:[%s719_s0 + $0x44] sm:$0xf] }
   0xd   :  { %v390_v47 = vor.u32 %v460_v45, %v389_v44  ;;  %v375_v49 = vld [vmem:[%s719_s0 + $0x48] sm:$0xf0]  ;;  %v365_v51 = vld [vmem:[%s719_s0 + $0x30] sm:$0xf]  ;;  %v454_v52 = vld [vmem:[%s719_s0 + $0x34] sm:$0xf0] }
   0xe   :  { %207 = vmatpush.bf16.msra.mxu0 %v467_v10  ;;  %v378_v50 = vor.u32 %v455_v48, %v375_v49  ;;  %v397_v53 = vld [vmem:[%s719_s0 + $0x70] sm:$0xf]  ;;  %v462_v54 = vld [vmem:[%s719_s0 + $0x74] sm:$0xf0]  ;;  %v366_v55 = vor.u32 %v454_v52, %v365_v51  ;;  %v636_v61 = vld [vmem:[%s720_s2] ss:$0 sm:$0xff] }
   0xf   :  { %475 = vmatpush.bf16.msra.mxu2 %v467_v10  ;;  %v398_v56 = vor.u32 %v462_v54, %v397_v53 }
  0x12   :  { %208 = vmatpush.bf16.msra.mxu0 %v466_v11 }
  0x13   :  { %476 = vmatpush.bf16.msra.mxu2 %v466_v11 }
  0x16   :  { %440 = vmatmul.msk.bf16.gmra.mxu1 %vm179_vm0, %v354_v14  ;;  %209 = vmatpush.bf16.msra.mxu0 %v465_v15 }
  0x17   :  { %477 = vmatpush.bf16.msra.mxu2 %v465_v15  ;;  %445 = vmatmul.msk.bf16.gmra.mxu3 %vm179_vm0, %v394_v19 }
  0x1a   :  { %210 = vmatpush.bf16.msra.mxu0 %v464_v16 }
  0x1b   :  { %478 = vmatpush.bf16.msra.mxu2 %v464_v16 }
  0x1e   :  { %211 = vmatpush.bf16.msra.mxu0 %v463_v20 }
  0x1f   :  { %479 = vmatpush.bf16.msra.mxu2 %v463_v20 }
  0x21   :  { %212 = vmatmul.bf16.vlgmr.msra.gmra.mxu0 %v342_v25 }
  0x22   :  { %232 = vmatmul.bf16.vlgmr.msra.gmra.mxu2 %v374_v26 }
  0x26   :  { %441 = vmatmul.msk.bf16.gmra.mxu1 %vm179_vm0, %v362_v29 }
  0x27   :  { %446 = vmatmul.msk.bf16.gmra.mxu3 %vm179_vm0, %v402_v32 }
  0x31   :  { %217 = vmatmul.bf16.gmra.mxu0 %v350_v37 }
  0x32   :  { %237 = vmatmul.bf16.gmra.mxu2 %v382_v38 }
  0x36   :  { %442 = vmatmul.msk.bf16.gmra.mxu1 %vm179_vm0, %v370_v41 }
  0x41   :  { %222 = vmatmul.bf16.gmra.mxu0 %v358_v46 }
  0x42   :  { %242 = vmatmul.bf16.gmra.mxu2 %v390_v47 }
  0x46   :  { %443 = vmatmul.msk.bf16.gmra.mxu1 %vm179_vm0, %v378_v50 }
  0x51   :  { %227 = vmatmul.bf16.gmra.mxu0 %v366_v55 }
  0x52   :  { %247 = vmatmul.bf16.gmra.mxu2 %v398_v56 }
  0x83   :  { %v262_v57 = vpop.f32.mrf.mxu1 }
  0x8a   :  { %v287_v10 = vpop.f32.mrf.mxu3 }
  0x8b   :  { %v264_v58 = vpop.f32.mrf.mxu1 }
  0x92   :  { %v289_v20 = vpop.f32.mrf.mxu3 }
  0x93   :  { %v267_v59 = vpop.f32.mrf.mxu1 }
  0x9a   :  { %v292_v32 = vpop.f32.mrf.mxu3 }
  0x9b   :  { %v269_v60 = vpop.f32.mrf.mxu1 }
  0x9e   :  { %v213_v62 = vpop.f32.mrf.mxu0 }
  0x9f   :  { %v214_v63 = vadd.f32 %v636_v61, %v213_v62 }
  0xa1   :  { %v263_v0 = vadd.f32 %v262_v57, %v214_v63 }
  0xa2   :  { %v294_v48 = vpop.f32.mrf.mxu3 }
  0xa3   :  { %v302_v1 = vmax.f32 %v263_v0, 0.0  ;;  %v272_v2 = vpop.f32.mrf.mxu1 }
  0xa5   :  { %319 = vst.msk [vmem:[%s721_s3] sm:$0xff] %vm318_vm1, %v302_v1  ;;  %v233_v3 = vpop.f32.mrf.mxu2 }
  0xa6   :  { %v215_v4 = vpop.f32.mrf.mxu0  ;;  %v234_v33 = vadd.f32 %v636_v61, %v233_v3 }
  0xa7   :  { %v216_v5 = vadd.f32 %v636_v61, %v215_v4 }
  0xa9   :  { %v265_v6 = vadd.f32 %v264_v58, %v216_v5 }
  0xab   :  { %v303_v7 = vmax.f32 %v265_v6, 0.0  ;;  %v274_v8 = vpop.f32.mrf.mxu1 }
  0xad   :  { %320 = vst.msk [vmem:[%s721_s3 + $0x8] sm:$0xff] %vm318_vm1, %v303_v7  ;;  %v235_v9 = vpop.f32.mrf.mxu2 }
  0xae   :  { %v218_v11 = vpop.f32.mrf.mxu0  ;;  %v236_v45 = vadd.f32 %v636_v61, %v235_v9 }
  0xaf   :  { %v219_v12 = vadd.f32 %v636_v61, %v218_v11 }
  0xb1   :  { %v268_v13 = vadd.f32 %v267_v59, %v219_v12 }
  0xb3   :  { %v304_v14 = vmax.f32 %v268_v13, 0.0  ;;  %v277_v15 = vpop.f32.mrf.mxu1 }
  0xb5   :  { %321 = vst.msk [vmem:[%s721_s3 + $0x10] sm:$0xff] %vm318_vm1, %v304_v14  ;;  %v238_v16 = vpop.f32.mrf.mxu2 }
  0xb6   :  { %v239_v17 = vadd.f32 %v636_v61, %v238_v16  ;;  %v220_v18 = vpop.f32.mrf.mxu0 }
  0xb7   :  { %v221_v19 = vadd.f32 %v636_v61, %v220_v18 }
  0xb8   :  { %v288_v21 = vadd.f32 %v287_v10, %v239_v17 }
  0xb9   :  { %v270_v22 = vadd.f32 %v269_v60, %v221_v19  ;;  %v297_v60 = vpop.f32.mrf.mxu3 }
  0xba   :  { %v312_v23 = vmax.f32 %v288_v21, 0.0 }
  0xbb   :  { %v305_v24 = vmax.f32 %v270_v22, 0.0  ;;  %v279_v25 = vpop.f32.mrf.mxu1 }
  0xbc   :  { %329 = vst.msk [vmem:[%s721_s3 + $0x50] sm:$0xff] %vm318_vm1, %v312_v23 }
  0xbd   :  { %322 = vst.msk [vmem:[%s721_s3 + $0x18] sm:$0xff] %vm318_vm1, %v305_v24  ;;  %v240_v26 = vpop.f32.mrf.mxu2 }
  0xbe   :  { %v241_v27 = vadd.f32 %v636_v61, %v240_v26  ;;  %v223_v28 = vpop.f32.mrf.mxu0 }
  0xbf   :  { %v224_v29 = vadd.f32 %v636_v61, %v223_v28 }
  0xc0   :  { %v290_v30 = vadd.f32 %v289_v20, %v241_v27 }
  0xc1   :  { %v273_v31 = vadd.f32 %v272_v2, %v224_v29 }
  0xc2   :  { %v313_v34 = vmax.f32 %v290_v30, 0.0 }
  0xc3   :  { %v306_v35 = vmax.f32 %v273_v31, 0.0  ;;  %v282_v36 = vpop.f32.mrf.mxu1 }
  0xc4   :  { %330 = vst.msk [vmem:[%s721_s3 + $0x58] sm:$0xff] %vm318_vm1, %v313_v34  ;;  %v283_v37 = vadd.f32 %v282_v36, %v234_v33 }
  0xc5   :  { %323 = vst.msk [vmem:[%s721_s3 + $0x20] sm:$0xff] %vm318_vm1, %v306_v35  ;;  %v243_v38 = vpop.f32.mrf.mxu2 }
  0xc6   :  { %v310_v39 = vmax.f32 %v283_v37, 0.0  ;;  %v244_v40 = vadd.f32 %v636_v61, %v243_v38  ;;  %v225_v41 = vpop.f32.mrf.mxu0 }
  0xc7   :  { %v226_v42 = vadd.f32 %v636_v61, %v225_v41 }
  0xc8   :  { %327 = vst.msk [vmem:[%s721_s3 + $0x40] sm:$0xff] %vm318_vm1, %v310_v39  ;;  %v293_v43 = vadd.f32 %v292_v32, %v244_v40 }
  0xc9   :  { %v275_v44 = vadd.f32 %v274_v8, %v226_v42  ;;  %v299_v8 = vpop.f32.mrf.mxu3 }
  0xca   :  { %v314_v46 = vmax.f32 %v293_v43, 0.0 }
  0xcb   :  { %v307_v47 = vmax.f32 %v275_v44, 0.0  ;;  %v284_v49 = vpop.f32.mrf.mxu1 }
  0xcc   :  { %331 = vst.msk [vmem:[%s721_s3 + $0x60] sm:$0xff] %vm318_vm1, %v314_v46  ;;  %v285_v50 = vadd.f32 %v284_v49, %v236_v45 }
  0xcd   :  { %324 = vst.msk [vmem:[%s721_s3 + $0x28] sm:$0xff] %vm318_vm1, %v307_v47  ;;  %v245_v51 = vpop.f32.mrf.mxu2 }
  0xce   :  { %v311_v52 = vmax.f32 %v285_v50, 0.0  ;;  %v246_v53 = vadd.f32 %v636_v61, %v245_v51  ;;  %v228_v54 = vpop.f32.mrf.mxu0 }
  0xcf   :  { %v229_v55 = vadd.f32 %v636_v61, %v228_v54 }
  0xd0   :  { %328 = vst.msk [vmem:[%s721_s3 + $0x48] sm:$0xff] %vm318_vm1, %v311_v52  ;;  %v295_v56 = vadd.f32 %v294_v48, %v246_v53 }
  0xd1   :  { %v278_v57 = vadd.f32 %v277_v15, %v229_v55 }
  0xd2   :  { %v315_v58 = vmax.f32 %v295_v56, 0.0 }
  0xd3   :  { %v308_v59 = vmax.f32 %v278_v57, 0.0 }
  0xd4   :  { %332 = vst.msk [vmem:[%s721_s3 + $0x68] sm:$0xff] %vm318_vm1, %v315_v58 }
  0xd5   :  { %325 = vst.msk [vmem:[%s721_s3 + $0x30] sm:$0xff] %vm318_vm1, %v308_v59  ;;  %v248_v62 = vpop.f32.mrf.mxu2 }
  0xd6   :  { %v249_v63 = vadd.f32 %v636_v61, %v248_v62  ;;  %v230_v0 = vpop.f32.mrf.mxu0 }
  0xd7   :  { %v231_v1 = vadd.f32 %v636_v61, %v230_v0 }
  0xd8   :  { %v298_v2 = vadd.f32 %v297_v60, %v249_v63 }
  0xd9   :  { %v280_v3 = vadd.f32 %v279_v25, %v231_v1 }
  0xda   :  { %v316_v4 = vmax.f32 %v298_v2, 0.0 }
  0xdb   :  { %v309_v5 = vmax.f32 %v280_v3, 0.0 }
  0xdc   :  { %333 = vst.msk [vmem:[%s721_s3 + $0x70] sm:$0xff] %vm318_vm1, %v316_v4 }
  0xdd   :  { %326 = vst.msk [vmem:[%s721_s3 + $0x38] sm:$0xff] %vm318_vm1, %v309_v5  ;;  %v250_v6 = vpop.f32.mrf.mxu2 }
  0xde   :  { %v251_v7 = vadd.f32 %v636_v61, %v250_v6 }
  0xe0   :  { %v300_v9 = vadd.f32 %v299_v8, %v251_v7 }
  0xe2   :  { %v317_v10 = vmax.f32 %v300_v9, 0.0 }
  0xe4   :  { %334 = vst.msk [vmem:[%s721_s3 + $0x78] sm:$0xff] %vm318_vm1, %v317_v10 }

// kernel: phdnet_forward.43
= control target key start
LH: loop header
LB: loop body
LE: loop exit
PB: predicated region body
PF: predicated region fallthrough
CT: control target
= control target key end

     0   :  { %vm112_vm0 = vcmask 1040384   ;;  %vm87_vm1 = vcmask 146432   ;;  %vm469_vm3 = vcmask 130048   ;;  %s967_s1 = inlined_call_operand.vmem [shape: bf16[18,16], index: 1, kind: input, shape index: {}]   ;;  %s968_s2 = inlined_call_operand.vmem [shape: f32[1,16], index: 2, kind: input, shape index: {}]   ;;  %s969_s0 = inlined_call_operand.vmem [shape: bf16[128,18], index: 0, kind: input, shape index: {}]   ;;  %s970_s3 = inlined_call_operand.vmem [shape: f32[128,16], index: 3, kind: output, shape index: {}]  }
   0x1   :  { %v33_v0 = vld [vmem:[%s967_s1 + $0x8] sm:$0x1]  ;;  %v558_v4 = vld [vmem:[%s967_s1] sm:$0xff]  ;;  %v552_v6 = vld [vmem:[%s969_s0 + $0x10] sm:$0xff] }
   0x2   :  { %v83_v1 = vunpack.c.l.b16 %v33_v0  ;;  %v550_v5 = vld [vmem:[%s969_s0] sm:$0xff]  ;;  %v556_v8 = vld [vmem:[%s969_s0 + $0x30] sm:$0xff]  ;;  %v551_v9 = vld [vmem:[%s969_s0 + $0x8] sm:$0xff] }
   0x3   :  { %v554_v7 = vld [vmem:[%s969_s0 + $0x20] sm:$0xff]  ;;  %v553_v10 = vld [vmem:[%s969_s0 + $0x18] sm:$0xff]  ;;  %v555_v11 = vld [vmem:[%s969_s0 + $0x28] sm:$0xff] }
   0x4   :  { %v85_v2 = vpack.c.b16 %v83_v1, %v83_v1  ;;  %v557_v12 = vld [vmem:[%s969_s0 + $0x38] sm:$0xff]  ;;  %v691_v13 = vld [vmem:[%s968_s2] ss:$0 sm:$0xff] }
   0x6   :  { %v114_v3 = vsel %vm112_vm0, %v85_v2, 0 }
   0x7   :  { %122 = vmatpush.bf16.msra.mxu0 %v114_v3  ;;  %559 = vmatpush.bf16.msra.mxu1 %v114_v3 }
   0x8   :  { %560 = vmatpush.bf16.msra.mxu2 %v114_v3  ;;  %561 = vmatpush.bf16.msra.mxu3 %v114_v3 }
   0xb   :  { %123 = vmatpush.bf16.msra.mxu0 %v558_v4  ;;  %562 = vmatpush.bf16.msra.mxu1 %v558_v4 }
   0xc   :  { %563 = vmatpush.bf16.msra.mxu2 %v558_v4  ;;  %564 = vmatpush.bf16.msra.mxu3 %v558_v4 }
   0xe   :  { %526 = vmatmul.msk.bf16.vlgmr.msra.gmra.mxu0 %vm87_vm1, %v550_v5  ;;  %528 = vmatmul.msk.bf16.vlgmr.msra.gmra.mxu1 %vm87_vm1, %v552_v6 }
   0xf   :  { %530 = vmatmul.msk.bf16.vlgmr.msra.gmra.mxu2 %vm87_vm1, %v554_v7  ;;  %532 = vmatmul.msk.bf16.vlgmr.msra.gmra.mxu3 %vm87_vm1, %v556_v8 }
  0x1e   :  { %527 = vmatmul.msk.bf16.gmra.mxu0 %vm87_vm1, %v551_v9  ;;  %529 = vmatmul.msk.bf16.gmra.mxu1 %vm87_vm1, %v553_v10 }
  0x1f   :  { %531 = vmatmul.msk.bf16.gmra.mxu2 %vm87_vm1, %v555_v11  ;;  %533 = vmatmul.msk.bf16.gmra.mxu3 %vm87_vm1, %v557_v12 }
  0x8b   :  { %v125_v14 = vpop.f32.mrf.mxu0  ;;  %v135_v15 = vpop.f32.mrf.mxu1 }
  0x8c   :  { %v126_v16 = vadd.f32 %v691_v13, %v125_v14  ;;  %v136_v17 = vadd.f32 %v691_v13, %v135_v15 }
  0x8e   :  { %v534_v18 = vmul.f32 -1.442695, %v126_v16  ;;  %v538_v19 = vmul.f32 -1.442695, %v136_v17 }
  0x90   :  { %566 = vpow2.f32 %v534_v18 }
  0x91   :  { %568 = vpow2.f32 %v538_v19 }
  0x92   :  { %v145_v20 = vpop.f32.mrf.mxu2  ;;  %v155_v21 = vpop.f32.mrf.mxu3 }
  0x93   :  { %v146_v22 = vadd.f32 %v691_v13, %v145_v20  ;;  %v156_v23 = vadd.f32 %v691_v13, %v155_v21  ;;  %v127_v24 = vpop.f32.mrf.mxu0  ;;  %v137_v25 = vpop.f32.mrf.mxu1 }
  0x94   :  { %v128_v26 = vadd.f32 %v691_v13, %v127_v24  ;;  %v138_v27 = vadd.f32 %v691_v13, %v137_v25 }
  0x95   :  { %v542_v28 = vmul.f32 -1.442695, %v146_v22  ;;  %v546_v29 = vmul.f32 -1.442695, %v156_v23 }
  0x96   :  { %v567_v30 = vpop.eup %566  ;;  %v535_v33 = vmul.f32 -1.442695, %v128_v26  ;;  %v539_v35 = vmul.f32 -1.442695, %v138_v27 }
  0x97   :  { %v569_v31 = vpop.eup %568  ;;  %v699_v32 = vadd.f32 1.0, %v567_v30  ;;  %570 = vpow2.f32 %v542_v28 }
  0x98   :  { %v701_v34 = vadd.f32 1.0, %v569_v31  ;;  %572 = vpow2.f32 %v546_v29 }
  0x99   :  { %574 = vrcp.f32 %v699_v32  ;;  %v238_v39 = vand.u32 2147483647, %v699_v32  ;;  %v240_v40 = vand.u32 2147483648, %v699_v32  ;;  %vm234_vm2 = vweird.f32 %v699_v32 }
  0x9a   :  { %576 = vrcp.f32 %v701_v34  ;;  %v147_v36 = vpop.f32.mrf.mxu2  ;;  %v157_v37 = vpop.f32.mrf.mxu3  ;;  %v298_v43 = vand.u32 2147483647, %v701_v34  ;;  %v300_v47 = vand.u32 2147483648, %v701_v34  ;;  %vm294_vm4 = vweird.f32 %v701_v34 }
  0x9b   :  { %578 = vpow2.f32 %v535_v33  ;;  %v148_v38 = vadd.f32 %v691_v13, %v147_v36  ;;  %v130_v41 = vpop.f32.mrf.mxu0  ;;  %v158_v45 = vadd.f32 %v691_v13, %v157_v37  ;;  %v140_v52 = vpop.f32.mrf.mxu1  ;;  %vm719_vm5 = vcmp.eq.f32.partialorder %v238_v39, 8.507059e+37 }
  0x9c   :  { %580 = vpow2.f32 %v539_v35  ;;  %v131_v51 = vadd.f32 %v691_v13, %v130_v41  ;;  %v241_v56 = vor.u32 1.1754944e-38, %v240_v40  ;;  %vm725_vm6 = vcmp.eq.f32.partialorder %v298_v43, 8.507059e+37 }
  0x9d   :  { %v571_v42 = vpop.eup %570  ;;  %v543_v44 = vmul.f32 -1.442695, %v148_v38  ;;  %v547_v60 = vmul.f32 -1.442695, %v158_v45  ;;  %v301_v63 = vor.u32 1.1754944e-38, %v300_v47  ;;  %v141_v0 = vadd.f32 %v691_v13, %v140_v52 }
  0x9e   :  { %v573_v46 = vpop.eup %572  ;;  %v711_v48 = vadd.f32 1.0, %v571_v42  ;;  %v536_v3 = vmul.f32 -1.442695, %v131_v51 }
  0x9f   :  { %v575_v49 = vpop.eup %574  ;;  %v715_v50 = vadd.f32 1.0, %v573_v46  ;;  %v740_v14 = vmul.f32 -1.442695, %v141_v0 }
  0xa0   :  { %v577_v53 = vpop.eup %576  ;;  %v230_v54 = vmul.f32 %v575_v49, %v699_v32  ;;  %582 = vrcp.f32 %v711_v48  ;;  %vm235_vm7 = vweird.f32 %v575_v49  ;;  %v358_v2 = vand.u32 2147483647, %v711_v48 }
  0xa1   :  { %v579_v57 = vpop.eup %578  ;;  %v290_v58 = vmul.f32 %v577_v53, %v701_v34  ;;  %584 = vpow2.f32 %v543_v44  ;;  %v360_v5 = vand.u32 2147483648, %v711_v48  ;;  %vm295_vm8 = vweird.f32 %v577_v53  ;;  %vm236_vm9 = vmor %vm234_vm2, %vm235_vm7 }
  0xa2   :  { %v581_v61 = vpop.eup %580  ;;  %v231_v62 = vsub.f32 1.0, %v230_v54  ;;  %586 = vrcp.f32 %v715_v50  ;;  %v733_v6 = vadd.f32 1.0, %v579_v57  ;;  %v418_v9 = vand.u32 2147483647, %v715_v50  ;;  %v150_v18 = vpop.f32.mrf.mxu2  ;;  %vm296_vm12 = vmor %vm294_vm4, %vm295_vm8 }
  0xa3   :  { %v291_v1 = vsub.f32 1.0, %v290_v58  ;;  %v735_v7 = vadd.f32 1.0, %v581_v61  ;;  %588 = vpow2.f32 %v547_v60  ;;  %v420_v12 = vand.u32 2147483648, %v715_v50  ;;  %v160_v45 = vpop.f32.mrf.mxu3  ;;  %v132_v0 = vpop.f32.mrf.mxu0 }
  0xa4   :  { %v232_v4 = vmul.f32 %v575_v49, %v231_v62  ;;  %590 = vrcp.f32 %v733_v6  ;;  %vm354_vm10 = vweird.f32 %v711_v48  ;;  %vm414_vm11 = vweird.f32 %v715_v50 }
  0xa5   :  { %v292_v8 = vmul.f32 %v577_v53, %v291_v1  ;;  %vm751_vm13 = vcmp.eq.f32.partialorder %v358_v2, 8.507059e+37  ;;  %v361_v22 = vor.u32 1.1754944e-38, %v360_v5  ;;  %592 = vrcp.f32 %v735_v7 }
  0xa6   :  { %v583_v10 = vpop.eup %582  ;;  %v233_v11 = vadd.f32 %v575_v49, %v232_v4  ;;  %vm759_vm14 = vcmp.eq.f32.partialorder %v418_v9, 8.507059e+37  ;;  %v421_v29 = vor.u32 1.1754944e-38, %v420_v12  ;;  %v253_v30 = vand.u32 2147483647, %v733_v6 }
  0xa7   :  { %v585_v15 = vpop.eup %584  ;;  %v293_v16 = vadd.f32 %v577_v53, %v292_v8  ;;  %v350_v17 = vmul.f32 %v583_v10, %v711_v48  ;;  %v151_v31 = vadd.f32 %v691_v13, %v150_v18  ;;  %vm355_vm15 = vweird.f32 %v583_v10  ;;  %v142_v18 = vpop.f32.mrf.mxu1 }
  0xa8   :  { %v587_v19 = vpop.eup %586  ;;  %v237_v20 = vsel %vm236_vm9, %v575_v49, %v233_v11  ;;  %v775_v35 = vadd.f32 1.0, %v585_v15  ;;  %vm249_vm1 = vweird.f32 %v733_v6  ;;  %v255_v37 = vand.u32 2147483648, %v733_v6  ;;  %vm356_vm2 = vmor %vm354_vm10, %vm355_vm15 }
  0xa9   :  { %v242_v23 = vsel %vm719_vm5, %v241_v56, %v237_v20  ;;  %v297_v24 = vsel %vm296_vm12, %v577_v53, %v293_v16  ;;  %v351_v25 = vsub.f32 1.0, %v350_v17  ;;  %v410_v26 = vmul.f32 %v587_v19, %v715_v50  ;;  %v589_v32 = vpop.eup %588 }
  0xaa   :  { %470 = vst.msk [vmem:[%s970_s3] sm:$0xff] %vm469_vm3, %v242_v23  ;;  %v302_v28 = vsel %vm725_vm6, %v301_v63, %v297_v24  ;;  %v591_v36 = vpop.eup %590  ;;  %vm415_vm0 = vweird.f32 %v587_v19  ;;  %594 = vpow2.f32 %v536_v3  ;;  %v780_v41 = vadd.f32 1.0, %v589_v32 }
  0xab   :  { %474 = vst.msk [vmem:[%s970_s3 + $0x20] sm:$0xff] %vm469_vm3, %v302_v28  ;;  %v352_v33 = vmul.f32 %v583_v10, %v351_v25  ;;  %v411_v34 = vsub.f32 1.0, %v410_v26  ;;  %v245_v40 = vmul.f32 %v591_v36, %v733_v6  ;;  %v593_v42 = vpop.eup %592  ;;  %vm784_vm4 = vcmp.eq.f32.partialorder %v253_v30, 8.507059e+37  ;;  %vm416_vm6 = vmor %vm414_vm11, %vm415_vm0 }
  0xac   :  { %vm309_vm5 = vweird.f32 %v735_v7  ;;  %v313_v44 = vand.u32 2147483647, %v735_v7  ;;  %596 = vrcp.f32 %v775_v35  ;;  %v305_v51 = vmul.f32 %v593_v42, %v735_v7 }
  0xad   :  { %v353_v38 = vadd.f32 %v583_v10, %v352_v33  ;;  %v412_v39 = vmul.f32 %v587_v19, %v411_v34  ;;  %v246_v49 = vsub.f32 1.0, %v245_v40  ;;  %vm250_vm7 = vweird.f32 %v591_v36 }
  0xae   :  { %v315_v52 = vand.u32 2147483648, %v735_v7  ;;  %v373_v53 = vand.u32 2147483647, %v775_v35  ;;  %v306_v56 = vsub.f32 1.0, %v305_v51  ;;  %598 = vrcp.f32 %v780_v41  ;;  %vm251_vm10 = vmor %vm249_vm1, %vm250_vm7  ;;  %v152_v7 = vpop.f32.mrf.mxu2 }
  0xaf   :  { %v357_v46 = vsel %vm356_vm2, %v583_v10, %v353_v38  ;;  %v413_v47 = vadd.f32 %v587_v19, %v412_v39  ;;  %v247_v55 = vmul.f32 %v591_v36, %v246_v49  ;;  %v256_v58 = vor.u32 1.1754944e-38, %v255_v37 }
  0xb0   :  { %v362_v48 = vsel %vm751_vm13, %v361_v22, %v357_v46  ;;  %v595_v57 = vpop.eup %594  ;;  %vm806_vm8 = vcmp.eq.f32.partialorder %v313_v44, 8.507059e+37  ;;  %v375_v60 = vand.u32 2147483648, %v775_v35  ;;  %v307_v62 = vmul.f32 %v593_v42, %v306_v56  ;;  %v162_v22 = vpop.f32.mrf.mxu3 }
  0xb1   :  { %478 = vst.msk [vmem:[%s970_s3 + $0x40] sm:$0xff] %vm469_vm3, %v362_v48  ;;  %v417_v54 = vsel %vm416_vm6, %v587_v19, %v413_v47  ;;  %v248_v61 = vadd.f32 %v591_v36, %v247_v55  ;;  %vm310_vm9 = vweird.f32 %v593_v42  ;;  %v815_v63 = vadd.f32 1.0, %v595_v57 }
  0xb2   :  { %v422_v50 = vsel %vm759_vm14, %v421_v29, %v417_v54  ;;  %v597_v1 = vpop.eup %596  ;;  %v316_v2 = vor.u32 1.1754944e-38, %v315_v52  ;;  %vm369_vm11 = vweird.f32 %v775_v35  ;;  %600 = vpow2.f32 %v740_v14  ;;  %vm311_vm13 = vmor %vm309_vm5, %vm310_vm9 }
  0xb3   :  { %482 = vst.msk [vmem:[%s970_s3 + $0x60] sm:$0xff] %vm469_vm3, %v422_v50  ;;  %v544_v3 = vmul.f32 -1.442695, %v151_v31  ;;  %v252_v4 = vsel %vm251_vm10, %v591_v36, %v248_v61  ;;  %v308_v5 = vadd.f32 %v593_v42, %v307_v62  ;;  %v365_v8 = vmul.f32 %v597_v1, %v775_v35 }
  0xb4   :  { %vm823_vm12 = vcmp.eq.f32.partialorder %v373_v53, 8.507059e+37  ;;  %v161_v10 = vadd.f32 %v691_v13, %v160_v45  ;;  %v257_v6 = vsel %vm784_vm4, %v256_v58, %v252_v4  ;;  %v376_v11 = vor.u32 1.1754944e-38, %v375_v60  ;;  %v599_v14 = vpop.eup %598 }
  0xb5   :  { %602 = vrcp.f32 %v815_v63  ;;  %v133_v12 = vadd.f32 %v691_v13, %v132_v0  ;;  %471 = vst.msk [vmem:[%s970_s3 + $0x8] sm:$0xff] %vm469_vm3, %v257_v6  ;;  %v312_v15 = vsel %vm311_vm13, %v593_v42, %v308_v5  ;;  %v366_v16 = vsub.f32 1.0, %v365_v8 }
  0xb6   :  { %vm429_vm14 = vweird.f32 %v780_v41  ;;  %v433_v17 = vand.u32 2147483647, %v780_v41  ;;  %v317_v19 = vsel %vm806_vm8, %v316_v2, %v312_v15  ;;  %v425_v20 = vmul.f32 %v599_v14, %v780_v41 }
  0xb7   :  { %v435_v21 = vand.u32 2147483648, %v780_v41  ;;  %604 = vpow2.f32 %v544_v3  ;;  %475 = vst.msk [vmem:[%s970_s3 + $0x28] sm:$0xff] %vm469_vm3, %v317_v19  ;;  %v367_v23 = vmul.f32 %v597_v1, %v366_v16  ;;  %vm370_vm15 = vweird.f32 %v597_v1 }
  0xb8   :  { %vm430_vm0 = vweird.f32 %v599_v14  ;;  %v548_v24 = vmul.f32 -1.442695, %v161_v10  ;;  %v601_v25 = vpop.eup %600  ;;  %v426_v26 = vsub.f32 1.0, %v425_v20  ;;  %v537_v27 = vmul.f32 -1.442695, %v133_v12  ;;  %vm371_vm1 = vmor %vm369_vm11, %vm370_vm15 }
  0xb9   :  { %v143_v28 = vadd.f32 %v691_v13, %v142_v18  ;;  %v153_v29 = vadd.f32 %v691_v13, %v152_v7  ;;  %v368_v30 = vadd.f32 %v597_v1, %v367_v23  ;;  %v851_v31 = vadd.f32 1.0, %v601_v25  ;;  %vm431_vm5 = vmor %vm429_vm14, %vm430_vm0 }
  0xba   :  { %606 = vpow2.f32 %v548_v24  ;;  %v163_v32 = vadd.f32 %v691_v13, %v162_v22  ;;  %v427_v34 = vmul.f32 %v599_v14, %v426_v26  ;;  %vm856_vm2 = vcmp.eq.f32.partialorder %v433_v17, 8.507059e+37 }
  0xbb   :  { %v603_v33 = vpop.eup %602  ;;  %608 = vpow2.f32 %v537_v27  ;;  %v541_v36 = vmul.f32 -1.442695, %v143_v28  ;;  %v545_v37 = vmul.f32 -1.442695, %v153_v29  ;;  %v372_v38 = vsel %vm371_vm1, %v597_v1, %v368_v30 }
  0xbc   :  { %v260_v40 = vmul.f32 %v603_v33, %v815_v63  ;;  %610 = vrcp.f32 %v851_v31  ;;  %v377_v13 = vsel %vm823_vm12, %v376_v11, %v372_v38  ;;  %v428_v43 = vadd.f32 %v599_v14, %v427_v34 }
  0xbd   :  { %v605_v42 = vpop.eup %604  ;;  %v436_v35 = vor.u32 1.1754944e-38, %v435_v21  ;;  %vm264_vm4 = vweird.f32 %v815_v63  ;;  %479 = vst.msk [vmem:[%s970_s3 + $0x48] sm:$0xff] %vm469_vm3, %v377_v13  ;;  %v268_v45 = vand.u32 2147483647, %v815_v63  ;;  %612 = vpow2.f32 %v541_v36 }
  0xbe   :  { %v261_v44 = vsub.f32 1.0, %v260_v40  ;;  %v873_v46 = vadd.f32 1.0, %v605_v42  ;;  %v432_v47 = vsel %vm431_vm5, %v599_v14, %v428_v43  ;;  %v270_v49 = vand.u32 2147483648, %v815_v63 }
  0xbf   :  { %614 = vpow2.f32 %v545_v37  ;;  %v549_v51 = vmul.f32 -1.442695, %v163_v32  ;;  %v437_v52 = vsel %vm856_vm2, %v436_v35, %v432_v47  ;;  %vm265_vm6 = vweird.f32 %v603_v33 }
  0xc0   :  { %v607_v48 = vpop.eup %606  ;;  %v262_v53 = vmul.f32 %v603_v33, %v261_v44  ;;  %616 = vrcp.f32 %v873_v46  ;;  %483 = vst.msk [vmem:[%s970_s3 + $0x68] sm:$0xff] %vm469_vm3, %v437_v52  ;;  %vm266_vm7 = vmor %vm264_vm4, %vm265_vm6  ;;  %v271_v50 = vor.u32 1.1754944e-38, %v270_v49  ;;  %vm269_vm8 = vcmp.eq.f32.partialorder %v268_v45, 8.507059e+37 }
  0xc1   :  { %v609_v41 = vpop.eup %608  ;;  %v883_v54 = vadd.f32 1.0, %v607_v48  ;;  %618 = vpow2.f32 %v549_v51  ;;  %v328_v1 = vand.u32 2147483647, %v851_v31  ;;  %v330_v63 = vand.u32 2147483648, %v851_v31 }
  0xc2   :  { %v611_v55 = vpop.eup %610  ;;  %v263_v56 = vadd.f32 %v603_v33, %v262_v53  ;;  %v885_v57 = vadd.f32 1.0, %v609_v41  ;;  %vm324_vm9 = vweird.f32 %v851_v31  ;;  %v388_v8 = vand.u32 2147483647, %v873_v46 }
  0xc3   :  { %v320_v58 = vmul.f32 %v611_v55, %v851_v31  ;;  %v613_v59 = vpop.eup %612  ;;  %620 = vrcp.f32 %v883_v54  ;;  %vm325_vm10 = vweird.f32 %v611_v55  ;;  %vm329_vm11 = vcmp.eq.f32.partialorder %v328_v1, 8.507059e+37 }
  0xc4   :  { %v267_v60 = vsel %vm266_vm7, %v603_v33, %v263_v56  ;;  %622 = vrcp.f32 %v885_v57  ;;  %v901_v9 = vadd.f32 1.0, %v613_v59  ;;  %vm326_vm12 = vmor %vm324_vm9, %vm325_vm10  ;;  %v331_v14 = vor.u32 1.1754944e-38, %v330_v63 }
  0xc5   :  { %v615_v61 = vpop.eup %614  ;;  %v272_v62 = vsel %vm269_vm8, %v271_v50, %v267_v60  ;;  %v321_v0 = vsub.f32 1.0, %v320_v58  ;;  %v390_v15 = vand.u32 2147483648, %v873_v46  ;;  %vm384_vm14 = vweird.f32 %v873_v46 }
  0xc6   :  { %v617_v2 = vpop.eup %616  ;;  %472 = vst.msk [vmem:[%s970_s3 + $0x10] sm:$0xff] %vm469_vm3, %v272_v62  ;;  %v903_v11 = vadd.f32 1.0, %v615_v61  ;;  %624 = vrcp.f32 %v901_v9  ;;  %vm911_vm15 = vcmp.eq.f32.partialorder %v388_v8, 8.507059e+37  ;;  %v448_v25 = vand.u32 2147483647, %v883_v54 }
  0xc7   :  { %v322_v3 = vmul.f32 %v611_v55, %v321_v0  ;;  %v380_v4 = vmul.f32 %v617_v2, %v873_v46  ;;  %v619_v5 = vpop.eup %618  ;;  %vm385_vm13 = vweird.f32 %v617_v2  ;;  %v391_v26 = vor.u32 1.1754944e-38, %v390_v15 }
  0xc8   :  { %v908_v19 = vadd.f32 1.0, %v619_v5  ;;  %626 = vrcp.f32 %v903_v11  ;;  %vm386_vm0 = vmor %vm384_vm14, %vm385_vm13  ;;  %v450_v27 = vand.u32 2147483648, %v883_v54  ;;  %v285_v29 = vand.u32 2147483648, %v885_v57 }
  0xc9   :  { %v323_v10 = vadd.f32 %v611_v55, %v322_v3  ;;  %v381_v6 = vsub.f32 1.0, %v380_v4  ;;  %v621_v12 = vpop.eup %620  ;;  %v283_v36 = vand.u32 2147483647, %v885_v57  ;;  %vm444_vm4 = vweird.f32 %v883_v54 }
  0xca   :  { %v623_v16 = vpop.eup %622  ;;  %v440_v7 = vmul.f32 %v621_v12, %v883_v54  ;;  %vm445_vm1 = vweird.f32 %v621_v12  ;;  %628 = vrcp.f32 %v908_v19  ;;  %vm449_vm5 = vcmp.eq.f32.partialorder %v448_v25, 8.507059e+37 }
  0xcb   :  { %v327_v17 = vsel %vm326_vm12, %v611_v55, %v323_v10  ;;  %v382_v18 = vmul.f32 %v617_v2, %v381_v6  ;;  %v275_v22 = vmul.f32 %v623_v16, %v885_v57  ;;  %vm280_vm2 = vweird.f32 %v623_v16  ;;  %vm446_vm6 = vmor %vm444_vm4, %vm445_vm1 }
  0xcc   :  { %v332_v20 = vsel %vm329_vm11, %v331_v14, %v327_v17  ;;  %v441_v24 = vsub.f32 1.0, %v440_v7  ;;  %v625_v32 = vpop.eup %624  ;;  %v451_v39 = vor.u32 1.1754944e-38, %v450_v27  ;;  %vm279_vm7 = vweird.f32 %v885_v57 }
  0xcd   :  { %476 = vst.msk [vmem:[%s970_s3 + $0x30] sm:$0xff] %vm469_vm3, %v332_v20  ;;  %v383_v23 = vadd.f32 %v617_v2, %v382_v18  ;;  %v276_v28 = vsub.f32 1.0, %v275_v22  ;;  %v335_v38 = vmul.f32 %v625_v32, %v901_v9  ;;  %v286_v42 = vor.u32 1.1754944e-38, %v285_v29  ;;  %vm281_vm8 = vmor %vm279_vm7, %vm280_vm2 }
  0xce   :  { %v442_v31 = vmul.f32 %v621_v12, %v441_v24  ;;  %v627_v13 = vpop.eup %626  ;;  %v343_v44 = vand.u32 2147483647, %v901_v9  ;;  %v345_v45 = vand.u32 2147483648, %v901_v9  ;;  %vm284_vm9 = vcmp.eq.f32.partialorder %v283_v36, 8.507059e+37 }
  0xcf   :  { %v387_v30 = vsel %vm386_vm0, %v617_v2, %v383_v23  ;;  %v277_v34 = vmul.f32 %v623_v16, %v276_v28  ;;  %v336_v35 = vsub.f32 1.0, %v335_v38  ;;  %v395_v49 = vmul.f32 %v627_v13, %v903_v11 }
  0xd0   :  { %v392_v33 = vsel %vm911_vm15, %v391_v26, %v387_v30  ;;  %v443_v37 = vadd.f32 %v621_v12, %v442_v31  ;;  %v629_v51 = vpop.eup %628  ;;  %vm340_vm10 = vweird.f32 %v625_v32  ;;  %vm339_vm11 = vweird.f32 %v901_v9 }
  0xd1   :  { %480 = vst.msk [vmem:[%s970_s3 + $0x50] sm:$0xff] %vm469_vm3, %v392_v33  ;;  %v278_v40 = vadd.f32 %v623_v16, %v277_v34  ;;  %v337_v52 = vmul.f32 %v625_v32, %v336_v35  ;;  %v396_v53 = vsub.f32 1.0, %v395_v49  ;;  %v455_v41 = vmul.f32 %v629_v51, %v908_v19  ;;  %vm341_vm13 = vmor %vm339_vm11, %vm340_vm10 }
  0xd2   :  { %v447_v43 = vsel %vm446_vm6, %v621_v12, %v443_v37  ;;  %vm344_vm12 = vcmp.eq.f32.partialorder %v343_v44, 8.507059e+37  ;;  %v346_v55 = vor.u32 1.1754944e-38, %v345_v45  ;;  %v405_v56 = vand.u32 2147483648, %v903_v11 }
  0xd3   :  { %v452_v46 = vsel %vm449_vm5, %v451_v39, %v447_v43  ;;  %v282_v47 = vsel %vm281_vm8, %v623_v16, %v278_v40  ;;  %v338_v54 = vadd.f32 %v625_v32, %v337_v52  ;;  %v397_v57 = vmul.f32 %v627_v13, %v396_v53 }
  0xd4   :  { %484 = vst.msk [vmem:[%s970_s3 + $0x70] sm:$0xff] %vm469_vm3, %v452_v46  ;;  %v287_v48 = vsel %vm284_vm9, %v286_v42, %v282_v47  ;;  %vm400_vm14 = vweird.f32 %v627_v13  ;;  %v403_v50 = vand.u32 2147483647, %v903_v11  ;;  %v456_v58 = vsub.f32 1.0, %v455_v41 }
  0xd5   :  { %473 = vst.msk [vmem:[%s970_s3 + $0x18] sm:$0xff] %vm469_vm3, %v287_v48  ;;  %v342_v59 = vsel %vm341_vm13, %v625_v32, %v338_v54  ;;  %vm399_vm15 = vweird.f32 %v903_v11  ;;  %v463_v60 = vand.u32 2147483647, %v908_v19  ;;  %v465_v61 = vand.u32 2147483648, %v908_v19 }
  0xd6   :  { %v347_v62 = vsel %vm344_vm12, %v346_v55, %v342_v59  ;;  %v398_v0 = vadd.f32 %v627_v13, %v397_v57  ;;  %v457_v1 = vmul.f32 %v629_v51, %v456_v58  ;;  %vm460_vm0 = vweird.f32 %v629_v51  ;;  %vm401_vm1 = vmor %vm399_vm15, %vm400_vm14 }
  0xd7   :  { %477 = vst.msk [vmem:[%s970_s3 + $0x38] sm:$0xff] %vm469_vm3, %v347_v62  ;;  %v406_v2 = vor.u32 1.1754944e-38, %v405_v56  ;;  %vm404_vm2 = vcmp.eq.f32.partialorder %v403_v50, 8.507059e+37  ;;  %vm459_vm4 = vweird.f32 %v908_v19  ;;  %v466_v5 = vor.u32 1.1754944e-38, %v465_v61 }
  0xd8   :  { %v402_v63 = vsel %vm401_vm1, %v627_v13, %v398_v0  ;;  %v458_v3 = vadd.f32 %v629_v51, %v457_v1  ;;  %vm461_vm5 = vmor %vm459_vm4, %vm460_vm0  ;;  %vm464_vm6 = vcmp.eq.f32.partialorder %v463_v60, 8.507059e+37 }
  0xd9   :  { %v407_v4 = vsel %vm404_vm2, %v406_v2, %v402_v63 }
  0xda   :  { %481 = vst.msk [vmem:[%s970_s3 + $0x58] sm:$0xff] %vm469_vm3, %v407_v4  ;;  %v462_v8 = vsel %vm461_vm5, %v629_v51, %v458_v3 }
  0xdb   :  { %v467_v9 = vsel %vm464_vm6, %v466_v5, %v462_v8 }
  0xdc   :  { %485 = vst.msk [vmem:[%s970_s3 + $0x78] sm:$0xff] %vm469_vm3, %v467_v9 }

// kernel: phdnet_forward.44
= control target key start
LH: loop header
LB: loop body
LE: loop exit
PB: predicated region body
PF: predicated region fallthrough
CT: control target
= control target key end

     0   :  { %vm51_vm0 = vcmask 130048   ;;  %vm125_vm1 = vcmask 261120   ;;  %s309_s1 = inlined_call_operand.vmem [shape: bf16[16,32], index: 1, kind: input, shape index: {}]   ;;  %s310_s0 = inlined_call_operand.vmem [shape: f32[128,16], index: 0, kind: input, shape index: {}]   ;;  %s311_s2 = inlined_call_operand.vmem [shape: f32[1,32], index: 2, kind: input, shape index: {}]   ;;  %s312_s3 = inlined_call_operand.vmem [shape: f32[128,32], index: 3, kind: output, shape index: {}]  }
   0x1   :  { %v158_v0 = vld [vmem:[%s309_s1] sm:$0xff]  ;;  %v16_v2 = vld [vmem:[%s310_s0 + $0x8] sm:$0xff]  ;;  %v17_v13 = vld [vmem:[%s310_s0 + $0x10] sm:$0xff] }
   0x2   :  { %v15_v1 = vld [vmem:[%s310_s0] sm:$0xff]  ;;  %v20_v5 = vld [vmem:[%s310_s0 + $0x28] sm:$0xff]  ;;  %83 = vmatpush.bf16.msra.mxu0 %v158_v0  ;;  %159 = vmatpush.bf16.msra.mxu1 %v158_v0  ;;  %v18_v14 = vld [vmem:[%s310_s0 + $0x18] sm:$0xff] }
   0x3   :  { %v31_v3 = vpack.c.bf16 %v16_v2, %v15_v1  ;;  %v19_v4 = vld [vmem:[%s310_s0 + $0x20] sm:$0xff]  ;;  %v24_v8 = vld [vmem:[%s310_s0 + $0x48] sm:$0xff]  ;;  %160 = vmatpush.bf16.msra.mxu2 %v158_v0  ;;  %161 = vmatpush.bf16.msra.mxu3 %v158_v0  ;;  %v21_v15 = vld [vmem:[%s310_s0 + $0x30] sm:$0xff]  ;;  %v32_v21 = vpack.c.bf16 %v18_v14, %v17_v13 }
   0x4   :  { %v23_v6 = vld [vmem:[%s310_s0 + $0x40] sm:$0xff]  ;;  %v33_v7 = vpack.c.bf16 %v20_v5, %v19_v4  ;;  %v28_v10 = vld [vmem:[%s310_s0 + $0x68] sm:$0xff]  ;;  %v22_v16 = vld [vmem:[%s310_s0 + $0x38] sm:$0xff] }
   0x5   :  { %v27_v9 = vld [vmem:[%s310_s0 + $0x60] sm:$0xff]  ;;  %v35_v11 = vpack.c.bf16 %v24_v8, %v23_v6  ;;  %150 = vmatmul.msk.bf16.vlgmr.msra.gmra.mxu0 %vm51_vm0, %v31_v3  ;;  %v25_v17 = vld [vmem:[%s310_s0 + $0x50] sm:$0xff]  ;;  %v26_v18 = vld [vmem:[%s310_s0 + $0x58] sm:$0xff]  ;;  %v34_v22 = vpack.c.bf16 %v22_v16, %v21_v15 }
   0x6   :  { %v37_v12 = vpack.c.bf16 %v28_v10, %v27_v9  ;;  %152 = vmatmul.msk.bf16.vlgmr.msra.gmra.mxu1 %vm51_vm0, %v33_v7  ;;  %v29_v19 = vld [vmem:[%s310_s0 + $0x70] sm:$0xff]  ;;  %v30_v20 = vld [vmem:[%s310_s0 + $0x78] sm:$0xff]  ;;  %v36_v23 = vpack.c.bf16 %v26_v18, %v25_v17  ;;  %v162_v25 = vld [vmem:[%s311_s2] ss:$0 sm:$0xff] }
   0x7   :  { %154 = vmatmul.msk.bf16.vlgmr.msra.gmra.mxu2 %vm51_vm0, %v35_v11  ;;  %v38_v24 = vpack.c.bf16 %v30_v20, %v29_v19 }
   0x8   :  { %156 = vmatmul.msk.bf16.vlgmr.msra.gmra.mxu3 %vm51_vm0, %v37_v12 }
  0x15   :  { %151 = vmatmul.msk.bf16.gmra.mxu0 %vm51_vm0, %v32_v21 }
  0x16   :  { %153 = vmatmul.msk.bf16.gmra.mxu1 %vm51_vm0, %v34_v22 }
  0x17   :  { %155 = vmatmul.msk.bf16.gmra.mxu2 %vm51_vm0, %v36_v23 }
  0x18   :  { %157 = vmatmul.msk.bf16.gmra.mxu3 %vm51_vm0, %v38_v24 }
  0x82   :  { %v85_v26 = vpop.f32.mrf.mxu0 }
  0x83   :  { %v95_v27 = vpop.f32.mrf.mxu1  ;;  %v86_v28 = vadd.f32 %v162_v25, %v85_v26 }
  0x84   :  { %v96_v29 = vadd.f32 %v162_v25, %v95_v27 }
  0x85   :  { %126 = vst.msk [vmem:[%s312_s3] sm:$0xff] %vm125_vm1, %v86_v28 }
  0x86   :  { %130 = vst.msk [vmem:[%s312_s3 + $0x20] sm:$0xff] %vm125_vm1, %v96_v29 }
  0x8a   :  { %v105_v30 = vpop.f32.mrf.mxu2  ;;  %v87_v34 = vpop.f32.mrf.mxu0 }
  0x8b   :  { %v115_v31 = vpop.f32.mrf.mxu3  ;;  %v106_v32 = vadd.f32 %v162_v25, %v105_v30  ;;  %v97_v35 = vpop.f32.mrf.mxu1  ;;  %v88_v36 = vadd.f32 %v162_v25, %v87_v34 }
  0x8c   :  { %v116_v33 = vadd.f32 %v162_v25, %v115_v31  ;;  %v98_v37 = vadd.f32 %v162_v25, %v97_v35 }
  0x8d   :  { %134 = vst.msk [vmem:[%s312_s3 + $0x40] sm:$0xff] %vm125_vm1, %v106_v32 }
  0x8e   :  { %138 = vst.msk [vmem:[%s312_s3 + $0x60] sm:$0xff] %vm125_vm1, %v116_v33 }
  0x8f   :  { %127 = vst.msk [vmem:[%s312_s3 + $0x8] sm:$0xff] %vm125_vm1, %v88_v36 }
  0x90   :  { %131 = vst.msk [vmem:[%s312_s3 + $0x28] sm:$0xff] %vm125_vm1, %v98_v37 }
  0x92   :  { %v107_v38 = vpop.f32.mrf.mxu2  ;;  %v90_v42 = vpop.f32.mrf.mxu0 }
  0x93   :  { %v117_v39 = vpop.f32.mrf.mxu3  ;;  %v108_v40 = vadd.f32 %v162_v25, %v107_v38  ;;  %v100_v43 = vpop.f32.mrf.mxu1  ;;  %v91_v44 = vadd.f32 %v162_v25, %v90_v42 }
  0x94   :  { %v118_v41 = vadd.f32 %v162_v25, %v117_v39  ;;  %v101_v45 = vadd.f32 %v162_v25, %v100_v43 }
  0x95   :  { %135 = vst.msk [vmem:[%s312_s3 + $0x48] sm:$0xff] %vm125_vm1, %v108_v40 }
  0x96   :  { %139 = vst.msk [vmem:[%s312_s3 + $0x68] sm:$0xff] %vm125_vm1, %v118_v41 }
  0x97   :  { %128 = vst.msk [vmem:[%s312_s3 + $0x10] sm:$0xff] %vm125_vm1, %v91_v44 }
  0x98   :  { %132 = vst.msk [vmem:[%s312_s3 + $0x30] sm:$0xff] %vm125_vm1, %v101_v45 }
  0x9a   :  { %v110_v46 = vpop.f32.mrf.mxu2  ;;  %v92_v50 = vpop.f32.mrf.mxu0 }
  0x9b   :  { %v120_v47 = vpop.f32.mrf.mxu3  ;;  %v111_v48 = vadd.f32 %v162_v25, %v110_v46  ;;  %v102_v51 = vpop.f32.mrf.mxu1  ;;  %v93_v52 = vadd.f32 %v162_v25, %v92_v50 }
  0x9c   :  { %v121_v49 = vadd.f32 %v162_v25, %v120_v47  ;;  %v103_v53 = vadd.f32 %v162_v25, %v102_v51 }
  0x9d   :  { %136 = vst.msk [vmem:[%s312_s3 + $0x50] sm:$0xff] %vm125_vm1, %v111_v48 }
  0x9e   :  { %140 = vst.msk [vmem:[%s312_s3 + $0x70] sm:$0xff] %vm125_vm1, %v121_v49 }
  0x9f   :  { %129 = vst.msk [vmem:[%s312_s3 + $0x18] sm:$0xff] %vm125_vm1, %v93_v52 }
  0xa0   :  { %133 = vst.msk [vmem:[%s312_s3 + $0x38] sm:$0xff] %vm125_vm1, %v103_v53 }
  0xa2   :  { %v112_v54 = vpop.f32.mrf.mxu2 }
  0xa3   :  { %v122_v55 = vpop.f32.mrf.mxu3  ;;  %v113_v56 = vadd.f32 %v162_v25, %v112_v54 }
  0xa4   :  { %v123_v57 = vadd.f32 %v162_v25, %v122_v55 }
  0xa5   :  { %137 = vst.msk [vmem:[%s312_s3 + $0x58] sm:$0xff] %vm125_vm1, %v113_v56 }
  0xa6   :  { %141 = vst.msk [vmem:[%s312_s3 + $0x78] sm:$0xff] %vm125_vm1, %v123_v57 }

// kernel: sub.163
= control target key start
LH: loop header
LB: loop body
LE: loop exit
PB: predicated region body
PF: predicated region fallthrough
CT: control target
= control target key end

     0   :  { %3 = vsyncpa [#allocation1], 0  ;;  %s187_s3 = smov 128   ;;  %s188_s4 = smov 8   ;;  %s279_s0 = inlined_call_operand.vmem [shape: f32[2,16,16,3], index: 0, kind: input, shape index: {}]   ;;  %s280_s1 = inlined_call_operand.vmem [shape: f32[2,16,16,3], index: 1, kind: input, shape index: {}]   ;;  %s281_s2 = inlined_call_operand.hbm [shape: f32[2,16,16,3], index: 2, kind: output, shape index: {}]  }
   0x1   :  { %v4_v0 = vld [vmem:[%s279_s0] sm:$0xff]  ;;  %v135_v3 = vld [vmem:[%s279_s0 + $0x30] sm:$0xff]  ;;  %v145_v17 = vld [vmem:[%s279_s0 + $0x8] sm:$0xff]  ;;  %s125_s2 = sshll.u32 %s281_s2, 4  ;;  %s126_s2 = int_to_ptr.hbm [resolvable:$true] %s125_s2 }
   0x2   :  { %v5_v1 = vld [vmem:[%s280_s1] sm:$0xff]  ;;  %v136_v4 = vld [vmem:[%s280_s1 + $0x30] sm:$0xff]  ;;  %v146_v18 = vld [vmem:[%s280_s1 + $0x8] sm:$0xff] }
   0x3   :  { %v8_v2 = vsub.f32 %v4_v0, %v5_v1  ;;  %v137_v5 = vld [vmem:[%s279_s0 + $0x10] sm:$0xff]  ;;  %v17_v6 = vsub.f32 %v135_v3, %v136_v4  ;;  %v139_v8 = vld [vmem:[%s279_s0 + $0x40] sm:$0xff]  ;;  %v67_v20 = vsub.f32 %v145_v17, %v146_v18  ;;  %v147_v21 = vld [vmem:[%s279_s0 + $0x38] sm:$0xff] }
   0x4   :  { %v138_v7 = vld [vmem:[%s280_s1 + $0x10] sm:$0xff]  ;;  %v140_v9 = vld [vmem:[%s280_s1 + $0x40] sm:$0xff]  ;;  %v148_v22 = vld [vmem:[%s280_s1 + $0x38] sm:$0xff] }
   0x5   :  { %10 = vst [vmem:[#allocation0] sm:$0xff] %v8_v2  ;;  %v27_v10 = vsub.f32 %v137_v5, %v138_v7  ;;  %v37_v11 = vsub.f32 %v139_v8, %v140_v9  ;;  %v141_v12 = vld [vmem:[%s279_s0 + $0x20] sm:$0xff]  ;;  %v143_v14 = vld [vmem:[%s279_s0 + $0x50] sm:$0xff]  ;;  %v149_v23 = vld [vmem:[%s279_s0 + $0x18] sm:$0xff]  ;;  %v77_v24 = vsub.f32 %v147_v21, %v148_v22 }
   0x6   :  { %v142_v13 = vld [vmem:[%s280_s1 + $0x20] sm:$0xff]  ;;  %20 = vst [vmem:[#allocation0 + $0x30] sm:$0xff] %v17_v6  ;;  %v144_v16 = vld [vmem:[%s280_s1 + $0x50] sm:$0xff]  ;;  %v150_v25 = vld [vmem:[%s280_s1 + $0x18] sm:$0xff] }
   0x7   :  { %v47_v15 = vsub.f32 %v141_v12, %v142_v13  ;;  %30 = vst [vmem:[#allocation0 + $0x10] sm:$0xff] %v27_v10  ;;  %v57_v19 = vsub.f32 %v143_v14, %v144_v16  ;;  %v151_v26 = vld [vmem:[%s279_s0 + $0x48] sm:$0xff]  ;;  %v87_v28 = vsub.f32 %v149_v23, %v150_v25  ;;  %v155_v31 = vld [vmem:[%s279_s0 + $0x58] sm:$0xff] }
   0x8   :  { %40 = vst [vmem:[#allocation0 + $0x40] sm:$0xff] %v37_v11  ;;  %v152_v27 = vld [vmem:[%s280_s1 + $0x48] sm:$0xff]  ;;  %v156_v33 = vld [vmem:[%s280_s1 + $0x58] sm:$0xff] }
   0x9   :  { %50 = vst [vmem:[#allocation0 + $0x20] sm:$0xff] %v47_v15  ;;  %v153_v29 = vld [vmem:[%s279_s0 + $0x28] sm:$0xff]  ;;  %v97_v32 = vsub.f32 %v151_v26, %v152_v27  ;;  %v117_v35 = vsub.f32 %v155_v31, %v156_v33 }
   0xa   :  { %v154_v30 = vld [vmem:[%s280_s1 + $0x28] sm:$0xff]  ;;  %60 = vst [vmem:[#allocation0 + $0x50] sm:$0xff] %v57_v19  ;;  %s186_s1 = smov [#allocation0]  }
   0xb   :  { %s123_s28 = sshll.u32 %s186_s1, 4  ;;  %70 = vst [vmem:[#allocation0 + $0x8] sm:$0xff] %v67_v20  ;;  %v107_v34 = vsub.f32 %v153_v29, %v154_v30  ;;  %s124_s28 = int_to_ptr.vmem [resolvable:$true] %s123_s28 }
   0xc   :  { %80 = vst [vmem:[#allocation0 + $0x38] sm:$0xff] %v77_v24 }
   0xd   :  { %90 = vst [vmem:[#allocation0 + $0x18] sm:$0xff] %v87_v28 }
   0xe   :  { %100 = vst [vmem:[#allocation0 + $0x48] sm:$0xff] %v97_v32 }
   0xf   :  { %110 = vst [vmem:[#allocation0 + $0x28] sm:$0xff] %v107_v34 }
  0x10   :  { %120 = vst [vmem:[#allocation0 + $0x58] sm:$0xff] %v117_v35 }
  0x11   :  { %131 = dma.vmem_to_hbm [thread:$0]  %s124_s28, 1536, %s126_s2, [#allocation1], %s187_s3, %s187_s3, %s188_s4  }
  0x12   :  { %184 = dma.done.wait [#allocation1], 1536  }
  0x13   :  { %185 = vsyncadd [#allocation1], 4294965760 }
  0x14   :  { %134 = vsyncpa [#allocation1], 1 }

// kernel: phdnet_forward.51
= control target key start
LH: loop header
LB: loop body
LE: loop exit
PB: predicated region body
PF: predicated region fallthrough
CT: control target
= control target key end

     0   :  { %s737_s12 = smov 0   ;;  %s910_s0 = inlined_call_operand.vmem [shape: bf16[512,72], index: 0, kind: input, shape index: {}]   ;;  %s911_s1 = inlined_call_operand.vmem [shape: bf16[72,3], index: 1, kind: input, shape index: {}]   ;;  %s912_s2 = inlined_call_operand.vmem [shape: f32[1,3], index: 2, kind: input, shape index: {}]   ;;  %s913_s3 = inlined_call_operand.vmem [shape: f32[512,3], index: 3, kind: output, shape index: {}]  }
   0x1 LB: > { %s558_s13 = sadd.s32 4294967295, %s715_s12   ;;  %p562_p0 = scmp.ge.s32.totalorder %s715_s12, 1  ;;  %s715_s12 = sphi %s737_s12, %s13_s12  }
   0x2   : > { %p138_p1 = scmp.lt.s32.totalorder %s715_s12, 3 }
   0x4   : > { %p139_p2 = pnand %p562_p0, %p138_p1 }
   0x5   : > { %s563_s16 = sshll.u32 (!%p139_p2), %s558_s13, 5 }
   0x6   : > { %142 = sbr.rel (%p139_p2) target bundleno = 229 (0xe5), region = 32  ;;  %p163_p3 = scmp.lt.s32.totalorder (!%p139_p2), %s563_s16, 63 }
   0xb   : > { %v215_v0 = vld [vmem:[%s911_s1 + $0x20] sm:$0xf]  ;;  %vm376_vm0 = vcmask 1043456   ;;  %v684_v4 = vld [vmem:[%s911_s1 + $0x18] sm:$0xff]  ;;  %v683_v5 = vld [vmem:[%s911_s1 + $0x10] sm:$0xff]  ;;  %s915_s16 = smov (!%p163_p3, %s563_s16), 63 }
   0xc   : > { %v317_v1 = vunpack.c.l.b16 %v215_v0  ;;  %v682_v6 = vld [vmem:[%s911_s1 + $0x8] sm:$0xff]  ;;  %s564_s23 = sshll.u32 %s915_s16, 2  ;;  %v681_v7 = vld [vmem:[%s911_s1] sm:$0xff]  ;;  %vm327_vm1 = vcmask 588800   ;;  %s566_s29 = sshll.u32 %s915_s16, 3  ;;  %vm469_vm2 = vcmask 23552  }
   0xd   : > { %s766_s28 = scalar_lea.vmem %s910_s0, %s564_s23  ;;  %v804_v24 = vld [vmem:[%s912_s2] ss:$0 sm:$0xff]  ;;  %s809_s7 = scalar_lea.vmem %s913_s3, %s566_s29 }
   0xe   : > { %v322_v2 = vpack.c.b16 %v317_v1, %v317_v1  ;;  %v665_v8 = vld [vmem:[%s766_s28] sm:$0xff]  ;;  %v666_v12 = vld [vmem:[%s766_s28 + $0x8] sm:$0xff]  ;;  %v667_v16 = vld [vmem:[%s766_s28 + $0x10] sm:$0xff] }
   0xf   : > { %v669_v9 = vld [vmem:[%s766_s28 + $0x20] sm:$0xff]  ;;  %v670_v13 = vld [vmem:[%s766_s28 + $0x28] sm:$0xff]  ;;  %v671_v17 = vld [vmem:[%s766_s28 + $0x30] sm:$0xff] }
  0x10   : > { %v378_v3 = vsel %vm376_vm0, %v322_v2, 0  ;;  %v673_v10 = vld [vmem:[%s766_s28 + $0x40] sm:$0xff]  ;;  %v674_v14 = vld [vmem:[%s766_s28 + $0x48] sm:$0xff]  ;;  %v675_v18 = vld [vmem:[%s766_s28 + $0x50] sm:$0xff] }
  0x11   : > { %383 = vmatpush.bf16.msra.mxu0 %v378_v3  ;;  %685 = vmatpush.bf16.msra.mxu1 %v378_v3  ;;  %v677_v11 = vld [vmem:[%s766_s28 + $0x60] sm:$0xff]  ;;  %v678_v15 = vld [vmem:[%s766_s28 + $0x68] sm:$0xff]  ;;  %v679_v19 = vld [vmem:[%s766_s28 + $0x70] sm:$0xff] }
  0x12   : > { %686 = vmatpush.bf16.msra.mxu2 %v378_v3  ;;  %687 = vmatpush.bf16.msra.mxu3 %v378_v3  ;;  %v668_v20 = vld [vmem:[%s766_s28 + $0x18] sm:$0xff] }
  0x13   : > { %v672_v21 = vld [vmem:[%s766_s28 + $0x38] sm:$0xff] }
  0x14   : > { %v676_v22 = vld [vmem:[%s766_s28 + $0x58] sm:$0xff] }
  0x15   : > { %384 = vmatpush.bf16.msra.mxu0 %v684_v4  ;;  %688 = vmatpush.bf16.msra.mxu1 %v684_v4  ;;  %v680_v23 = vld [vmem:[%s766_s28 + $0x78] sm:$0xff] }
  0x16   : > { %689 = vmatpush.bf16.msra.mxu2 %v684_v4  ;;  %690 = vmatpush.bf16.msra.mxu3 %v684_v4 }
  0x19   : > { %385 = vmatpush.bf16.msra.mxu0 %v683_v5  ;;  %691 = vmatpush.bf16.msra.mxu1 %v683_v5 }
  0x1a   : > { %692 = vmatpush.bf16.msra.mxu2 %v683_v5  ;;  %693 = vmatpush.bf16.msra.mxu3 %v683_v5 }
  0x1d   : > { %386 = vmatpush.bf16.msra.mxu0 %v682_v6  ;;  %694 = vmatpush.bf16.msra.mxu1 %v682_v6 }
  0x1e   : > { %695 = vmatpush.bf16.msra.mxu2 %v682_v6  ;;  %696 = vmatpush.bf16.msra.mxu3 %v682_v6 }
  0x21   : > { %387 = vmatpush.bf16.msra.mxu0 %v681_v7  ;;  %697 = vmatpush.bf16.msra.mxu1 %v681_v7 }
  0x22   : > { %698 = vmatpush.bf16.msra.mxu2 %v681_v7  ;;  %699 = vmatpush.bf16.msra.mxu3 %v681_v7 }
  0x24   : > { %647 = vmatmul.msk.bf16.vlgmr.msra.gmra.mxu0 %vm327_vm1, %v665_v8  ;;  %651 = vmatmul.msk.bf16.vlgmr.msra.gmra.mxu1 %vm327_vm1, %v669_v9 }
  0x25   : > { %655 = vmatmul.msk.bf16.vlgmr.msra.gmra.mxu2 %vm327_vm1, %v673_v10  ;;  %659 = vmatmul.msk.bf16.vlgmr.msra.gmra.mxu3 %vm327_vm1, %v677_v11 }
  0x34   : > { %648 = vmatmul.msk.bf16.gmra.mxu0 %vm327_vm1, %v666_v12  ;;  %652 = vmatmul.msk.bf16.gmra.mxu1 %vm327_vm1, %v670_v13 }
  0x35   : > { %656 = vmatmul.msk.bf16.gmra.mxu2 %vm327_vm1, %v674_v14  ;;  %660 = vmatmul.msk.bf16.gmra.mxu3 %vm327_vm1, %v678_v15 }
  0x44   : > { %649 = vmatmul.msk.bf16.gmra.mxu0 %vm327_vm1, %v667_v16  ;;  %653 = vmatmul.msk.bf16.gmra.mxu1 %vm327_vm1, %v671_v17 }
  0x45   : > { %657 = vmatmul.msk.bf16.gmra.mxu2 %vm327_vm1, %v675_v18  ;;  %661 = vmatmul.msk.bf16.gmra.mxu3 %vm327_vm1, %v679_v19 }
  0x54   : > { %650 = vmatmul.msk.bf16.gmra.mxu0 %vm327_vm1, %v668_v20  ;;  %654 = vmatmul.msk.bf16.gmra.mxu1 %vm327_vm1, %v672_v21 }
  0x55   : > { %658 = vmatmul.msk.bf16.gmra.mxu2 %vm327_vm1, %v676_v22  ;;  %662 = vmatmul.msk.bf16.gmra.mxu3 %vm327_vm1, %v680_v23 }
  0xa1   : > { %v389_v25 = vpop.f32.mrf.mxu0  ;;  %v409_v26 = vpop.f32.mrf.mxu1 }
  0xa2   : > { %v390_v27 = vadd.f32 %v804_v24, %v389_v25  ;;  %v410_v28 = vadd.f32 %v804_v24, %v409_v26 }
  0xa4   : > { %470 = vst.msk [vmem:[%s809_s7] sm:$0xff] %vm469_vm2, %v390_v27 }
  0xa5   : > { %478 = vst.msk [vmem:[%s809_s7 + $0x40] sm:$0xff] %vm469_vm2, %v410_v28 }
  0xa8   : > { %v429_v29 = vpop.f32.mrf.mxu2  ;;  %v449_v30 = vpop.f32.mrf.mxu3 }
  0xa9   : > { %v430_v31 = vadd.f32 %v804_v24, %v429_v29  ;;  %v450_v32 = vadd.f32 %v804_v24, %v449_v30  ;;  %v391_v33 = vpop.f32.mrf.mxu0  ;;  %v411_v34 = vpop.f32.mrf.mxu1 }
  0xaa   : > { %v392_v35 = vadd.f32 %v804_v24, %v391_v33  ;;  %v412_v36 = vadd.f32 %v804_v24, %v411_v34 }
  0xab   : > { %486 = vst.msk [vmem:[%s809_s7 + $0x80] sm:$0xff] %vm469_vm2, %v430_v31 }
  0xac   : > { %494 = vst.msk [vmem:[%s809_s7 + $0xc0] sm:$0xff] %vm469_vm2, %v450_v32 }
  0xad   : > { %471 = vst.msk [vmem:[%s809_s7 + $0x8] sm:$0xff] %vm469_vm2, %v392_v35 }
  0xae   : > { %479 = vst.msk [vmem:[%s809_s7 + $0x48] sm:$0xff] %vm469_vm2, %v412_v36 }
  0xb0   : > { %v431_v37 = vpop.f32.mrf.mxu2  ;;  %v451_v38 = vpop.f32.mrf.mxu3 }
  0xb1   : > { %v432_v39 = vadd.f32 %v804_v24, %v431_v37  ;;  %v452_v40 = vadd.f32 %v804_v24, %v451_v38  ;;  %v394_v41 = vpop.f32.mrf.mxu0  ;;  %v414_v42 = vpop.f32.mrf.mxu1 }
  0xb2   : > { %v395_v43 = vadd.f32 %v804_v24, %v394_v41  ;;  %v415_v44 = vadd.f32 %v804_v24, %v414_v42 }
  0xb3   : > { %487 = vst.msk [vmem:[%s809_s7 + $0x88] sm:$0xff] %vm469_vm2, %v432_v39 }
  0xb4   : > { %495 = vst.msk [vmem:[%s809_s7 + $0xc8] sm:$0xff] %vm469_vm2, %v452_v40 }
  0xb5   : > { %472 = vst.msk [vmem:[%s809_s7 + $0x10] sm:$0xff] %vm469_vm2, %v395_v43 }
  0xb6   : > { %480 = vst.msk [vmem:[%s809_s7 + $0x50] sm:$0xff] %vm469_vm2, %v415_v44 }
  0xb8   : > { %v434_v45 = vpop.f32.mrf.mxu2  ;;  %v454_v46 = vpop.f32.mrf.mxu3 }
  0xb9   : > { %v435_v47 = vadd.f32 %v804_v24, %v434_v45  ;;  %v455_v48 = vadd.f32 %v804_v24, %v454_v46  ;;  %v396_v49 = vpop.f32.mrf.mxu0  ;;  %v416_v50 = vpop.f32.mrf.mxu1 }
  0xba   : > { %v397_v51 = vadd.f32 %v804_v24, %v396_v49  ;;  %v417_v52 = vadd.f32 %v804_v24, %v416_v50 }
  0xbb   : > { %488 = vst.msk [vmem:[%s809_s7 + $0x90] sm:$0xff] %vm469_vm2, %v435_v47 }
  0xbc   : > { %496 = vst.msk [vmem:[%s809_s7 + $0xd0] sm:$0xff] %vm469_vm2, %v455_v48 }
  0xbd   : > { %473 = vst.msk [vmem:[%s809_s7 + $0x18] sm:$0xff] %vm469_vm2, %v397_v51 }
  0xbe   : > { %481 = vst.msk [vmem:[%s809_s7 + $0x58] sm:$0xff] %vm469_vm2, %v417_v52 }
  0xc0   : > { %v436_v53 = vpop.f32.mrf.mxu2  ;;  %v456_v54 = vpop.f32.mrf.mxu3 }
  0xc1   : > { %v437_v55 = vadd.f32 %v804_v24, %v436_v53  ;;  %v457_v56 = vadd.f32 %v804_v24, %v456_v54  ;;  %v399_v57 = vpop.f32.mrf.mxu0  ;;  %v419_v58 = vpop.f32.mrf.mxu1 }
  0xc2   : > { %v400_v59 = vadd.f32 %v804_v24, %v399_v57  ;;  %v420_v60 = vadd.f32 %v804_v24, %v419_v58 }
  0xc3   : > { %489 = vst.msk [vmem:[%s809_s7 + $0x98] sm:$0xff] %vm469_vm2, %v437_v55 }
  0xc4   : > { %497 = vst.msk [vmem:[%s809_s7 + $0xd8] sm:$0xff] %vm469_vm2, %v457_v56 }
  0xc5   : > { %474 = vst.msk [vmem:[%s809_s7 + $0x20] sm:$0xff] %vm469_vm2, %v400_v59 }
  0xc6   : > { %482 = vst.msk [vmem:[%s809_s7 + $0x60] sm:$0xff] %vm469_vm2, %v420_v60 }
  0xc8   : > { %v439_v61 = vpop.f32.mrf.mxu2  ;;  %v459_v62 = vpop.f32.mrf.mxu3 }
  0xc9   : > { %v440_v63 = vadd.f32 %v804_v24, %v439_v61  ;;  %v460_v0 = vadd.f32 %v804_v24, %v459_v62  ;;  %v401_v1 = vpop.f32.mrf.mxu0  ;;  %v421_v2 = vpop.f32.mrf.mxu1 }
  0xca   : > { %v402_v3 = vadd.f32 %v804_v24, %v401_v1  ;;  %v422_v4 = vadd.f32 %v804_v24, %v421_v2 }
  0xcb   : > { %490 = vst.msk [vmem:[%s809_s7 + $0xa0] sm:$0xff] %vm469_vm2, %v440_v63 }
  0xcc   : > { %498 = vst.msk [vmem:[%s809_s7 + $0xe0] sm:$0xff] %vm469_vm2, %v460_v0 }
  0xcd   : > { %475 = vst.msk [vmem:[%s809_s7 + $0x28] sm:$0xff] %vm469_vm2, %v402_v3 }
  0xce   : > { %483 = vst.msk [vmem:[%s809_s7 + $0x68] sm:$0xff] %vm469_vm2, %v422_v4 }
  0xd0   : > { %v441_v5 = vpop.f32.mrf.mxu2  ;;  %v461_v6 = vpop.f32.mrf.mxu3 }
  0xd1   : > { %v442_v7 = vadd.f32 %v804_v24, %v441_v5  ;;  %v462_v8 = vadd.f32 %v804_v24, %v461_v6  ;;  %v404_v9 = vpop.f32.mrf.mxu0  ;;  %v424_v10 = vpop.f32.mrf.mxu1 }
  0xd2   : > { %v405_v11 = vadd.f32 %v804_v24, %v404_v9  ;;  %v425_v12 = vadd.f32 %v804_v24, %v424_v10 }
  0xd3   : > { %491 = vst.msk [vmem:[%s809_s7 + $0xa8] sm:$0xff] %vm469_vm2, %v442_v7 }
  0xd4   : > { %499 = vst.msk [vmem:[%s809_s7 + $0xe8] sm:$0xff] %vm469_vm2, %v462_v8 }
  0xd5   : > { %476 = vst.msk [vmem:[%s809_s7 + $0x30] sm:$0xff] %vm469_vm2, %v405_v11 }
  0xd6   : > { %484 = vst.msk [vmem:[%s809_s7 + $0x70] sm:$0xff] %vm469_vm2, %v425_v12 }
  0xd8   : > { %v444_v13 = vpop.f32.mrf.mxu2  ;;  %v464_v14 = vpop.f32.mrf.mxu3 }
  0xd9   : > { %v445_v15 = vadd.f32 %v804_v24, %v444_v13  ;;  %v465_v16 = vadd.f32 %v804_v24, %v464_v14  ;;  %v406_v17 = vpop.f32.mrf.mxu0  ;;  %v426_v18 = vpop.f32.mrf.mxu1 }
  0xda   : > { %v407_v19 = vadd.f32 %v804_v24, %v406_v17  ;;  %v427_v20 = vadd.f32 %v804_v24, %v426_v18 }
  0xdb   : > { %492 = vst.msk [vmem:[%s809_s7 + $0xb0] sm:$0xff] %vm469_vm2, %v445_v15 }
  0xdc   : > { %500 = vst.msk [vmem:[%s809_s7 + $0xf0] sm:$0xff] %vm469_vm2, %v465_v16 }
  0xdd   : > { %477 = vst.msk [vmem:[%s809_s7 + $0x38] sm:$0xff] %vm469_vm2, %v407_v19 }
  0xde   : > { %485 = vst.msk [vmem:[%s809_s7 + $0x78] sm:$0xff] %vm469_vm2, %v427_v20 }
  0xe0   : > { %v446_v21 = vpop.f32.mrf.mxu2  ;;  %v466_v22 = vpop.f32.mrf.mxu3 }
  0xe1   : > { %v447_v23 = vadd.f32 %v804_v24, %v446_v21  ;;  %v467_v25 = vadd.f32 %v804_v24, %v466_v22 }
  0xe3   : > { %493 = vst.msk [vmem:[%s809_s7 + $0xb8] sm:$0xff] %vm469_vm2, %v447_v23 }
  0xe4   : > { %501 = vst.msk [vmem:[%s809_s7 + $0xf8] sm:$0xff] %vm469_vm2, %v467_v25 }
  0xe5 PF: > { %s13_s12 = sadd.s32 1, %s715_s12  }
  0xe6   : > { %p10_p4 = scmp.ge.s32.totalorder %s13_s12, 4  }
  0xe8   :  { %12 = sbr.rel (!%p10_p4) target bundleno = 1 (0x1), region = 62 }

</bundles_post_ra>
